<compile_context>
chip_gen: v6e
topology: v6e:2x2x1
jax: 0.10.0
libtpu: 0.0.40
codegen_flags: <defaults>
</compile_context>

<pallas_src>
import functools
import numpy as np
import jax
import jax.numpy as jnp
from jax.experimental import pallas as pl
from jax.experimental.pallas import tpu as pltpu

_BN_EPS = 1e-5
_HALO = 3          # left margin rows  (= max pad_left over kernel sizes {8, 5, 3, 1})
_GAP = 7           # zero rows between / after batch segments (= max pad_left + pad_right)
_ACT_DTYPE = jnp.bfloat16
_NBUF = 4          # rotating activation buffers: src, cx, cy, out


def round_up(n, m=8):
    return ((n + m - 1) // m) * m


def pad_axis(a, axis, target):
    if a.shape[axis] == target:
        return a
    pads = [(0, 0)] * a.ndim
    pads[axis] = (0, target - a.shape[axis])
    return jnp.pad(a, pads)


# ----------------------------- in-kernel helpers -----------------------------

def _conv_rows(src_ref, r0, nrows, K, w_ref, b_ref, *, relu, res=None):
    """Rows [r0, r0+nrows) of a stride-1 'same' conv read from a flat halo buffer.

    src_ref : (R, W) bf16 buffer; logical position p of batch b lives at row
              _HALO + b*(L+_GAP) + p; halo/gap/tail rows are zero, so PyTorch's
              zero-'same' padding falls out of plain row windows.
    w_ref   : (K, Cin, Cout) bf16 conv weight with the BN scale folded in.
    b_ref   : (1, Cout) f32 conv bias + BN shift folded in.
    Each tap is one MXU matmul with M = nrows (whole batch chunk at once).
    """
    cin = w_ref.shape[1]
    s0 = r0 - (K - 1) // 2            # PyTorch 'same': pad_left = (K - 1) // 2
    acc = jnp.dot(src_ref[s0:s0 + nrows, :cin], w_ref[0],
                  preferred_element_type=jnp.float32)
    for k in range(1, K):
        acc = acc + jnp.dot(src_ref[s0 + k:s0 + k + nrows, :cin], w_ref[k],
                            preferred_element_type=jnp.float32)
    acc = acc + b_ref[...]
    if res is not None:
        acc = acc + res
    return jnp.maximum(acc, 0.0) if relu else acc


def _res_block(src_ref, dst_bufs, wb, nrows, live):
    """conv(8)+BN+ReLU -> conv(5)+BN+ReLU -> conv(3)+BN+ReLU, shortcut conv(1)+BN,
    sum, ReLU (ReLU on the last main-path conv matches the reference ResBlock).
    Output lands in dst_bufs[2]; gap rows are re-zeroed so they keep acting as
    'same' padding for the next conv.  The live mask broadcast is hoisted once."""
    cx_buf, cy_buf, out_buf = dst_bufs
    wx, bx, wy, by, wz, bz, ws, bs = wb
    nf = wx.shape[2]
    live_b = None if live is None else jnp.broadcast_to(live, (nrows, nf))

    def store(buf, val):
        if live_b is not None:
            val = jnp.where(live_b, val, 0.0)
        buf[_HALO:_HALO + nrows, :nf] = val.astype(buf.dtype)

    store(cx_buf, _conv_rows(src_ref, _HALO, nrows, 8, wx, bx, relu=True))
    store(cy_buf, _conv_rows(cx_buf, _HALO, nrows, 5, wy, by, relu=True))
    cz = _conv_rows(cy_buf, _HALO, nrows, 3, wz, bz, relu=True)
    out = _conv_rows(src_ref, _HALO, nrows, 1, ws, bs, relu=True, res=cz)
    store(out_buf, out)
    return out_buf


def _prep_buffers(bufs, x_ref, live_ref, bchunk, L, nrows):
    """Zero only the rows that are never rewritten (halo + tail of every buffer,
    inter-batch gap rows of the input buffer), scatter the (bchunk, L, C) input
    into the flat halo layout of bufs[0], and load the live-row mask."""
    stride = L + _GAP
    tail = _HALO + nrows
    for buf in bufs:
        w = buf.shape[1]
        buf[0:_HALO, :] = jnp.zeros((_HALO, w), buf.dtype)
        buf[tail:tail + _GAP, :] = jnp.zeros((_GAP, w), buf.dtype)

    in_buf = bufs[0]
    cin = x_ref.shape[2]
    for b in range(bchunk):
        r = _HALO + b * stride
        in_buf[r:r + L, :cin] = x_ref[b].astype(in_buf.dtype)
        if b + 1 < bchunk:
            in_buf[r + L:r + stride, :cin] = jnp.zeros((_GAP, cin), in_buf.dtype)

    live = None if bchunk == 1 else (live_ref[...] > 0.5)     # (nrows, 1) bool
    return in_buf, live


def _run_blocks(bufs, blocks, x_ref, live_ref, bchunk, L, nrows):
    """Run three ResBlocks with 4 rotating scratch buffers (out becomes next src)."""
    cur, live = _prep_buffers(bufs, x_ref, live_ref, bchunk, L, nrows)
    free = [bufs[1], bufs[2], bufs[3]]
    for wb in blocks:
        out_buf = _res_block(cur, free, wb, nrows, live)
        free = [cur, free[0], free[1]]
        cur = out_buf
    return cur


# ------------------------------- fused kernels -------------------------------

def _encoder_kernel(*refs, bchunk, L, nclusters):
    x_ref = refs[0]
    blocks = [refs[1 + 8 * i: 9 + 8 * i] for i in range(3)]
    dw_ref, db_ref, clt_ref, csq_ref = refs[25:29]
    live_ref, pool_ref = refs[29:31]
    d1_ref, d2_ref, q_ref = refs[31:34]
    bufs = refs[34:38]

    stride = L + _GAP
    nrows = (bchunk - 1) * stride + L
    cur = _run_blocks(bufs, blocks, x_ref, live_ref, bchunk, L, nrows)

    # ---- head: AdaptiveAvgPool1d(1) + Dropout(identity) + Linear + student-t q ----
    c50p = dw_ref.shape[0]
    window = cur[_HALO:_HALO + nrows, :c50p]                  # (nrows, 56) bf16
    # Pooling as ONE MXU matmul with a precomputed {0,1} selection matrix; the
    # exact 1/L scale is applied afterwards in f32.  d1 stays in registers.
    d1 = jnp.dot(pool_ref[...], window,
                 preferred_element_type=jnp.float32) * (1.0 / L)   # (bchunk, 56)

    # TODO(synk): nn.Dropout(p=0.5) is identity at inference; no train-mode RNG drop.
    d2 = (jnp.dot(d1, dw_ref[...], preferred_element_type=jnp.float32)
          + db_ref[...])

    # dist = |d|^2 + |c|^2 - 2 d @ c^T   (MXU form; alpha = 1 so q**((alpha+1)/2)==q)
    scores = jnp.dot(d1, clt_ref[...], preferred_element_type=jnp.float32)
    dist = jnp.sum(d1 * d1, axis=1, keepdims=True) + csq_ref[...] - 2.0 * scores
    q = pl.reciprocal(1.0 + dist, approx=True)                # EUP slot
    ncp = q_ref.shape[2]
    real = jax.lax.broadcasted_iota(jnp.int32, (bchunk, ncp), 1) < nclusters
    q = jnp.where(real, q, 0.0)                               # drop padded cluster lanes
    q = q / jnp.sum(q, axis=1, keepdims=True)                 # exact normalization

    for b in range(bchunk):
        d1_ref[b] = d1[b:b + 1, :]
        d2_ref[b] = d2[b:b + 1, :]
        q_ref[b] = q[b:b + 1, :]


def _decoder_kernel(*refs, bchunk, L):
    x_ref = refs[0]
    blocks = [refs[1 + 8 * i: 9 + 8 * i] for i in range(3)]
    wc_ref, bc_ref = refs[25:27]
    live_ref = refs[27]
    c_ref = refs[28]
    bufs = refs[29:33]

    stride = L + _GAP
    nrows = (bchunk - 1) * stride + L
    cur = _run_blocks(bufs, blocks, x_ref, live_ref, bchunk, L, nrows)

    # Final Conv1dPadSame(128, inp1, 3): one conv over the whole flat window
    # (M = nrows), then scatter the live segments into the per-batch output.
    out_flat = _conv_rows(cur, _HALO, nrows, 3, wc_ref, bc_ref, relu=False)
    for b in range(bchunk):
        c_ref[b] = out_flat[b * stride:b * stride + L, :]


# ------------------------------ pallas_call glue ------------------------------

def _chunk_spec(shape, bchunk):
    blk = (bchunk,) + tuple(shape[1:])
    zeros = (0,) * (len(shape) - 1)
    return pl.BlockSpec(blk, lambda i, z=zeros: (i,) + z)


def _full_spec(shape):
    zeros = (0,) * len(shape)
    return pl.BlockSpec(tuple(shape), lambda i, z=zeros: z)


def _vmem_limit(args, out_shapes, act_rows, act_width):
    act = _NBUF * act_rows * act_width * jnp.dtype(_ACT_DTYPE).itemsize
    io = sum(int(np.prod(a.shape)) * a.dtype.itemsize for a in args)
    outs = sum(int(np.prod(s)) * 4 for s in out_shapes)
    need = act + 2 * (io + outs) + (4 << 20)
    # 48 MiB keeps headroom on v7x (64 MiB physical VMEM); v5e/v6e have 128 MiB.
    return int(min(max(need, 16 << 20), 48 << 20))


def _fused_call(kernel, chunked_args, resident_args, out_shapes, *, bchunk,
                n_steps, act_rows, act_width, static):
    args = list(chunked_args) + list(resident_args)
    in_specs = ([_chunk_spec(a.shape, bchunk) for a in chunked_args]
                + [_full_spec(a.shape) for a in resident_args])
    out_specs = tuple(_chunk_spec(s, bchunk) for s in out_shapes)
    scratch = [pltpu.VMEM((act_rows, act_width), _ACT_DTYPE) for _ in range(_NBUF)]
    return pl.pallas_call(
        functools.partial(kernel, **static),
        grid=(n_steps,),
        in_specs=in_specs,
        out_specs=out_specs,
        out_shape=tuple(jax.ShapeDtypeStruct(s, jnp.float32) for s in out_shapes),
        scratch_shapes=scratch,
        compiler_params=pltpu.CompilerParams(
            dimension_semantics=("parallel",),   # batch chunks are independent
            vmem_limit_bytes=_vmem_limit(args, out_shapes, act_rows, act_width),
        ),
    )(*args)


def _chunk_masks(bchunk, L):
    """Compile-time constants: live-row column (nrows,1) and avg-pool selection
    matrix (bchunk, nrows) for the flat halo layout of one batch chunk."""
    stride = L + _GAP
    nrows = (bchunk - 1) * stride + L
    pos = np.arange(nrows)
    live_rows = (pos % stride) < L
    live = live_rows.astype(np.float32)[:, None]
    pool = ((pos // stride)[None, :] == np.arange(bchunk)[:, None]) & live_rows[None, :]
    return jnp.asarray(live), jnp.asarray(pool.astype(np.float32), dtype=_ACT_DTYPE)


def _pick_chunk(B, L, width, act_budget=12 << 20):
    """Largest divisor of B whose rotating activation scratch fits the budget."""
    per_batch = _NBUF * (L + _GAP) * width * jnp.dtype(_ACT_DTYPE).itemsize
    cap = max(1, (act_budget - _NBUF * _HALO * width * 2) // max(per_batch, 1))
    best = 1
    for d in range(1, B + 1):
        if B % d == 0 and d <= cap:
            best = d
    return int(best)


# --------------------------------- parameters ---------------------------------

def _init_conv(key, cin, cout, K, cin_p, cout_p, with_bn):
    """PyTorch Conv1d default init; bias + inference BatchNorm folded in."""
    kw, kb = jax.random.split(key)
    bound = 1.0 / np.sqrt(cin * K)
    w = jax.random.uniform(kw, (K, cin, cout), jnp.float32, -bound, bound)
    b = jax.random.uniform(kb, (cout,), jnp.float32, -bound, bound)
    if with_bn:
        # BatchNorm1d eval, default stats: y = (x - 0) / sqrt(1 + eps) * 1 + 0
        s = 1.0 / np.sqrt(1.0 + _BN_EPS)
        w, b = w * s, b * s
    w = pad_axis(pad_axis(w, 1, cin_p), 2, cout_p).astype(jnp.bfloat16)
    b = pad_axis(b, 0, cout_p)[None, :].astype(jnp.float32)
    return w, b


def _init_res_block(key, cin, nf):
    ks = jax.random.split(key, 4)
    cin_p, nf_p = round_up(cin), round_up(nf)
    wx, bx = _init_conv(ks[0], cin, nf, 8, cin_p, nf_p, True)
    wy, by = _init_conv(ks[1], nf, nf, 5, nf_p, nf_p, True)
    wz, bz = _init_conv(ks[2], nf, nf, 3, nf_p, nf_p, True)
    ws, bs = _init_conv(ks[3], cin, nf, 1, cin_p, nf_p, True)
    return (wx, bx, wy, by, wz, bz, ws, bs)


def init_autoencoder(key, inp1, inp2, nclusters):
    ks = jax.random.split(key, 9)
    c1p = round_up(inp1)
    enc = (_init_res_block(ks[0], inp1, 64)
           + _init_res_block(ks[1], 64, 128)
           + _init_res_block(ks[2], 128, 50))
    dec = (_init_res_block(ks[3], inp1, 64)
           + _init_res_block(ks[4], 64, 128)
           + _init_res_block(ks[5], 128, 128))
    conv_w, conv_b = _init_conv(ks[6], 128, inp1, 3, 128, c1p, False)

    # dense1: Linear(50, inp2), stored as (in, out), zero-padded
    kd_w, kd_b = jax.random.split(ks[7])
    bound = 1.0 / np.sqrt(50)
    c50p, inp2_p = round_up(50), round_up(inp2)
    dw = jax.random.uniform(kd_w, (50, inp2), jnp.float32, -bound, bound)
    db = jax.random.uniform(kd_b, (inp2,), jnp.float32, -bound, bound)
    dense_w = pad_axis(pad_axis(dw, 0, c50p), 1, inp2_p)
    dense_b = pad_axis(db, 0, inp2_p)[None, :]

    # cluster_layer: xavier_normal_((nclusters, 50)); stored transposed + |c|^2
    std = np.sqrt(2.0 / (nclusters + 50))
    cl = std * jax.random.normal(ks[8], (nclusters, 50), jnp.float32)
    ncp = round_up(nclusters)
    cluster_t = pad_axis(pad_axis(cl.T, 0, c50p), 1, ncp)               # (56, NCp)
    cluster_sq = pad_axis(jnp.sum(cl * cl, axis=1), 0, ncp)[None, :]    # (1, NCp)

    return dict(enc_w=enc, dec_w=dec, conv_w=conv_w, conv_b=conv_b,
                dense_w=dense_w, dense_b=dense_b,
                cluster_t=cluster_t, cluster_sq=cluster_sq)


# ---------------------------------- forward ----------------------------------

def autoencoder_forward(params, x_ncl, inp1, inp2, nclusters, batch_chunk=None):
    B, _, L = x_ncl.shape
    c1p = round_up(inp1)
    c50p, inp2_p = params['dense_w'].shape
    ncp = params['cluster_t'].shape[1]
    width = max(128, c1p)

    if batch_chunk is None:
        batch_chunk = _pick_chunk(B, max(L, inp2), width)
    assert B % batch_chunk == 0, "batch_chunk must divide the batch size"
    n_steps = B // batch_chunk

    # NCL -> NLC, channels zero-padded to a multiple of 8
    x = pad_axis(jnp.transpose(x_ncl, (0, 2, 1)).astype(jnp.float32), 2, c1p)

    enc_live, enc_pool = _chunk_masks(batch_chunk, L)
    enc_rows = _HALO + batch_chunk * (L + _GAP)
    d1, d2, q = _fused_call(
        _encoder_kernel,
        chunked_args=[x],
        resident_args=(list(params['enc_w'])
                       + [params['dense_w'], params['dense_b'],
                          params['cluster_t'], params['cluster_sq'],
                          enc_live, enc_pool]),
        out_shapes=[(B, 1, c50p), (B, 1, inp2_p), (B, 1, ncp)],
        bchunk=batch_chunk, n_steps=n_steps, act_rows=enc_rows, act_width=width,
        static=dict(bchunk=batch_chunk, L=L, nclusters=nclusters))

    # torch d2 is (B, 1, inp2) NCL; the decoder consumes it as NLC (B, inp2, 1).
    d2_nlc = pad_axis(d2[:, 0, :inp2][..., None], 2, c1p)

    dec_live, _ = _chunk_masks(batch_chunk, inp2)
    dec_rows = _HALO + batch_chunk * (inp2 + _GAP)
    (c,) = _fused_call(
        _decoder_kernel,
        chunked_args=[d2_nlc],
        resident_args=(list(params['dec_w'])
                       + [params['conv_w'], params['conv_b'], dec_live]),
        out_shapes=[(B, inp2, c1p)],
        bchunk=batch_chunk, n_steps=n_steps, act_rows=dec_rows, act_width=width,
        static=dict(bchunk=batch_chunk, L=inp2))

    c_ncl = jnp.transpose(c[:, :, :inp1], (0, 2, 1))          # (B, inp1, inp2)
    return c_ncl, d1[:, :, :50], q[:, 0, :nclusters]


if __name__ == "__main__":
    # inp1 must be 1 for the original PyTorch forward to be shape-consistent
    # (d2 = dense1(a1) has 1 channel and feeds res_block4 which expects inp1).
    B, inp1, L, inp2, nclusters = 2, 1, 16, 16, 4

    key = jax.random.PRNGKey(0)
    kp, kx = jax.random.split(key)
    params = init_autoencoder(kp, inp1, inp2, nclusters)
    x = jax.random.normal(kx, (B, inp1, L), jnp.float32)

    fwd_c1 = jax.jit(functools.partial(autoencoder_forward, inp1=inp1, inp2=inp2,
                                       nclusters=nclusters, batch_chunk=1))
    fwd_c2 = jax.jit(functools.partial(autoencoder_forward, inp1=inp1, inp2=inp2,
                                       nclusters=nclusters, batch_chunk=2))
    c, d1, q = fwd_c1(params, x)        # grid=(2,) - exercises the chunked batch grid
    c2, d1b, q2 = fwd_c2(params, x)     # grid=(1,) - whole batch in one step
    jax.block_until_ready((c, d1, q, c2, d1b, q2))

    assert c.shape == (B, inp1, inp2)
    assert d1.shape == (B, 1, 50)
    assert q.shape == (B, nclusters)
    for t in (c, d1, q):
        assert bool(jnp.all(jnp.isfinite(t)))
    # q rows are a normalized soft-assignment and must sum to 1.
    assert bool(jnp.allclose(jnp.sum(q, axis=1), 1.0, atol=1e-5))
    # batch-chunked grid and single-step grid must agree.
    assert bool(jnp.allclose(d1, d1b, atol=1e-4, rtol=1e-4))
    assert bool(jnp.allclose(q, q2, atol=1e-4, rtol=1e-4))
    assert bool(jnp.allclose(c, c2, atol=5e-2, rtol=5e-2))
    print("KERNEL_OK")
</pallas_src>

<mosaic_0001>
module attributes {stable_mosaic.version = 11 : i64} {
  func.func @_encoder_kernel(%arg0: i32, %arg1: memref<1x16x8xf32, #tpu.memory_space<vmem>>, %arg2: memref<8x8x64xbf16, #tpu.memory_space<vmem>>, %arg3: memref<1x64xf32, #tpu.memory_space<vmem>>, %arg4: memref<5x64x64xbf16, #tpu.memory_space<vmem>>, %arg5: memref<1x64xf32, #tpu.memory_space<vmem>>, %arg6: memref<3x64x64xbf16, #tpu.memory_space<vmem>>, %arg7: memref<1x64xf32, #tpu.memory_space<vmem>>, %arg8: memref<1x8x64xbf16, #tpu.memory_space<vmem>>, %arg9: memref<1x64xf32, #tpu.memory_space<vmem>>, %arg10: memref<8x64x128xbf16, #tpu.memory_space<vmem>>, %arg11: memref<1x128xf32, #tpu.memory_space<vmem>>, %arg12: memref<5x128x128xbf16, #tpu.memory_space<vmem>>, %arg13: memref<1x128xf32, #tpu.memory_space<vmem>>, %arg14: memref<3x128x128xbf16, #tpu.memory_space<vmem>>, %arg15: memref<1x128xf32, #tpu.memory_space<vmem>>, %arg16: memref<1x64x128xbf16, #tpu.memory_space<vmem>>, %arg17: memref<1x128xf32, #tpu.memory_space<vmem>>, %arg18: memref<8x128x56xbf16, #tpu.memory_space<vmem>>, %arg19: memref<1x56xf32, #tpu.memory_space<vmem>>, %arg20: memref<5x56x56xbf16, #tpu.memory_space<vmem>>, %arg21: memref<1x56xf32, #tpu.memory_space<vmem>>, %arg22: memref<3x56x56xbf16, #tpu.memory_space<vmem>>, %arg23: memref<1x56xf32, #tpu.memory_space<vmem>>, %arg24: memref<1x128x56xbf16, #tpu.memory_space<vmem>>, %arg25: memref<1x56xf32, #tpu.memory_space<vmem>>, %arg26: memref<56x16xf32, #tpu.memory_space<vmem>>, %arg27: memref<1x16xf32, #tpu.memory_space<vmem>>, %arg28: memref<56x8xf32, #tpu.memory_space<vmem>>, %arg29: memref<1x8xf32, #tpu.memory_space<vmem>>, %arg30: memref<16x1xf32, #tpu.memory_space<vmem>>, %arg31: memref<1x16xbf16, #tpu.memory_space<vmem>>, %arg32: memref<1x1x56xf32, #tpu.memory_space<vmem>>, %arg33: memref<1x1x16xf32, #tpu.memory_space<vmem>>, %arg34: memref<1x1x8xf32, #tpu.memory_space<vmem>>, %arg35: memref<26x128xbf16, #tpu.memory_space<vmem>>, %arg36: memref<26x128xbf16, #tpu.memory_space<vmem>>, %arg37: memref<26x128xbf16, #tpu.memory_space<vmem>>, %arg38: memref<26x128xbf16, #tpu.memory_space<vmem>>) attributes {dimension_semantics = [#tpu.dimension_semantics<parallel>], iteration_bounds = array<i64: 2>, scalar_prefetch = 0 : i64, scratch_operands = 4 : i64, tpu.core_type = #tpu.core_type<tc>, window_params = [{transform_indices = @transform_0, window_bounds = array<i64: 1, 16, 8>}, {pipeline_mode = #tpu.pipeline_mode<synchronous>, transform_indices = @transform_1, window_bounds = array<i64: 8, 8, 64>}, {pipeline_mode = #tpu.pipeline_mode<synchronous>, transform_indices = @transform_2, window_bounds = array<i64: 1, 64>}, {pipeline_mode = #tpu.pipeline_mode<synchronous>, transform_indices = @transform_3, window_bounds = array<i64: 5, 64, 64>}, {pipeline_mode = #tpu.pipeline_mode<synchronous>, transform_indices = @transform_4, window_bounds = array<i64: 1, 64>}, {pipeline_mode = #tpu.pipeline_mode<synchronous>, transform_indices = @transform_5, window_bounds = array<i64: 3, 64, 64>}, {pipeline_mode = #tpu.pipeline_mode<synchronous>, transform_indices = @transform_6, window_bounds = array<i64: 1, 64>}, {pipeline_mode = #tpu.pipeline_mode<synchronous>, transform_indices = @transform_7, window_bounds = array<i64: 1, 8, 64>}, {pipeline_mode = #tpu.pipeline_mode<synchronous>, transform_indices = @transform_8, window_bounds = array<i64: 1, 64>}, {pipeline_mode = #tpu.pipeline_mode<synchronous>, transform_indices = @transform_9, window_bounds = array<i64: 8, 64, 128>}, {pipeline_mode = #tpu.pipeline_mode<synchronous>, transform_indices = @transform_10, window_bounds = array<i64: 1, 128>}, {pipeline_mode = #tpu.pipeline_mode<synchronous>, transform_indices = @transform_11, window_bounds = array<i64: 5, 128, 128>}, {pipeline_mode = #tpu.pipeline_mode<synchronous>, transform_indices = @transform_12, window_bounds = array<i64: 1, 128>}, {pipeline_mode = #tpu.pipeline_mode<synchronous>, transform_indices = @transform_13, window_bounds = array<i64: 3, 128, 128>}, {pipeline_mode = #tpu.pipeline_mode<synchronous>, transform_indices = @transform_14, window_bounds = array<i64: 1, 128>}, {pipeline_mode = #tpu.pipeline_mode<synchronous>, transform_indices = @transform_15, window_bounds = array<i64: 1, 64, 128>}, {pipeline_mode = #tpu.pipeline_mode<synchronous>, transform_indices = @transform_16, window_bounds = array<i64: 1, 128>}, {pipeline_mode = #tpu.pipeline_mode<synchronous>, transform_indices = @transform_17, window_bounds = array<i64: 8, 128, 56>}, {pipeline_mode = #tpu.pipeline_mode<synchronous>, transform_indices = @transform_18, window_bounds = array<i64: 1, 56>}, {pipeline_mode = #tpu.pipeline_mode<synchronous>, transform_indices = @transform_19, window_bounds = array<i64: 5, 56, 56>}, {pipeline_mode = #tpu.pipeline_mode<synchronous>, transform_indices = @transform_20, window_bounds = array<i64: 1, 56>}, {pipeline_mode = #tpu.pipeline_mode<synchronous>, transform_indices = @transform_21, window_bounds = array<i64: 3, 56, 56>}, {pipeline_mode = #tpu.pipeline_mode<synchronous>, transform_indices = @transform_22, window_bounds = array<i64: 1, 56>}, {pipeline_mode = #tpu.pipeline_mode<synchronous>, transform_indices = @transform_23, window_bounds = array<i64: 1, 128, 56>}, {pipeline_mode = #tpu.pipeline_mode<synchronous>, transform_indices = @transform_24, window_bounds = array<i64: 1, 56>}, {pipeline_mode = #tpu.pipeline_mode<synchronous>, transform_indices = @transform_25, window_bounds = array<i64: 56, 16>}, {pipeline_mode = #tpu.pipeline_mode<synchronous>, transform_indices = @transform_26, window_bounds = array<i64: 1, 16>}, {pipeline_mode = #tpu.pipeline_mode<synchronous>, transform_indices = @transform_27, window_bounds = array<i64: 56, 8>}, {pipeline_mode = #tpu.pipeline_mode<synchronous>, transform_indices = @transform_28, window_bounds = array<i64: 1, 8>}, {pipeline_mode = #tpu.pipeline_mode<synchronous>, transform_indices = @transform_29, window_bounds = array<i64: 16, 1>}, {pipeline_mode = #tpu.pipeline_mode<synchronous>, transform_indices = @transform_30, window_bounds = array<i64: 1, 16>}, {transform_indices = @transform_31, window_bounds = array<i64: 1, 1, 56>}, {transform_indices = @transform_32, window_bounds = array<i64: 1, 1, 16>}, {transform_indices = @transform_33, window_bounds = array<i64: 1, 1, 8>}]} {
    %cst = arith.constant 0.000000e+00 : bf16
    %0 = vector.broadcast %cst : bf16 to vector<3x128xbf16>
    %c0 = arith.constant 0 : index
    %c0_0 = arith.constant 0 : index
    %1 = vector.load %arg35[%c0, %c0_0] : memref<26x128xbf16, #tpu.memory_space<vmem>>, vector<3x128xbf16>
    tpu.vector_store %arg35[%c0, %c0_0], %0 {strides = array<i32>} : memref<26x128xbf16, #tpu.memory_space<vmem>>, vector<3x128xbf16>,
    %cst_1 = arith.constant 0.000000e+00 : bf16
    %2 = vector.broadcast %cst_1 : bf16 to vector<7x128xbf16>
    %c19 = arith.constant 19 : index
    %c0_2 = arith.constant 0 : index
    %3 = vector.load %arg35[%c19, %c0_2] : memref<26x128xbf16, #tpu.memory_space<vmem>>, vector<7x128xbf16>
    tpu.vector_store %arg35[%c19, %c0_2], %2 {strides = array<i32>} : memref<26x128xbf16, #tpu.memory_space<vmem>>, vector<7x128xbf16>,
    %cst_3 = arith.constant 0.000000e+00 : bf16
    %4 = vector.broadcast %cst_3 : bf16 to vector<3x128xbf16>
    %c0_4 = arith.constant 0 : index
    %c0_5 = arith.constant 0 : index
    %5 = vector.load %arg36[%c0_4, %c0_5] : memref<26x128xbf16, #tpu.memory_space<vmem>>, vector<3x128xbf16>
    tpu.vector_store %arg36[%c0_4, %c0_5], %4 {strides = array<i32>} : memref<26x128xbf16, #tpu.memory_space<vmem>>, vector<3x128xbf16>,
    %cst_6 = arith.constant 0.000000e+00 : bf16
    %6 = vector.broadcast %cst_6 : bf16 to vector<7x128xbf16>
    %c19_7 = arith.constant 19 : index
    %c0_8 = arith.constant 0 : index
    %7 = vector.load %arg36[%c19_7, %c0_8] : memref<26x128xbf16, #tpu.memory_space<vmem>>, vector<7x128xbf16>
    tpu.vector_store %arg36[%c19_7, %c0_8], %6 {strides = array<i32>} : memref<26x128xbf16, #tpu.memory_space<vmem>>, vector<7x128xbf16>,
    %cst_9 = arith.constant 0.000000e+00 : bf16
    %8 = vector.broadcast %cst_9 : bf16 to vector<3x128xbf16>
    %c0_10 = arith.constant 0 : index
    %c0_11 = arith.constant 0 : index
    %9 = vector.load %arg37[%c0_10, %c0_11] : memref<26x128xbf16, #tpu.memory_space<vmem>>, vector<3x128xbf16>
    tpu.vector_store %arg37[%c0_10, %c0_11], %8 {strides = array<i32>} : memref<26x128xbf16, #tpu.memory_space<vmem>>, vector<3x128xbf16>,
    %cst_12 = arith.constant 0.000000e+00 : bf16
    %10 = vector.broadcast %cst_12 : bf16 to vector<7x128xbf16>
    %c19_13 = arith.constant 19 : index
    %c0_14 = arith.constant 0 : index
    %11 = vector.load %arg37[%c19_13, %c0_14] : memref<26x128xbf16, #tpu.memory_space<vmem>>, vector<7x128xbf16>
    tpu.vector_store %arg37[%c19_13, %c0_14], %10 {strides = array<i32>} : memref<26x128xbf16, #tpu.memory_space<vmem>>, vector<7x128xbf16>,
    %cst_15 = arith.constant 0.000000e+00 : bf16
    %12 = vector.broadcast %cst_15 : bf16 to vector<3x128xbf16>
    %c0_16 = arith.constant 0 : index
    %c0_17 = arith.constant 0 : index
    %13 = vector.load %arg38[%c0_16, %c0_17] : memref<26x128xbf16, #tpu.memory_space<vmem>>, vector<3x128xbf16>
    tpu.vector_store %arg38[%c0_16, %c0_17], %12 {strides = array<i32>} : memref<26x128xbf16, #tpu.memory_space<vmem>>, vector<3x128xbf16>,
    %cst_18 = arith.constant 0.000000e+00 : bf16
    %14 = vector.broadcast %cst_18 : bf16 to vector<7x128xbf16>
    %c19_19 = arith.constant 19 : index
    %c0_20 = arith.constant 0 : index
    %15 = vector.load %arg38[%c19_19, %c0_20] : memref<26x128xbf16, #tpu.memory_space<vmem>>, vector<7x128xbf16>
    tpu.vector_store %arg38[%c19_19, %c0_20], %14 {strides = array<i32>} : memref<26x128xbf16, #tpu.memory_space<vmem>>, vector<7x128xbf16>,
    %c0_21 = arith.constant 0 : index
    %c0_22 = arith.constant 0 : index
    %c0_23 = arith.constant 0 : index
    %16 = vector.load %arg1[%c0_21, %c0_22, %c0_23] : memref<1x16x8xf32, #tpu.memory_space<vmem>>, vector<1x16x8xf32>
    %17 = vector.shape_cast %16 : vector<1x16x8xf32> to vector<16x8xf32>
    %18 = arith.truncf %17 : vector<16x8xf32> to vector<16x8xbf16>
    %c3 = arith.constant 3 : index
    %c0_24 = arith.constant 0 : index
    %19 = vector.load %arg35[%c3, %c0_24] : memref<26x128xbf16, #tpu.memory_space<vmem>>, vector<16x8xbf16>
    tpu.vector_store %arg35[%c3, %c0_24], %18 {strides = array<i32>} : memref<26x128xbf16, #tpu.memory_space<vmem>>, vector<16x8xbf16>,
    %c0_25 = arith.constant 0 : index
    %c0_26 = arith.constant 0 : index
    %20 = vector.load %arg35[%c0_25, %c0_26] : memref<26x128xbf16, #tpu.memory_space<vmem>>, vector<16x8xbf16>
    %c0_27 = arith.constant 0 : index
    %c0_28 = arith.constant 0 : index
    %c0_29 = arith.constant 0 : index
    %21 = vector.load %arg2[%c0_27, %c0_28, %c0_29] : memref<8x8x64xbf16, #tpu.memory_space<vmem>>, vector<1x8x64xbf16>
    %22 = vector.shape_cast %21 : vector<1x8x64xbf16> to vector<8x64xbf16>
    %cst_30 = arith.constant dense<0.000000e+00> : vector<16x64xf32>
    %23 = tpu.matmul %20, %22, %cst_30 {dimension_numbers = #tpu.dot_dimension_numbers<[1], [0], [0], [1], [0, 0, 1, 1], [], []>} : vector<16x8xbf16>, vector<8x64xbf16>, vector<16x64xf32> -> vector<16x64xf32>
    %c1 = arith.constant 1 : index
    %c0_31 = arith.constant 0 : index
    %24 = vector.load %arg35[%c1, %c0_31] : memref<26x128xbf16, #tpu.memory_space<vmem>>, vector<16x8xbf16>
    %c1_32 = arith.constant 1 : index
    %c0_33 = arith.constant 0 : index
    %c0_34 = arith.constant 0 : index
    %25 = vector.load %arg2[%c1_32, %c0_33, %c0_34] : memref<8x8x64xbf16, #tpu.memory_space<vmem>>, vector<1x8x64xbf16>
    %26 = vector.shape_cast %25 : vector<1x8x64xbf16> to vector<8x64xbf16>
    %cst_35 = arith.constant dense<0.000000e+00> : vector<16x64xf32>
    %27 = tpu.matmul %24, %26, %cst_35 {dimension_numbers = #tpu.dot_dimension_numbers<[1], [0], [0], [1], [0, 0, 1, 1], [], []>} : vector<16x8xbf16>, vector<8x64xbf16>, vector<16x64xf32> -> vector<16x64xf32>
    %28 = arith.addf %23, %27 : vector<16x64xf32>
    %c2 = arith.constant 2 : index
    %c0_36 = arith.constant 0 : index
    %29 = vector.load %arg35[%c2, %c0_36] : memref<26x128xbf16, #tpu.memory_space<vmem>>, vector<16x8xbf16>
    %c2_37 = arith.constant 2 : index
    %c0_38 = arith.constant 0 : index
    %c0_39 = arith.constant 0 : index
    %30 = vector.load %arg2[%c2_37, %c0_38, %c0_39] : memref<8x8x64xbf16, #tpu.memory_space<vmem>>, vector<1x8x64xbf16>
    %31 = vector.shape_cast %30 : vector<1x8x64xbf16> to vector<8x64xbf16>
    %cst_40 = arith.constant dense<0.000000e+00> : vector<16x64xf32>
    %32 = tpu.matmul %29, %31, %cst_40 {dimension_numbers = #tpu.dot_dimension_numbers<[1], [0], [0], [1], [0, 0, 1, 1], [], []>} : vector<16x8xbf16>, vector<8x64xbf16>, vector<16x64xf32> -> vector<16x64xf32>
    %33 = arith.addf %28, %32 : vector<16x64xf32>
    %c3_41 = arith.constant 3 : index
    %c0_42 = arith.constant 0 : index
    %34 = vector.load %arg35[%c3_41, %c0_42] : memref<26x128xbf16, #tpu.memory_space<vmem>>, vector<16x8xbf16>
    %c3_43 = arith.constant 3 : index
    %c0_44 = arith.constant 0 : index
    %c0_45 = arith.constant 0 : index
    %35 = vector.load %arg2[%c3_43, %c0_44, %c0_45] : memref<8x8x64xbf16, #tpu.memory_space<vmem>>, vector<1x8x64xbf16>
    %36 = vector.shape_cast %35 : vector<1x8x64xbf16> to vector<8x64xbf16>
    %cst_46 = arith.constant dense<0.000000e+00> : vector<16x64xf32>
    %37 = tpu.matmul %34, %36, %cst_46 {dimension_numbers = #tpu.dot_dimension_numbers<[1], [0], [0], [1], [0, 0, 1, 1], [], []>} : vector<16x8xbf16>, vector<8x64xbf16>, vector<16x64xf32> -> vector<16x64xf32>
    %38 = arith.addf %33, %37 : vector<16x64xf32>
    %c4 = arith.constant 4 : index
    %c0_47 = arith.constant 0 : index
    %39 = vector.load %arg35[%c4, %c0_47] : memref<26x128xbf16, #tpu.memory_space<vmem>>, vector<16x8xbf16>
    %c4_48 = arith.constant 4 : index
    %c0_49 = arith.constant 0 : index
    %c0_50 = arith.constant 0 : index
    %40 = vector.load %arg2[%c4_48, %c0_49, %c0_50] : memref<8x8x64xbf16, #tpu.memory_space<vmem>>, vector<1x8x64xbf16>
    %41 = vector.shape_cast %40 : vector<1x8x64xbf16> to vector<8x64xbf16>
    %cst_51 = arith.constant dense<0.000000e+00> : vector<16x64xf32>
    %42 = tpu.matmul %39, %41, %cst_51 {dimension_numbers = #tpu.dot_dimension_numbers<[1], [0], [0], [1], [0, 0, 1, 1], [], []>} : vector<16x8xbf16>, vector<8x64xbf16>, vector<16x64xf32> -> vector<16x64xf32>
    %43 = arith.addf %38, %42 : vector<16x64xf32>
    %c5 = arith.constant 5 : index
    %c0_52 = arith.constant 0 : index
    %44 = vector.load %arg35[%c5, %c0_52] : memref<26x128xbf16, #tpu.memory_space<vmem>>, vector<16x8xbf16>
    %c5_53 = arith.constant 5 : index
    %c0_54 = arith.constant 0 : index
    %c0_55 = arith.constant 0 : index
    %45 = vector.load %arg2[%c5_53, %c0_54, %c0_55] : memref<8x8x64xbf16, #tpu.memory_space<vmem>>, vector<1x8x64xbf16>
    %46 = vector.shape_cast %45 : vector<1x8x64xbf16> to vector<8x64xbf16>
    %cst_56 = arith.constant dense<0.000000e+00> : vector<16x64xf32>
    %47 = tpu.matmul %44, %46, %cst_56 {dimension_numbers = #tpu.dot_dimension_numbers<[1], [0], [0], [1], [0, 0, 1, 1], [], []>} : vector<16x8xbf16>, vector<8x64xbf16>, vector<16x64xf32> -> vector<16x64xf32>
    %48 = arith.addf %43, %47 : vector<16x64xf32>
    %c6 = arith.constant 6 : index
    %c0_57 = arith.constant 0 : index
    %49 = vector.load %arg35[%c6, %c0_57] : memref<26x128xbf16, #tpu.memory_space<vmem>>, vector<16x8xbf16>
    %c6_58 = arith.constant 6 : index
    %c0_59 = arith.constant 0 : index
    %c0_60 = arith.constant 0 : index
    %50 = vector.load %arg2[%c6_58, %c0_59, %c0_60] : memref<8x8x64xbf16, #tpu.memory_space<vmem>>, vector<1x8x64xbf16>
    %51 = vector.shape_cast %50 : vector<1x8x64xbf16> to vector<8x64xbf16>
    %cst_61 = arith.constant dense<0.000000e+00> : vector<16x64xf32>
    %52 = tpu.matmul %49, %51, %cst_61 {dimension_numbers = #tpu.dot_dimension_numbers<[1], [0], [0], [1], [0, 0, 1, 1], [], []>} : vector<16x8xbf16>, vector<8x64xbf16>, vector<16x64xf32> -> vector<16x64xf32>
    %53 = arith.addf %48, %52 : vector<16x64xf32>
    %c7 = arith.constant 7 : index
    %c0_62 = arith.constant 0 : index
    %54 = vector.load %arg35[%c7, %c0_62] : memref<26x128xbf16, #tpu.memory_space<vmem>>, vector<16x8xbf16>
    %c7_63 = arith.constant 7 : index
    %c0_64 = arith.constant 0 : index
    %c0_65 = arith.constant 0 : index
    %55 = vector.load %arg2[%c7_63, %c0_64, %c0_65] : memref<8x8x64xbf16, #tpu.memory_space<vmem>>, vector<1x8x64xbf16>
    %56 = vector.shape_cast %55 : vector<1x8x64xbf16> to vector<8x64xbf16>
    %cst_66 = arith.constant dense<0.000000e+00> : vector<16x64xf32>
    %57 = tpu.matmul %54, %56, %cst_66 {dimension_numbers = #tpu.dot_dimension_numbers<[1], [0], [0], [1], [0, 0, 1, 1], [], []>} : vector<16x8xbf16>, vector<8x64xbf16>, vector<16x64xf32> -> vector<16x64xf32>
    %58 = arith.addf %53, %57 : vector<16x64xf32>
    %c0_67 = arith.constant 0 : index
    %c0_68 = arith.constant 0 : index
    %59 = vector.load %arg3[%c0_67, %c0_68] : memref<1x64xf32, #tpu.memory_space<vmem>>, vector<1x64xf32>
    %60 = vector.broadcast %59 : vector<1x64xf32> to vector<16x64xf32>
    %61 = arith.addf %58, %60 : vector<16x64xf32>
    %cst_69 = arith.constant 0.000000e+00 : f32
    %62 = vector.broadcast %cst_69 : f32 to vector<16x64xf32>
    %63 = arith.maximumf %61, %62 : vector<16x64xf32>
    %64 = arith.truncf %63 : vector<16x64xf32> to vector<16x64xbf16>
    %c3_70 = arith.constant 3 : index
    %c0_71 = arith.constant 0 : index
    %65 = vector.load %arg36[%c3_70, %c0_71] : memref<26x128xbf16, #tpu.memory_space<vmem>>, vector<16x64xbf16>
    tpu.vector_store %arg36[%c3_70, %c0_71], %64 {strides = array<i32>} : memref<26x128xbf16, #tpu.memory_space<vmem>>, vector<16x64xbf16>,
    %c1_72 = arith.constant 1 : index
    %c0_73 = arith.constant 0 : index
    %66 = vector.load %arg36[%c1_72, %c0_73] : memref<26x128xbf16, #tpu.memory_space<vmem>>, vector<16x64xbf16>
    %c0_74 = arith.constant 0 : index
    %c0_75 = arith.constant 0 : index
    %c0_76 = arith.constant 0 : index
    %67 = vector.load %arg4[%c0_74, %c0_75, %c0_76] : memref<5x64x64xbf16, #tpu.memory_space<vmem>>, vector<1x64x64xbf16>
    %68 = vector.shape_cast %67 : vector<1x64x64xbf16> to vector<64x64xbf16>
    %cst_77 = arith.constant dense<0.000000e+00> : vector<16x64xf32>
    %69 = tpu.matmul %66, %68, %cst_77 {dimension_numbers = #tpu.dot_dimension_numbers<[1], [0], [0], [1], [0, 0, 1, 1], [], []>} : vector<16x64xbf16>, vector<64x64xbf16>, vector<16x64xf32> -> vector<16x64xf32>
    %c2_78 = arith.constant 2 : index
    %c0_79 = arith.constant 0 : index
    %70 = vector.load %arg36[%c2_78, %c0_79] : memref<26x128xbf16, #tpu.memory_space<vmem>>, vector<16x64xbf16>
    %c1_80 = arith.constant 1 : index
    %c0_81 = arith.constant 0 : index
    %c0_82 = arith.constant 0 : index
    %71 = vector.load %arg4[%c1_80, %c0_81, %c0_82] : memref<5x64x64xbf16, #tpu.memory_space<vmem>>, vector<1x64x64xbf16>
    %72 = vector.shape_cast %71 : vector<1x64x64xbf16> to vector<64x64xbf16>
    %cst_83 = arith.constant dense<0.000000e+00> : vector<16x64xf32>
    %73 = tpu.matmul %70, %72, %cst_83 {dimension_numbers = #tpu.dot_dimension_numbers<[1], [0], [0], [1], [0, 0, 1, 1], [], []>} : vector<16x64xbf16>, vector<64x64xbf16>, vector<16x64xf32> -> vector<16x64xf32>
    %74 = arith.addf %69, %73 : vector<16x64xf32>
    %c3_84 = arith.constant 3 : index
    %c0_85 = arith.constant 0 : index
    %75 = vector.load %arg36[%c3_84, %c0_85] : memref<26x128xbf16, #tpu.memory_space<vmem>>, vector<16x64xbf16>
    %c2_86 = arith.constant 2 : index
    %c0_87 = arith.constant 0 : index
    %c0_88 = arith.constant 0 : index
    %76 = vector.load %arg4[%c2_86, %c0_87, %c0_88] : memref<5x64x64xbf16, #tpu.memory_space<vmem>>, vector<1x64x64xbf16>
    %77 = vector.shape_cast %76 : vector<1x64x64xbf16> to vector<64x64xbf16>
    %cst_89 = arith.constant dense<0.000000e+00> : vector<16x64xf32>
    %78 = tpu.matmul %75, %77, %cst_89 {dimension_numbers = #tpu.dot_dimension_numbers<[1], [0], [0], [1], [0, 0, 1, 1], [], []>} : vector<16x64xbf16>, vector<64x64xbf16>, vector<16x64xf32> -> vector<16x64xf32>
    %79 = arith.addf %74, %78 : vector<16x64xf32>
    %c4_90 = arith.constant 4 : index
    %c0_91 = arith.constant 0 : index
    %80 = vector.load %arg36[%c4_90, %c0_91] : memref<26x128xbf16, #tpu.memory_space<vmem>>, vector<16x64xbf16>
    %c3_92 = arith.constant 3 : index
    %c0_93 = arith.constant 0 : index
    %c0_94 = arith.constant 0 : index
    %81 = vector.load %arg4[%c3_92, %c0_93, %c0_94] : memref<5x64x64xbf16, #tpu.memory_space<vmem>>, vector<1x64x64xbf16>
    %82 = vector.shape_cast %81 : vector<1x64x64xbf16> to vector<64x64xbf16>
    %cst_95 = arith.constant dense<0.000000e+00> : vector<16x64xf32>
    %83 = tpu.matmul %80, %82, %cst_95 {dimension_numbers = #tpu.dot_dimension_numbers<[1], [0], [0], [1], [0, 0, 1, 1], [], []>} : vector<16x64xbf16>, vector<64x64xbf16>, vector<16x64xf32> -> vector<16x64xf32>
    %84 = arith.addf %79, %83 : vector<16x64xf32>
    %c5_96 = arith.constant 5 : index
    %c0_97 = arith.constant 0 : index
    %85 = vector.load %arg36[%c5_96, %c0_97] : memref<26x128xbf16, #tpu.memory_space<vmem>>, vector<16x64xbf16>
    %c4_98 = arith.constant 4 : index
    %c0_99 = arith.constant 0 : index
    %c0_100 = arith.constant 0 : index
    %86 = vector.load %arg4[%c4_98, %c0_99, %c0_100] : memref<5x64x64xbf16, #tpu.memory_space<vmem>>, vector<1x64x64xbf16>
    %87 = vector.shape_cast %86 : vector<1x64x64xbf16> to vector<64x64xbf16>
    %cst_101 = arith.constant dense<0.000000e+00> : vector<16x64xf32>
    %88 = tpu.matmul %85, %87, %cst_101 {dimension_numbers = #tpu.dot_dimension_numbers<[1], [0], [0], [1], [0, 0, 1, 1], [], []>} : vector<16x64xbf16>, vector<64x64xbf16>, vector<16x64xf32> -> vector<16x64xf32>
    %89 = arith.addf %84, %88 : vector<16x64xf32>
    %c0_102 = arith.constant 0 : index
    %c0_103 = arith.constant 0 : index
    %90 = vector.load %arg5[%c0_102, %c0_103] : memref<1x64xf32, #tpu.memory_space<vmem>>, vector<1x64xf32>
    %91 = vector.broadcast %90 : vector<1x64xf32> to vector<16x64xf32>
    %92 = arith.addf %89, %91 : vector<16x64xf32>
    %cst_104 = arith.constant 0.000000e+00 : f32
    %93 = vector.broadcast %cst_104 : f32 to vector<16x64xf32>
    %94 = arith.maximumf %92, %93 : vector<16x64xf32>
    %95 = arith.truncf %94 : vector<16x64xf32> to vector<16x64xbf16>
    %c3_105 = arith.constant 3 : index
    %c0_106 = arith.constant 0 : index
    %96 = vector.load %arg37[%c3_105, %c0_106] : memref<26x128xbf16, #tpu.memory_space<vmem>>, vector<16x64xbf16>
    tpu.vector_store %arg37[%c3_105, %c0_106], %95 {strides = array<i32>} : memref<26x128xbf16, #tpu.memory_space<vmem>>, vector<16x64xbf16>,
    %c2_107 = arith.constant 2 : index
    %c0_108 = arith.constant 0 : index
    %97 = vector.load %arg37[%c2_107, %c0_108] : memref<26x128xbf16, #tpu.memory_space<vmem>>, vector<16x64xbf16>
    %c0_109 = arith.constant 0 : index
    %c0_110 = arith.constant 0 : index
    %c0_111 = arith.constant 0 : index
    %98 = vector.load %arg6[%c0_109, %c0_110, %c0_111] : memref<3x64x64xbf16, #tpu.memory_space<vmem>>, vector<1x64x64xbf16>
    %99 = vector.shape_cast %98 : vector<1x64x64xbf16> to vector<64x64xbf16>
    %cst_112 = arith.constant dense<0.000000e+00> : vector<16x64xf32>
    %100 = tpu.matmul %97, %99, %cst_112 {dimension_numbers = #tpu.dot_dimension_numbers<[1], [0], [0], [1], [0, 0, 1, 1], [], []>} : vector<16x64xbf16>, vector<64x64xbf16>, vector<16x64xf32> -> vector<16x64xf32>
    %c3_113 = arith.constant 3 : index
    %c0_114 = arith.constant 0 : index
    %101 = vector.load %arg37[%c3_113, %c0_114] : memref<26x128xbf16, #tpu.memory_space<vmem>>, vector<16x64xbf16>
    %c1_115 = arith.constant 1 : index
    %c0_116 = arith.constant 0 : index
    %c0_117 = arith.constant 0 : index
    %102 = vector.load %arg6[%c1_115, %c0_116, %c0_117] : memref<3x64x64xbf16, #tpu.memory_space<vmem>>, vector<1x64x64xbf16>
    %103 = vector.shape_cast %102 : vector<1x64x64xbf16> to vector<64x64xbf16>
    %cst_118 = arith.constant dense<0.000000e+00> : vector<16x64xf32>
    %104 = tpu.matmul %101, %103, %cst_118 {dimension_numbers = #tpu.dot_dimension_numbers<[1], [0], [0], [1], [0, 0, 1, 1], [], []>} : vector<16x64xbf16>, vector<64x64xbf16>, vector<16x64xf32> -> vector<16x64xf32>
    %105 = arith.addf %100, %104 : vector<16x64xf32>
    %c4_119 = arith.constant 4 : index
    %c0_120 = arith.constant 0 : index
    %106 = vector.load %arg37[%c4_119, %c0_120] : memref<26x128xbf16, #tpu.memory_space<vmem>>, vector<16x64xbf16>
    %c2_121 = arith.constant 2 : index
    %c0_122 = arith.constant 0 : index
    %c0_123 = arith.constant 0 : index
    %107 = vector.load %arg6[%c2_121, %c0_122, %c0_123] : memref<3x64x64xbf16, #tpu.memory_space<vmem>>, vector<1x64x64xbf16>
    %108 = vector.shape_cast %107 : vector<1x64x64xbf16> to vector<64x64xbf16>
    %cst_124 = arith.constant dense<0.000000e+00> : vector<16x64xf32>
    %109 = tpu.matmul %106, %108, %cst_124 {dimension_numbers = #tpu.dot_dimension_numbers<[1], [0], [0], [1], [0, 0, 1, 1], [], []>} : vector<16x64xbf16>, vector<64x64xbf16>, vector<16x64xf32> -> vector<16x64xf32>
    %110 = arith.addf %105, %109 : vector<16x64xf32>
    %c0_125 = arith.constant 0 : index
    %c0_126 = arith.constant 0 : index
    %111 = vector.load %arg7[%c0_125, %c0_126] : memref<1x64xf32, #tpu.memory_space<vmem>>, vector<1x64xf32>
    %112 = vector.broadcast %111 : vector<1x64xf32> to vector<16x64xf32>
    %113 = arith.addf %110, %112 : vector<16x64xf32>
    %cst_127 = arith.constant 0.000000e+00 : f32
    %114 = vector.broadcast %cst_127 : f32 to vector<16x64xf32>
    %115 = arith.maximumf %113, %114 : vector<16x64xf32>
    %c3_128 = arith.constant 3 : index
    %c0_129 = arith.constant 0 : index
    %116 = vector.load %arg35[%c3_128, %c0_129] : memref<26x128xbf16, #tpu.memory_space<vmem>>, vector<16x8xbf16>
    %c0_130 = arith.constant 0 : index
    %c0_131 = arith.constant 0 : index
    %c0_132 = arith.constant 0 : index
    %117 = vector.load %arg8[%c0_130, %c0_131, %c0_132] : memref<1x8x64xbf16, #tpu.memory_space<vmem>>, vector<1x8x64xbf16>
    %118 = vector.shape_cast %117 : vector<1x8x64xbf16> to vector<8x64xbf16>
    %cst_133 = arith.constant dense<0.000000e+00> : vector<16x64xf32>
    %119 = tpu.matmul %116, %118, %cst_133 {dimension_numbers = #tpu.dot_dimension_numbers<[1], [0], [0], [1], [0, 0, 1, 1], [], []>} : vector<16x8xbf16>, vector<8x64xbf16>, vector<16x64xf32> -> vector<16x64xf32>
    %c0_134 = arith.constant 0 : index
    %c0_135 = arith.constant 0 : index
    %120 = vector.load %arg9[%c0_134, %c0_135] : memref<1x64xf32, #tpu.memory_space<vmem>>, vector<1x64xf32>
    %121 = vector.broadcast %120 : vector<1x64xf32> to vector<16x64xf32>
    %122 = arith.addf %119, %121 : vector<16x64xf32>
    %123 = arith.addf %122, %115 : vector<16x64xf32>
    %cst_136 = arith.constant 0.000000e+00 : f32
    %124 = vector.broadcast %cst_136 : f32 to vector<16x64xf32>
    %125 = arith.maximumf %123, %124 : vector<16x64xf32>
    %126 = arith.truncf %125 : vector<16x64xf32> to vector<16x64xbf16>
    %c3_137 = arith.constant 3 : index
    %c0_138 = arith.constant 0 : index
    %127 = vector.load %arg38[%c3_137, %c0_138] : memref<26x128xbf16, #tpu.memory_space<vmem>>, vector<16x64xbf16>
    tpu.vector_store %arg38[%c3_137, %c0_138], %126 {strides = array<i32>} : memref<26x128xbf16, #tpu.memory_space<vmem>>, vector<16x64xbf16>,
    %c0_139 = arith.constant 0 : index
    %c0_140 = arith.constant 0 : index
    %128 = vector.load %arg38[%c0_139, %c0_140] : memref<26x128xbf16, #tpu.memory_space<vmem>>, vector<16x64xbf16>
    %c0_141 = arith.constant 0 : index
    %c0_142 = arith.constant 0 : index
    %c0_143 = arith.constant 0 : index
    %129 = vector.load %arg10[%c0_141, %c0_142, %c0_143] : memref<8x64x128xbf16, #tpu.memory_space<vmem>>, vector<1x64x128xbf16>
    %130 = vector.shape_cast %129 : vector<1x64x128xbf16> to vector<64x128xbf16>
    %cst_144 = arith.constant dense<0.000000e+00> : vector<16x128xf32>
    %131 = tpu.matmul %128, %130, %cst_144 {dimension_numbers = #tpu.dot_dimension_numbers<[1], [0], [0], [1], [0, 0, 1, 1], [], []>} : vector<16x64xbf16>, vector<64x128xbf16>, vector<16x128xf32> -> vector<16x128xf32>
    %c1_145 = arith.constant 1 : index
    %c0_146 = arith.constant 0 : index
    %132 = vector.load %arg38[%c1_145, %c0_146] : memref<26x128xbf16, #tpu.memory_space<vmem>>, vector<16x64xbf16>
    %c1_147 = arith.constant 1 : index
    %c0_148 = arith.constant 0 : index
    %c0_149 = arith.constant 0 : index
    %133 = vector.load %arg10[%c1_147, %c0_148, %c0_149] : memref<8x64x128xbf16, #tpu.memory_space<vmem>>, vector<1x64x128xbf16>
    %134 = vector.shape_cast %133 : vector<1x64x128xbf16> to vector<64x128xbf16>
    %cst_150 = arith.constant dense<0.000000e+00> : vector<16x128xf32>
    %135 = tpu.matmul %132, %134, %cst_150 {dimension_numbers = #tpu.dot_dimension_numbers<[1], [0], [0], [1], [0, 0, 1, 1], [], []>} : vector<16x64xbf16>, vector<64x128xbf16>, vector<16x128xf32> -> vector<16x128xf32>
    %136 = arith.addf %131, %135 : vector<16x128xf32>
    %c2_151 = arith.constant 2 : index
    %c0_152 = arith.constant 0 : index
    %137 = vector.load %arg38[%c2_151, %c0_152] : memref<26x128xbf16, #tpu.memory_space<vmem>>, vector<16x64xbf16>
    %c2_153 = arith.constant 2 : index
    %c0_154 = arith.constant 0 : index
    %c0_155 = arith.constant 0 : index
    %138 = vector.load %arg10[%c2_153, %c0_154, %c0_155] : memref<8x64x128xbf16, #tpu.memory_space<vmem>>, vector<1x64x128xbf16>
    %139 = vector.shape_cast %138 : vector<1x64x128xbf16> to vector<64x128xbf16>
    %cst_156 = arith.constant dense<0.000000e+00> : vector<16x128xf32>
    %140 = tpu.matmul %137, %139, %cst_156 {dimension_numbers = #tpu.dot_dimension_numbers<[1], [0], [0], [1], [0, 0, 1, 1], [], []>} : vector<16x64xbf16>, vector<64x128xbf16>, vector<16x128xf32> -> vector<16x128xf32>
    %141 = arith.addf %136, %140 : vector<16x128xf32>
    %c3_157 = arith.constant 3 : index
    %c0_158 = arith.constant 0 : index
    %142 = vector.load %arg38[%c3_157, %c0_158] : memref<26x128xbf16, #tpu.memory_space<vmem>>, vector<16x64xbf16>
    %c3_159 = arith.constant 3 : index
    %c0_160 = arith.constant 0 : index
    %c0_161 = arith.constant 0 : index
    %143 = vector.load %arg10[%c3_159, %c0_160, %c0_161] : memref<8x64x128xbf16, #tpu.memory_space<vmem>>, vector<1x64x128xbf16>
    %144 = vector.shape_cast %143 : vector<1x64x128xbf16> to vector<64x128xbf16>
    %cst_162 = arith.constant dense<0.000000e+00> : vector<16x128xf32>
    %145 = tpu.matmul %142, %144, %cst_162 {dimension_numbers = #tpu.dot_dimension_numbers<[1], [0], [0], [1], [0, 0, 1, 1], [], []>} : vector<16x64xbf16>, vector<64x128xbf16>, vector<16x128xf32> -> vector<16x128xf32>
    %146 = arith.addf %141, %145 : vector<16x128xf32>
    %c4_163 = arith.constant 4 : index
    %c0_164 = arith.constant 0 : index
    %147 = vector.load %arg38[%c4_163, %c0_164] : memref<26x128xbf16, #tpu.memory_space<vmem>>, vector<16x64xbf16>
    %c4_165 = arith.constant 4 : index
    %c0_166 = arith.constant 0 : index
    %c0_167 = arith.constant 0 : index
    %148 = vector.load %arg10[%c4_165, %c0_166, %c0_167] : memref<8x64x128xbf16, #tpu.memory_space<vmem>>, vector<1x64x128xbf16>
    %149 = vector.shape_cast %148 : vector<1x64x128xbf16> to vector<64x128xbf16>
    %cst_168 = arith.constant dense<0.000000e+00> : vector<16x128xf32>
    %150 = tpu.matmul %147, %149, %cst_168 {dimension_numbers = #tpu.dot_dimension_numbers<[1], [0], [0], [1], [0, 0, 1, 1], [], []>} : vector<16x64xbf16>, vector<64x128xbf16>, vector<16x128xf32> -> vector<16x128xf32>
    %151 = arith.addf %146, %150 : vector<16x128xf32>
    %c5_169 = arith.constant 5 : index
    %c0_170 = arith.constant 0 : index
    %152 = vector.load %arg38[%c5_169, %c0_170] : memref<26x128xbf16, #tpu.memory_space<vmem>>, vector<16x64xbf16>
    %c5_171 = arith.constant 5 : index
    %c0_172 = arith.constant 0 : index
    %c0_173 = arith.constant 0 : index
    %153 = vector.load %arg10[%c5_171, %c0_172, %c0_173] : memref<8x64x128xbf16, #tpu.memory_space<vmem>>, vector<1x64x128xbf16>
    %154 = vector.shape_cast %153 : vector<1x64x128xbf16> to vector<64x128xbf16>
    %cst_174 = arith.constant dense<0.000000e+00> : vector<16x128xf32>
    %155 = tpu.matmul %152, %154, %cst_174 {dimension_numbers = #tpu.dot_dimension_numbers<[1], [0], [0], [1], [0, 0, 1, 1], [], []>} : vector<16x64xbf16>, vector<64x128xbf16>, vector<16x128xf32> -> vector<16x128xf32>
    %156 = arith.addf %151, %155 : vector<16x128xf32>
    %c6_175 = arith.constant 6 : index
    %c0_176 = arith.constant 0 : index
    %157 = vector.load %arg38[%c6_175, %c0_176] : memref<26x128xbf16, #tpu.memory_space<vmem>>, vector<16x64xbf16>
    %c6_177 = arith.constant 6 : index
    %c0_178 = arith.constant 0 : index
    %c0_179 = arith.constant 0 : index
    %158 = vector.load %arg10[%c6_177, %c0_178, %c0_179] : memref<8x64x128xbf16, #tpu.memory_space<vmem>>, vector<1x64x128xbf16>
    %159 = vector.shape_cast %158 : vector<1x64x128xbf16> to vector<64x128xbf16>
    %cst_180 = arith.constant dense<0.000000e+00> : vector<16x128xf32>
    %160 = tpu.matmul %157, %159, %cst_180 {dimension_numbers = #tpu.dot_dimension_numbers<[1], [0], [0], [1], [0, 0, 1, 1], [], []>} : vector<16x64xbf16>, vector<64x128xbf16>, vector<16x128xf32> -> vector<16x128xf32>
    %161 = arith.addf %156, %160 : vector<16x128xf32>
    %c7_181 = arith.constant 7 : index
    %c0_182 = arith.constant 0 : index
    %162 = vector.load %arg38[%c7_181, %c0_182] : memref<26x128xbf16, #tpu.memory_space<vmem>>, vector<16x64xbf16>
    %c7_183 = arith.constant 7 : index
    %c0_184 = arith.constant 0 : index
    %c0_185 = arith.constant 0 : index
    %163 = vector.load %arg10[%c7_183, %c0_184, %c0_185] : memref<8x64x128xbf16, #tpu.memory_space<vmem>>, vector<1x64x128xbf16>
    %164 = vector.shape_cast %163 : vector<1x64x128xbf16> to vector<64x128xbf16>
    %cst_186 = arith.constant dense<0.000000e+00> : vector<16x128xf32>
    %165 = tpu.matmul %162, %164, %cst_186 {dimension_numbers = #tpu.dot_dimension_numbers<[1], [0], [0], [1], [0, 0, 1, 1], [], []>} : vector<16x64xbf16>, vector<64x128xbf16>, vector<16x128xf32> -> vector<16x128xf32>
    %166 = arith.addf %161, %165 : vector<16x128xf32>
    %c0_187 = arith.constant 0 : index
    %c0_188 = arith.constant 0 : index
    %167 = vector.load %arg11[%c0_187, %c0_188] : memref<1x128xf32, #tpu.memory_space<vmem>>, vector<1x128xf32>
    %168 = vector.broadcast %167 : vector<1x128xf32> to vector<16x128xf32>
    %169 = arith.addf %166, %168 : vector<16x128xf32>
    %cst_189 = arith.constant 0.000000e+00 : f32
    %170 = vector.broadcast %cst_189 : f32 to vector<16x128xf32>
    %171 = arith.maximumf %169, %170 : vector<16x128xf32>
    %172 = arith.truncf %171 : vector<16x128xf32> to vector<16x128xbf16>
    %c3_190 = arith.constant 3 : index
    %c0_191 = arith.constant 0 : index
    %173 = vector.load %arg35[%c3_190, %c0_191] : memref<26x128xbf16, #tpu.memory_space<vmem>>, vector<16x128xbf16>
    tpu.vector_store %arg35[%c3_190, %c0_191], %172 {strides = array<i32>} : memref<26x128xbf16, #tpu.memory_space<vmem>>, vector<16x128xbf16>,
    %c1_192 = arith.constant 1 : index
    %c0_193 = arith.constant 0 : index
    %174 = vector.load %arg35[%c1_192, %c0_193] : memref<26x128xbf16, #tpu.memory_space<vmem>>, vector<16x128xbf16>
    %c0_194 = arith.constant 0 : index
    %c0_195 = arith.constant 0 : index
    %c0_196 = arith.constant 0 : index
    %175 = vector.load %arg12[%c0_194, %c0_195, %c0_196] : memref<5x128x128xbf16, #tpu.memory_space<vmem>>, vector<1x128x128xbf16>
    %176 = vector.shape_cast %175 : vector<1x128x128xbf16> to vector<128x128xbf16>
    %cst_197 = arith.constant dense<0.000000e+00> : vector<16x128xf32>
    %177 = tpu.matmul %174, %176, %cst_197 {dimension_numbers = #tpu.dot_dimension_numbers<[1], [0], [0], [1], [0, 0, 1, 1], [], []>} : vector<16x128xbf16>, vector<128x128xbf16>, vector<16x128xf32> -> vector<16x128xf32>
    %c2_198 = arith.constant 2 : index
    %c0_199 = arith.constant 0 : index
    %178 = vector.load %arg35[%c2_198, %c0_199] : memref<26x128xbf16, #tpu.memory_space<vmem>>, vector<16x128xbf16>
    %c1_200 = arith.constant 1 : index
    %c0_201 = arith.constant 0 : index
    %c0_202 = arith.constant 0 : index
    %179 = vector.load %arg12[%c1_200, %c0_201, %c0_202] : memref<5x128x128xbf16, #tpu.memory_space<vmem>>, vector<1x128x128xbf16>
    %180 = vector.shape_cast %179 : vector<1x128x128xbf16> to vector<128x128xbf16>
    %cst_203 = arith.constant dense<0.000000e+00> : vector<16x128xf32>
    %181 = tpu.matmul %178, %180, %cst_203 {dimension_numbers = #tpu.dot_dimension_numbers<[1], [0], [0], [1], [0, 0, 1, 1], [], []>} : vector<16x128xbf16>, vector<128x128xbf16>, vector<16x128xf32> -> vector<16x128xf32>
    %182 = arith.addf %177, %181 : vector<16x128xf32>
    %c3_204 = arith.constant 3 : index
    %c0_205 = arith.constant 0 : index
    %183 = vector.load %arg35[%c3_204, %c0_205] : memref<26x128xbf16, #tpu.memory_space<vmem>>, vector<16x128xbf16>
    %c2_206 = arith.constant 2 : index
    %c0_207 = arith.constant 0 : index
    %c0_208 = arith.constant 0 : index
    %184 = vector.load %arg12[%c2_206, %c0_207, %c0_208] : memref<5x128x128xbf16, #tpu.memory_space<vmem>>, vector<1x128x128xbf16>
    %185 = vector.shape_cast %184 : vector<1x128x128xbf16> to vector<128x128xbf16>
    %cst_209 = arith.constant dense<0.000000e+00> : vector<16x128xf32>
    %186 = tpu.matmul %183, %185, %cst_209 {dimension_numbers = #tpu.dot_dimension_numbers<[1], [0], [0], [1], [0, 0, 1, 1], [], []>} : vector<16x128xbf16>, vector<128x128xbf16>, vector<16x128xf32> -> vector<16x128xf32>
    %187 = arith.addf %182, %186 : vector<16x128xf32>
    %c4_210 = arith.constant 4 : index
    %c0_211 = arith.constant 0 : index
    %188 = vector.load %arg35[%c4_210, %c0_211] : memref<26x128xbf16, #tpu.memory_space<vmem>>, vector<16x128xbf16>
    %c3_212 = arith.constant 3 : index
    %c0_213 = arith.constant 0 : index
    %c0_214 = arith.constant 0 : index
    %189 = vector.load %arg12[%c3_212, %c0_213, %c0_214] : memref<5x128x128xbf16, #tpu.memory_space<vmem>>, vector<1x128x128xbf16>
    %190 = vector.shape_cast %189 : vector<1x128x128xbf16> to vector<128x128xbf16>
    %cst_215 = arith.constant dense<0.000000e+00> : vector<16x128xf32>
    %191 = tpu.matmul %188, %190, %cst_215 {dimension_numbers = #tpu.dot_dimension_numbers<[1], [0], [0], [1], [0, 0, 1, 1], [], []>} : vector<16x128xbf16>, vector<128x128xbf16>, vector<16x128xf32> -> vector<16x128xf32>
    %192 = arith.addf %187, %191 : vector<16x128xf32>
    %c5_216 = arith.constant 5 : index
    %c0_217 = arith.constant 0 : index
    %193 = vector.load %arg35[%c5_216, %c0_217] : memref<26x128xbf16, #tpu.memory_space<vmem>>, vector<16x128xbf16>
    %c4_218 = arith.constant 4 : index
    %c0_219 = arith.constant 0 : index
    %c0_220 = arith.constant 0 : index
    %194 = vector.load %arg12[%c4_218, %c0_219, %c0_220] : memref<5x128x128xbf16, #tpu.memory_space<vmem>>, vector<1x128x128xbf16>
    %195 = vector.shape_cast %194 : vector<1x128x128xbf16> to vector<128x128xbf16>
    %cst_221 = arith.constant dense<0.000000e+00> : vector<16x128xf32>
    %196 = tpu.matmul %193, %195, %cst_221 {dimension_numbers = #tpu.dot_dimension_numbers<[1], [0], [0], [1], [0, 0, 1, 1], [], []>} : vector<16x128xbf16>, vector<128x128xbf16>, vector<16x128xf32> -> vector<16x128xf32>
    %197 = arith.addf %192, %196 : vector<16x128xf32>
    %c0_222 = arith.constant 0 : index
    %c0_223 = arith.constant 0 : index
    %198 = vector.load %arg13[%c0_222, %c0_223] : memref<1x128xf32, #tpu.memory_space<vmem>>, vector<1x128xf32>
    %199 = vector.broadcast %198 : vector<1x128xf32> to vector<16x128xf32>
    %200 = arith.addf %197, %199 : vector<16x128xf32>
    %cst_224 = arith.constant 0.000000e+00 : f32
    %201 = vector.broadcast %cst_224 : f32 to vector<16x128xf32>
    %202 = arith.maximumf %200, %201 : vector<16x128xf32>
    %203 = arith.truncf %202 : vector<16x128xf32> to vector<16x128xbf16>
    %c3_225 = arith.constant 3 : index
    %c0_226 = arith.constant 0 : index
    %204 = vector.load %arg36[%c3_225, %c0_226] : memref<26x128xbf16, #tpu.memory_space<vmem>>, vector<16x128xbf16>
    tpu.vector_store %arg36[%c3_225, %c0_226], %203 {strides = array<i32>} : memref<26x128xbf16, #tpu.memory_space<vmem>>, vector<16x128xbf16>,
    %c2_227 = arith.constant 2 : index
    %c0_228 = arith.constant 0 : index
    %205 = vector.load %arg36[%c2_227, %c0_228] : memref<26x128xbf16, #tpu.memory_space<vmem>>, vector<16x128xbf16>
    %c0_229 = arith.constant 0 : index
    %c0_230 = arith.constant 0 : index
    %c0_231 = arith.constant 0 : index
    %206 = vector.load %arg14[%c0_229, %c0_230, %c0_231] : memref<3x128x128xbf16, #tpu.memory_space<vmem>>, vector<1x128x128xbf16>
    %207 = vector.shape_cast %206 : vector<1x128x128xbf16> to vector<128x128xbf16>
    %cst_232 = arith.constant dense<0.000000e+00> : vector<16x128xf32>
    %208 = tpu.matmul %205, %207, %cst_232 {dimension_numbers = #tpu.dot_dimension_numbers<[1], [0], [0], [1], [0, 0, 1, 1], [], []>} : vector<16x128xbf16>, vector<128x128xbf16>, vector<16x128xf32> -> vector<16x128xf32>
    %c3_233 = arith.constant 3 : index
    %c0_234 = arith.constant 0 : index
    %209 = vector.load %arg36[%c3_233, %c0_234] : memref<26x128xbf16, #tpu.memory_space<vmem>>, vector<16x128xbf16>
    %c1_235 = arith.constant 1 : index
    %c0_236 = arith.constant 0 : index
    %c0_237 = arith.constant 0 : index
    %210 = vector.load %arg14[%c1_235, %c0_236, %c0_237] : memref<3x128x128xbf16, #tpu.memory_space<vmem>>, vector<1x128x128xbf16>
    %211 = vector.shape_cast %210 : vector<1x128x128xbf16> to vector<128x128xbf16>
    %cst_238 = arith.constant dense<0.000000e+00> : vector<16x128xf32>
    %212 = tpu.matmul %209, %211, %cst_238 {dimension_numbers = #tpu.dot_dimension_numbers<[1], [0], [0], [1], [0, 0, 1, 1], [], []>} : vector<16x128xbf16>, vector<128x128xbf16>, vector<16x128xf32> -> vector<16x128xf32>
    %213 = arith.addf %208, %212 : vector<16x128xf32>
    %c4_239 = arith.constant 4 : index
    %c0_240 = arith.constant 0 : index
    %214 = vector.load %arg36[%c4_239, %c0_240] : memref<26x128xbf16, #tpu.memory_space<vmem>>, vector<16x128xbf16>
    %c2_241 = arith.constant 2 : index
    %c0_242 = arith.constant 0 : index
    %c0_243 = arith.constant 0 : index
    %215 = vector.load %arg14[%c2_241, %c0_242, %c0_243] : memref<3x128x128xbf16, #tpu.memory_space<vmem>>, vector<1x128x128xbf16>
    %216 = vector.shape_cast %215 : vector<1x128x128xbf16> to vector<128x128xbf16>
    %cst_244 = arith.constant dense<0.000000e+00> : vector<16x128xf32>
    %217 = tpu.matmul %214, %216, %cst_244 {dimension_numbers = #tpu.dot_dimension_numbers<[1], [0], [0], [1], [0, 0, 1, 1], [], []>} : vector<16x128xbf16>, vector<128x128xbf16>, vector<16x128xf32> -> vector<16x128xf32>
    %218 = arith.addf %213, %217 : vector<16x128xf32>
    %c0_245 = arith.constant 0 : index
    %c0_246 = arith.constant 0 : index
    %219 = vector.load %arg15[%c0_245, %c0_246] : memref<1x128xf32, #tpu.memory_space<vmem>>, vector<1x128xf32>
    %220 = vector.broadcast %219 : vector<1x128xf32> to vector<16x128xf32>
    %221 = arith.addf %218, %220 : vector<16x128xf32>
    %cst_247 = arith.constant 0.000000e+00 : f32
    %222 = vector.broadcast %cst_247 : f32 to vector<16x128xf32>
    %223 = arith.maximumf %221, %222 : vector<16x128xf32>
    %c3_248 = arith.constant 3 : index
    %c0_249 = arith.constant 0 : index
    %224 = vector.load %arg38[%c3_248, %c0_249] : memref<26x128xbf16, #tpu.memory_space<vmem>>, vector<16x64xbf16>
    %c0_250 = arith.constant 0 : index
    %c0_251 = arith.constant 0 : index
    %c0_252 = arith.constant 0 : index
    %225 = vector.load %arg16[%c0_250, %c0_251, %c0_252] : memref<1x64x128xbf16, #tpu.memory_space<vmem>>, vector<1x64x128xbf16>
    %226 = vector.shape_cast %225 : vector<1x64x128xbf16> to vector<64x128xbf16>
    %cst_253 = arith.constant dense<0.000000e+00> : vector<16x128xf32>
    %227 = tpu.matmul %224, %226, %cst_253 {dimension_numbers = #tpu.dot_dimension_numbers<[1], [0], [0], [1], [0, 0, 1, 1], [], []>} : vector<16x64xbf16>, vector<64x128xbf16>, vector<16x128xf32> -> vector<16x128xf32>
    %c0_254 = arith.constant 0 : index
    %c0_255 = arith.constant 0 : index
    %228 = vector.load %arg17[%c0_254, %c0_255] : memref<1x128xf32, #tpu.memory_space<vmem>>, vector<1x128xf32>
    %229 = vector.broadcast %228 : vector<1x128xf32> to vector<16x128xf32>
    %230 = arith.addf %227, %229 : vector<16x128xf32>
    %231 = arith.addf %230, %223 : vector<16x128xf32>
    %cst_256 = arith.constant 0.000000e+00 : f32
    %232 = vector.broadcast %cst_256 : f32 to vector<16x128xf32>
    %233 = arith.maximumf %231, %232 : vector<16x128xf32>
    %234 = arith.truncf %233 : vector<16x128xf32> to vector<16x128xbf16>
    %c3_257 = arith.constant 3 : index
    %c0_258 = arith.constant 0 : index
    %235 = vector.load %arg37[%c3_257, %c0_258] : memref<26x128xbf16, #tpu.memory_space<vmem>>, vector<16x128xbf16>
    tpu.vector_store %arg37[%c3_257, %c0_258], %234 {strides = array<i32>} : memref<26x128xbf16, #tpu.memory_space<vmem>>, vector<16x128xbf16>,
    %c0_259 = arith.constant 0 : index
    %c0_260 = arith.constant 0 : index
    %236 = vector.load %arg37[%c0_259, %c0_260] : memref<26x128xbf16, #tpu.memory_space<vmem>>, vector<16x128xbf16>
    %c0_261 = arith.constant 0 : index
    %c0_262 = arith.constant 0 : index
    %c0_263 = arith.constant 0 : index
    %237 = vector.load %arg18[%c0_261, %c0_262, %c0_263] : memref<8x128x56xbf16, #tpu.memory_space<vmem>>, vector<1x128x56xbf16>
    %238 = vector.shape_cast %237 : vector<1x128x56xbf16> to vector<128x56xbf16>
    %cst_264 = arith.constant dense<0.000000e+00> : vector<16x56xf32>
    %239 = tpu.matmul %236, %238, %cst_264 {dimension_numbers = #tpu.dot_dimension_numbers<[1], [0], [0], [1], [0, 0, 1, 1], [], []>} : vector<16x128xbf16>, vector<128x56xbf16>, vector<16x56xf32> -> vector<16x56xf32>
    %c1_265 = arith.constant 1 : index
    %c0_266 = arith.constant 0 : index
    %240 = vector.load %arg37[%c1_265, %c0_266] : memref<26x128xbf16, #tpu.memory_space<vmem>>, vector<16x128xbf16>
    %c1_267 = arith.constant 1 : index
    %c0_268 = arith.constant 0 : index
    %c0_269 = arith.constant 0 : index
    %241 = vector.load %arg18[%c1_267, %c0_268, %c0_269] : memref<8x128x56xbf16, #tpu.memory_space<vmem>>, vector<1x128x56xbf16>
    %242 = vector.shape_cast %241 : vector<1x128x56xbf16> to vector<128x56xbf16>
    %cst_270 = arith.constant dense<0.000000e+00> : vector<16x56xf32>
    %243 = tpu.matmul %240, %242, %cst_270 {dimension_numbers = #tpu.dot_dimension_numbers<[1], [0], [0], [1], [0, 0, 1, 1], [], []>} : vector<16x128xbf16>, vector<128x56xbf16>, vector<16x56xf32> -> vector<16x56xf32>
    %244 = arith.addf %239, %243 : vector<16x56xf32>
    %c2_271 = arith.constant 2 : index
    %c0_272 = arith.constant 0 : index
    %245 = vector.load %arg37[%c2_271, %c0_272] : memref<26x128xbf16, #tpu.memory_space<vmem>>, vector<16x128xbf16>
    %c2_273 = arith.constant 2 : index
    %c0_274 = arith.constant 0 : index
    %c0_275 = arith.constant 0 : index
    %246 = vector.load %arg18[%c2_273, %c0_274, %c0_275] : memref<8x128x56xbf16, #tpu.memory_space<vmem>>, vector<1x128x56xbf16>
    %247 = vector.shape_cast %246 : vector<1x128x56xbf16> to vector<128x56xbf16>
    %cst_276 = arith.constant dense<0.000000e+00> : vector<16x56xf32>
    %248 = tpu.matmul %245, %247, %cst_276 {dimension_numbers = #tpu.dot_dimension_numbers<[1], [0], [0], [1], [0, 0, 1, 1], [], []>} : vector<16x128xbf16>, vector<128x56xbf16>, vector<16x56xf32> -> vector<16x56xf32>
    %249 = arith.addf %244, %248 : vector<16x56xf32>
    %c3_277 = arith.constant 3 : index
    %c0_278 = arith.constant 0 : index
    %250 = vector.load %arg37[%c3_277, %c0_278] : memref<26x128xbf16, #tpu.memory_space<vmem>>, vector<16x128xbf16>
    %c3_279 = arith.constant 3 : index
    %c0_280 = arith.constant 0 : index
    %c0_281 = arith.constant 0 : index
    %251 = vector.load %arg18[%c3_279, %c0_280, %c0_281] : memref<8x128x56xbf16, #tpu.memory_space<vmem>>, vector<1x128x56xbf16>
    %252 = vector.shape_cast %251 : vector<1x128x56xbf16> to vector<128x56xbf16>
    %cst_282 = arith.constant dense<0.000000e+00> : vector<16x56xf32>
    %253 = tpu.matmul %250, %252, %cst_282 {dimension_numbers = #tpu.dot_dimension_numbers<[1], [0], [0], [1], [0, 0, 1, 1], [], []>} : vector<16x128xbf16>, vector<128x56xbf16>, vector<16x56xf32> -> vector<16x56xf32>
    %254 = arith.addf %249, %253 : vector<16x56xf32>
    %c4_283 = arith.constant 4 : index
    %c0_284 = arith.constant 0 : index
    %255 = vector.load %arg37[%c4_283, %c0_284] : memref<26x128xbf16, #tpu.memory_space<vmem>>, vector<16x128xbf16>
    %c4_285 = arith.constant 4 : index
    %c0_286 = arith.constant 0 : index
    %c0_287 = arith.constant 0 : index
    %256 = vector.load %arg18[%c4_285, %c0_286, %c0_287] : memref<8x128x56xbf16, #tpu.memory_space<vmem>>, vector<1x128x56xbf16>
    %257 = vector.shape_cast %256 : vector<1x128x56xbf16> to vector<128x56xbf16>
    %cst_288 = arith.constant dense<0.000000e+00> : vector<16x56xf32>
    %258 = tpu.matmul %255, %257, %cst_288 {dimension_numbers = #tpu.dot_dimension_numbers<[1], [0], [0], [1], [0, 0, 1, 1], [], []>} : vector<16x128xbf16>, vector<128x56xbf16>, vector<16x56xf32> -> vector<16x56xf32>
    %259 = arith.addf %254, %258 : vector<16x56xf32>
    %c5_289 = arith.constant 5 : index
    %c0_290 = arith.constant 0 : index
    %260 = vector.load %arg37[%c5_289, %c0_290] : memref<26x128xbf16, #tpu.memory_space<vmem>>, vector<16x128xbf16>
    %c5_291 = arith.constant 5 : index
    %c0_292 = arith.constant 0 : index
    %c0_293 = arith.constant 0 : index
    %261 = vector.load %arg18[%c5_291, %c0_292, %c0_293] : memref<8x128x56xbf16, #tpu.memory_space<vmem>>, vector<1x128x56xbf16>
    %262 = vector.shape_cast %261 : vector<1x128x56xbf16> to vector<128x56xbf16>
    %cst_294 = arith.constant dense<0.000000e+00> : vector<16x56xf32>
    %263 = tpu.matmul %260, %262, %cst_294 {dimension_numbers = #tpu.dot_dimension_numbers<[1], [0], [0], [1], [0, 0, 1, 1], [], []>} : vector<16x128xbf16>, vector<128x56xbf16>, vector<16x56xf32> -> vector<16x56xf32>
    %264 = arith.addf %259, %263 : vector<16x56xf32>
    %c6_295 = arith.constant 6 : index
    %c0_296 = arith.constant 0 : index
    %265 = vector.load %arg37[%c6_295, %c0_296] : memref<26x128xbf16, #tpu.memory_space<vmem>>, vector<16x128xbf16>
    %c6_297 = arith.constant 6 : index
    %c0_298 = arith.constant 0 : index
    %c0_299 = arith.constant 0 : index
    %266 = vector.load %arg18[%c6_297, %c0_298, %c0_299] : memref<8x128x56xbf16, #tpu.memory_space<vmem>>, vector<1x128x56xbf16>
    %267 = vector.shape_cast %266 : vector<1x128x56xbf16> to vector<128x56xbf16>
    %cst_300 = arith.constant dense<0.000000e+00> : vector<16x56xf32>
    %268 = tpu.matmul %265, %267, %cst_300 {dimension_numbers = #tpu.dot_dimension_numbers<[1], [0], [0], [1], [0, 0, 1, 1], [], []>} : vector<16x128xbf16>, vector<128x56xbf16>, vector<16x56xf32> -> vector<16x56xf32>
    %269 = arith.addf %264, %268 : vector<16x56xf32>
    %c7_301 = arith.constant 7 : index
    %c0_302 = arith.constant 0 : index
    %270 = vector.load %arg37[%c7_301, %c0_302] : memref<26x128xbf16, #tpu.memory_space<vmem>>, vector<16x128xbf16>
    %c7_303 = arith.constant 7 : index
    %c0_304 = arith.constant 0 : index
    %c0_305 = arith.constant 0 : index
    %271 = vector.load %arg18[%c7_303, %c0_304, %c0_305] : memref<8x128x56xbf16, #tpu.memory_space<vmem>>, vector<1x128x56xbf16>
    %272 = vector.shape_cast %271 : vector<1x128x56xbf16> to vector<128x56xbf16>
    %cst_306 = arith.constant dense<0.000000e+00> : vector<16x56xf32>
    %273 = tpu.matmul %270, %272, %cst_306 {dimension_numbers = #tpu.dot_dimension_numbers<[1], [0], [0], [1], [0, 0, 1, 1], [], []>} : vector<16x128xbf16>, vector<128x56xbf16>, vector<16x56xf32> -> vector<16x56xf32>
    %274 = arith.addf %269, %273 : vector<16x56xf32>
    %c0_307 = arith.constant 0 : index
    %c0_308 = arith.constant 0 : index
    %275 = vector.load %arg19[%c0_307, %c0_308] : memref<1x56xf32, #tpu.memory_space<vmem>>, vector<1x56xf32>
    %276 = vector.broadcast %275 : vector<1x56xf32> to vector<16x56xf32>
    %277 = arith.addf %274, %276 : vector<16x56xf32>
    %cst_309 = arith.constant 0.000000e+00 : f32
    %278 = vector.broadcast %cst_309 : f32 to vector<16x56xf32>
    %279 = arith.maximumf %277, %278 : vector<16x56xf32>
    %280 = arith.truncf %279 : vector<16x56xf32> to vector<16x56xbf16>
    %c3_310 = arith.constant 3 : index
    %c0_311 = arith.constant 0 : index
    %281 = vector.load %arg38[%c3_310, %c0_311] : memref<26x128xbf16, #tpu.memory_space<vmem>>, vector<16x56xbf16>
    tpu.vector_store %arg38[%c3_310, %c0_311], %280 {strides = array<i32>} : memref<26x128xbf16, #tpu.memory_space<vmem>>, vector<16x56xbf16>,
    %c1_312 = arith.constant 1 : index
    %c0_313 = arith.constant 0 : index
    %282 = vector.load %arg38[%c1_312, %c0_313] : memref<26x128xbf16, #tpu.memory_space<vmem>>, vector<16x56xbf16>
    %c0_314 = arith.constant 0 : index
    %c0_315 = arith.constant 0 : index
    %c0_316 = arith.constant 0 : index
    %283 = vector.load %arg20[%c0_314, %c0_315, %c0_316] : memref<5x56x56xbf16, #tpu.memory_space<vmem>>, vector<1x56x56xbf16>
    %284 = vector.shape_cast %283 : vector<1x56x56xbf16> to vector<56x56xbf16>
    %cst_317 = arith.constant dense<0.000000e+00> : vector<16x56xf32>
    %285 = tpu.matmul %282, %284, %cst_317 {dimension_numbers = #tpu.dot_dimension_numbers<[1], [0], [0], [1], [0, 0, 1, 1], [], []>} : vector<16x56xbf16>, vector<56x56xbf16>, vector<16x56xf32> -> vector<16x56xf32>
    %c2_318 = arith.constant 2 : index
    %c0_319 = arith.constant 0 : index
    %286 = vector.load %arg38[%c2_318, %c0_319] : memref<26x128xbf16, #tpu.memory_space<vmem>>, vector<16x56xbf16>
    %c1_320 = arith.constant 1 : index
    %c0_321 = arith.constant 0 : index
    %c0_322 = arith.constant 0 : index
    %287 = vector.load %arg20[%c1_320, %c0_321, %c0_322] : memref<5x56x56xbf16, #tpu.memory_space<vmem>>, vector<1x56x56xbf16>
    %288 = vector.shape_cast %287 : vector<1x56x56xbf16> to vector<56x56xbf16>
    %cst_323 = arith.constant dense<0.000000e+00> : vector<16x56xf32>
    %289 = tpu.matmul %286, %288, %cst_323 {dimension_numbers = #tpu.dot_dimension_numbers<[1], [0], [0], [1], [0, 0, 1, 1], [], []>} : vector<16x56xbf16>, vector<56x56xbf16>, vector<16x56xf32> -> vector<16x56xf32>
    %290 = arith.addf %285, %289 : vector<16x56xf32>
    %c3_324 = arith.constant 3 : index
    %c0_325 = arith.constant 0 : index
    %291 = vector.load %arg38[%c3_324, %c0_325] : memref<26x128xbf16, #tpu.memory_space<vmem>>, vector<16x56xbf16>
    %c2_326 = arith.constant 2 : index
    %c0_327 = arith.constant 0 : index
    %c0_328 = arith.constant 0 : index
    %292 = vector.load %arg20[%c2_326, %c0_327, %c0_328] : memref<5x56x56xbf16, #tpu.memory_space<vmem>>, vector<1x56x56xbf16>
    %293 = vector.shape_cast %292 : vector<1x56x56xbf16> to vector<56x56xbf16>
    %cst_329 = arith.constant dense<0.000000e+00> : vector<16x56xf32>
    %294 = tpu.matmul %291, %293, %cst_329 {dimension_numbers = #tpu.dot_dimension_numbers<[1], [0], [0], [1], [0, 0, 1, 1], [], []>} : vector<16x56xbf16>, vector<56x56xbf16>, vector<16x56xf32> -> vector<16x56xf32>
    %295 = arith.addf %290, %294 : vector<16x56xf32>
    %c4_330 = arith.constant 4 : index
    %c0_331 = arith.constant 0 : index
    %296 = vector.load %arg38[%c4_330, %c0_331] : memref<26x128xbf16, #tpu.memory_space<vmem>>, vector<16x56xbf16>
    %c3_332 = arith.constant 3 : index
    %c0_333 = arith.constant 0 : index
    %c0_334 = arith.constant 0 : index
    %297 = vector.load %arg20[%c3_332, %c0_333, %c0_334] : memref<5x56x56xbf16, #tpu.memory_space<vmem>>, vector<1x56x56xbf16>
    %298 = vector.shape_cast %297 : vector<1x56x56xbf16> to vector<56x56xbf16>
    %cst_335 = arith.constant dense<0.000000e+00> : vector<16x56xf32>
    %299 = tpu.matmul %296, %298, %cst_335 {dimension_numbers = #tpu.dot_dimension_numbers<[1], [0], [0], [1], [0, 0, 1, 1], [], []>} : vector<16x56xbf16>, vector<56x56xbf16>, vector<16x56xf32> -> vector<16x56xf32>
    %300 = arith.addf %295, %299 : vector<16x56xf32>
    %c5_336 = arith.constant 5 : index
    %c0_337 = arith.constant 0 : index
    %301 = vector.load %arg38[%c5_336, %c0_337] : memref<26x128xbf16, #tpu.memory_space<vmem>>, vector<16x56xbf16>
    %c4_338 = arith.constant 4 : index
    %c0_339 = arith.constant 0 : index
    %c0_340 = arith.constant 0 : index
    %302 = vector.load %arg20[%c4_338, %c0_339, %c0_340] : memref<5x56x56xbf16, #tpu.memory_space<vmem>>, vector<1x56x56xbf16>
    %303 = vector.shape_cast %302 : vector<1x56x56xbf16> to vector<56x56xbf16>
    %cst_341 = arith.constant dense<0.000000e+00> : vector<16x56xf32>
    %304 = tpu.matmul %301, %303, %cst_341 {dimension_numbers = #tpu.dot_dimension_numbers<[1], [0], [0], [1], [0, 0, 1, 1], [], []>} : vector<16x56xbf16>, vector<56x56xbf16>, vector<16x56xf32> -> vector<16x56xf32>
    %305 = arith.addf %300, %304 : vector<16x56xf32>
    %c0_342 = arith.constant 0 : index
    %c0_343 = arith.constant 0 : index
    %306 = vector.load %arg21[%c0_342, %c0_343] : memref<1x56xf32, #tpu.memory_space<vmem>>, vector<1x56xf32>
    %307 = vector.broadcast %306 : vector<1x56xf32> to vector<16x56xf32>
    %308 = arith.addf %305, %307 : vector<16x56xf32>
    %cst_344 = arith.constant 0.000000e+00 : f32
    %309 = vector.broadcast %cst_344 : f32 to vector<16x56xf32>
    %310 = arith.maximumf %308, %309 : vector<16x56xf32>
    %311 = arith.truncf %310 : vector<16x56xf32> to vector<16x56xbf16>
    %c3_345 = arith.constant 3 : index
    %c0_346 = arith.constant 0 : index
    %312 = vector.load %arg35[%c3_345, %c0_346] : memref<26x128xbf16, #tpu.memory_space<vmem>>, vector<16x56xbf16>
    tpu.vector_store %arg35[%c3_345, %c0_346], %311 {strides = array<i32>} : memref<26x128xbf16, #tpu.memory_space<vmem>>, vector<16x56xbf16>,
    %c2_347 = arith.constant 2 : index
    %c0_348 = arith.constant 0 : index
    %313 = vector.load %arg35[%c2_347, %c0_348] : memref<26x128xbf16, #tpu.memory_space<vmem>>, vector<16x56xbf16>
    %c0_349 = arith.constant 0 : index
    %c0_350 = arith.constant 0 : index
    %c0_351 = arith.constant 0 : index
    %314 = vector.load %arg22[%c0_349, %c0_350, %c0_351] : memref<3x56x56xbf16, #tpu.memory_space<vmem>>, vector<1x56x56xbf16>
    %315 = vector.shape_cast %314 : vector<1x56x56xbf16> to vector<56x56xbf16>
    %cst_352 = arith.constant dense<0.000000e+00> : vector<16x56xf32>
    %316 = tpu.matmul %313, %315, %cst_352 {dimension_numbers = #tpu.dot_dimension_numbers<[1], [0], [0], [1], [0, 0, 1, 1], [], []>} : vector<16x56xbf16>, vector<56x56xbf16>, vector<16x56xf32> -> vector<16x56xf32>
    %c3_353 = arith.constant 3 : index
    %c0_354 = arith.constant 0 : index
    %317 = vector.load %arg35[%c3_353, %c0_354] : memref<26x128xbf16, #tpu.memory_space<vmem>>, vector<16x56xbf16>
    %c1_355 = arith.constant 1 : index
    %c0_356 = arith.constant 0 : index
    %c0_357 = arith.constant 0 : index
    %318 = vector.load %arg22[%c1_355, %c0_356, %c0_357] : memref<3x56x56xbf16, #tpu.memory_space<vmem>>, vector<1x56x56xbf16>
    %319 = vector.shape_cast %318 : vector<1x56x56xbf16> to vector<56x56xbf16>
    %cst_358 = arith.constant dense<0.000000e+00> : vector<16x56xf32>
    %320 = tpu.matmul %317, %319, %cst_358 {dimension_numbers = #tpu.dot_dimension_numbers<[1], [0], [0], [1], [0, 0, 1, 1], [], []>} : vector<16x56xbf16>, vector<56x56xbf16>, vector<16x56xf32> -> vector<16x56xf32>
    %321 = arith.addf %316, %320 : vector<16x56xf32>
    %c4_359 = arith.constant 4 : index
    %c0_360 = arith.constant 0 : index
    %322 = vector.load %arg35[%c4_359, %c0_360] : memref<26x128xbf16, #tpu.memory_space<vmem>>, vector<16x56xbf16>
    %c2_361 = arith.constant 2 : index
    %c0_362 = arith.constant 0 : index
    %c0_363 = arith.constant 0 : index
    %323 = vector.load %arg22[%c2_361, %c0_362, %c0_363] : memref<3x56x56xbf16, #tpu.memory_space<vmem>>, vector<1x56x56xbf16>
    %324 = vector.shape_cast %323 : vector<1x56x56xbf16> to vector<56x56xbf16>
    %cst_364 = arith.constant dense<0.000000e+00> : vector<16x56xf32>
    %325 = tpu.matmul %322, %324, %cst_364 {dimension_numbers = #tpu.dot_dimension_numbers<[1], [0], [0], [1], [0, 0, 1, 1], [], []>} : vector<16x56xbf16>, vector<56x56xbf16>, vector<16x56xf32> -> vector<16x56xf32>
    %326 = arith.addf %321, %325 : vector<16x56xf32>
    %c0_365 = arith.constant 0 : index
    %c0_366 = arith.constant 0 : index
    %327 = vector.load %arg23[%c0_365, %c0_366] : memref<1x56xf32, #tpu.memory_space<vmem>>, vector<1x56xf32>
    %328 = vector.broadcast %327 : vector<1x56xf32> to vector<16x56xf32>
    %329 = arith.addf %326, %328 : vector<16x56xf32>
    %cst_367 = arith.constant 0.000000e+00 : f32
    %330 = vector.broadcast %cst_367 : f32 to vector<16x56xf32>
    %331 = arith.maximumf %329, %330 : vector<16x56xf32>
    %c3_368 = arith.constant 3 : index
    %c0_369 = arith.constant 0 : index
    %332 = vector.load %arg37[%c3_368, %c0_369] : memref<26x128xbf16, #tpu.memory_space<vmem>>, vector<16x128xbf16>
    %c0_370 = arith.constant 0 : index
    %c0_371 = arith.constant 0 : index
    %c0_372 = arith.constant 0 : index
    %333 = vector.load %arg24[%c0_370, %c0_371, %c0_372] : memref<1x128x56xbf16, #tpu.memory_space<vmem>>, vector<1x128x56xbf16>
    %334 = vector.shape_cast %333 : vector<1x128x56xbf16> to vector<128x56xbf16>
    %cst_373 = arith.constant dense<0.000000e+00> : vector<16x56xf32>
    %335 = tpu.matmul %332, %334, %cst_373 {dimension_numbers = #tpu.dot_dimension_numbers<[1], [0], [0], [1], [0, 0, 1, 1], [], []>} : vector<16x128xbf16>, vector<128x56xbf16>, vector<16x56xf32> -> vector<16x56xf32>
    %c0_374 = arith.constant 0 : index
    %c0_375 = arith.constant 0 : index
    %336 = vector.load %arg25[%c0_374, %c0_375] : memref<1x56xf32, #tpu.memory_space<vmem>>, vector<1x56xf32>
    %337 = vector.broadcast %336 : vector<1x56xf32> to vector<16x56xf32>
    %338 = arith.addf %335, %337 : vector<16x56xf32>
    %339 = arith.addf %338, %331 : vector<16x56xf32>
    %cst_376 = arith.constant 0.000000e+00 : f32
    %340 = vector.broadcast %cst_376 : f32 to vector<16x56xf32>
    %341 = arith.maximumf %339, %340 : vector<16x56xf32>
    %342 = arith.truncf %341 : vector<16x56xf32> to vector<16x56xbf16>
    %c3_377 = arith.constant 3 : index
    %c0_378 = arith.constant 0 : index
    %343 = vector.load %arg36[%c3_377, %c0_378] : memref<26x128xbf16, #tpu.memory_space<vmem>>, vector<16x56xbf16>
    tpu.vector_store %arg36[%c3_377, %c0_378], %342 {strides = array<i32>} : memref<26x128xbf16, #tpu.memory_space<vmem>>, vector<16x56xbf16>,
    %c3_379 = arith.constant 3 : index
    %c0_380 = arith.constant 0 : index
    %344 = vector.load %arg36[%c3_379, %c0_380] : memref<26x128xbf16, #tpu.memory_space<vmem>>, vector<16x56xbf16>
    %c0_381 = arith.constant 0 : index
    %c0_382 = arith.constant 0 : index
    %345 = vector.load %arg31[%c0_381, %c0_382] : memref<1x16xbf16, #tpu.memory_space<vmem>>, vector<1x16xbf16>
    %cst_383 = arith.constant dense<0.000000e+00> : vector<1x56xf32>
    %346 = tpu.matmul %345, %344, %cst_383 {dimension_numbers = #tpu.dot_dimension_numbers<[1], [0], [0], [1], [0, 0, 1, 1], [], []>} : vector<1x16xbf16>, vector<16x56xbf16>, vector<1x56xf32> -> vector<1x56xf32>
    %cst_384 = arith.constant 6.250000e-02 : f32
    %347 = vector.broadcast %cst_384 : f32 to vector<1x56xf32>
    %348 = arith.mulf %346, %347 : vector<1x56xf32>
    %c0_385 = arith.constant 0 : index
    %c0_386 = arith.constant 0 : index
    %349 = vector.load %arg26[%c0_385, %c0_386] : memref<56x16xf32, #tpu.memory_space<vmem>>, vector<56x16xf32>
    %cst_387 = arith.constant dense<0.000000e+00> : vector<1x16xf32>
    %350 = tpu.matmul %348, %349, %cst_387 {dimension_numbers = #tpu.dot_dimension_numbers<[1], [0], [0], [1], [0, 0, 1, 1], [], []>} : vector<1x56xf32>, vector<56x16xf32>, vector<1x16xf32> -> vector<1x16xf32>
    %c0_388 = arith.constant 0 : index
    %c0_389 = arith.constant 0 : index
    %351 = vector.load %arg27[%c0_388, %c0_389] : memref<1x16xf32, #tpu.memory_space<vmem>>, vector<1x16xf32>
    %352 = arith.addf %350, %351 : vector<1x16xf32>
    %c0_390 = arith.constant 0 : index
    %c0_391 = arith.constant 0 : index
    %353 = vector.load %arg28[%c0_390, %c0_391] : memref<56x8xf32, #tpu.memory_space<vmem>>, vector<56x8xf32>
    %cst_392 = arith.constant dense<0.000000e+00> : vector<1x8xf32>
    %354 = tpu.matmul %348, %353, %cst_392 {dimension_numbers = #tpu.dot_dimension_numbers<[1], [0], [0], [1], [0, 0, 1, 1], [], []>} : vector<1x56xf32>, vector<56x8xf32>, vector<1x8xf32> -> vector<1x8xf32>
    %355 = arith.mulf %348, %348 : vector<1x56xf32>
    %cst_393 = arith.constant dense<0.000000e+00> : vector<1xf32>
    %356 = vector.multi_reduction <add>, %355, %cst_393 [1] : vector<1x56xf32> to vector<1xf32>
    %357 = vector.shape_cast %356 : vector<1xf32> to vector<1x1xf32>
    %c0_394 = arith.constant 0 : index
    %c0_395 = arith.constant 0 : index
    %358 = vector.load %arg29[%c0_394, %c0_395] : memref<1x8xf32, #tpu.memory_space<vmem>>, vector<1x8xf32>
    %359 = vector.broadcast %357 : vector<1x1xf32> to vector<1x8xf32>
    %360 = arith.addf %359, %358 : vector<1x8xf32>
    %cst_396 = arith.constant 2.000000e+00 : f32
    %361 = vector.broadcast %cst_396 : f32 to vector<1x8xf32>
    %362 = arith.mulf %361, %354 : vector<1x8xf32>
    %363 = arith.subf %360, %362 : vector<1x8xf32>
    %cst_397 = arith.constant 1.000000e+00 : f32
    %364 = vector.broadcast %cst_397 : f32 to vector<1x8xf32>
    %365 = arith.addf %364, %363 : vector<1x8xf32>
    %366 = tpu.reciprocal %365 {approx = true} : vector<1x8xf32> -> vector<1x8xf32>
    %367 = tpu.iota {dimensions = array<i32: 1>} : vector<1x8xi32>
    %c4_i32 = arith.constant 4 : i32
    %368 = vector.broadcast %c4_i32 : i32 to vector<1x8xi32>
    %369 = arith.cmpi slt, %367, %368 : vector<1x8xi32>
    %cst_398 = arith.constant 0.000000e+00 : f32
    %370 = vector.broadcast %cst_398 : f32 to vector<1x8xf32>
    %371 = arith.select %369, %366, %370 : vector<1x8xi1>, vector<1x8xf32>
    %cst_399 = arith.constant dense<0.000000e+00> : vector<1xf32>
    %372 = vector.multi_reduction <add>, %371, %cst_399 [1] : vector<1x8xf32> to vector<1xf32>
    %373 = vector.shape_cast %372 : vector<1xf32> to vector<1x1xf32>
    %374 = vector.broadcast %373 : vector<1x1xf32> to vector<1x8xf32>
    %375 = arith.divf %371, %374 : vector<1x8xf32>
    %c0_400 = arith.constant 0 : index
    %c0_401 = arith.constant 0 : index
    %c0_402 = arith.constant 0 : index
    %376 = vector.load %arg32[%c0_400, %c0_401, %c0_402] : memref<1x1x56xf32, #tpu.memory_space<vmem>>, vector<1x1x56xf32>
    %377 = vector.shape_cast %376 : vector<1x1x56xf32> to vector<1x56xf32>
    %378 = vector.shape_cast %348 : vector<1x56xf32> to vector<1x1x56xf32>
    tpu.vector_store %arg32[%c0_400, %c0_401, %c0_402], %378 {strides = array<i32>} : memref<1x1x56xf32, #tpu.memory_space<vmem>>, vector<1x1x56xf32>,
    %c0_403 = arith.constant 0 : index
    %c0_404 = arith.constant 0 : index
    %c0_405 = arith.constant 0 : index
    %379 = vector.load %arg33[%c0_403, %c0_404, %c0_405] : memref<1x1x16xf32, #tpu.memory_space<vmem>>, vector<1x1x16xf32>
    %380 = vector.shape_cast %379 : vector<1x1x16xf32> to vector<1x16xf32>
    %381 = vector.shape_cast %352 : vector<1x16xf32> to vector<1x1x16xf32>
    tpu.vector_store %arg33[%c0_403, %c0_404, %c0_405], %381 {strides = array<i32>} : memref<1x1x16xf32, #tpu.memory_space<vmem>>, vector<1x1x16xf32>,
    %c0_406 = arith.constant 0 : index
    %c0_407 = arith.constant 0 : index
    %c0_408 = arith.constant 0 : index
    %382 = vector.load %arg34[%c0_406, %c0_407, %c0_408] : memref<1x1x8xf32, #tpu.memory_space<vmem>>, vector<1x1x8xf32>
    %383 = vector.shape_cast %382 : vector<1x1x8xf32> to vector<1x8xf32>
    %384 = vector.shape_cast %375 : vector<1x8xf32> to vector<1x1x8xf32>
    tpu.vector_store %arg34[%c0_406, %c0_407, %c0_408], %384 {strides = array<i32>} : memref<1x1x8xf32, #tpu.memory_space<vmem>>, vector<1x1x8xf32>,
    return
  }
  func.func @transform_0(%arg0: i32) -> (i32, i32, i32) {
    %c0_i32 = arith.constant 0 : i32
    %c0_i32_0 = arith.constant 0 : i32
    %c0_i32_1 = arith.constant 0 : i32
    return %arg0, %c0_i32, %c0_i32_0 : i32, i32, i32
  }
  func.func @transform_1(%arg0: i32) -> (i32, i32, i32) {
    %c0_i32 = arith.constant 0 : i32
    %c0_i32_0 = arith.constant 0 : i32
    %c0_i32_1 = arith.constant 0 : i32
    %c0_i32_2 = arith.constant 0 : i32
    return %c0_i32, %c0_i32_0, %c0_i32_1 : i32, i32, i32
  }
  func.func @transform_2(%arg0: i32) -> (i32, i32) {
    %c0_i32 = arith.constant 0 : i32
    %c0_i32_0 = arith.constant 0 : i32
    %c0_i32_1 = arith.constant 0 : i32
    return %c0_i32, %c0_i32_0 : i32, i32
  }
  func.func @transform_3(%arg0: i32) -> (i32, i32, i32) {
    %c0_i32 = arith.constant 0 : i32
    %c0_i32_0 = arith.constant 0 : i32
    %c0_i32_1 = arith.constant 0 : i32
    %c0_i32_2 = arith.constant 0 : i32
    return %c0_i32, %c0_i32_0, %c0_i32_1 : i32, i32, i32
  }
  func.func @transform_4(%arg0: i32) -> (i32, i32) {
    %c0_i32 = arith.constant 0 : i32
    %c0_i32_0 = arith.constant 0 : i32
    %c0_i32_1 = arith.constant 0 : i32
    return %c0_i32, %c0_i32_0 : i32, i32
  }
  func.func @transform_5(%arg0: i32) -> (i32, i32, i32) {
    %c0_i32 = arith.constant 0 : i32
    %c0_i32_0 = arith.constant 0 : i32
    %c0_i32_1 = arith.constant 0 : i32
    %c0_i32_2 = arith.constant 0 : i32
    return %c0_i32, %c0_i32_0, %c0_i32_1 : i32, i32, i32
  }
  func.func @transform_6(%arg0: i32) -> (i32, i32) {
    %c0_i32 = arith.constant 0 : i32
    %c0_i32_0 = arith.constant 0 : i32
    %c0_i32_1 = arith.constant 0 : i32
    return %c0_i32, %c0_i32_0 : i32, i32
  }
  func.func @transform_7(%arg0: i32) -> (i32, i32, i32) {
    %c0_i32 = arith.constant 0 : i32
    %c0_i32_0 = arith.constant 0 : i32
    %c0_i32_1 = arith.constant 0 : i32
    %c0_i32_2 = arith.constant 0 : i32
    return %c0_i32, %c0_i32_0, %c0_i32_1 : i32, i32, i32
  }
  func.func @transform_8(%arg0: i32) -> (i32, i32) {
    %c0_i32 = arith.constant 0 : i32
    %c0_i32_0 = arith.constant 0 : i32
    %c0_i32_1 = arith.constant 0 : i32
    return %c0_i32, %c0_i32_0 : i32, i32
  }
  func.func @transform_9(%arg0: i32) -> (i32, i32, i32) {
    %c0_i32 = arith.constant 0 : i32
    %c0_i32_0 = arith.constant 0 : i32
    %c0_i32_1 = arith.constant 0 : i32
    %c0_i32_2 = arith.constant 0 : i32
    return %c0_i32, %c0_i32_0, %c0_i32_1 : i32, i32, i32
  }
  func.func @transform_10(%arg0: i32) -> (i32, i32) {
    %c0_i32 = arith.constant 0 : i32
    %c0_i32_0 = arith.constant 0 : i32
    %c0_i32_1 = arith.constant 0 : i32
    return %c0_i32, %c0_i32_0 : i32, i32
  }
  func.func @transform_11(%arg0: i32) -> (i32, i32, i32) {
    %c0_i32 = arith.constant 0 : i32
    %c0_i32_0 = arith.constant 0 : i32
    %c0_i32_1 = arith.constant 0 : i32
    %c0_i32_2 = arith.constant 0 : i32
    return %c0_i32, %c0_i32_0, %c0_i32_1 : i32, i32, i32
  }
  func.func @transform_12(%arg0: i32) -> (i32, i32) {
    %c0_i32 = arith.constant 0 : i32
    %c0_i32_0 = arith.constant 0 : i32
    %c0_i32_1 = arith.constant 0 : i32
    return %c0_i32, %c0_i32_0 : i32, i32
  }
  func.func @transform_13(%arg0: i32) -> (i32, i32, i32) {
    %c0_i32 = arith.constant 0 : i32
    %c0_i32_0 = arith.constant 0 : i32
    %c0_i32_1 = arith.constant 0 : i32
    %c0_i32_2 = arith.constant 0 : i32
    return %c0_i32, %c0_i32_0, %c0_i32_1 : i32, i32, i32
  }
  func.func @transform_14(%arg0: i32) -> (i32, i32) {
    %c0_i32 = arith.constant 0 : i32
    %c0_i32_0 = arith.constant 0 : i32
    %c0_i32_1 = arith.constant 0 : i32
    return %c0_i32, %c0_i32_0 : i32, i32
  }
  func.func @transform_15(%arg0: i32) -> (i32, i32, i32) {
    %c0_i32 = arith.constant 0 : i32
    %c0_i32_0 = arith.constant 0 : i32
    %c0_i32_1 = arith.constant 0 : i32
    %c0_i32_2 = arith.constant 0 : i32
    return %c0_i32, %c0_i32_0, %c0_i32_1 : i32, i32, i32
  }
  func.func @transform_16(%arg0: i32) -> (i32, i32) {
    %c0_i32 = arith.constant 0 : i32
    %c0_i32_0 = arith.constant 0 : i32
    %c0_i32_1 = arith.constant 0 : i32
    return %c0_i32, %c0_i32_0 : i32, i32
  }
  func.func @transform_17(%arg0: i32) -> (i32, i32, i32) {
    %c0_i32 = arith.constant 0 : i32
    %c0_i32_0 = arith.constant 0 : i32
    %c0_i32_1 = arith.constant 0 : i32
    %c0_i32_2 = arith.constant 0 : i32
    return %c0_i32, %c0_i32_0, %c0_i32_1 : i32, i32, i32
  }
  func.func @transform_18(%arg0: i32) -> (i32, i32) {
    %c0_i32 = arith.constant 0 : i32
    %c0_i32_0 = arith.constant 0 : i32
    %c0_i32_1 = arith.constant 0 : i32
    return %c0_i32, %c0_i32_0 : i32, i32
  }
  func.func @transform_19(%arg0: i32) -> (i32, i32, i32) {
    %c0_i32 = arith.constant 0 : i32
    %c0_i32_0 = arith.constant 0 : i32
    %c0_i32_1 = arith.constant 0 : i32
    %c0_i32_2 = arith.constant 0 : i32
    return %c0_i32, %c0_i32_0, %c0_i32_1 : i32, i32, i32
  }
  func.func @transform_20(%arg0: i32) -> (i32, i32) {
    %c0_i32 = arith.constant 0 : i32
    %c0_i32_0 = arith.constant 0 : i32
    %c0_i32_1 = arith.constant 0 : i32
    return %c0_i32, %c0_i32_0 : i32, i32
  }
  func.func @transform_21(%arg0: i32) -> (i32, i32, i32) {
    %c0_i32 = arith.constant 0 : i32
    %c0_i32_0 = arith.constant 0 : i32
    %c0_i32_1 = arith.constant 0 : i32
    %c0_i32_2 = arith.constant 0 : i32
    return %c0_i32, %c0_i32_0, %c0_i32_1 : i32, i32, i32
  }
  func.func @transform_22(%arg0: i32) -> (i32, i32) {
    %c0_i32 = arith.constant 0 : i32
    %c0_i32_0 = arith.constant 0 : i32
    %c0_i32_1 = arith.constant 0 : i32
    return %c0_i32, %c0_i32_0 : i32, i32
  }
  func.func @transform_23(%arg0: i32) -> (i32, i32, i32) {
    %c0_i32 = arith.constant 0 : i32
    %c0_i32_0 = arith.constant 0 : i32
    %c0_i32_1 = arith.constant 0 : i32
    %c0_i32_2 = arith.constant 0 : i32
    return %c0_i32, %c0_i32_0, %c0_i32_1 : i32, i32, i32
  }
  func.func @transform_24(%arg0: i32) -> (i32, i32) {
    %c0_i32 = arith.constant 0 : i32
    %c0_i32_0 = arith.constant 0 : i32
    %c0_i32_1 = arith.constant 0 : i32
    return %c0_i32, %c0_i32_0 : i32, i32
  }
  func.func @transform_25(%arg0: i32) -> (i32, i32) {
    %c0_i32 = arith.constant 0 : i32
    %c0_i32_0 = arith.constant 0 : i32
    %c0_i32_1 = arith.constant 0 : i32
    return %c0_i32, %c0_i32_0 : i32, i32
  }
  func.func @transform_26(%arg0: i32) -> (i32, i32) {
    %c0_i32 = arith.constant 0 : i32
    %c0_i32_0 = arith.constant 0 : i32
    %c0_i32_1 = arith.constant 0 : i32
    return %c0_i32, %c0_i32_0 : i32, i32
  }
  func.func @transform_27(%arg0: i32) -> (i32, i32) {
    %c0_i32 = arith.constant 0 : i32
    %c0_i32_0 = arith.constant 0 : i32
    %c0_i32_1 = arith.constant 0 : i32
    return %c0_i32, %c0_i32_0 : i32, i32
  }
  func.func @transform_28(%arg0: i32) -> (i32, i32) {
    %c0_i32 = arith.constant 0 : i32
    %c0_i32_0 = arith.constant 0 : i32
    %c0_i32_1 = arith.constant 0 : i32
    return %c0_i32, %c0_i32_0 : i32, i32
  }
  func.func @transform_29(%arg0: i32) -> (i32, i32) {
    %c0_i32 = arith.constant 0 : i32
    %c0_i32_0 = arith.constant 0 : i32
    %c0_i32_1 = arith.constant 0 : i32
    return %c0_i32, %c0_i32_0 : i32, i32
  }
  func.func @transform_30(%arg0: i32) -> (i32, i32) {
    %c0_i32 = arith.constant 0 : i32
    %c0_i32_0 = arith.constant 0 : i32
    %c0_i32_1 = arith.constant 0 : i32
    return %c0_i32, %c0_i32_0 : i32, i32
  }
  func.func @transform_31(%arg0: i32) -> (i32, i32, i32) {
    %c0_i32 = arith.constant 0 : i32
    %c0_i32_0 = arith.constant 0 : i32
    %c0_i32_1 = arith.constant 0 : i32
    return %arg0, %c0_i32, %c0_i32_0 : i32, i32, i32
  }
  func.func @transform_32(%arg0: i32) -> (i32, i32, i32) {
    %c0_i32 = arith.constant 0 : i32
    %c0_i32_0 = arith.constant 0 : i32
    %c0_i32_1 = arith.constant 0 : i32
    return %arg0, %c0_i32, %c0_i32_0 : i32, i32, i32
  }
  func.func @transform_33(%arg0: i32) -> (i32, i32, i32) {
    %c0_i32 = arith.constant 0 : i32
    %c0_i32_0 = arith.constant 0 : i32
    %c0_i32_1 = arith.constant 0 : i32
    return %arg0, %c0_i32, %c0_i32_0 : i32, i32, i32
  }
}

module attributes {stable_mosaic.version = 11 : i64} {
  func.func @_decoder_kernel(%arg0: i32, %arg1: memref<1x16x8xf32, #tpu.memory_space<vmem>>, %arg2: memref<8x8x64xbf16, #tpu.memory_space<vmem>>, %arg3: memref<1x64xf32, #tpu.memory_space<vmem>>, %arg4: memref<5x64x64xbf16, #tpu.memory_space<vmem>>, %arg5: memref<1x64xf32, #tpu.memory_space<vmem>>, %arg6: memref<3x64x64xbf16, #tpu.memory_space<vmem>>, %arg7: memref<1x64xf32, #tpu.memory_space<vmem>>, %arg8: memref<1x8x64xbf16, #tpu.memory_space<vmem>>, %arg9: memref<1x64xf32, #tpu.memory_space<vmem>>, %arg10: memref<8x64x128xbf16, #tpu.memory_space<vmem>>, %arg11: memref<1x128xf32, #tpu.memory_space<vmem>>, %arg12: memref<5x128x128xbf16, #tpu.memory_space<vmem>>, %arg13: memref<1x128xf32, #tpu.memory_space<vmem>>, %arg14: memref<3x128x128xbf16, #tpu.memory_space<vmem>>, %arg15: memref<1x128xf32, #tpu.memory_space<vmem>>, %arg16: memref<1x64x128xbf16, #tpu.memory_space<vmem>>, %arg17: memref<1x128xf32, #tpu.memory_space<vmem>>, %arg18: memref<8x128x128xbf16, #tpu.memory_space<vmem>>, %arg19: memref<1x128xf32, #tpu.memory_space<vmem>>, %arg20: memref<5x128x128xbf16, #tpu.memory_space<vmem>>, %arg21: memref<1x128xf32, #tpu.memory_space<vmem>>, %arg22: memref<3x128x128xbf16, #tpu.memory_space<vmem>>, %arg23: memref<1x128xf32, #tpu.memory_space<vmem>>, %arg24: memref<1x128x128xbf16, #tpu.memory_space<vmem>>, %arg25: memref<1x128xf32, #tpu.memory_space<vmem>>, %arg26: memref<3x128x8xbf16, #tpu.memory_space<vmem>>, %arg27: memref<1x8xf32, #tpu.memory_space<vmem>>, %arg28: memref<16x1xf32, #tpu.memory_space<vmem>>, %arg29: memref<1x16x8xf32, #tpu.memory_space<vmem>>, %arg30: memref<26x128xbf16, #tpu.memory_space<vmem>>, %arg31: memref<26x128xbf16, #tpu.memory_space<vmem>>, %arg32: memref<26x128xbf16, #tpu.memory_space<vmem>>, %arg33: memref<26x128xbf16, #tpu.memory_space<vmem>>) attributes {dimension_semantics = [#tpu.dimension_semantics<parallel>], iteration_bounds = array<i64: 2>, scalar_prefetch = 0 : i64, scratch_operands = 4 : i64, tpu.core_type = #tpu.core_type<tc>, window_params = [{transform_indices = @transform_0, window_bounds = array<i64: 1, 16, 8>}, {pipeline_mode = #tpu.pipeline_mode<synchronous>, transform_indices = @transform_1, window_bounds = array<i64: 8, 8, 64>}, {pipeline_mode = #tpu.pipeline_mode<synchronous>, transform_indices = @transform_2, window_bounds = array<i64: 1, 64>}, {pipeline_mode = #tpu.pipeline_mode<synchronous>, transform_indices = @transform_3, window_bounds = array<i64: 5, 64, 64>}, {pipeline_mode = #tpu.pipeline_mode<synchronous>, transform_indices = @transform_4, window_bounds = array<i64: 1, 64>}, {pipeline_mode = #tpu.pipeline_mode<synchronous>, transform_indices = @transform_5, window_bounds = array<i64: 3, 64, 64>}, {pipeline_mode = #tpu.pipeline_mode<synchronous>, transform_indices = @transform_6, window_bounds = array<i64: 1, 64>}, {pipeline_mode = #tpu.pipeline_mode<synchronous>, transform_indices = @transform_7, window_bounds = array<i64: 1, 8, 64>}, {pipeline_mode = #tpu.pipeline_mode<synchronous>, transform_indices = @transform_8, window_bounds = array<i64: 1, 64>}, {pipeline_mode = #tpu.pipeline_mode<synchronous>, transform_indices = @transform_9, window_bounds = array<i64: 8, 64, 128>}, {pipeline_mode = #tpu.pipeline_mode<synchronous>, transform_indices = @transform_10, window_bounds = array<i64: 1, 128>}, {pipeline_mode = #tpu.pipeline_mode<synchronous>, transform_indices = @transform_11, window_bounds = array<i64: 5, 128, 128>}, {pipeline_mode = #tpu.pipeline_mode<synchronous>, transform_indices = @transform_12, window_bounds = array<i64: 1, 128>}, {pipeline_mode = #tpu.pipeline_mode<synchronous>, transform_indices = @transform_13, window_bounds = array<i64: 3, 128, 128>}, {pipeline_mode = #tpu.pipeline_mode<synchronous>, transform_indices = @transform_14, window_bounds = array<i64: 1, 128>}, {pipeline_mode = #tpu.pipeline_mode<synchronous>, transform_indices = @transform_15, window_bounds = array<i64: 1, 64, 128>}, {pipeline_mode = #tpu.pipeline_mode<synchronous>, transform_indices = @transform_16, window_bounds = array<i64: 1, 128>}, {pipeline_mode = #tpu.pipeline_mode<synchronous>, transform_indices = @transform_17, window_bounds = array<i64: 8, 128, 128>}, {pipeline_mode = #tpu.pipeline_mode<synchronous>, transform_indices = @transform_18, window_bounds = array<i64: 1, 128>}, {pipeline_mode = #tpu.pipeline_mode<synchronous>, transform_indices = @transform_19, window_bounds = array<i64: 5, 128, 128>}, {pipeline_mode = #tpu.pipeline_mode<synchronous>, transform_indices = @transform_20, window_bounds = array<i64: 1, 128>}, {pipeline_mode = #tpu.pipeline_mode<synchronous>, transform_indices = @transform_21, window_bounds = array<i64: 3, 128, 128>}, {pipeline_mode = #tpu.pipeline_mode<synchronous>, transform_indices = @transform_22, window_bounds = array<i64: 1, 128>}, {pipeline_mode = #tpu.pipeline_mode<synchronous>, transform_indices = @transform_23, window_bounds = array<i64: 1, 128, 128>}, {pipeline_mode = #tpu.pipeline_mode<synchronous>, transform_indices = @transform_24, window_bounds = array<i64: 1, 128>}, {pipeline_mode = #tpu.pipeline_mode<synchronous>, transform_indices = @transform_25, window_bounds = array<i64: 3, 128, 8>}, {pipeline_mode = #tpu.pipeline_mode<synchronous>, transform_indices = @transform_26, window_bounds = array<i64: 1, 8>}, {pipeline_mode = #tpu.pipeline_mode<synchronous>, transform_indices = @transform_27, window_bounds = array<i64: 16, 1>}, {transform_indices = @transform_28, window_bounds = array<i64: 1, 16, 8>}]} {
    %cst = arith.constant 0.000000e+00 : bf16
    %0 = vector.broadcast %cst : bf16 to vector<3x128xbf16>
    %c0 = arith.constant 0 : index
    %c0_0 = arith.constant 0 : index
    %1 = vector.load %arg30[%c0, %c0_0] : memref<26x128xbf16, #tpu.memory_space<vmem>>, vector<3x128xbf16>
    tpu.vector_store %arg30[%c0, %c0_0], %0 {strides = array<i32>} : memref<26x128xbf16, #tpu.memory_space<vmem>>, vector<3x128xbf16>,
    %cst_1 = arith.constant 0.000000e+00 : bf16
    %2 = vector.broadcast %cst_1 : bf16 to vector<7x128xbf16>
    %c19 = arith.constant 19 : index
    %c0_2 = arith.constant 0 : index
    %3 = vector.load %arg30[%c19, %c0_2] : memref<26x128xbf16, #tpu.memory_space<vmem>>, vector<7x128xbf16>
    tpu.vector_store %arg30[%c19, %c0_2], %2 {strides = array<i32>} : memref<26x128xbf16, #tpu.memory_space<vmem>>, vector<7x128xbf16>,
    %cst_3 = arith.constant 0.000000e+00 : bf16
    %4 = vector.broadcast %cst_3 : bf16 to vector<3x128xbf16>
    %c0_4 = arith.constant 0 : index
    %c0_5 = arith.constant 0 : index
    %5 = vector.load %arg31[%c0_4, %c0_5] : memref<26x128xbf16, #tpu.memory_space<vmem>>, vector<3x128xbf16>
    tpu.vector_store %arg31[%c0_4, %c0_5], %4 {strides = array<i32>} : memref<26x128xbf16, #tpu.memory_space<vmem>>, vector<3x128xbf16>,
    %cst_6 = arith.constant 0.000000e+00 : bf16
    %6 = vector.broadcast %cst_6 : bf16 to vector<7x128xbf16>
    %c19_7 = arith.constant 19 : index
    %c0_8 = arith.constant 0 : index
    %7 = vector.load %arg31[%c19_7, %c0_8] : memref<26x128xbf16, #tpu.memory_space<vmem>>, vector<7x128xbf16>
    tpu.vector_store %arg31[%c19_7, %c0_8], %6 {strides = array<i32>} : memref<26x128xbf16, #tpu.memory_space<vmem>>, vector<7x128xbf16>,
    %cst_9 = arith.constant 0.000000e+00 : bf16
    %8 = vector.broadcast %cst_9 : bf16 to vector<3x128xbf16>
    %c0_10 = arith.constant 0 : index
    %c0_11 = arith.constant 0 : index
    %9 = vector.load %arg32[%c0_10, %c0_11] : memref<26x128xbf16, #tpu.memory_space<vmem>>, vector<3x128xbf16>
    tpu.vector_store %arg32[%c0_10, %c0_11], %8 {strides = array<i32>} : memref<26x128xbf16, #tpu.memory_space<vmem>>, vector<3x128xbf16>,
    %cst_12 = arith.constant 0.000000e+00 : bf16
    %10 = vector.broadcast %cst_12 : bf16 to vector<7x128xbf16>
    %c19_13 = arith.constant 19 : index
    %c0_14 = arith.constant 0 : index
    %11 = vector.load %arg32[%c19_13, %c0_14] : memref<26x128xbf16, #tpu.memory_space<vmem>>, vector<7x128xbf16>
    tpu.vector_store %arg32[%c19_13, %c0_14], %10 {strides = array<i32>} : memref<26x128xbf16, #tpu.memory_space<vmem>>, vector<7x128xbf16>,
    %cst_15 = arith.constant 0.000000e+00 : bf16
    %12 = vector.broadcast %cst_15 : bf16 to vector<3x128xbf16>
    %c0_16 = arith.constant 0 : index
    %c0_17 = arith.constant 0 : index
    %13 = vector.load %arg33[%c0_16, %c0_17] : memref<26x128xbf16, #tpu.memory_space<vmem>>, vector<3x128xbf16>
    tpu.vector_store %arg33[%c0_16, %c0_17], %12 {strides = array<i32>} : memref<26x128xbf16, #tpu.memory_space<vmem>>, vector<3x128xbf16>,
    %cst_18 = arith.constant 0.000000e+00 : bf16
    %14 = vector.broadcast %cst_18 : bf16 to vector<7x128xbf16>
    %c19_19 = arith.constant 19 : index
    %c0_20 = arith.constant 0 : index
    %15 = vector.load %arg33[%c19_19, %c0_20] : memref<26x128xbf16, #tpu.memory_space<vmem>>, vector<7x128xbf16>
    tpu.vector_store %arg33[%c19_19, %c0_20], %14 {strides = array<i32>} : memref<26x128xbf16, #tpu.memory_space<vmem>>, vector<7x128xbf16>,
    %c0_21 = arith.constant 0 : index
    %c0_22 = arith.constant 0 : index
    %c0_23 = arith.constant 0 : index
    %16 = vector.load %arg1[%c0_21, %c0_22, %c0_23] : memref<1x16x8xf32, #tpu.memory_space<vmem>>, vector<1x16x8xf32>
    %17 = vector.shape_cast %16 : vector<1x16x8xf32> to vector<16x8xf32>
    %18 = arith.truncf %17 : vector<16x8xf32> to vector<16x8xbf16>
    %c3 = arith.constant 3 : index
    %c0_24 = arith.constant 0 : index
    %19 = vector.load %arg30[%c3, %c0_24] : memref<26x128xbf16, #tpu.memory_space<vmem>>, vector<16x8xbf16>
    tpu.vector_store %arg30[%c3, %c0_24], %18 {strides = array<i32>} : memref<26x128xbf16, #tpu.memory_space<vmem>>, vector<16x8xbf16>,
    %c0_25 = arith.constant 0 : index
    %c0_26 = arith.constant 0 : index
    %20 = vector.load %arg30[%c0_25, %c0_26] : memref<26x128xbf16, #tpu.memory_space<vmem>>, vector<16x8xbf16>
    %c0_27 = arith.constant 0 : index
    %c0_28 = arith.constant 0 : index
    %c0_29 = arith.constant 0 : index
    %21 = vector.load %arg2[%c0_27, %c0_28, %c0_29] : memref<8x8x64xbf16, #tpu.memory_space<vmem>>, vector<1x8x64xbf16>
    %22 = vector.shape_cast %21 : vector<1x8x64xbf16> to vector<8x64xbf16>
    %cst_30 = arith.constant dense<0.000000e+00> : vector<16x64xf32>
    %23 = tpu.matmul %20, %22, %cst_30 {dimension_numbers = #tpu.dot_dimension_numbers<[1], [0], [0], [1], [0, 0, 1, 1], [], []>} : vector<16x8xbf16>, vector<8x64xbf16>, vector<16x64xf32> -> vector<16x64xf32>
    %c1 = arith.constant 1 : index
    %c0_31 = arith.constant 0 : index
    %24 = vector.load %arg30[%c1, %c0_31] : memref<26x128xbf16, #tpu.memory_space<vmem>>, vector<16x8xbf16>
    %c1_32 = arith.constant 1 : index
    %c0_33 = arith.constant 0 : index
    %c0_34 = arith.constant 0 : index
    %25 = vector.load %arg2[%c1_32, %c0_33, %c0_34] : memref<8x8x64xbf16, #tpu.memory_space<vmem>>, vector<1x8x64xbf16>
    %26 = vector.shape_cast %25 : vector<1x8x64xbf16> to vector<8x64xbf16>
    %cst_35 = arith.constant dense<0.000000e+00> : vector<16x64xf32>
    %27 = tpu.matmul %24, %26, %cst_35 {dimension_numbers = #tpu.dot_dimension_numbers<[1], [0], [0], [1], [0, 0, 1, 1], [], []>} : vector<16x8xbf16>, vector<8x64xbf16>, vector<16x64xf32> -> vector<16x64xf32>
    %28 = arith.addf %23, %27 : vector<16x64xf32>
    %c2 = arith.constant 2 : index
    %c0_36 = arith.constant 0 : index
    %29 = vector.load %arg30[%c2, %c0_36] : memref<26x128xbf16, #tpu.memory_space<vmem>>, vector<16x8xbf16>
    %c2_37 = arith.constant 2 : index
    %c0_38 = arith.constant 0 : index
    %c0_39 = arith.constant 0 : index
    %30 = vector.load %arg2[%c2_37, %c0_38, %c0_39] : memref<8x8x64xbf16, #tpu.memory_space<vmem>>, vector<1x8x64xbf16>
    %31 = vector.shape_cast %30 : vector<1x8x64xbf16> to vector<8x64xbf16>
    %cst_40 = arith.constant dense<0.000000e+00> : vector<16x64xf32>
    %32 = tpu.matmul %29, %31, %cst_40 {dimension_numbers = #tpu.dot_dimension_numbers<[1], [0], [0], [1], [0, 0, 1, 1], [], []>} : vector<16x8xbf16>, vector<8x64xbf16>, vector<16x64xf32> -> vector<16x64xf32>
    %33 = arith.addf %28, %32 : vector<16x64xf32>
    %c3_41 = arith.constant 3 : index
    %c0_42 = arith.constant 0 : index
    %34 = vector.load %arg30[%c3_41, %c0_42] : memref<26x128xbf16, #tpu.memory_space<vmem>>, vector<16x8xbf16>
    %c3_43 = arith.constant 3 : index
    %c0_44 = arith.constant 0 : index
    %c0_45 = arith.constant 0 : index
    %35 = vector.load %arg2[%c3_43, %c0_44, %c0_45] : memref<8x8x64xbf16, #tpu.memory_space<vmem>>, vector<1x8x64xbf16>
    %36 = vector.shape_cast %35 : vector<1x8x64xbf16> to vector<8x64xbf16>
    %cst_46 = arith.constant dense<0.000000e+00> : vector<16x64xf32>
    %37 = tpu.matmul %34, %36, %cst_46 {dimension_numbers = #tpu.dot_dimension_numbers<[1], [0], [0], [1], [0, 0, 1, 1], [], []>} : vector<16x8xbf16>, vector<8x64xbf16>, vector<16x64xf32> -> vector<16x64xf32>
    %38 = arith.addf %33, %37 : vector<16x64xf32>
    %c4 = arith.constant 4 : index
    %c0_47 = arith.constant 0 : index
    %39 = vector.load %arg30[%c4, %c0_47] : memref<26x128xbf16, #tpu.memory_space<vmem>>, vector<16x8xbf16>
    %c4_48 = arith.constant 4 : index
    %c0_49 = arith.constant 0 : index
    %c0_50 = arith.constant 0 : index
    %40 = vector.load %arg2[%c4_48, %c0_49, %c0_50] : memref<8x8x64xbf16, #tpu.memory_space<vmem>>, vector<1x8x64xbf16>
    %41 = vector.shape_cast %40 : vector<1x8x64xbf16> to vector<8x64xbf16>
    %cst_51 = arith.constant dense<0.000000e+00> : vector<16x64xf32>
    %42 = tpu.matmul %39, %41, %cst_51 {dimension_numbers = #tpu.dot_dimension_numbers<[1], [0], [0], [1], [0, 0, 1, 1], [], []>} : vector<16x8xbf16>, vector<8x64xbf16>, vector<16x64xf32> -> vector<16x64xf32>
    %43 = arith.addf %38, %42 : vector<16x64xf32>
    %c5 = arith.constant 5 : index
    %c0_52 = arith.constant 0 : index
    %44 = vector.load %arg30[%c5, %c0_52] : memref<26x128xbf16, #tpu.memory_space<vmem>>, vector<16x8xbf16>
    %c5_53 = arith.constant 5 : index
    %c0_54 = arith.constant 0 : index
    %c0_55 = arith.constant 0 : index
    %45 = vector.load %arg2[%c5_53, %c0_54, %c0_55] : memref<8x8x64xbf16, #tpu.memory_space<vmem>>, vector<1x8x64xbf16>
    %46 = vector.shape_cast %45 : vector<1x8x64xbf16> to vector<8x64xbf16>
    %cst_56 = arith.constant dense<0.000000e+00> : vector<16x64xf32>
    %47 = tpu.matmul %44, %46, %cst_56 {dimension_numbers = #tpu.dot_dimension_numbers<[1], [0], [0], [1], [0, 0, 1, 1], [], []>} : vector<16x8xbf16>, vector<8x64xbf16>, vector<16x64xf32> -> vector<16x64xf32>
    %48 = arith.addf %43, %47 : vector<16x64xf32>
    %c6 = arith.constant 6 : index
    %c0_57 = arith.constant 0 : index
    %49 = vector.load %arg30[%c6, %c0_57] : memref<26x128xbf16, #tpu.memory_space<vmem>>, vector<16x8xbf16>
    %c6_58 = arith.constant 6 : index
    %c0_59 = arith.constant 0 : index
    %c0_60 = arith.constant 0 : index
    %50 = vector.load %arg2[%c6_58, %c0_59, %c0_60] : memref<8x8x64xbf16, #tpu.memory_space<vmem>>, vector<1x8x64xbf16>
    %51 = vector.shape_cast %50 : vector<1x8x64xbf16> to vector<8x64xbf16>
    %cst_61 = arith.constant dense<0.000000e+00> : vector<16x64xf32>
    %52 = tpu.matmul %49, %51, %cst_61 {dimension_numbers = #tpu.dot_dimension_numbers<[1], [0], [0], [1], [0, 0, 1, 1], [], []>} : vector<16x8xbf16>, vector<8x64xbf16>, vector<16x64xf32> -> vector<16x64xf32>
    %53 = arith.addf %48, %52 : vector<16x64xf32>
    %c7 = arith.constant 7 : index
    %c0_62 = arith.constant 0 : index
    %54 = vector.load %arg30[%c7, %c0_62] : memref<26x128xbf16, #tpu.memory_space<vmem>>, vector<16x8xbf16>
    %c7_63 = arith.constant 7 : index
    %c0_64 = arith.constant 0 : index
    %c0_65 = arith.constant 0 : index
    %55 = vector.load %arg2[%c7_63, %c0_64, %c0_65] : memref<8x8x64xbf16, #tpu.memory_space<vmem>>, vector<1x8x64xbf16>
    %56 = vector.shape_cast %55 : vector<1x8x64xbf16> to vector<8x64xbf16>
    %cst_66 = arith.constant dense<0.000000e+00> : vector<16x64xf32>
    %57 = tpu.matmul %54, %56, %cst_66 {dimension_numbers = #tpu.dot_dimension_numbers<[1], [0], [0], [1], [0, 0, 1, 1], [], []>} : vector<16x8xbf16>, vector<8x64xbf16>, vector<16x64xf32> -> vector<16x64xf32>
    %58 = arith.addf %53, %57 : vector<16x64xf32>
    %c0_67 = arith.constant 0 : index
    %c0_68 = arith.constant 0 : index
    %59 = vector.load %arg3[%c0_67, %c0_68] : memref<1x64xf32, #tpu.memory_space<vmem>>, vector<1x64xf32>
    %60 = vector.broadcast %59 : vector<1x64xf32> to vector<16x64xf32>
    %61 = arith.addf %58, %60 : vector<16x64xf32>
    %cst_69 = arith.constant 0.000000e+00 : f32
    %62 = vector.broadcast %cst_69 : f32 to vector<16x64xf32>
    %63 = arith.maximumf %61, %62 : vector<16x64xf32>
    %64 = arith.truncf %63 : vector<16x64xf32> to vector<16x64xbf16>
    %c3_70 = arith.constant 3 : index
    %c0_71 = arith.constant 0 : index
    %65 = vector.load %arg31[%c3_70, %c0_71] : memref<26x128xbf16, #tpu.memory_space<vmem>>, vector<16x64xbf16>
    tpu.vector_store %arg31[%c3_70, %c0_71], %64 {strides = array<i32>} : memref<26x128xbf16, #tpu.memory_space<vmem>>, vector<16x64xbf16>,
    %c1_72 = arith.constant 1 : index
    %c0_73 = arith.constant 0 : index
    %66 = vector.load %arg31[%c1_72, %c0_73] : memref<26x128xbf16, #tpu.memory_space<vmem>>, vector<16x64xbf16>
    %c0_74 = arith.constant 0 : index
    %c0_75 = arith.constant 0 : index
    %c0_76 = arith.constant 0 : index
    %67 = vector.load %arg4[%c0_74, %c0_75, %c0_76] : memref<5x64x64xbf16, #tpu.memory_space<vmem>>, vector<1x64x64xbf16>
    %68 = vector.shape_cast %67 : vector<1x64x64xbf16> to vector<64x64xbf16>
    %cst_77 = arith.constant dense<0.000000e+00> : vector<16x64xf32>
    %69 = tpu.matmul %66, %68, %cst_77 {dimension_numbers = #tpu.dot_dimension_numbers<[1], [0], [0], [1], [0, 0, 1, 1], [], []>} : vector<16x64xbf16>, vector<64x64xbf16>, vector<16x64xf32> -> vector<16x64xf32>
    %c2_78 = arith.constant 2 : index
    %c0_79 = arith.constant 0 : index
    %70 = vector.load %arg31[%c2_78, %c0_79] : memref<26x128xbf16, #tpu.memory_space<vmem>>, vector<16x64xbf16>
    %c1_80 = arith.constant 1 : index
    %c0_81 = arith.constant 0 : index
    %c0_82 = arith.constant 0 : index
    %71 = vector.load %arg4[%c1_80, %c0_81, %c0_82] : memref<5x64x64xbf16, #tpu.memory_space<vmem>>, vector<1x64x64xbf16>
    %72 = vector.shape_cast %71 : vector<1x64x64xbf16> to vector<64x64xbf16>
    %cst_83 = arith.constant dense<0.000000e+00> : vector<16x64xf32>
    %73 = tpu.matmul %70, %72, %cst_83 {dimension_numbers = #tpu.dot_dimension_numbers<[1], [0], [0], [1], [0, 0, 1, 1], [], []>} : vector<16x64xbf16>, vector<64x64xbf16>, vector<16x64xf32> -> vector<16x64xf32>
    %74 = arith.addf %69, %73 : vector<16x64xf32>
    %c3_84 = arith.constant 3 : index
    %c0_85 = arith.constant 0 : index
    %75 = vector.load %arg31[%c3_84, %c0_85] : memref<26x128xbf16, #tpu.memory_space<vmem>>, vector<16x64xbf16>
    %c2_86 = arith.constant 2 : index
    %c0_87 = arith.constant 0 : index
    %c0_88 = arith.constant 0 : index
    %76 = vector.load %arg4[%c2_86, %c0_87, %c0_88] : memref<5x64x64xbf16, #tpu.memory_space<vmem>>, vector<1x64x64xbf16>
    %77 = vector.shape_cast %76 : vector<1x64x64xbf16> to vector<64x64xbf16>
    %cst_89 = arith.constant dense<0.000000e+00> : vector<16x64xf32>
    %78 = tpu.matmul %75, %77, %cst_89 {dimension_numbers = #tpu.dot_dimension_numbers<[1], [0], [0], [1], [0, 0, 1, 1], [], []>} : vector<16x64xbf16>, vector<64x64xbf16>, vector<16x64xf32> -> vector<16x64xf32>
    %79 = arith.addf %74, %78 : vector<16x64xf32>
    %c4_90 = arith.constant 4 : index
    %c0_91 = arith.constant 0 : index
    %80 = vector.load %arg31[%c4_90, %c0_91] : memref<26x128xbf16, #tpu.memory_space<vmem>>, vector<16x64xbf16>
    %c3_92 = arith.constant 3 : index
    %c0_93 = arith.constant 0 : index
    %c0_94 = arith.constant 0 : index
    %81 = vector.load %arg4[%c3_92, %c0_93, %c0_94] : memref<5x64x64xbf16, #tpu.memory_space<vmem>>, vector<1x64x64xbf16>
    %82 = vector.shape_cast %81 : vector<1x64x64xbf16> to vector<64x64xbf16>
    %cst_95 = arith.constant dense<0.000000e+00> : vector<16x64xf32>
    %83 = tpu.matmul %80, %82, %cst_95 {dimension_numbers = #tpu.dot_dimension_numbers<[1], [0], [0], [1], [0, 0, 1, 1], [], []>} : vector<16x64xbf16>, vector<64x64xbf16>, vector<16x64xf32> -> vector<16x64xf32>
    %84 = arith.addf %79, %83 : vector<16x64xf32>
    %c5_96 = arith.constant 5 : index
    %c0_97 = arith.constant 0 : index
    %85 = vector.load %arg31[%c5_96, %c0_97] : memref<26x128xbf16, #tpu.memory_space<vmem>>, vector<16x64xbf16>
    %c4_98 = arith.constant 4 : index
    %c0_99 = arith.constant 0 : index
    %c0_100 = arith.constant 0 : index
    %86 = vector.load %arg4[%c4_98, %c0_99, %c0_100] : memref<5x64x64xbf16, #tpu.memory_space<vmem>>, vector<1x64x64xbf16>
    %87 = vector.shape_cast %86 : vector<1x64x64xbf16> to vector<64x64xbf16>
    %cst_101 = arith.constant dense<0.000000e+00> : vector<16x64xf32>
    %88 = tpu.matmul %85, %87, %cst_101 {dimension_numbers = #tpu.dot_dimension_numbers<[1], [0], [0], [1], [0, 0, 1, 1], [], []>} : vector<16x64xbf16>, vector<64x64xbf16>, vector<16x64xf32> -> vector<16x64xf32>
    %89 = arith.addf %84, %88 : vector<16x64xf32>
    %c0_102 = arith.constant 0 : index
    %c0_103 = arith.constant 0 : index
    %90 = vector.load %arg5[%c0_102, %c0_103] : memref<1x64xf32, #tpu.memory_space<vmem>>, vector<1x64xf32>
    %91 = vector.broadcast %90 : vector<1x64xf32> to vector<16x64xf32>
    %92 = arith.addf %89, %91 : vector<16x64xf32>
    %cst_104 = arith.constant 0.000000e+00 : f32
    %93 = vector.broadcast %cst_104 : f32 to vector<16x64xf32>
    %94 = arith.maximumf %92, %93 : vector<16x64xf32>
    %95 = arith.truncf %94 : vector<16x64xf32> to vector<16x64xbf16>
    %c3_105 = arith.constant 3 : index
    %c0_106 = arith.constant 0 : index
    %96 = vector.load %arg32[%c3_105, %c0_106] : memref<26x128xbf16, #tpu.memory_space<vmem>>, vector<16x64xbf16>
    tpu.vector_store %arg32[%c3_105, %c0_106], %95 {strides = array<i32>} : memref<26x128xbf16, #tpu.memory_space<vmem>>, vector<16x64xbf16>,
    %c2_107 = arith.constant 2 : index
    %c0_108 = arith.constant 0 : index
    %97 = vector.load %arg32[%c2_107, %c0_108] : memref<26x128xbf16, #tpu.memory_space<vmem>>, vector<16x64xbf16>
    %c0_109 = arith.constant 0 : index
    %c0_110 = arith.constant 0 : index
    %c0_111 = arith.constant 0 : index
    %98 = vector.load %arg6[%c0_109, %c0_110, %c0_111] : memref<3x64x64xbf16, #tpu.memory_space<vmem>>, vector<1x64x64xbf16>
    %99 = vector.shape_cast %98 : vector<1x64x64xbf16> to vector<64x64xbf16>
    %cst_112 = arith.constant dense<0.000000e+00> : vector<16x64xf32>
    %100 = tpu.matmul %97, %99, %cst_112 {dimension_numbers = #tpu.dot_dimension_numbers<[1], [0], [0], [1], [0, 0, 1, 1], [], []>} : vector<16x64xbf16>, vector<64x64xbf16>, vector<16x64xf32> -> vector<16x64xf32>
    %c3_113 = arith.constant 3 : index
    %c0_114 = arith.constant 0 : index
    %101 = vector.load %arg32[%c3_113, %c0_114] : memref<26x128xbf16, #tpu.memory_space<vmem>>, vector<16x64xbf16>
    %c1_115 = arith.constant 1 : index
    %c0_116 = arith.constant 0 : index
    %c0_117 = arith.constant 0 : index
    %102 = vector.load %arg6[%c1_115, %c0_116, %c0_117] : memref<3x64x64xbf16, #tpu.memory_space<vmem>>, vector<1x64x64xbf16>
    %103 = vector.shape_cast %102 : vector<1x64x64xbf16> to vector<64x64xbf16>
    %cst_118 = arith.constant dense<0.000000e+00> : vector<16x64xf32>
    %104 = tpu.matmul %101, %103, %cst_118 {dimension_numbers = #tpu.dot_dimension_numbers<[1], [0], [0], [1], [0, 0, 1, 1], [], []>} : vector<16x64xbf16>, vector<64x64xbf16>, vector<16x64xf32> -> vector<16x64xf32>
    %105 = arith.addf %100, %104 : vector<16x64xf32>
    %c4_119 = arith.constant 4 : index
    %c0_120 = arith.constant 0 : index
    %106 = vector.load %arg32[%c4_119, %c0_120] : memref<26x128xbf16, #tpu.memory_space<vmem>>, vector<16x64xbf16>
    %c2_121 = arith.constant 2 : index
    %c0_122 = arith.constant 0 : index
    %c0_123 = arith.constant 0 : index
    %107 = vector.load %arg6[%c2_121, %c0_122, %c0_123] : memref<3x64x64xbf16, #tpu.memory_space<vmem>>, vector<1x64x64xbf16>
    %108 = vector.shape_cast %107 : vector<1x64x64xbf16> to vector<64x64xbf16>
    %cst_124 = arith.constant dense<0.000000e+00> : vector<16x64xf32>
    %109 = tpu.matmul %106, %108, %cst_124 {dimension_numbers = #tpu.dot_dimension_numbers<[1], [0], [0], [1], [0, 0, 1, 1], [], []>} : vector<16x64xbf16>, vector<64x64xbf16>, vector<16x64xf32> -> vector<16x64xf32>
    %110 = arith.addf %105, %109 : vector<16x64xf32>
    %c0_125 = arith.constant 0 : index
    %c0_126 = arith.constant 0 : index
    %111 = vector.load %arg7[%c0_125, %c0_126] : memref<1x64xf32, #tpu.memory_space<vmem>>, vector<1x64xf32>
    %112 = vector.broadcast %111 : vector<1x64xf32> to vector<16x64xf32>
    %113 = arith.addf %110, %112 : vector<16x64xf32>
    %cst_127 = arith.constant 0.000000e+00 : f32
    %114 = vector.broadcast %cst_127 : f32 to vector<16x64xf32>
    %115 = arith.maximumf %113, %114 : vector<16x64xf32>
    %c3_128 = arith.constant 3 : index
    %c0_129 = arith.constant 0 : index
    %116 = vector.load %arg30[%c3_128, %c0_129] : memref<26x128xbf16, #tpu.memory_space<vmem>>, vector<16x8xbf16>
    %c0_130 = arith.constant 0 : index
    %c0_131 = arith.constant 0 : index
    %c0_132 = arith.constant 0 : index
    %117 = vector.load %arg8[%c0_130, %c0_131, %c0_132] : memref<1x8x64xbf16, #tpu.memory_space<vmem>>, vector<1x8x64xbf16>
    %118 = vector.shape_cast %117 : vector<1x8x64xbf16> to vector<8x64xbf16>
    %cst_133 = arith.constant dense<0.000000e+00> : vector<16x64xf32>
    %119 = tpu.matmul %116, %118, %cst_133 {dimension_numbers = #tpu.dot_dimension_numbers<[1], [0], [0], [1], [0, 0, 1, 1], [], []>} : vector<16x8xbf16>, vector<8x64xbf16>, vector<16x64xf32> -> vector<16x64xf32>
    %c0_134 = arith.constant 0 : index
    %c0_135 = arith.constant 0 : index
    %120 = vector.load %arg9[%c0_134, %c0_135] : memref<1x64xf32, #tpu.memory_space<vmem>>, vector<1x64xf32>
    %121 = vector.broadcast %120 : vector<1x64xf32> to vector<16x64xf32>
    %122 = arith.addf %119, %121 : vector<16x64xf32>
    %123 = arith.addf %122, %115 : vector<16x64xf32>
    %cst_136 = arith.constant 0.000000e+00 : f32
    %124 = vector.broadcast %cst_136 : f32 to vector<16x64xf32>
    %125 = arith.maximumf %123, %124 : vector<16x64xf32>
    %126 = arith.truncf %125 : vector<16x64xf32> to vector<16x64xbf16>
    %c3_137 = arith.constant 3 : index
    %c0_138 = arith.constant 0 : index
    %127 = vector.load %arg33[%c3_137, %c0_138] : memref<26x128xbf16, #tpu.memory_space<vmem>>, vector<16x64xbf16>
    tpu.vector_store %arg33[%c3_137, %c0_138], %126 {strides = array<i32>} : memref<26x128xbf16, #tpu.memory_space<vmem>>, vector<16x64xbf16>,
    %c0_139 = arith.constant 0 : index
    %c0_140 = arith.constant 0 : index
    %128 = vector.load %arg33[%c0_139, %c0_140] : memref<26x128xbf16, #tpu.memory_space<vmem>>, vector<16x64xbf16>
    %c0_141 = arith.constant 0 : index
    %c0_142 = arith.constant 0 : index
    %c0_143 = arith.constant 0 : index
    %129 = vector.load %arg10[%c0_141, %c0_142, %c0_143] : memref<8x64x128xbf16, #tpu.memory_space<vmem>>, vector<1x64x128xbf16>
    %130 = vector.shape_cast %129 : vector<1x64x128xbf16> to vector<64x128xbf16>
    %cst_144 = arith.constant dense<0.000000e+00> : vector<16x128xf32>
    %131 = tpu.matmul %128, %130, %cst_144 {dimension_numbers = #tpu.dot_dimension_numbers<[1], [0], [0], [1], [0, 0, 1, 1], [], []>} : vector<16x64xbf16>, vector<64x128xbf16>, vector<16x128xf32> -> vector<16x128xf32>
    %c1_145 = arith.constant 1 : index
    %c0_146 = arith.constant 0 : index
    %132 = vector.load %arg33[%c1_145, %c0_146] : memref<26x128xbf16, #tpu.memory_space<vmem>>, vector<16x64xbf16>
    %c1_147 = arith.constant 1 : index
    %c0_148 = arith.constant 0 : index
    %c0_149 = arith.constant 0 : index
    %133 = vector.load %arg10[%c1_147, %c0_148, %c0_149] : memref<8x64x128xbf16, #tpu.memory_space<vmem>>, vector<1x64x128xbf16>
    %134 = vector.shape_cast %133 : vector<1x64x128xbf16> to vector<64x128xbf16>
    %cst_150 = arith.constant dense<0.000000e+00> : vector<16x128xf32>
    %135 = tpu.matmul %132, %134, %cst_150 {dimension_numbers = #tpu.dot_dimension_numbers<[1], [0], [0], [1], [0, 0, 1, 1], [], []>} : vector<16x64xbf16>, vector<64x128xbf16>, vector<16x128xf32> -> vector<16x128xf32>
    %136 = arith.addf %131, %135 : vector<16x128xf32>
    %c2_151 = arith.constant 2 : index
    %c0_152 = arith.constant 0 : index
    %137 = vector.load %arg33[%c2_151, %c0_152] : memref<26x128xbf16, #tpu.memory_space<vmem>>, vector<16x64xbf16>
    %c2_153 = arith.constant 2 : index
    %c0_154 = arith.constant 0 : index
    %c0_155 = arith.constant 0 : index
    %138 = vector.load %arg10[%c2_153, %c0_154, %c0_155] : memref<8x64x128xbf16, #tpu.memory_space<vmem>>, vector<1x64x128xbf16>
    %139 = vector.shape_cast %138 : vector<1x64x128xbf16> to vector<64x128xbf16>
    %cst_156 = arith.constant dense<0.000000e+00> : vector<16x128xf32>
    %140 = tpu.matmul %137, %139, %cst_156 {dimension_numbers = #tpu.dot_dimension_numbers<[1], [0], [0], [1], [0, 0, 1, 1], [], []>} : vector<16x64xbf16>, vector<64x128xbf16>, vector<16x128xf32> -> vector<16x128xf32>
    %141 = arith.addf %136, %140 : vector<16x128xf32>
    %c3_157 = arith.constant 3 : index
    %c0_158 = arith.constant 0 : index
    %142 = vector.load %arg33[%c3_157, %c0_158] : memref<26x128xbf16, #tpu.memory_space<vmem>>, vector<16x64xbf16>
    %c3_159 = arith.constant 3 : index
    %c0_160 = arith.constant 0 : index
    %c0_161 = arith.constant 0 : index
    %143 = vector.load %arg10[%c3_159, %c0_160, %c0_161] : memref<8x64x128xbf16, #tpu.memory_space<vmem>>, vector<1x64x128xbf16>
    %144 = vector.shape_cast %143 : vector<1x64x128xbf16> to vector<64x128xbf16>
    %cst_162 = arith.constant dense<0.000000e+00> : vector<16x128xf32>
    %145 = tpu.matmul %142, %144, %cst_162 {dimension_numbers = #tpu.dot_dimension_numbers<[1], [0], [0], [1], [0, 0, 1, 1], [], []>} : vector<16x64xbf16>, vector<64x128xbf16>, vector<16x128xf32> -> vector<16x128xf32>
    %146 = arith.addf %141, %145 : vector<16x128xf32>
    %c4_163 = arith.constant 4 : index
    %c0_164 = arith.constant 0 : index
    %147 = vector.load %arg33[%c4_163, %c0_164] : memref<26x128xbf16, #tpu.memory_space<vmem>>, vector<16x64xbf16>
    %c4_165 = arith.constant 4 : index
    %c0_166 = arith.constant 0 : index
    %c0_167 = arith.constant 0 : index
    %148 = vector.load %arg10[%c4_165, %c0_166, %c0_167] : memref<8x64x128xbf16, #tpu.memory_space<vmem>>, vector<1x64x128xbf16>
    %149 = vector.shape_cast %148 : vector<1x64x128xbf16> to vector<64x128xbf16>
    %cst_168 = arith.constant dense<0.000000e+00> : vector<16x128xf32>
    %150 = tpu.matmul %147, %149, %cst_168 {dimension_numbers = #tpu.dot_dimension_numbers<[1], [0], [0], [1], [0, 0, 1, 1], [], []>} : vector<16x64xbf16>, vector<64x128xbf16>, vector<16x128xf32> -> vector<16x128xf32>
    %151 = arith.addf %146, %150 : vector<16x128xf32>
    %c5_169 = arith.constant 5 : index
    %c0_170 = arith.constant 0 : index
    %152 = vector.load %arg33[%c5_169, %c0_170] : memref<26x128xbf16, #tpu.memory_space<vmem>>, vector<16x64xbf16>
    %c5_171 = arith.constant 5 : index
    %c0_172 = arith.constant 0 : index
    %c0_173 = arith.constant 0 : index
    %153 = vector.load %arg10[%c5_171, %c0_172, %c0_173] : memref<8x64x128xbf16, #tpu.memory_space<vmem>>, vector<1x64x128xbf16>
    %154 = vector.shape_cast %153 : vector<1x64x128xbf16> to vector<64x128xbf16>
    %cst_174 = arith.constant dense<0.000000e+00> : vector<16x128xf32>
    %155 = tpu.matmul %152, %154, %cst_174 {dimension_numbers = #tpu.dot_dimension_numbers<[1], [0], [0], [1], [0, 0, 1, 1], [], []>} : vector<16x64xbf16>, vector<64x128xbf16>, vector<16x128xf32> -> vector<16x128xf32>
    %156 = arith.addf %151, %155 : vector<16x128xf32>
    %c6_175 = arith.constant 6 : index
    %c0_176 = arith.constant 0 : index
    %157 = vector.load %arg33[%c6_175, %c0_176] : memref<26x128xbf16, #tpu.memory_space<vmem>>, vector<16x64xbf16>
    %c6_177 = arith.constant 6 : index
    %c0_178 = arith.constant 0 : index
    %c0_179 = arith.constant 0 : index
    %158 = vector.load %arg10[%c6_177, %c0_178, %c0_179] : memref<8x64x128xbf16, #tpu.memory_space<vmem>>, vector<1x64x128xbf16>
    %159 = vector.shape_cast %158 : vector<1x64x128xbf16> to vector<64x128xbf16>
    %cst_180 = arith.constant dense<0.000000e+00> : vector<16x128xf32>
    %160 = tpu.matmul %157, %159, %cst_180 {dimension_numbers = #tpu.dot_dimension_numbers<[1], [0], [0], [1], [0, 0, 1, 1], [], []>} : vector<16x64xbf16>, vector<64x128xbf16>, vector<16x128xf32> -> vector<16x128xf32>
    %161 = arith.addf %156, %160 : vector<16x128xf32>
    %c7_181 = arith.constant 7 : index
    %c0_182 = arith.constant 0 : index
    %162 = vector.load %arg33[%c7_181, %c0_182] : memref<26x128xbf16, #tpu.memory_space<vmem>>, vector<16x64xbf16>
    %c7_183 = arith.constant 7 : index
    %c0_184 = arith.constant 0 : index
    %c0_185 = arith.constant 0 : index
    %163 = vector.load %arg10[%c7_183, %c0_184, %c0_185] : memref<8x64x128xbf16, #tpu.memory_space<vmem>>, vector<1x64x128xbf16>
    %164 = vector.shape_cast %163 : vector<1x64x128xbf16> to vector<64x128xbf16>
    %cst_186 = arith.constant dense<0.000000e+00> : vector<16x128xf32>
    %165 = tpu.matmul %162, %164, %cst_186 {dimension_numbers = #tpu.dot_dimension_numbers<[1], [0], [0], [1], [0, 0, 1, 1], [], []>} : vector<16x64xbf16>, vector<64x128xbf16>, vector<16x128xf32> -> vector<16x128xf32>
    %166 = arith.addf %161, %165 : vector<16x128xf32>
    %c0_187 = arith.constant 0 : index
    %c0_188 = arith.constant 0 : index
    %167 = vector.load %arg11[%c0_187, %c0_188] : memref<1x128xf32, #tpu.memory_space<vmem>>, vector<1x128xf32>
    %168 = vector.broadcast %167 : vector<1x128xf32> to vector<16x128xf32>
    %169 = arith.addf %166, %168 : vector<16x128xf32>
    %cst_189 = arith.constant 0.000000e+00 : f32
    %170 = vector.broadcast %cst_189 : f32 to vector<16x128xf32>
    %171 = arith.maximumf %169, %170 : vector<16x128xf32>
    %172 = arith.truncf %171 : vector<16x128xf32> to vector<16x128xbf16>
    %c3_190 = arith.constant 3 : index
    %c0_191 = arith.constant 0 : index
    %173 = vector.load %arg30[%c3_190, %c0_191] : memref<26x128xbf16, #tpu.memory_space<vmem>>, vector<16x128xbf16>
    tpu.vector_store %arg30[%c3_190, %c0_191], %172 {strides = array<i32>} : memref<26x128xbf16, #tpu.memory_space<vmem>>, vector<16x128xbf16>,
    %c1_192 = arith.constant 1 : index
    %c0_193 = arith.constant 0 : index
    %174 = vector.load %arg30[%c1_192, %c0_193] : memref<26x128xbf16, #tpu.memory_space<vmem>>, vector<16x128xbf16>
    %c0_194 = arith.constant 0 : index
    %c0_195 = arith.constant 0 : index
    %c0_196 = arith.constant 0 : index
    %175 = vector.load %arg12[%c0_194, %c0_195, %c0_196] : memref<5x128x128xbf16, #tpu.memory_space<vmem>>, vector<1x128x128xbf16>
    %176 = vector.shape_cast %175 : vector<1x128x128xbf16> to vector<128x128xbf16>
    %cst_197 = arith.constant dense<0.000000e+00> : vector<16x128xf32>
    %177 = tpu.matmul %174, %176, %cst_197 {dimension_numbers = #tpu.dot_dimension_numbers<[1], [0], [0], [1], [0, 0, 1, 1], [], []>} : vector<16x128xbf16>, vector<128x128xbf16>, vector<16x128xf32> -> vector<16x128xf32>
    %c2_198 = arith.constant 2 : index
    %c0_199 = arith.constant 0 : index
    %178 = vector.load %arg30[%c2_198, %c0_199] : memref<26x128xbf16, #tpu.memory_space<vmem>>, vector<16x128xbf16>
    %c1_200 = arith.constant 1 : index
    %c0_201 = arith.constant 0 : index
    %c0_202 = arith.constant 0 : index
    %179 = vector.load %arg12[%c1_200, %c0_201, %c0_202] : memref<5x128x128xbf16, #tpu.memory_space<vmem>>, vector<1x128x128xbf16>
    %180 = vector.shape_cast %179 : vector<1x128x128xbf16> to vector<128x128xbf16>
    %cst_203 = arith.constant dense<0.000000e+00> : vector<16x128xf32>
    %181 = tpu.matmul %178, %180, %cst_203 {dimension_numbers = #tpu.dot_dimension_numbers<[1], [0], [0], [1], [0, 0, 1, 1], [], []>} : vector<16x128xbf16>, vector<128x128xbf16>, vector<16x128xf32> -> vector<16x128xf32>
    %182 = arith.addf %177, %181 : vector<16x128xf32>
    %c3_204 = arith.constant 3 : index
    %c0_205 = arith.constant 0 : index
    %183 = vector.load %arg30[%c3_204, %c0_205] : memref<26x128xbf16, #tpu.memory_space<vmem>>, vector<16x128xbf16>
    %c2_206 = arith.constant 2 : index
    %c0_207 = arith.constant 0 : index
    %c0_208 = arith.constant 0 : index
    %184 = vector.load %arg12[%c2_206, %c0_207, %c0_208] : memref<5x128x128xbf16, #tpu.memory_space<vmem>>, vector<1x128x128xbf16>
    %185 = vector.shape_cast %184 : vector<1x128x128xbf16> to vector<128x128xbf16>
    %cst_209 = arith.constant dense<0.000000e+00> : vector<16x128xf32>
    %186 = tpu.matmul %183, %185, %cst_209 {dimension_numbers = #tpu.dot_dimension_numbers<[1], [0], [0], [1], [0, 0, 1, 1], [], []>} : vector<16x128xbf16>, vector<128x128xbf16>, vector<16x128xf32> -> vector<16x128xf32>
    %187 = arith.addf %182, %186 : vector<16x128xf32>
    %c4_210 = arith.constant 4 : index
    %c0_211 = arith.constant 0 : index
    %188 = vector.load %arg30[%c4_210, %c0_211] : memref<26x128xbf16, #tpu.memory_space<vmem>>, vector<16x128xbf16>
    %c3_212 = arith.constant 3 : index
    %c0_213 = arith.constant 0 : index
    %c0_214 = arith.constant 0 : index
    %189 = vector.load %arg12[%c3_212, %c0_213, %c0_214] : memref<5x128x128xbf16, #tpu.memory_space<vmem>>, vector<1x128x128xbf16>
    %190 = vector.shape_cast %189 : vector<1x128x128xbf16> to vector<128x128xbf16>
    %cst_215 = arith.constant dense<0.000000e+00> : vector<16x128xf32>
    %191 = tpu.matmul %188, %190, %cst_215 {dimension_numbers = #tpu.dot_dimension_numbers<[1], [0], [0], [1], [0, 0, 1, 1], [], []>} : vector<16x128xbf16>, vector<128x128xbf16>, vector<16x128xf32> -> vector<16x128xf32>
    %192 = arith.addf %187, %191 : vector<16x128xf32>
    %c5_216 = arith.constant 5 : index
    %c0_217 = arith.constant 0 : index
    %193 = vector.load %arg30[%c5_216, %c0_217] : memref<26x128xbf16, #tpu.memory_space<vmem>>, vector<16x128xbf16>
    %c4_218 = arith.constant 4 : index
    %c0_219 = arith.constant 0 : index
    %c0_220 = arith.constant 0 : index
    %194 = vector.load %arg12[%c4_218, %c0_219, %c0_220] : memref<5x128x128xbf16, #tpu.memory_space<vmem>>, vector<1x128x128xbf16>
    %195 = vector.shape_cast %194 : vector<1x128x128xbf16> to vector<128x128xbf16>
    %cst_221 = arith.constant dense<0.000000e+00> : vector<16x128xf32>
    %196 = tpu.matmul %193, %195, %cst_221 {dimension_numbers = #tpu.dot_dimension_numbers<[1], [0], [0], [1], [0, 0, 1, 1], [], []>} : vector<16x128xbf16>, vector<128x128xbf16>, vector<16x128xf32> -> vector<16x128xf32>
    %197 = arith.addf %192, %196 : vector<16x128xf32>
    %c0_222 = arith.constant 0 : index
    %c0_223 = arith.constant 0 : index
    %198 = vector.load %arg13[%c0_222, %c0_223] : memref<1x128xf32, #tpu.memory_space<vmem>>, vector<1x128xf32>
    %199 = vector.broadcast %198 : vector<1x128xf32> to vector<16x128xf32>
    %200 = arith.addf %197, %199 : vector<16x128xf32>
    %cst_224 = arith.constant 0.000000e+00 : f32
    %201 = vector.broadcast %cst_224 : f32 to vector<16x128xf32>
    %202 = arith.maximumf %200, %201 : vector<16x128xf32>
    %203 = arith.truncf %202 : vector<16x128xf32> to vector<16x128xbf16>
    %c3_225 = arith.constant 3 : index
    %c0_226 = arith.constant 0 : index
    %204 = vector.load %arg31[%c3_225, %c0_226] : memref<26x128xbf16, #tpu.memory_space<vmem>>, vector<16x128xbf16>
    tpu.vector_store %arg31[%c3_225, %c0_226], %203 {strides = array<i32>} : memref<26x128xbf16, #tpu.memory_space<vmem>>, vector<16x128xbf16>,
    %c2_227 = arith.constant 2 : index
    %c0_228 = arith.constant 0 : index
    %205 = vector.load %arg31[%c2_227, %c0_228] : memref<26x128xbf16, #tpu.memory_space<vmem>>, vector<16x128xbf16>
    %c0_229 = arith.constant 0 : index
    %c0_230 = arith.constant 0 : index
    %c0_231 = arith.constant 0 : index
    %206 = vector.load %arg14[%c0_229, %c0_230, %c0_231] : memref<3x128x128xbf16, #tpu.memory_space<vmem>>, vector<1x128x128xbf16>
    %207 = vector.shape_cast %206 : vector<1x128x128xbf16> to vector<128x128xbf16>
    %cst_232 = arith.constant dense<0.000000e+00> : vector<16x128xf32>
    %208 = tpu.matmul %205, %207, %cst_232 {dimension_numbers = #tpu.dot_dimension_numbers<[1], [0], [0], [1], [0, 0, 1, 1], [], []>} : vector<16x128xbf16>, vector<128x128xbf16>, vector<16x128xf32> -> vector<16x128xf32>
    %c3_233 = arith.constant 3 : index
    %c0_234 = arith.constant 0 : index
    %209 = vector.load %arg31[%c3_233, %c0_234] : memref<26x128xbf16, #tpu.memory_space<vmem>>, vector<16x128xbf16>
    %c1_235 = arith.constant 1 : index
    %c0_236 = arith.constant 0 : index
    %c0_237 = arith.constant 0 : index
    %210 = vector.load %arg14[%c1_235, %c0_236, %c0_237] : memref<3x128x128xbf16, #tpu.memory_space<vmem>>, vector<1x128x128xbf16>
    %211 = vector.shape_cast %210 : vector<1x128x128xbf16> to vector<128x128xbf16>
    %cst_238 = arith.constant dense<0.000000e+00> : vector<16x128xf32>
    %212 = tpu.matmul %209, %211, %cst_238 {dimension_numbers = #tpu.dot_dimension_numbers<[1], [0], [0], [1], [0, 0, 1, 1], [], []>} : vector<16x128xbf16>, vector<128x128xbf16>, vector<16x128xf32> -> vector<16x128xf32>
    %213 = arith.addf %208, %212 : vector<16x128xf32>
    %c4_239 = arith.constant 4 : index
    %c0_240 = arith.constant 0 : index
    %214 = vector.load %arg31[%c4_239, %c0_240] : memref<26x128xbf16, #tpu.memory_space<vmem>>, vector<16x128xbf16>
    %c2_241 = arith.constant 2 : index
    %c0_242 = arith.constant 0 : index
    %c0_243 = arith.constant 0 : index
    %215 = vector.load %arg14[%c2_241, %c0_242, %c0_243] : memref<3x128x128xbf16, #tpu.memory_space<vmem>>, vector<1x128x128xbf16>
    %216 = vector.shape_cast %215 : vector<1x128x128xbf16> to vector<128x128xbf16>
    %cst_244 = arith.constant dense<0.000000e+00> : vector<16x128xf32>
    %217 = tpu.matmul %214, %216, %cst_244 {dimension_numbers = #tpu.dot_dimension_numbers<[1], [0], [0], [1], [0, 0, 1, 1], [], []>} : vector<16x128xbf16>, vector<128x128xbf16>, vector<16x128xf32> -> vector<16x128xf32>
    %218 = arith.addf %213, %217 : vector<16x128xf32>
    %c0_245 = arith.constant 0 : index
    %c0_246 = arith.constant 0 : index
    %219 = vector.load %arg15[%c0_245, %c0_246] : memref<1x128xf32, #tpu.memory_space<vmem>>, vector<1x128xf32>
    %220 = vector.broadcast %219 : vector<1x128xf32> to vector<16x128xf32>
    %221 = arith.addf %218, %220 : vector<16x128xf32>
    %cst_247 = arith.constant 0.000000e+00 : f32
    %222 = vector.broadcast %cst_247 : f32 to vector<16x128xf32>
    %223 = arith.maximumf %221, %222 : vector<16x128xf32>
    %c3_248 = arith.constant 3 : index
    %c0_249 = arith.constant 0 : index
    %224 = vector.load %arg33[%c3_248, %c0_249] : memref<26x128xbf16, #tpu.memory_space<vmem>>, vector<16x64xbf16>
    %c0_250 = arith.constant 0 : index
    %c0_251 = arith.constant 0 : index
    %c0_252 = arith.constant 0 : index
    %225 = vector.load %arg16[%c0_250, %c0_251, %c0_252] : memref<1x64x128xbf16, #tpu.memory_space<vmem>>, vector<1x64x128xbf16>
    %226 = vector.shape_cast %225 : vector<1x64x128xbf16> to vector<64x128xbf16>
    %cst_253 = arith.constant dense<0.000000e+00> : vector<16x128xf32>
    %227 = tpu.matmul %224, %226, %cst_253 {dimension_numbers = #tpu.dot_dimension_numbers<[1], [0], [0], [1], [0, 0, 1, 1], [], []>} : vector<16x64xbf16>, vector<64x128xbf16>, vector<16x128xf32> -> vector<16x128xf32>
    %c0_254 = arith.constant 0 : index
    %c0_255 = arith.constant 0 : index
    %228 = vector.load %arg17[%c0_254, %c0_255] : memref<1x128xf32, #tpu.memory_space<vmem>>, vector<1x128xf32>
    %229 = vector.broadcast %228 : vector<1x128xf32> to vector<16x128xf32>
    %230 = arith.addf %227, %229 : vector<16x128xf32>
    %231 = arith.addf %230, %223 : vector<16x128xf32>
    %cst_256 = arith.constant 0.000000e+00 : f32
    %232 = vector.broadcast %cst_256 : f32 to vector<16x128xf32>
    %233 = arith.maximumf %231, %232 : vector<16x128xf32>
    %234 = arith.truncf %233 : vector<16x128xf32> to vector<16x128xbf16>
    %c3_257 = arith.constant 3 : index
    %c0_258 = arith.constant 0 : index
    %235 = vector.load %arg32[%c3_257, %c0_258] : memref<26x128xbf16, #tpu.memory_space<vmem>>, vector<16x128xbf16>
    tpu.vector_store %arg32[%c3_257, %c0_258], %234 {strides = array<i32>} : memref<26x128xbf16, #tpu.memory_space<vmem>>, vector<16x128xbf16>,
    %c0_259 = arith.constant 0 : index
    %c0_260 = arith.constant 0 : index
    %236 = vector.load %arg32[%c0_259, %c0_260] : memref<26x128xbf16, #tpu.memory_space<vmem>>, vector<16x128xbf16>
    %c0_261 = arith.constant 0 : index
    %c0_262 = arith.constant 0 : index
    %c0_263 = arith.constant 0 : index
    %237 = vector.load %arg18[%c0_261, %c0_262, %c0_263] : memref<8x128x128xbf16, #tpu.memory_space<vmem>>, vector<1x128x128xbf16>
    %238 = vector.shape_cast %237 : vector<1x128x128xbf16> to vector<128x128xbf16>
    %cst_264 = arith.constant dense<0.000000e+00> : vector<16x128xf32>
    %239 = tpu.matmul %236, %238, %cst_264 {dimension_numbers = #tpu.dot_dimension_numbers<[1], [0], [0], [1], [0, 0, 1, 1], [], []>} : vector<16x128xbf16>, vector<128x128xbf16>, vector<16x128xf32> -> vector<16x128xf32>
    %c1_265 = arith.constant 1 : index
    %c0_266 = arith.constant 0 : index
    %240 = vector.load %arg32[%c1_265, %c0_266] : memref<26x128xbf16, #tpu.memory_space<vmem>>, vector<16x128xbf16>
    %c1_267 = arith.constant 1 : index
    %c0_268 = arith.constant 0 : index
    %c0_269 = arith.constant 0 : index
    %241 = vector.load %arg18[%c1_267, %c0_268, %c0_269] : memref<8x128x128xbf16, #tpu.memory_space<vmem>>, vector<1x128x128xbf16>
    %242 = vector.shape_cast %241 : vector<1x128x128xbf16> to vector<128x128xbf16>
    %cst_270 = arith.constant dense<0.000000e+00> : vector<16x128xf32>
    %243 = tpu.matmul %240, %242, %cst_270 {dimension_numbers = #tpu.dot_dimension_numbers<[1], [0], [0], [1], [0, 0, 1, 1], [], []>} : vector<16x128xbf16>, vector<128x128xbf16>, vector<16x128xf32> -> vector<16x128xf32>
    %244 = arith.addf %239, %243 : vector<16x128xf32>
    %c2_271 = arith.constant 2 : index
    %c0_272 = arith.constant 0 : index
    %245 = vector.load %arg32[%c2_271, %c0_272] : memref<26x128xbf16, #tpu.memory_space<vmem>>, vector<16x128xbf16>
    %c2_273 = arith.constant 2 : index
    %c0_274 = arith.constant 0 : index
    %c0_275 = arith.constant 0 : index
    %246 = vector.load %arg18[%c2_273, %c0_274, %c0_275] : memref<8x128x128xbf16, #tpu.memory_space<vmem>>, vector<1x128x128xbf16>
    %247 = vector.shape_cast %246 : vector<1x128x128xbf16> to vector<128x128xbf16>
    %cst_276 = arith.constant dense<0.000000e+00> : vector<16x128xf32>
    %248 = tpu.matmul %245, %247, %cst_276 {dimension_numbers = #tpu.dot_dimension_numbers<[1], [0], [0], [1], [0, 0, 1, 1], [], []>} : vector<16x128xbf16>, vector<128x128xbf16>, vector<16x128xf32> -> vector<16x128xf32>
    %249 = arith.addf %244, %248 : vector<16x128xf32>
    %c3_277 = arith.constant 3 : index
    %c0_278 = arith.constant 0 : index
    %250 = vector.load %arg32[%c3_277, %c0_278] : memref<26x128xbf16, #tpu.memory_space<vmem>>, vector<16x128xbf16>
    %c3_279 = arith.constant 3 : index
    %c0_280 = arith.constant 0 : index
    %c0_281 = arith.constant 0 : index
    %251 = vector.load %arg18[%c3_279, %c0_280, %c0_281] : memref<8x128x128xbf16, #tpu.memory_space<vmem>>, vector<1x128x128xbf16>
    %252 = vector.shape_cast %251 : vector<1x128x128xbf16> to vector<128x128xbf16>
    %cst_282 = arith.constant dense<0.000000e+00> : vector<16x128xf32>
    %253 = tpu.matmul %250, %252, %cst_282 {dimension_numbers = #tpu.dot_dimension_numbers<[1], [0], [0], [1], [0, 0, 1, 1], [], []>} : vector<16x128xbf16>, vector<128x128xbf16>, vector<16x128xf32> -> vector<16x128xf32>
    %254 = arith.addf %249, %253 : vector<16x128xf32>
    %c4_283 = arith.constant 4 : index
    %c0_284 = arith.constant 0 : index
    %255 = vector.load %arg32[%c4_283, %c0_284] : memref<26x128xbf16, #tpu.memory_space<vmem>>, vector<16x128xbf16>
    %c4_285 = arith.constant 4 : index
    %c0_286 = arith.constant 0 : index
    %c0_287 = arith.constant 0 : index
    %256 = vector.load %arg18[%c4_285, %c0_286, %c0_287] : memref<8x128x128xbf16, #tpu.memory_space<vmem>>, vector<1x128x128xbf16>
    %257 = vector.shape_cast %256 : vector<1x128x128xbf16> to vector<128x128xbf16>
    %cst_288 = arith.constant dense<0.000000e+00> : vector<16x128xf32>
    %258 = tpu.matmul %255, %257, %cst_288 {dimension_numbers = #tpu.dot_dimension_numbers<[1], [0], [0], [1], [0, 0, 1, 1], [], []>} : vector<16x128xbf16>, vector<128x128xbf16>, vector<16x128xf32> -> vector<16x128xf32>
    %259 = arith.addf %254, %258 : vector<16x128xf32>
    %c5_289 = arith.constant 5 : index
    %c0_290 = arith.constant 0 : index
    %260 = vector.load %arg32[%c5_289, %c0_290] : memref<26x128xbf16, #tpu.memory_space<vmem>>, vector<16x128xbf16>
    %c5_291 = arith.constant 5 : index
    %c0_292 = arith.constant 0 : index
    %c0_293 = arith.constant 0 : index
    %261 = vector.load %arg18[%c5_291, %c0_292, %c0_293] : memref<8x128x128xbf16, #tpu.memory_space<vmem>>, vector<1x128x128xbf16>
    %262 = vector.shape_cast %261 : vector<1x128x128xbf16> to vector<128x128xbf16>
    %cst_294 = arith.constant dense<0.000000e+00> : vector<16x128xf32>
    %263 = tpu.matmul %260, %262, %cst_294 {dimension_numbers = #tpu.dot_dimension_numbers<[1], [0], [0], [1], [0, 0, 1, 1], [], []>} : vector<16x128xbf16>, vector<128x128xbf16>, vector<16x128xf32> -> vector<16x128xf32>
    %264 = arith.addf %259, %263 : vector<16x128xf32>
    %c6_295 = arith.constant 6 : index
    %c0_296 = arith.constant 0 : index
    %265 = vector.load %arg32[%c6_295, %c0_296] : memref<26x128xbf16, #tpu.memory_space<vmem>>, vector<16x128xbf16>
    %c6_297 = arith.constant 6 : index
    %c0_298 = arith.constant 0 : index
    %c0_299 = arith.constant 0 : index
    %266 = vector.load %arg18[%c6_297, %c0_298, %c0_299] : memref<8x128x128xbf16, #tpu.memory_space<vmem>>, vector<1x128x128xbf16>
    %267 = vector.shape_cast %266 : vector<1x128x128xbf16> to vector<128x128xbf16>
    %cst_300 = arith.constant dense<0.000000e+00> : vector<16x128xf32>
    %268 = tpu.matmul %265, %267, %cst_300 {dimension_numbers = #tpu.dot_dimension_numbers<[1], [0], [0], [1], [0, 0, 1, 1], [], []>} : vector<16x128xbf16>, vector<128x128xbf16>, vector<16x128xf32> -> vector<16x128xf32>
    %269 = arith.addf %264, %268 : vector<16x128xf32>
    %c7_301 = arith.constant 7 : index
    %c0_302 = arith.constant 0 : index
    %270 = vector.load %arg32[%c7_301, %c0_302] : memref<26x128xbf16, #tpu.memory_space<vmem>>, vector<16x128xbf16>
    %c7_303 = arith.constant 7 : index
    %c0_304 = arith.constant 0 : index
    %c0_305 = arith.constant 0 : index
    %271 = vector.load %arg18[%c7_303, %c0_304, %c0_305] : memref<8x128x128xbf16, #tpu.memory_space<vmem>>, vector<1x128x128xbf16>
    %272 = vector.shape_cast %271 : vector<1x128x128xbf16> to vector<128x128xbf16>
    %cst_306 = arith.constant dense<0.000000e+00> : vector<16x128xf32>
    %273 = tpu.matmul %270, %272, %cst_306 {dimension_numbers = #tpu.dot_dimension_numbers<[1], [0], [0], [1], [0, 0, 1, 1], [], []>} : vector<16x128xbf16>, vector<128x128xbf16>, vector<16x128xf32> -> vector<16x128xf32>
    %274 = arith.addf %269, %273 : vector<16x128xf32>
    %c0_307 = arith.constant 0 : index
    %c0_308 = arith.constant 0 : index
    %275 = vector.load %arg19[%c0_307, %c0_308] : memref<1x128xf32, #tpu.memory_space<vmem>>, vector<1x128xf32>
    %276 = vector.broadcast %275 : vector<1x128xf32> to vector<16x128xf32>
    %277 = arith.addf %274, %276 : vector<16x128xf32>
    %cst_309 = arith.constant 0.000000e+00 : f32
    %278 = vector.broadcast %cst_309 : f32 to vector<16x128xf32>
    %279 = arith.maximumf %277, %278 : vector<16x128xf32>
    %280 = arith.truncf %279 : vector<16x128xf32> to vector<16x128xbf16>
    %c3_310 = arith.constant 3 : index
    %c0_311 = arith.constant 0 : index
    %281 = vector.load %arg33[%c3_310, %c0_311] : memref<26x128xbf16, #tpu.memory_space<vmem>>, vector<16x128xbf16>
    tpu.vector_store %arg33[%c3_310, %c0_311], %280 {strides = array<i32>} : memref<26x128xbf16, #tpu.memory_space<vmem>>, vector<16x128xbf16>,
    %c1_312 = arith.constant 1 : index
    %c0_313 = arith.constant 0 : index
    %282 = vector.load %arg33[%c1_312, %c0_313] : memref<26x128xbf16, #tpu.memory_space<vmem>>, vector<16x128xbf16>
    %c0_314 = arith.constant 0 : index
    %c0_315 = arith.constant 0 : index
    %c0_316 = arith.constant 0 : index
    %283 = vector.load %arg20[%c0_314, %c0_315, %c0_316] : memref<5x128x128xbf16, #tpu.memory_space<vmem>>, vector<1x128x128xbf16>
    %284 = vector.shape_cast %283 : vector<1x128x128xbf16> to vector<128x128xbf16>
    %cst_317 = arith.constant dense<0.000000e+00> : vector<16x128xf32>
    %285 = tpu.matmul %282, %284, %cst_317 {dimension_numbers = #tpu.dot_dimension_numbers<[1], [0], [0], [1], [0, 0, 1, 1], [], []>} : vector<16x128xbf16>, vector<128x128xbf16>, vector<16x128xf32> -> vector<16x128xf32>
    %c2_318 = arith.constant 2 : index
    %c0_319 = arith.constant 0 : index
    %286 = vector.load %arg33[%c2_318, %c0_319] : memref<26x128xbf16, #tpu.memory_space<vmem>>, vector<16x128xbf16>
    %c1_320 = arith.constant 1 : index
    %c0_321 = arith.constant 0 : index
    %c0_322 = arith.constant 0 : index
    %287 = vector.load %arg20[%c1_320, %c0_321, %c0_322] : memref<5x128x128xbf16, #tpu.memory_space<vmem>>, vector<1x128x128xbf16>
    %288 = vector.shape_cast %287 : vector<1x128x128xbf16> to vector<128x128xbf16>
    %cst_323 = arith.constant dense<0.000000e+00> : vector<16x128xf32>
    %289 = tpu.matmul %286, %288, %cst_323 {dimension_numbers = #tpu.dot_dimension_numbers<[1], [0], [0], [1], [0, 0, 1, 1], [], []>} : vector<16x128xbf16>, vector<128x128xbf16>, vector<16x128xf32> -> vector<16x128xf32>
    %290 = arith.addf %285, %289 : vector<16x128xf32>
    %c3_324 = arith.constant 3 : index
    %c0_325 = arith.constant 0 : index
    %291 = vector.load %arg33[%c3_324, %c0_325] : memref<26x128xbf16, #tpu.memory_space<vmem>>, vector<16x128xbf16>
    %c2_326 = arith.constant 2 : index
    %c0_327 = arith.constant 0 : index
    %c0_328 = arith.constant 0 : index
    %292 = vector.load %arg20[%c2_326, %c0_327, %c0_328] : memref<5x128x128xbf16, #tpu.memory_space<vmem>>, vector<1x128x128xbf16>
    %293 = vector.shape_cast %292 : vector<1x128x128xbf16> to vector<128x128xbf16>
    %cst_329 = arith.constant dense<0.000000e+00> : vector<16x128xf32>
    %294 = tpu.matmul %291, %293, %cst_329 {dimension_numbers = #tpu.dot_dimension_numbers<[1], [0], [0], [1], [0, 0, 1, 1], [], []>} : vector<16x128xbf16>, vector<128x128xbf16>, vector<16x128xf32> -> vector<16x128xf32>
    %295 = arith.addf %290, %294 : vector<16x128xf32>
    %c4_330 = arith.constant 4 : index
    %c0_331 = arith.constant 0 : index
    %296 = vector.load %arg33[%c4_330, %c0_331] : memref<26x128xbf16, #tpu.memory_space<vmem>>, vector<16x128xbf16>
    %c3_332 = arith.constant 3 : index
    %c0_333 = arith.constant 0 : index
    %c0_334 = arith.constant 0 : index
    %297 = vector.load %arg20[%c3_332, %c0_333, %c0_334] : memref<5x128x128xbf16, #tpu.memory_space<vmem>>, vector<1x128x128xbf16>
    %298 = vector.shape_cast %297 : vector<1x128x128xbf16> to vector<128x128xbf16>
    %cst_335 = arith.constant dense<0.000000e+00> : vector<16x128xf32>
    %299 = tpu.matmul %296, %298, %cst_335 {dimension_numbers = #tpu.dot_dimension_numbers<[1], [0], [0], [1], [0, 0, 1, 1], [], []>} : vector<16x128xbf16>, vector<128x128xbf16>, vector<16x128xf32> -> vector<16x128xf32>
    %300 = arith.addf %295, %299 : vector<16x128xf32>
    %c5_336 = arith.constant 5 : index
    %c0_337 = arith.constant 0 : index
    %301 = vector.load %arg33[%c5_336, %c0_337] : memref<26x128xbf16, #tpu.memory_space<vmem>>, vector<16x128xbf16>
    %c4_338 = arith.constant 4 : index
    %c0_339 = arith.constant 0 : index
    %c0_340 = arith.constant 0 : index
    %302 = vector.load %arg20[%c4_338, %c0_339, %c0_340] : memref<5x128x128xbf16, #tpu.memory_space<vmem>>, vector<1x128x128xbf16>
    %303 = vector.shape_cast %302 : vector<1x128x128xbf16> to vector<128x128xbf16>
    %cst_341 = arith.constant dense<0.000000e+00> : vector<16x128xf32>
    %304 = tpu.matmul %301, %303, %cst_341 {dimension_numbers = #tpu.dot_dimension_numbers<[1], [0], [0], [1], [0, 0, 1, 1], [], []>} : vector<16x128xbf16>, vector<128x128xbf16>, vector<16x128xf32> -> vector<16x128xf32>
    %305 = arith.addf %300, %304 : vector<16x128xf32>
    %c0_342 = arith.constant 0 : index
    %c0_343 = arith.constant 0 : index
    %306 = vector.load %arg21[%c0_342, %c0_343] : memref<1x128xf32, #tpu.memory_space<vmem>>, vector<1x128xf32>
    %307 = vector.broadcast %306 : vector<1x128xf32> to vector<16x128xf32>
    %308 = arith.addf %305, %307 : vector<16x128xf32>
    %cst_344 = arith.constant 0.000000e+00 : f32
    %309 = vector.broadcast %cst_344 : f32 to vector<16x128xf32>
    %310 = arith.maximumf %308, %309 : vector<16x128xf32>
    %311 = arith.truncf %310 : vector<16x128xf32> to vector<16x128xbf16>
    %c3_345 = arith.constant 3 : index
    %c0_346 = arith.constant 0 : index
    %312 = vector.load %arg30[%c3_345, %c0_346] : memref<26x128xbf16, #tpu.memory_space<vmem>>, vector<16x128xbf16>
    tpu.vector_store %arg30[%c3_345, %c0_346], %311 {strides = array<i32>} : memref<26x128xbf16, #tpu.memory_space<vmem>>, vector<16x128xbf16>,
    %c2_347 = arith.constant 2 : index
    %c0_348 = arith.constant 0 : index
    %313 = vector.load %arg30[%c2_347, %c0_348] : memref<26x128xbf16, #tpu.memory_space<vmem>>, vector<16x128xbf16>
    %c0_349 = arith.constant 0 : index
    %c0_350 = arith.constant 0 : index
    %c0_351 = arith.constant 0 : index
    %314 = vector.load %arg22[%c0_349, %c0_350, %c0_351] : memref<3x128x128xbf16, #tpu.memory_space<vmem>>, vector<1x128x128xbf16>
    %315 = vector.shape_cast %314 : vector<1x128x128xbf16> to vector<128x128xbf16>
    %cst_352 = arith.constant dense<0.000000e+00> : vector<16x128xf32>
    %316 = tpu.matmul %313, %315, %cst_352 {dimension_numbers = #tpu.dot_dimension_numbers<[1], [0], [0], [1], [0, 0, 1, 1], [], []>} : vector<16x128xbf16>, vector<128x128xbf16>, vector<16x128xf32> -> vector<16x128xf32>
    %c3_353 = arith.constant 3 : index
    %c0_354 = arith.constant 0 : index
    %317 = vector.load %arg30[%c3_353, %c0_354] : memref<26x128xbf16, #tpu.memory_space<vmem>>, vector<16x128xbf16>
    %c1_355 = arith.constant 1 : index
    %c0_356 = arith.constant 0 : index
    %c0_357 = arith.constant 0 : index
    %318 = vector.load %arg22[%c1_355, %c0_356, %c0_357] : memref<3x128x128xbf16, #tpu.memory_space<vmem>>, vector<1x128x128xbf16>
    %319 = vector.shape_cast %318 : vector<1x128x128xbf16> to vector<128x128xbf16>
    %cst_358 = arith.constant dense<0.000000e+00> : vector<16x128xf32>
    %320 = tpu.matmul %317, %319, %cst_358 {dimension_numbers = #tpu.dot_dimension_numbers<[1], [0], [0], [1], [0, 0, 1, 1], [], []>} : vector<16x128xbf16>, vector<128x128xbf16>, vector<16x128xf32> -> vector<16x128xf32>
    %321 = arith.addf %316, %320 : vector<16x128xf32>
    %c4_359 = arith.constant 4 : index
    %c0_360 = arith.constant 0 : index
    %322 = vector.load %arg30[%c4_359, %c0_360] : memref<26x128xbf16, #tpu.memory_space<vmem>>, vector<16x128xbf16>
    %c2_361 = arith.constant 2 : index
    %c0_362 = arith.constant 0 : index
    %c0_363 = arith.constant 0 : index
    %323 = vector.load %arg22[%c2_361, %c0_362, %c0_363] : memref<3x128x128xbf16, #tpu.memory_space<vmem>>, vector<1x128x128xbf16>
    %324 = vector.shape_cast %323 : vector<1x128x128xbf16> to vector<128x128xbf16>
    %cst_364 = arith.constant dense<0.000000e+00> : vector<16x128xf32>
    %325 = tpu.matmul %322, %324, %cst_364 {dimension_numbers = #tpu.dot_dimension_numbers<[1], [0], [0], [1], [0, 0, 1, 1], [], []>} : vector<16x128xbf16>, vector<128x128xbf16>, vector<16x128xf32> -> vector<16x128xf32>
    %326 = arith.addf %321, %325 : vector<16x128xf32>
    %c0_365 = arith.constant 0 : index
    %c0_366 = arith.constant 0 : index
    %327 = vector.load %arg23[%c0_365, %c0_366] : memref<1x128xf32, #tpu.memory_space<vmem>>, vector<1x128xf32>
    %328 = vector.broadcast %327 : vector<1x128xf32> to vector<16x128xf32>
    %329 = arith.addf %326, %328 : vector<16x128xf32>
    %cst_367 = arith.constant 0.000000e+00 : f32
    %330 = vector.broadcast %cst_367 : f32 to vector<16x128xf32>
    %331 = arith.maximumf %329, %330 : vector<16x128xf32>
    %c3_368 = arith.constant 3 : index
    %c0_369 = arith.constant 0 : index
    %332 = vector.load %arg32[%c3_368, %c0_369] : memref<26x128xbf16, #tpu.memory_space<vmem>>, vector<16x128xbf16>
    %c0_370 = arith.constant 0 : index
    %c0_371 = arith.constant 0 : index
    %c0_372 = arith.constant 0 : index
    %333 = vector.load %arg24[%c0_370, %c0_371, %c0_372] : memref<1x128x128xbf16, #tpu.memory_space<vmem>>, vector<1x128x128xbf16>
    %334 = vector.shape_cast %333 : vector<1x128x128xbf16> to vector<128x128xbf16>
    %cst_373 = arith.constant dense<0.000000e+00> : vector<16x128xf32>
    %335 = tpu.matmul %332, %334, %cst_373 {dimension_numbers = #tpu.dot_dimension_numbers<[1], [0], [0], [1], [0, 0, 1, 1], [], []>} : vector<16x128xbf16>, vector<128x128xbf16>, vector<16x128xf32> -> vector<16x128xf32>
    %c0_374 = arith.constant 0 : index
    %c0_375 = arith.constant 0 : index
    %336 = vector.load %arg25[%c0_374, %c0_375] : memref<1x128xf32, #tpu.memory_space<vmem>>, vector<1x128xf32>
    %337 = vector.broadcast %336 : vector<1x128xf32> to vector<16x128xf32>
    %338 = arith.addf %335, %337 : vector<16x128xf32>
    %339 = arith.addf %338, %331 : vector<16x128xf32>
    %cst_376 = arith.constant 0.000000e+00 : f32
    %340 = vector.broadcast %cst_376 : f32 to vector<16x128xf32>
    %341 = arith.maximumf %339, %340 : vector<16x128xf32>
    %342 = arith.truncf %341 : vector<16x128xf32> to vector<16x128xbf16>
    %c3_377 = arith.constant 3 : index
    %c0_378 = arith.constant 0 : index
    %343 = vector.load %arg31[%c3_377, %c0_378] : memref<26x128xbf16, #tpu.memory_space<vmem>>, vector<16x128xbf16>
    tpu.vector_store %arg31[%c3_377, %c0_378], %342 {strides = array<i32>} : memref<26x128xbf16, #tpu.memory_space<vmem>>, vector<16x128xbf16>,
    %c2_379 = arith.constant 2 : index
    %c0_380 = arith.constant 0 : index
    %344 = vector.load %arg31[%c2_379, %c0_380] : memref<26x128xbf16, #tpu.memory_space<vmem>>, vector<16x128xbf16>
    %c0_381 = arith.constant 0 : index
    %c0_382 = arith.constant 0 : index
    %c0_383 = arith.constant 0 : index
    %345 = vector.load %arg26[%c0_381, %c0_382, %c0_383] : memref<3x128x8xbf16, #tpu.memory_space<vmem>>, vector<1x128x8xbf16>
    %346 = vector.shape_cast %345 : vector<1x128x8xbf16> to vector<128x8xbf16>
    %cst_384 = arith.constant dense<0.000000e+00> : vector<16x8xf32>
    %347 = tpu.matmul %344, %346, %cst_384 {dimension_numbers = #tpu.dot_dimension_numbers<[1], [0], [0], [1], [0, 0, 1, 1], [], []>} : vector<16x128xbf16>, vector<128x8xbf16>, vector<16x8xf32> -> vector<16x8xf32>
    %c3_385 = arith.constant 3 : index
    %c0_386 = arith.constant 0 : index
    %348 = vector.load %arg31[%c3_385, %c0_386] : memref<26x128xbf16, #tpu.memory_space<vmem>>, vector<16x128xbf16>
    %c1_387 = arith.constant 1 : index
    %c0_388 = arith.constant 0 : index
    %c0_389 = arith.constant 0 : index
    %349 = vector.load %arg26[%c1_387, %c0_388, %c0_389] : memref<3x128x8xbf16, #tpu.memory_space<vmem>>, vector<1x128x8xbf16>
    %350 = vector.shape_cast %349 : vector<1x128x8xbf16> to vector<128x8xbf16>
    %cst_390 = arith.constant dense<0.000000e+00> : vector<16x8xf32>
    %351 = tpu.matmul %348, %350, %cst_390 {dimension_numbers = #tpu.dot_dimension_numbers<[1], [0], [0], [1], [0, 0, 1, 1], [], []>} : vector<16x128xbf16>, vector<128x8xbf16>, vector<16x8xf32> -> vector<16x8xf32>
    %352 = arith.addf %347, %351 : vector<16x8xf32>
    %c4_391 = arith.constant 4 : index
    %c0_392 = arith.constant 0 : index
    %353 = vector.load %arg31[%c4_391, %c0_392] : memref<26x128xbf16, #tpu.memory_space<vmem>>, vector<16x128xbf16>
    %c2_393 = arith.constant 2 : index
    %c0_394 = arith.constant 0 : index
    %c0_395 = arith.constant 0 : index
    %354 = vector.load %arg26[%c2_393, %c0_394, %c0_395] : memref<3x128x8xbf16, #tpu.memory_space<vmem>>, vector<1x128x8xbf16>
    %355 = vector.shape_cast %354 : vector<1x128x8xbf16> to vector<128x8xbf16>
    %cst_396 = arith.constant dense<0.000000e+00> : vector<16x8xf32>
    %356 = tpu.matmul %353, %355, %cst_396 {dimension_numbers = #tpu.dot_dimension_numbers<[1], [0], [0], [1], [0, 0, 1, 1], [], []>} : vector<16x128xbf16>, vector<128x8xbf16>, vector<16x8xf32> -> vector<16x8xf32>
    %357 = arith.addf %352, %356 : vector<16x8xf32>
    %c0_397 = arith.constant 0 : index
    %c0_398 = arith.constant 0 : index
    %358 = vector.load %arg27[%c0_397, %c0_398] : memref<1x8xf32, #tpu.memory_space<vmem>>, vector<1x8xf32>
    %359 = vector.broadcast %358 : vector<1x8xf32> to vector<16x8xf32>
    %360 = arith.addf %357, %359 : vector<16x8xf32>
    %c0_399 = arith.constant 0 : index
    %c0_400 = arith.constant 0 : index
    %c0_401 = arith.constant 0 : index
    %361 = vector.load %arg29[%c0_399, %c0_400, %c0_401] : memref<1x16x8xf32, #tpu.memory_space<vmem>>, vector<1x16x8xf32>
    %362 = vector.shape_cast %361 : vector<1x16x8xf32> to vector<16x8xf32>
    %363 = vector.shape_cast %360 : vector<16x8xf32> to vector<1x16x8xf32>
    tpu.vector_store %arg29[%c0_399, %c0_400, %c0_401], %363 {strides = array<i32>} : memref<1x16x8xf32, #tpu.memory_space<vmem>>, vector<1x16x8xf32>,
    return
  }
  func.func @transform_0(%arg0: i32) -> (i32, i32, i32) {
    %c0_i32 = arith.constant 0 : i32
    %c0_i32_0 = arith.constant 0 : i32
    %c0_i32_1 = arith.constant 0 : i32
    return %arg0, %c0_i32, %c0_i32_0 : i32, i32, i32
  }
  func.func @transform_1(%arg0: i32) -> (i32, i32, i32) {
    %c0_i32 = arith.constant 0 : i32
    %c0_i32_0 = arith.constant 0 : i32
    %c0_i32_1 = arith.constant 0 : i32
    %c0_i32_2 = arith.constant 0 : i32
    return %c0_i32, %c0_i32_0, %c0_i32_1 : i32, i32, i32
  }
  func.func @transform_2(%arg0: i32) -> (i32, i32) {
    %c0_i32 = arith.constant 0 : i32
    %c0_i32_0 = arith.constant 0 : i32
    %c0_i32_1 = arith.constant 0 : i32
    return %c0_i32, %c0_i32_0 : i32, i32
  }
  func.func @transform_3(%arg0: i32) -> (i32, i32, i32) {
    %c0_i32 = arith.constant 0 : i32
    %c0_i32_0 = arith.constant 0 : i32
    %c0_i32_1 = arith.constant 0 : i32
    %c0_i32_2 = arith.constant 0 : i32
    return %c0_i32, %c0_i32_0, %c0_i32_1 : i32, i32, i32
  }
  func.func @transform_4(%arg0: i32) -> (i32, i32) {
    %c0_i32 = arith.constant 0 : i32
    %c0_i32_0 = arith.constant 0 : i32
    %c0_i32_1 = arith.constant 0 : i32
    return %c0_i32, %c0_i32_0 : i32, i32
  }
  func.func @transform_5(%arg0: i32) -> (i32, i32, i32) {
    %c0_i32 = arith.constant 0 : i32
    %c0_i32_0 = arith.constant 0 : i32
    %c0_i32_1 = arith.constant 0 : i32
    %c0_i32_2 = arith.constant 0 : i32
    return %c0_i32, %c0_i32_0, %c0_i32_1 : i32, i32, i32
  }
  func.func @transform_6(%arg0: i32) -> (i32, i32) {
    %c0_i32 = arith.constant 0 : i32
    %c0_i32_0 = arith.constant 0 : i32
    %c0_i32_1 = arith.constant 0 : i32
    return %c0_i32, %c0_i32_0 : i32, i32
  }
  func.func @transform_7(%arg0: i32) -> (i32, i32, i32) {
    %c0_i32 = arith.constant 0 : i32
    %c0_i32_0 = arith.constant 0 : i32
    %c0_i32_1 = arith.constant 0 : i32
    %c0_i32_2 = arith.constant 0 : i32
    return %c0_i32, %c0_i32_0, %c0_i32_1 : i32, i32, i32
  }
  func.func @transform_8(%arg0: i32) -> (i32, i32) {
    %c0_i32 = arith.constant 0 : i32
    %c0_i32_0 = arith.constant 0 : i32
    %c0_i32_1 = arith.constant 0 : i32
    return %c0_i32, %c0_i32_0 : i32, i32
  }
  func.func @transform_9(%arg0: i32) -> (i32, i32, i32) {
    %c0_i32 = arith.constant 0 : i32
    %c0_i32_0 = arith.constant 0 : i32
    %c0_i32_1 = arith.constant 0 : i32
    %c0_i32_2 = arith.constant 0 : i32
    return %c0_i32, %c0_i32_0, %c0_i32_1 : i32, i32, i32
  }
  func.func @transform_10(%arg0: i32) -> (i32, i32) {
    %c0_i32 = arith.constant 0 : i32
    %c0_i32_0 = arith.constant 0 : i32
    %c0_i32_1 = arith.constant 0 : i32
    return %c0_i32, %c0_i32_0 : i32, i32
  }
  func.func @transform_11(%arg0: i32) -> (i32, i32, i32) {
    %c0_i32 = arith.constant 0 : i32
    %c0_i32_0 = arith.constant 0 : i32
    %c0_i32_1 = arith.constant 0 : i32
    %c0_i32_2 = arith.constant 0 : i32
    return %c0_i32, %c0_i32_0, %c0_i32_1 : i32, i32, i32
  }
  func.func @transform_12(%arg0: i32) -> (i32, i32) {
    %c0_i32 = arith.constant 0 : i32
    %c0_i32_0 = arith.constant 0 : i32
    %c0_i32_1 = arith.constant 0 : i32
    return %c0_i32, %c0_i32_0 : i32, i32
  }
  func.func @transform_13(%arg0: i32) -> (i32, i32, i32) {
    %c0_i32 = arith.constant 0 : i32
    %c0_i32_0 = arith.constant 0 : i32
    %c0_i32_1 = arith.constant 0 : i32
    %c0_i32_2 = arith.constant 0 : i32
    return %c0_i32, %c0_i32_0, %c0_i32_1 : i32, i32, i32
  }
  func.func @transform_14(%arg0: i32) -> (i32, i32) {
    %c0_i32 = arith.constant 0 : i32
    %c0_i32_0 = arith.constant 0 : i32
    %c0_i32_1 = arith.constant 0 : i32
    return %c0_i32, %c0_i32_0 : i32, i32
  }
  func.func @transform_15(%arg0: i32) -> (i32, i32, i32) {
    %c0_i32 = arith.constant 0 : i32
    %c0_i32_0 = arith.constant 0 : i32
    %c0_i32_1 = arith.constant 0 : i32
    %c0_i32_2 = arith.constant 0 : i32
    return %c0_i32, %c0_i32_0, %c0_i32_1 : i32, i32, i32
  }
  func.func @transform_16(%arg0: i32) -> (i32, i32) {
    %c0_i32 = arith.constant 0 : i32
    %c0_i32_0 = arith.constant 0 : i32
    %c0_i32_1 = arith.constant 0 : i32
    return %c0_i32, %c0_i32_0 : i32, i32
  }
  func.func @transform_17(%arg0: i32) -> (i32, i32, i32) {
    %c0_i32 = arith.constant 0 : i32
    %c0_i32_0 = arith.constant 0 : i32
    %c0_i32_1 = arith.constant 0 : i32
    %c0_i32_2 = arith.constant 0 : i32
    return %c0_i32, %c0_i32_0, %c0_i32_1 : i32, i32, i32
  }
  func.func @transform_18(%arg0: i32) -> (i32, i32) {
    %c0_i32 = arith.constant 0 : i32
    %c0_i32_0 = arith.constant 0 : i32
    %c0_i32_1 = arith.constant 0 : i32
    return %c0_i32, %c0_i32_0 : i32, i32
  }
  func.func @transform_19(%arg0: i32) -> (i32, i32, i32) {
    %c0_i32 = arith.constant 0 : i32
    %c0_i32_0 = arith.constant 0 : i32
    %c0_i32_1 = arith.constant 0 : i32
    %c0_i32_2 = arith.constant 0 : i32
    return %c0_i32, %c0_i32_0, %c0_i32_1 : i32, i32, i32
  }
  func.func @transform_20(%arg0: i32) -> (i32, i32) {
    %c0_i32 = arith.constant 0 : i32
    %c0_i32_0 = arith.constant 0 : i32
    %c0_i32_1 = arith.constant 0 : i32
    return %c0_i32, %c0_i32_0 : i32, i32
  }
  func.func @transform_21(%arg0: i32) -> (i32, i32, i32) {
    %c0_i32 = arith.constant 0 : i32
    %c0_i32_0 = arith.constant 0 : i32
    %c0_i32_1 = arith.constant 0 : i32
    %c0_i32_2 = arith.constant 0 : i32
    return %c0_i32, %c0_i32_0, %c0_i32_1 : i32, i32, i32
  }
  func.func @transform_22(%arg0: i32) -> (i32, i32) {
    %c0_i32 = arith.constant 0 : i32
    %c0_i32_0 = arith.constant 0 : i32
    %c0_i32_1 = arith.constant 0 : i32
    return %c0_i32, %c0_i32_0 : i32, i32
  }
  func.func @transform_23(%arg0: i32) -> (i32, i32, i32) {
    %c0_i32 = arith.constant 0 : i32
    %c0_i32_0 = arith.constant 0 : i32
    %c0_i32_1 = arith.constant 0 : i32
    %c0_i32_2 = arith.constant 0 : i32
    return %c0_i32, %c0_i32_0, %c0_i32_1 : i32, i32, i32
  }
  func.func @transform_24(%arg0: i32) -> (i32, i32) {
    %c0_i32 = arith.constant 0 : i32
    %c0_i32_0 = arith.constant 0 : i32
    %c0_i32_1 = arith.constant 0 : i32
    return %c0_i32, %c0_i32_0 : i32, i32
  }
  func.func @transform_25(%arg0: i32) -> (i32, i32, i32) {
    %c0_i32 = arith.constant 0 : i32
    %c0_i32_0 = arith.constant 0 : i32
    %c0_i32_1 = arith.constant 0 : i32
    %c0_i32_2 = arith.constant 0 : i32
    return %c0_i32, %c0_i32_0, %c0_i32_1 : i32, i32, i32
  }
  func.func @transform_26(%arg0: i32) -> (i32, i32) {
    %c0_i32 = arith.constant 0 : i32
    %c0_i32_0 = arith.constant 0 : i32
    %c0_i32_1 = arith.constant 0 : i32
    return %c0_i32, %c0_i32_0 : i32, i32
  }
  func.func @transform_27(%arg0: i32) -> (i32, i32) {
    %c0_i32 = arith.constant 0 : i32
    %c0_i32_0 = arith.constant 0 : i32
    %c0_i32_1 = arith.constant 0 : i32
    return %c0_i32, %c0_i32_0 : i32, i32
  }
  func.func @transform_28(%arg0: i32) -> (i32, i32, i32) {
    %c0_i32 = arith.constant 0 : i32
    %c0_i32_0 = arith.constant 0 : i32
    %c0_i32_1 = arith.constant 0 : i32
    return %arg0, %c0_i32, %c0_i32_0 : i32, i32, i32
  }
}

</mosaic_0001>

<bundles_post_ra>
// kernel: autoencoder_forward.2
= control target key start
LH: loop header
LB: loop body
LE: loop exit
PB: predicated region body
PF: predicated region fallthrough
CT: control target
= control target key end

     0   :  { %s10188_s6 = smov 1   ;;  %s10189_s10 = smov 2   ;;  %s11570_s0 = inlined_call_operand.smem [shape: u32[34], index: -1, kind: input, shape index: {}] }
   0x1   :  { %s10249_s5 = sld [smem:[%s11570_s0]]   ;;  %s10190_s14 = smov 3  }
   0x2   :  { %s10254_s9 = sld [smem:[%s11570_s0 + %s10188_s6]]   ;;  %s10191_s18 = smov 4  }
   0x3   :  { %s10259_s13 = sld [smem:[%s11570_s0 + %s10189_s10]]   ;;  %s10192_s22 = smov 5  }
   0x4   :  { %s10264_s17 = sld [smem:[%s11570_s0 + %s10190_s14]]   ;;  %s10193_s26 = smov 6  }
   0x5   :  { %s10269_s21 = sld [smem:[%s11570_s0 + %s10191_s18]]   ;;  %s10194_s30 = smov 7  }
   0x6   :  { %s10274_s25 = sld [smem:[%s11570_s0 + %s10192_s22]]   ;;  %s10195_s4 = smov 8  }
   0x7   :  { %11605 = sst [smem:[#allocation43_spill]] %s10249_s5  ;;  %s10196_s10 = smov 9  }
   0x8   :  { %11606 = sst [smem:[#allocation44_spill]] %s10254_s9  ;;  %s10197_s15 = smov 10  }
   0x9   :  { %11607 = sst [smem:[#allocation45_spill]] %s10259_s13  ;;  %s10198_s20 = smov 11  }
   0xa   :  { %11608 = sst [smem:[#allocation46_spill]] %s10264_s17  ;;  %s10200_s1 = smov 13  }
   0xb   :  { %s10279_s29 = sld [smem:[%s11570_s0 + %s10193_s26]]   ;;  %s10199_s26 = smov 12  }
   0xc   :  { %11609 = sst [smem:[#allocation47_spill]] %s10274_s25  ;;  %s10201_s7 = smov 14  }
   0xd   :  { %s10284_s3 = sld [smem:[%s11570_s0 + %s10194_s30]]   ;;  %s10203_s22 = smov 16  }
   0xe   :  { %s10289_s8 = sld [smem:[%s11570_s0 + %s10195_s4]]   ;;  %s10204_s28 = smov 17  }
   0xf   :  { %s10294_s14 = sld [smem:[%s11570_s0 + %s10196_s10]]  }
  0x10   :  { %s10299_s19 = sld [smem:[%s11570_s0 + %s10197_s15]]   ;;  %s10202_s15 = smov 15  }
  0x11   :  { %s10304_s24 = sld [smem:[%s11570_s0 + %s10198_s20]]  }
  0x12   :  { %s10309_s30 = sld [smem:[%s11570_s0 + %s10199_s26]]  }
  0x13   :  { %11610 = sst [smem:[#allocation48_spill]] %s10284_s3 }
  0x14   :  { %11611 = sst [smem:[#allocation49_spill]] %s10289_s8 }
  0x15   :  { %11612 = sst [smem:[#allocation50_spill]] %s10294_s14 }
  0x16   :  { %s10314_s6 = sld [smem:[%s11570_s0 + %s10200_s1]]  }
  0x17   :  { %11613 = sst [smem:[#allocation51_spill]] %s10304_s24 }
  0x18   :  { %s10319_s12 = sld [smem:[%s11570_s0 + %s10201_s7]]   ;;  %s10205_s7 = smov 18  }
  0x19   :  { %s10324_s20 = sld [smem:[%s11570_s0 + %s10202_s15]]   ;;  %s10206_s15 = smov 19  }
  0x1a   :  { %s10329_s27 = sld [smem:[%s11570_s0 + %s10203_s22]]   ;;  %s10207_s22 = smov 20  }
  0x1b   :  { %s10334_s4 = sld [smem:[%s11570_s0 + %s10204_s28]]   ;;  %s10208_s28 = smov 21  }
  0x1c   :  { %11614 = sst [smem:[#allocation52_spill]] %s10314_s6 }
  0x1d   :  { %s10339_s6 = sld [smem:[%s11570_s0 + %s10205_s7]]   ;;  %s10209_s7 = smov 22  }
  0x1e   :  { %11615 = sst [smem:[#allocation53_spill]] %s10319_s12 }
  0x1f   :  { %11616 = sst [smem:[#allocation54_spill]] %s10324_s20 }
  0x20   :  { %s10344_s20 = sld [smem:[%s11570_s0 + %s10206_s15]]   ;;  %s10210_s15 = smov 23  }
  0x21   :  { %11617 = sst [smem:[#allocation55_spill]] %s10334_s4 }
  0x22   :  { %s10349_s24 = sld [smem:[%s11570_s0 + %s10207_s22]]   ;;  %s10211_s22 = smov 24  }
  0x23   :  { %11618 = sst [smem:[#allocation56_spill]] %s10339_s6 }
  0x24   :  { %s10354_s4 = sld [smem:[%s11570_s0 + %s10208_s28]]   ;;  %s10212_s28 = smov 25  }
  0x25   :  { %s10359_s14 = sld [smem:[%s11570_s0 + %s10209_s7]]   ;;  %s10213_s7 = smov 26  }
  0x26   :  { %11619 = sst [smem:[#allocation57_spill]] %s10344_s20 }
  0x27   :  { %s10364_s20 = sld [smem:[%s11570_s0 + %s10210_s15]]   ;;  %s10214_s15 = smov 27  }
  0x28   :  { %s10369_s13 = sld [smem:[%s11570_s0 + %s10211_s22]]   ;;  %s10215_s22 = smov 28  }
  0x29   :  { %s10374_s17 = sld [smem:[%s11570_s0 + %s10212_s28]]   ;;  %s10216_s28 = smov 30  }
  0x2a   :  { %11620 = sst [smem:[#allocation58_spill]] %s10354_s4 }
  0x2b   :  { %s10379_s9 = sld [smem:[%s11570_s0 + %s10213_s7]]   ;;  %s10217_s7 = smov 31  }
  0x2c   :  { %s10389_s5 = sld [smem:[%s11570_s0 + %s10215_s22]]   ;;  %s10219_s22 = smov 33  }
  0x2d   :  { %11621 = sst [smem:[#allocation59_spill]] %s10364_s20 }
  0x2e   :  { %s10384_s20 = sld [smem:[%s11570_s0 + %s10214_s15]]   ;;  %s10218_s15 = smov 32  }
  0x2f   :  { %11622 = sst [smem:[#allocation60_spill]] %s10374_s17 }
  0x30   :  { %s10394_s17 = sld [smem:[%s11570_s0 + %s10216_s28]]  }
  0x31   :  { %11623 = sst [smem:[#allocation61_spill]] %s10379_s9 }
  0x32   :  { %11625 = sst [smem:[#allocation63_spill]] %s10389_s5 }
  0x33   :  { %s10399_s9 = sld [smem:[%s11570_s0 + %s10217_s7]]  }
  0x34   :  { %11624 = sst [smem:[#allocation62_spill]] %s10384_s20 }
  0x35   :  { %s10404_s20 = sld [smem:[%s11570_s0 + %s10218_s15]]  }
  0x36   :  { %s10409_s5 = sld [smem:[%s11570_s0 + %s10219_s22]]  }
  0x39   :  { %11626 = sst [smem:[#allocation64_spill]] %s10399_s9 }
  0x3a   :  { %73 = vsyncpa [#allocation7], 0 }
  0x3b   :  { %74 = vsyncpa [#allocation10], 0 }
  0x3c   :  { %75 = vsyncpa [#allocation13], 0 }
  0x3d   :  { %76 = vsyncpa [#allocation16], 0 }
  0x3e   :  { %77 = vsyncpa [#allocation19], 0 }
  0x3f   :  { %78 = vsyncpa [#allocation22], 0 }
  0x40   :  { %79 = vsyncpa [#allocation25], 0 }
  0x41   :  { %80 = vsyncpa [#allocation28], 0 }
  0x42   :  { %81 = vsyncpa [#allocation8], 0 }
  0x43   :  { %83 = vsyncpa [#allocation8 + $0x1], 0 }
  0x44   :  { %84 = vsyncpa [#allocation32], 0 }
  0x45   :  { %86 = vsyncpa [#allocation32 + $0x1], 0  ;;  %s10411_s28 = smov 0   ;;  %s10413_s1 = smov 0  }
  0x46   :  { %s10415_s2 = smov 0   ;;  %s10417_s0 = smov 0  }
  0x47 LB: > { %s11627_s9 = sld [smem:[#allocation64_spill]]  ;;  %s10432_s7 = sadd.s32 4294967295, %s10186_s0   ;;  %s10174_s28 = sphi %s10411_s28, %s11722_s28   ;;  %s10186_s0 = sphi %s10417_s0, %s11719_s0   ;;  %s10182_s2 = sphi %s10415_s2, %s11721_s2   ;;  %s10178_s1 = sphi %s10413_s1, %s11723_s1  }
  0x48   : > { %11628 = sst [smem:[#allocation65_spill]] %s10174_s28  ;;  %s7333_s10 = sadd.s32 4294967294, %s10186_s0  }
  0x49   : > { %11629 = sst [smem:[#allocation66_spill]] %s10182_s2  ;;  %s10436_s11 = sadd.s32 1, %s10186_s0  }
  0x4a   : > { %11630 = sst [smem:[#allocation67_spill]] %s10186_s0  ;;  %s755_s15 = sadd.s32 1, %s10182_s2 }
  0x4b   : > { %11631 = sst [smem:[#allocation68_spill]] %s10436_s11  ;;  %s752_s16 = ssub.s32 %s10186_s0, %s10436_s11 }
  0x4c   : > { %p765_p0 = scmp.ne.s32.totalorder %s10182_s2, %s10178_s1  ;;  %p753_p1 = scmp.eq.s32.totalorder %s752_s16, 0 }
  0x4d   : > { %p766_p2 = scmp.eq.s32.totalorder %s10432_s7, 1  ;;  %p771_p3 = scmp.ne.s32.totalorder %s10178_s1, %s10174_s28 }
  0x4e   : > { %p772_p4 = scmp.eq.s32.totalorder %s7333_s10, 1  ;;  %p7334_p7 = scmp.ge.s32.totalorder %s10186_s0, 1 }
  0x4f   : > { %s10447_s18 = scalar_select %p753_p1, %s10182_s2, %s755_s15  }
  0x50   : > { %p10449_p5 = por %p766_p2, %p765_p0  ;;  %p10453_p6 = por %p772_p4, %p771_p3 }
  0x51   : > { %11632 = sst [smem:[#allocation69_spill]] %s10447_s18  ;;  %p831_p8 = scmp.lt.s32.totalorder %s10186_s0, 3 }
  0x52   : > { %s11633_s22 = scalar_select %p10449_p5, 1, 0 }
  0x53   : > { %s11634_s23 = scalar_select %p10453_p6, 1, 0 }
  0x54   : > { %p11588_p9 = scmp.eq.s32.totalorder %s10432_s7, 0  ;;  %p10460_p10 = pnand %p7334_p7, %p831_p8 }
  0x55   : > { %11635 = sst [smem:[#allocation70_spill]] %s11634_s23  ;;  %s10220_s16 = smov [#allocation9]  }
  0x56   : > { %s11636_s26 = scalar_select %p10460_p10, 1, 0 }
  0x57   : > { %s863_s10 = sshll.u32 %s10220_s16, 4  ;;  %p9204_p11 = pneg %p10460_p10  ;;  %s864_s10 = int_to_ptr.vmem [resolvable:$true] %s863_s10 }
  0x58   : > { %s10221_s18 = smov [#allocation12]   ;;  %s10222_s11 = smov [#allocation15]  }
  0x59   : > { %p10468_p12 = pnand %p11588_p9, %p9204_p11  ;;  %s888_s2 = sshll.u32 %s10221_s18, 4  ;;  %s889_s2 = int_to_ptr.vmem [resolvable:$true] %s888_s2 }
  0x5a   : > { %s913_s23 = sshll.u32 %s10222_s11, 4  ;;  %s9685_s16 = scalar_lea.vmem %s864_s10, 1536  ;;  %s914_s23 = int_to_ptr.vmem [resolvable:$true] %s913_s23 }
  0x5b   : > { %p10474_p13 = pneg %p10468_p12  ;;  %p9686_p0 = scmp.ne.s32.totalorder %s864_s10, %s9685_s16 }
  0x5c   : > { %p9693_p3 = scmp.lt.s32.totalorder %s864_s10, %s864_s10  ;;  %p9694_p4 = scmp.lt.s32.totalorder %s9685_s16, %s9685_s16 }
  0x5d   : > { %p9688_p1 = pnand %p9686_p0, %p10474_p13 }
  0x5e   : > { %p9695_p7 = por %p9694_p4, %p9693_p3 }
  0x5f   : > { %p9689_p2 = pneg %p9688_p1 }
  0x61   : > { %p9696_p8 = pnand %p9695_p7, %p9689_p2 }
  0x63   : > { %9699 = shalt.err (!%p9696_p8)
}
  0x64   : > { %s11591_s18 = smov 64   ;;  %s11639_s25 = sld [smem:[#allocation47_spill]] }
  0x65   : > { %s11592_s11 = smov 4   ;;  %s9711_s0 = scalar_lea.vmem %s889_s2, 64 }
  0x66   : > { %p9712_p11 = scmp.ne.s32.totalorder %s889_s2, %s9711_s0  ;;  %p9719_p9 = scmp.lt.s32.totalorder %s889_s2, %s889_s2 }
  0x67   : > { %p9720_p6 = scmp.lt.s32.totalorder %s9711_s0, %s9711_s0 }
  0x68   : > { %p9714_p0 = pnand %p9712_p11, %p10474_p13 }
  0x69   : > { %p9721_p3 = por %p9720_p6, %p9719_p9 }
  0x6a   : > { %9210 = dma.hbm_to_vmem [thread:$0]  (!%p10468_p12), %s11639_s25, 1536, %s864_s10, [#allocation10], %s11591_s18, %s11591_s18, %s11592_s11  }
  0x6b   : > { %p9715_p1 = pneg %p9714_p0 }
  0x6d   : > { %p9722_p2 = pnand %p9721_p3, %p9715_p1 }
  0x6f   : > { %9725 = shalt.err (!%p9722_p2)
}
  0x70   : > { %s11640_s3 = sld [smem:[#allocation48_spill]]  ;;  %s9737_s16 = scalar_lea.vmem %s914_s23, 16 }
  0x71   : > { %p9738_p4 = scmp.ne.s32.totalorder %s914_s23, %s9737_s16  ;;  %s9744_s10 = scalar_lea.vmem %s914_s23, 32 }
  0x72   : > { %p9745_p5 = scmp.lt.s32.totalorder %s914_s23, %s914_s23  ;;  %p9746_p11 = scmp.lt.s32.totalorder %s9744_s10, %s9737_s16 }
  0x73   : > { %p9740_p7 = pnand %p9738_p4, %p10474_p13 }
  0x74   : > { %p9747_p0 = por %p9746_p11, %p9745_p5 }
  0x75   : > { %p9741_p8 = pneg %p9740_p7 }
  0x76   : > { %9216 = dma.hbm_to_vmem [thread:$0]  (!%p10468_p12), %s11640_s3, 64, %s889_s2, [#allocation13]  }
  0x77   : > { %p9748_p10 = pnand %p9747_p0, %p9741_p8 }
  0x79   : > { %9751 = shalt.err (!%p9748_p10)
}
  0x7a   : > { %9222 = dma.hbm_to_vmem [thread:$0]  (!%p10468_p12), %s10299_s19, 16, %s914_s23, [#allocation16]  }
  0x7b   : > { %s10225_s0 = smov [#allocation18]   ;;  %s10226_s2 = smov [#allocation21]  }
  0x7c   : > { %s941_s18 = sshll.u32 %s10225_s0, 4  ;;  %s969_s11 = sshll.u32 %s10226_s2, 4  ;;  %s942_s18 = int_to_ptr.vmem [resolvable:$true] %s941_s18  ;;  %s970_s11 = int_to_ptr.vmem [resolvable:$true] %s969_s11 }
  0x7d   : > { %s9763_s3 = scalar_lea.vmem %s942_s18, 16  ;;  %s9770_s25 = scalar_lea.vmem %s942_s18, 32 }
  0x7e   : > { %p9764_p6 = scmp.ne.s32.totalorder %s942_s18, %s9763_s3  ;;  %p9771_p3 = scmp.lt.s32.totalorder %s942_s18, %s942_s18 }
  0x7f   : > { %p9772_p5 = scmp.lt.s32.totalorder %s9770_s25, %s9763_s3 }
  0x80   : > { %p9766_p9 = pnand %p9764_p6, %p10474_p13 }
  0x81   : > { %p9773_p2 = por %p9772_p5, %p9771_p3 }
  0x82   : > { %p9767_p1 = pneg %p9766_p9 }
  0x84   : > { %p9774_p10 = pnand %p9773_p2, %p9767_p1 }
  0x86   : > { %9777 = shalt.err (!%p9774_p10)
}
  0x87   : > { %s11641_s12 = sld [smem:[#allocation53_spill]]  ;;  %s9789_s23 = scalar_lea.vmem %s970_s11, 16 }
  0x88   : > { %p9790_p4 = scmp.ne.s32.totalorder %s970_s11, %s9789_s23  ;;  %s9796_s16 = scalar_lea.vmem %s970_s11, 32 }
  0x89   : > { %p9797_p11 = scmp.lt.s32.totalorder %s970_s11, %s970_s11  ;;  %p9798_p0 = scmp.lt.s32.totalorder %s9796_s16, %s9789_s23 }
  0x8a   : > { %p9792_p7 = pnand %p9790_p4, %p10474_p13 }
  0x8b   : > { %p9799_p6 = por %p9798_p0, %p9797_p11 }
  0x8c   : > { %p9793_p8 = pneg %p9792_p7 }
  0x8d   : > { %9228 = dma.hbm_to_vmem [thread:$0]  (!%p10468_p12), %s11641_s12, 16, %s942_s18, [#allocation19]  }
  0x8e   : > { %p9800_p9 = pnand %p9799_p6, %p9793_p8 }
  0x90   : > { %9803 = shalt.err (!%p9800_p9)
}
  0x91   : > { %s11642_s6 = sld [smem:[#allocation56_spill]]  ;;  %s10227_s25 = smov [#allocation24]  }
  0x92   : > { %s993_s3 = sshll.u32 %s10227_s25, 4  ;;  %s10228_s18 = smov [#allocation27]   ;;  %s994_s3 = int_to_ptr.vmem [resolvable:$true] %s993_s3 }
  0x93   : > { %s1021_s10 = sshll.u32 %s10228_s18, 4  ;;  %s9815_s0 = scalar_lea.vmem %s994_s3, 1344  ;;  %s1022_s10 = int_to_ptr.vmem [resolvable:$true] %s1021_s10 }
  0x94   : > { %p9816_p1 = scmp.ne.s32.totalorder %s994_s3, %s9815_s0  ;;  %p9823_p2 = scmp.lt.s32.totalorder %s994_s3, %s994_s3 }
  0x95   : > { %p9824_p10 = scmp.lt.s32.totalorder %s9815_s0, %s9815_s0 }
  0x96   : > { %p9818_p3 = pnand %p9816_p1, %p10474_p13 }
  0x97   : > { %9234 = dma.hbm_to_vmem [thread:$0]  (!%p10468_p12), %s11642_s6, 16, %s970_s11, [#allocation22]  }
  0x98   : > { %p9819_p5 = pneg %p9818_p3  ;;  %p9825_p4 = por %p9824_p10, %p9823_p2 }
  0x9a   : > { %p9826_p7 = pnand %p9825_p4, %p9819_p5 }
  0x9c   : > { %9829 = shalt.err (!%p9826_p7)
}
  0x9d   : > { %s11643_s2 = smov 4   ;;  %s11644_s23 = smov 64  }
  0x9e   : > { %s11645_s4 = sld [smem:[#allocation58_spill]]  ;;  %s9841_s11 = scalar_lea.vmem %s1022_s10, 16 }
  0x9f   : > { %p9842_p8 = scmp.ne.s32.totalorder %s1022_s10, %s9841_s11  ;;  %s9848_s16 = scalar_lea.vmem %s1022_s10, 32 }
  0xa0   : > { %p9849_p6 = scmp.lt.s32.totalorder %s1022_s10, %s1022_s10  ;;  %p9850_p9 = scmp.lt.s32.totalorder %s9848_s16, %s9841_s11 }
  0xa1   : > { %p9844_p11 = pnand %p9842_p8, %p10474_p13 }
  0xa2   : > { %p9851_p1 = por %p9850_p9, %p9849_p6 }
  0xa3   : > { %p9845_p0 = pneg %p9844_p11 }
  0xa4   : > { %9240 = dma.hbm_to_vmem [thread:$0]  (!%p10468_p12), %s11645_s4, 1344, %s994_s3, [#allocation25], %s11644_s23, %s11644_s23, %s11643_s2  }
  0xa5   : > { %p9852_p3 = pnand %p9851_p1, %p9845_p0 }
  0xa7   : > { %9855 = shalt.err (!%p9852_p3)
}
  0xa8   : > { %9246 = dma.hbm_to_vmem [thread:$0]  (!%p10468_p12), %s10369_s13, 16, %s1022_s10, [#allocation28]  }
  0xa9   : > { %s10229_s25 = smov [#allocation6]   ;;  %s10230_s3 = smov [#allocation11]  }
  0xaa   : > { %s853_s18 = sshll.u32 %s10229_s25, 4  ;;  %s877_s0 = sshll.u32 %s10230_s3, 4  ;;  %s854_s18 = int_to_ptr.vmem [resolvable:$true] %s853_s18  ;;  %s878_s0 = int_to_ptr.vmem [resolvable:$true] %s877_s0 }
  0xab   : > { %s9867_s2 = scalar_lea.vmem %s854_s18, 16  ;;  %s9874_s23 = scalar_lea.vmem %s854_s18, 32 }
  0xac   : > { %p9868_p5 = scmp.ne.s32.totalorder %s854_s18, %s9867_s2  ;;  %p9875_p4 = scmp.lt.s32.totalorder %s854_s18, %s854_s18 }
  0xad   : > { %p9876_p7 = scmp.lt.s32.totalorder %s9874_s23, %s9867_s2 }
  0xae   : > { %p9870_p2 = pnand %p9868_p5, %p10474_p13 }
  0xaf   : > { %p9877_p8 = por %p9876_p7, %p9875_p4 }
  0xb0   : > { %p9871_p10 = pneg %p9870_p2 }
  0xb2   : > { %p9878_p11 = pnand %p9877_p8, %p9871_p10 }
  0xb4   : > { %9881 = shalt.err (!%p9878_p11)
}
  0xb5   : > { %9207 = dma.hbm_to_vmem [thread:$0]  (!%p10468_p12), %s10269_s21, 16, %s854_s18, [#allocation7]  }
  0xb6   : > { %s9893_s10 = scalar_lea.vmem %s878_s0, 16  ;;  %s9900_s11 = scalar_lea.vmem %s878_s0, 32 }
  0xb7   : > { %p9894_p0 = scmp.ne.s32.totalorder %s878_s0, %s9893_s10  ;;  %p9901_p1 = scmp.lt.s32.totalorder %s878_s0, %s878_s0 }
  0xb8   : > { %p9902_p3 = scmp.lt.s32.totalorder %s9900_s11, %s9893_s10 }
  0xb9   : > { %p9896_p6 = pnand %p9894_p0, %p10474_p13 }
  0xba   : > { %p9903_p5 = por %p9902_p3, %p9901_p1 }
  0xbb   : > { %p9897_p9 = pneg %p9896_p6 }
  0xbd   : > { %p9904_p2 = pnand %p9903_p5, %p9897_p9 }
  0xbf   : > { %9907 = shalt.err (!%p9904_p2)
}
  0xc0   : > { %9213 = dma.hbm_to_vmem [thread:$0]  (!%p10468_p12), %s10279_s29, 16, %s878_s0, [#allocation10]  }
  0xc1   : > { %s10231_s16 = smov [#allocation14]   ;;  %s10232_s18 = smov [#allocation17]  }
  0xc2   : > { %s899_s25 = sshll.u32 %s10231_s16, 4  ;;  %s927_s3 = sshll.u32 %s10232_s18, 4  ;;  %s900_s25 = int_to_ptr.vmem [resolvable:$true] %s899_s25  ;;  %s928_s3 = int_to_ptr.vmem [resolvable:$true] %s927_s3 }
  0xc3   : > { %s9919_s2 = scalar_lea.vmem %s900_s25, 16  ;;  %s9926_s23 = scalar_lea.vmem %s900_s25, 32 }
  0xc4   : > { %p9920_p10 = scmp.ne.s32.totalorder %s900_s25, %s9919_s2  ;;  %p9927_p8 = scmp.lt.s32.totalorder %s900_s25, %s900_s25 }
  0xc5   : > { %p9928_p11 = scmp.lt.s32.totalorder %s9926_s23, %s9919_s2 }
  0xc6   : > { %p9922_p4 = pnand %p9920_p10, %p10474_p13 }
  0xc7   : > { %p9929_p0 = por %p9928_p11, %p9927_p8 }
  0xc8   : > { %p9923_p7 = pneg %p9922_p4 }
  0xca   : > { %p9930_p6 = pnand %p9929_p0, %p9923_p7 }
  0xcc   : > { %9933 = shalt.err (!%p9930_p6)
}
  0xcd   : > { %s11646_s8 = sld [smem:[#allocation49_spill]]  ;;  %s9945_s0 = scalar_lea.vmem %s928_s3, 16 }
  0xce   : > { %p9946_p9 = scmp.ne.s32.totalorder %s928_s3, %s9945_s0  ;;  %s9952_s10 = scalar_lea.vmem %s928_s3, 32 }
  0xcf   : > { %p9953_p5 = scmp.lt.s32.totalorder %s928_s3, %s928_s3  ;;  %p9954_p2 = scmp.lt.s32.totalorder %s9952_s10, %s9945_s0 }
  0xd0   : > { %p9948_p1 = pnand %p9946_p9, %p10474_p13 }
  0xd1   : > { %p9955_p10 = por %p9954_p2, %p9953_p5 }
  0xd2   : > { %p9949_p3 = pneg %p9948_p1 }
  0xd3   : > { %9219 = dma.hbm_to_vmem [thread:$0]  (!%p10468_p12), %s11646_s8, 16, %s900_s25, [#allocation13]  }
  0xd4   : > { %p9956_p4 = pnand %p9955_p10, %p9949_p3 }
  0xd6   : > { %9959 = shalt.err (!%p9956_p4)
}
  0xd7   : > { %9225 = dma.hbm_to_vmem [thread:$0]  (!%p10468_p12), %s10309_s30, 16, %s928_s3, [#allocation16]  }
  0xd8   : > { %s10233_s11 = smov [#allocation20]   ;;  %s10234_s25 = smov [#allocation23]  }
  0xd9   : > { %s955_s16 = sshll.u32 %s10233_s11, 4  ;;  %s983_s18 = sshll.u32 %s10234_s25, 4  ;;  %s956_s16 = int_to_ptr.vmem [resolvable:$true] %s955_s16  ;;  %s984_s18 = int_to_ptr.vmem [resolvable:$true] %s983_s18 }
  0xda   : > { %s9971_s2 = scalar_lea.vmem %s956_s16, 16  ;;  %s9978_s23 = scalar_lea.vmem %s956_s16, 32 }
  0xdb   : > { %p9972_p7 = scmp.ne.s32.totalorder %s956_s16, %s9971_s2  ;;  %p9979_p0 = scmp.lt.s32.totalorder %s956_s16, %s956_s16 }
  0xdc   : > { %p9980_p6 = scmp.lt.s32.totalorder %s9978_s23, %s9971_s2 }
  0xdd   : > { %p9974_p8 = pnand %p9972_p7, %p10474_p13 }
  0xde   : > { %p9981_p9 = por %p9980_p6, %p9979_p0 }
  0xdf   : > { %p9975_p11 = pneg %p9974_p8 }
  0xe1   : > { %p9982_p1 = pnand %p9981_p9, %p9975_p11 }
  0xe3   : > { %9985 = shalt.err (!%p9982_p1)
}
  0xe4   : > { %9231 = dma.hbm_to_vmem [thread:$0]  (!%p10468_p12), %s10329_s27, 16, %s956_s16, [#allocation19]  }
  0xe5   : > { %s9997_s3 = scalar_lea.vmem %s984_s18, 16  ;;  %s10004_s0 = scalar_lea.vmem %s984_s18, 32 }
  0xe6   : > { %p9998_p3 = scmp.ne.s32.totalorder %s984_s18, %s9997_s3  ;;  %p10005_p10 = scmp.lt.s32.totalorder %s984_s18, %s984_s18 }
  0xe7   : > { %p10006_p4 = scmp.lt.s32.totalorder %s10004_s0, %s9997_s3 }
  0xe8   : > { %p10000_p5 = pnand %p9998_p3, %p10474_p13 }
  0xe9   : > { %p10007_p7 = por %p10006_p4, %p10005_p10 }
  0xea   : > { %p10001_p2 = pneg %p10000_p5 }
  0xec   : > { %p10008_p8 = pnand %p10007_p7, %p10001_p2 }
  0xee   : > { %10011 = shalt.err (!%p10008_p8)
}
  0xef   : > { %9237 = dma.hbm_to_vmem [thread:$0]  (!%p10468_p12), %s10349_s24, 16, %s984_s18, [#allocation22]  }
  0xf0   : > { %s10235_s10 = smov [#allocation26]   ;;  %s10236_s16 = smov [#allocation29]  }
  0xf1   : > { %s1007_s11 = sshll.u32 %s10235_s10, 4  ;;  %s1035_s25 = sshll.u32 %s10236_s16, 4  ;;  %s1008_s11 = int_to_ptr.vmem [resolvable:$true] %s1007_s11  ;;  %s1036_s25 = int_to_ptr.vmem [resolvable:$true] %s1035_s25 }
  0xf2   : > { %s10023_s2 = scalar_lea.vmem %s1008_s11, 16  ;;  %s10030_s23 = scalar_lea.vmem %s1008_s11, 32 }
  0xf3   : > { %p10024_p11 = scmp.ne.s32.totalorder %s1008_s11, %s10023_s2  ;;  %p10031_p9 = scmp.lt.s32.totalorder %s1008_s11, %s1008_s11 }
  0xf4   : > { %p10032_p1 = scmp.lt.s32.totalorder %s10030_s23, %s10023_s2 }
  0xf5   : > { %p10026_p0 = pnand %p10024_p11, %p10474_p13 }
  0xf6   : > { %p10033_p3 = por %p10032_p1, %p10031_p9 }
  0xf7   : > { %p10027_p6 = pneg %p10026_p0 }
  0xf9   : > { %p10034_p5 = pnand %p10033_p3, %p10027_p6 }
  0xfb   : > { %10037 = shalt.err (!%p10034_p5)
}
  0xfc   : > { %9243 = dma.hbm_to_vmem [thread:$0]  (!%p10468_p12), %s10359_s14, 16, %s1008_s11, [#allocation25]  }
  0xfd   : > { %s10049_s18 = scalar_lea.vmem %s1036_s25, 16  ;;  %s10056_s3 = scalar_lea.vmem %s1036_s25, 32 }
  0xfe   : > { %p10050_p2 = scmp.ne.s32.totalorder %s1036_s25, %s10049_s18  ;;  %p10057_p7 = scmp.lt.s32.totalorder %s1036_s25, %s1036_s25 }
  0xff   : > { %p10058_p8 = scmp.lt.s32.totalorder %s10056_s3, %s10049_s18 }
 0x100   : > { %p10052_p10 = pnand %p10050_p2, %p10474_p13 }
 0x101   : > { %p10059_p11 = por %p10058_p8, %p10057_p7 }
 0x102   : > { %p10053_p4 = pneg %p10052_p10 }
 0x104   : > { %p10060_p0 = pnand %p10059_p11, %p10053_p4 }
 0x106   : > { %10063 = shalt.err (!%p10060_p0)
}
 0x107   : > { %s11647_s0 = sld [smem:[#allocation61_spill]]  ;;  %p11648_p6 = scmp.ne.s32.totalorder %s11636_s26, 0 }
 0x108   : > { %p11649_p9 = scmp.eq.s32.totalorder (!%p11648_p6), %s10432_s7, 0 }
 0x109   : > { %1068 = sbr.rel (%p11648_p6) target bundleno = 3364 (0xd24), region = 144 }
 0x10d   : > { %9249 = dma.hbm_to_vmem [thread:$0]  (!%p10468_p12), %s11647_s0, 16, %s1036_s25, [#allocation28]  }
 0x10e   : > { %10133 = dma.done.wait (%p11649_p9), [#allocation7], 16   ;;  %p11650_p1 = pmov %p11649_p9 }
 0x110   : > { %10135 = vsyncadd (%p11650_p1), [#allocation7], 4294967280  ;;  %p11651_p13 = pmov %p11650_p1 }
 0x111   : > { %p11652_p3 = pmov %p11650_p1 }
 0x112   : > { %10137 = dma.done.wait (%p11651_p13), [#allocation10], 1552  }
 0x113   : > { %10139 = vsyncadd (%p11652_p3), [#allocation10], 4294965744  ;;  %p11653_p5 = pmov %p11650_p1 }
 0x114   : > { %p11654_p12 = pmov %p11650_p1 }
 0x115   : > { %10141 = dma.done.wait (%p11653_p5), [#allocation13], 80  }
 0x116   : > { %10143 = vsyncadd (%p11654_p12), [#allocation13], 4294967216  ;;  %p11655_p2 = pmov %p11650_p1 }
 0x117   : > { %p11656_p10 = pmov %p11650_p1 }
 0x118   : > { %10145 = dma.done.wait (%p11655_p2), [#allocation16], 32  }
 0x119   : > { %10147 = vsyncadd (%p11656_p10), [#allocation16], 4294967264  ;;  %p11657_p4 = pmov %p11650_p1 }
 0x11a   : > { %p11658_p7 = pmov %p11650_p1 }
 0x11b   : > { %10149 = dma.done.wait (%p11657_p4), [#allocation19], 32  }
 0x11c   : > { %10151 = vsyncadd (%p11658_p7), [#allocation19], 4294967264  ;;  %p11659_p8 = pmov %p11650_p1 }
 0x11d   : > { %p11660_p11 = pmov %p11650_p1 }
 0x11e   : > { %10153 = dma.done.wait (%p11659_p8), [#allocation22], 32  }
 0x11f   : > { %10155 = vsyncadd (%p11660_p11), [#allocation22], 4294967264  ;;  %p11661_p0 = pmov %p11650_p1 }
 0x121   : > { %10157 = dma.done.wait (%p11661_p0), [#allocation25], 1360   ;;  %p11662_p6 = pmov %p11661_p0 }
 0x122   : > { %p11663_p9 = pmov %p11661_p0 }
 0x123   : > { %10159 = vsyncadd (%p11662_p6), [#allocation25], 4294965936 }
 0x124   : > { %10161 = dma.done.wait (%p11663_p9), [#allocation28], 32   ;;  %p11664_p1 = pmov %p11661_p0 }
 0x125   : > { %s11665_s28 = sld [smem:[#allocation43_spill]]  ;;  %v10237_v0 = vmov 0.0   ;;  %vm10238_vm0 = vmmov 0   ;;  %p1214_p13 = scmp.lt.s32.totalorder %s10432_s7, 1  ;;  %vm1223_vm1 = vcmask 1041408   ;;  %vm1229_vm3 = vcmask 1043457  }
 0x126   : > { %10163 = vsyncadd (%p11664_p1), [#allocation28], 4294967264  ;;  %8412 = vmatprep.subr.bf16.mxu1 %v10237_v0  ;;  %s11666_s26 = sld [smem:[#allocation44_spill]]  ;;  %8414 = vmatprep.mubr.msk.bf16.mxu1 %vm10238_vm0, %v10237_v0  ;;  %vm1224_vm2 = vsmask.f32 1280  ;;  %vm11596_vm5 = vcmask 1043456  }
 0x127   : > { %8406 = vmatprep.subr.bf16.mxu0 %v10237_v0  ;;  %8408 = vmatprep.mubr.msk.bf16.mxu0 %vm10238_vm0, %v10237_v0  ;;  %s10601_s15 = scalar_select %p1214_p13, %s10432_s7, 1  ;;  %vm1230_vm4 = vsmask.f32 7942  ;;  %vm10605_vm6 = vmand %vm1223_vm1, %vm1224_vm2  ;;  %v1226_v4 = vld [vmem:[#allocation2] sm:$0x3]  ;;  %vm1289_vm8 = vcmask 60417  }
 0x128   : > { %vm10611_vm7 = vmand %vm1229_vm3, %vm1230_vm4  ;;  %v1227_v7 = vsel %vm10605_vm6, 0, %v1226_v4  ;;  %v1232_v13 = vld [vmem:[#allocation2 + $0x8] sm:$0xe]  ;;  %vm1265_vm9 = vsmask.f32 5392  ;;  %vm1296_vm10 = vcmask 58368  }
 0x129   : > { %s8071_s10 = sshll.u32 %s10601_s15, 4  ;;  %1228 = vst [vmem:[#allocation2] sm:$0x3] %v1227_v7  ;;  %v1233_v16 = vsel %vm10611_vm7, 0, %v1232_v13  ;;  %vm1290_vm11 = vmand %vm1289_vm8, %vm1230_vm4  ;;  %vm1294_vm13 = vcmask 60416   ;;  %vm11595_vm15 = vcmask 64512  }
 0x12a   : > { %1234 = vst [vmem:[#allocation2 + $0x8] sm:$0xe] %v1233_v16  ;;  %vm10629_vm12 = vmor %vm1224_vm2, %vm1265_vm9  ;;  %vm1315_vm1 = vsmask.f32 7424  ;;  %vm1488_vm3 = vsmask.f32 6400 }
 0x12b   : > { %s1218_s11 = scalar_lea.vmem %s11665_s28, %s8071_s10  ;;  %vm1297_vm14 = vmand %vm1296_vm10, %vm1224_vm2  ;;  %vm1429_vm8 = vcmask 1046528   ;;  %vm1620_vm9 = vsmask.f32 5376  ;;  %vm1561_vm10 = vcmask 1045504   ;;  %s11673_s16 = sld [smem:[#allocation46_spill]] }
 0x12c   : > { %v1303_v3 = vld [vmem:[%s11666_s26] sm:$0xf]  ;;  %v1258_v8 = vld [vmem:[%s1218_s11 + $0x8] sm:$0xff]  ;;  %v7371_v10 = vld [vmem:[%s11666_s26 + $0x4] sm:$0xf]  ;;  %s11674_s25 = sld [smem:[#allocation45_spill]] }
 0x12d   : > { %v1257_v5 = vld [vmem:[%s1218_s11] sm:$0xff]  ;;  %v1380_v6 = vsel %vm11596_vm5, %v1303_v3, 0  ;;  %v8073_v11 = vpack.c.bf16 %v1258_v8, %v1258_v8  ;;  %v1334_v12 = vsel %vm11596_vm5, %v7371_v10, 0  ;;  %v7379_v23 = vld [vmem:[%s11666_s26 + $0xc] sm:$0xf]  ;;  %s11681_s2 = sld [smem:[#allocation50_spill]] }
 0x12e   : > { %v8072_v9 = vpack.c.bf16 %v1257_v5, %v1257_v5  ;;  %8413 = vmatpush3.bf16.msra.mxu1 %v1380_v6  ;;  %8407 = vmatpush3.bf16.msra.mxu0 %v1334_v12  ;;  %v7376_v25 = vld [vmem:[%s11666_s26 + $0x8] sm:$0xf]  ;;  %v1510_v30 = vsel %vm11596_vm5, %v7379_v23, 0  ;;  %v7385_v37 = vld [vmem:[%s11666_s26 + $0x14] sm:$0xf]  ;;  %s11683_s18 = sld [smem:[#allocation51_spill]] }
 0x12f   : > { %8424 = vmatprep.subr.bf16.mxu1 %v10237_v0  ;;  %v1277_v17 = vshrl.u32 %v8073_v11, 16  ;;  %v1280_v18 = vshll.u32 %v8073_v11, 16  ;;  %8418 = vmatprep.subr.bf16.mxu0 %v10237_v0  ;;  %v10636_v33 = vsel %vm11596_vm5, %v7376_v25, 0  ;;  %v7382_v38 = vld [vmem:[%s11666_s26 + $0x10] sm:$0xf]  ;;  %v1642_v48 = vsel %vm11596_vm5, %v7385_v37, 0 }
 0x130   : > { %v1268_v14 = vshrl.u32 %v8072_v9, 16  ;;  %v1271_v15 = vshll.u32 %v8072_v9, 16  ;;  %v1291_v29 = vld [vmem:[#allocation2] sm:$0xe]  ;;  %v7391_v42 = vld [vmem:[%s11666_s26 + $0x1c] sm:$0xf] }
 0x131   : > { %v1279_v21 = vrot.slane %v1277_v17, 6  ;;  %v1282_v22 = vrot.slane %v1280_v18, 7  ;;  %v1298_v35 = vld [vmem:[#allocation2 + $0x8] sm:$0x3]  ;;  %v7388_v44 = vld [vmem:[%s11666_s26 + $0x18] sm:$0xf] }
 0x132   : > { %v1270_v19 = vrot.slane %v1268_v14, 6  ;;  %v1273_v20 = vrot.slane %v1271_v15, 7  ;;  %v10654_v51 = vsel %vm11596_vm5, %v7382_v38, 0  ;;  %v1774_v60 = vsel %vm11596_vm5, %v7391_v42, 0  ;;  %s11686_s3 = sld [smem:[#allocation52_spill]]  ;;  %p11714_p5 = scmp.ne.s32.totalorder %s11633_s22, 0 }
 0x133   : > { %v1283_v27 = vor.u32 %v1282_v22, %v1279_v21  ;;  %v1701_v4 = vsel %vm11596_vm5, %v7388_v44, 0  ;;  %s11682_s23 = smov %s11681_s2  ;;  %s11687_s0 = sld [smem:[#allocation54_spill]] }
 0x134   : > { %v1274_v24 = vor.u32 %v1273_v20, %v1270_v19  ;;  %s11689_s28 = sld [smem:[#allocation55_spill]]  ;;  %s10239_s8 = smov [#allocation30]  }
 0x135   : > { %v1285_v32 = vrot.slane %v1283_v27, 4 }
 0x136   : > { %v1275_v28 = vrot.slane %v1274_v24, 4  ;;  %v1292_v31 = vsel %vm1290_vm11, %v1274_v24, %v1291_v29  ;;  %vm11594_vm11 = vsmask.f32 4352 }
 0x137   : > { %1293 = vst [vmem:[#allocation2] sm:$0xe] %v1292_v31  ;;  %v1299_v36 = vsel %vm1297_vm14, %v1285_v32, %v1298_v35  ;;  %vm1858_vm14 = vcmask 519169  }
 0x138   : > { %v1284_v34 = vsel %vm10629_vm12, %v1275_v28, %v1283_v27  ;;  %1300 = vst [vmem:[#allocation2 + $0x8] sm:$0x3] %v1299_v36 }
 0x139   : > { %1295 = vst.msk [vmem:[#allocation2 + $0x4] sm:$0xf] %vm1294_vm13, %v1284_v34  ;;  %vm11593_vm13 = vcmask 1044480   ;;  %s11688_s10 = smov %s11687_s0 }
 0x13a   : > { %s11690_s11 = smov %s11689_s28 }
 0x13e   : > { %v1301_v39 = vld [vmem:[#allocation2] sm:$0xf] }
 0x13f   : > { %v1423_v40 = vld [vmem:[#allocation2] sm:$0xe]  ;;  %v10644_v46 = vld [vmem:[#allocation2 + $0x8] ss:$0 sps:$4 sm:$0x11]  }
 0x140   : > { %v1555_v41 = vld [vmem:[#allocation2] sm:$0xc]  ;;  %v1302_v43 = vld [vmem:[#allocation2 + $0x4] sm:$0xf]  ;;  %v1324_v55 = vshll.u32 %v10644_v46, 16  ;;  %v1431_v22 = vrot.slane %v10644_v46, 1 }
 0x141   : > { %v7372_v45 = vcombine.low %v1301_v39, %v1302_v43  ;;  %v10646_v47 = vcombine.low %v1423_v40, %v1302_v43  ;;  %v10649_v49 = vld [vmem:[#allocation2 + $0x8] ss:$0 sps:$4 sm:$0x33]   ;;  %v10651_v50 = vcombine.low %v1555_v41, %v1302_v43  ;;  %v1687_v52 = vld [vmem:[#allocation2] sm:$0x8] }
 0x142   : > { %v1498_v58 = vshrl.u32 %v10649_v49, 16  ;;  %v1501_v59 = vshll.u32 %v10649_v49, 16  ;;  %v1326_v62 = vrot.slane %v1324_v55, 1  ;;  %v9379_v3 = vld [vmem:[#allocation2 + $0x8] ss:$0 sps:$4 sm:$0xff]   ;;  %v7389_v12 = vcombine.low %v1687_v52, %v1302_v43  ;;  %v9381_v52 = vld [vmem:[%s11673_s16 + $0x18] sm:$0xff]  }
 0x143   : > { %8415 = vmatmul.mubr.msk.bf16.vlgmr.msra.gmra.mxu1 %vm11595_vm15, %v7372_v45  ;;  %v1317_v53 = vshrl.u32 %v7372_v45, 16  ;;  %v1319_v54 = vshll.u32 %v7372_v45, 16  ;;  %v1490_v56 = vshrl.u32 %v10646_v47, 16  ;;  %v1493_v57 = vshll.u32 %v10646_v47, 16  ;;  %v9384_v55 = vld [vmem:[%s11673_s16 + $0x28] sm:$0xff]  }
 0x144   : > { %8425 = vmatpush3.bf16.msra.mxu1 %v1510_v30  ;;  %8426 = vmatprep.mubr.msk.bf16.mxu1 %vm10238_vm0, %v10237_v0  ;;  %v1500_v6 = vrot.slane %v1498_v58, 1  ;;  %v1503_v7 = vrot.slane %v1501_v59, 2  ;;  %v10667_v8 = vld [vmem:[#allocation2 + $0x8] ss:$0 sps:$4 sm:$0x77]   ;;  %v1622_v10 = vshrl.u32 %v10651_v50, 16 }
 0x145   : > { %v1321_v61 = vrot.slane %v1319_v54, 1  ;;  %v1492_v63 = vrot.slane %v1490_v56, 1  ;;  %8436 = vmatprep.subr.bf16.mxu1 %v10237_v0  ;;  %v1495_v5 = vrot.slane %v1493_v57, 2  ;;  %v1625_v11 = vshll.u32 %v10651_v50, 16  ;;  %v9383_v54 = vld [vmem:[%s11673_s16 + $0x10] sm:$0xff]   ;;  %v9385_v56 = vld [vmem:[%s11673_s16 + $0x8] sm:$0xff]  }
 0x146   : > { %v1504_v14 = vor.u32 %v1503_v7, %v1500_v6  ;;  %v1630_v15 = vshrl.u32 %v10667_v8, 16  ;;  %v1633_v16 = vshll.u32 %v10667_v8, 16  ;;  %v1430_v18 = vrot.slane %v10646_v47, 1  ;;  %v1236_v47 = vld [vmem:[#allocation3] sm:$0x3]  ;;  %v9386_v57 = vld [vmem:[%s11673_s16 + $0x20] sm:$0xff]  }
 0x147   : > { %v1322_v9 = vor.u32 %v1321_v61, %v1317_v53  ;;  %v1496_v13 = vor.u32 %v1495_v5, %v1492_v63  ;;  %v1624_v19 = vrot.slane %v1622_v10, 2  ;;  %v1627_v20 = vrot.slane %v1625_v11, 3  ;;  %v9382_v53 = vld [vmem:[%s11673_s16 + $0x30] sm:$0xff]   ;;  %v9387_v58 = vld [vmem:[%s11673_s16] sm:$0xff]  }
 0x148   : > { %v1632_v23 = vrot.slane %v1630_v15, 2  ;;  %v1635_v24 = vrot.slane %v1633_v16, 3  ;;  %v1562_v25 = vrot.slane %v10651_v50, 2  ;;  %v1754_v27 = vshrl.u32 %v7389_v12, 16 }
 0x149   : > { %v1327_v17 = vsel %vm1315_vm1, %v1322_v9, %v1326_v62  ;;  %v1505_v21 = vsel %vm1488_vm3, %v1496_v13, %v1504_v14  ;;  %v1757_v28 = vshll.u32 %v7389_v12, 16  ;;  %v1762_v29 = vshrl.u32 %v9379_v3, 16 }
 0x14a   : > { %8409 = vmatmul.mubr.msk.bf16.vlgmr.msra.gmra.mxu0 %vm11595_vm15, %v1327_v17  ;;  %v1628_v30 = vor.u32 %v1627_v20, %v1624_v19  ;;  %v1636_v31 = vor.u32 %v1635_v24, %v1632_v23  ;;  %v1563_v32 = vrot.slane %v10649_v49, 2  ;;  %v1765_v34 = vshll.u32 %v9379_v3, 16  ;;  %v1239_v49 = vld [vmem:[#allocation3 + $0x8] sm:$0xe] }
 0x14b   : > { %8427 = vmatmul.mubr.msk.bf16.vlgmr.msra.gmra.mxu1 %vm11595_vm15, %v1505_v21  ;;  %8419 = vmatpush3.bf16.msra.mxu0 %v10636_v33  ;;  %v1756_v33 = vrot.slane %v1754_v27, 3  ;;  %v1759_v35 = vrot.slane %v1757_v28, 4  ;;  %v1764_v36 = vrot.slane %v1762_v29, 3  ;;  %v1694_v37 = vrot.slane %v7389_v12, 3 }
 0x14c   : > { %8420 = vmatprep.mubr.msk.bf16.mxu0 %vm10238_vm0, %v10237_v0  ;;  %8437 = vmatpush3.bf16.msra.mxu1 %v1642_v48  ;;  %v1767_v38 = vrot.slane %v1765_v34, 4  ;;  %v1695_v39 = vrot.slane %v10667_v8, 3  ;;  %v1432_v40 = vsel %vm1429_vm8, %v1430_v18, %v1431_v22  ;;  %v1637_v41 = vsel %vm1620_vm9, %v1628_v30, %v1636_v31 }
 0x14d   : > { %8438 = vmatprep.mubr.msk.bf16.mxu1 %vm10238_vm0, %v10237_v0  ;;  %8430 = vmatprep.subr.bf16.mxu0 %v10237_v0  ;;  %v1760_v42 = vor.u32 %v1759_v35, %v1756_v33  ;;  %v1564_v44 = vsel %vm1561_vm10, %v1562_v25, %v1563_v32  ;;  %v1237_v48 = vsel %vm10605_vm6, 0, %v1236_v47  ;;  %v1240_v50 = vsel %vm10611_vm7, 0, %v1239_v49 }
 0x14e   : > { %8448 = vmatprep.subr.bf16.mxu1 %v10237_v0  ;;  %v1768_v43 = vor.u32 %v1767_v38, %v1764_v36  ;;  %v1696_v46 = vsel %vm11593_vm13, %v1694_v37, %v1695_v39  ;;  %1238 = vst [vmem:[#allocation3] sm:$0x3] %v1237_v48  ;;  %1241 = vst [vmem:[#allocation3 + $0x8] sm:$0xe] %v1240_v50  ;;  %v7394_v38 = vld [vmem:[%s11674_s25] ss:$0 sm:$0xff] }
 0x14f   : > { %vm10735_vm13 = vmand %vm1858_vm14, %vm1230_vm4  ;;  %vm11679_vm14 = vcmask 1043456   ;;  %s11691_s25 = sld [smem:[#allocation57_spill]] }
 0x150   : > { %v1769_v45 = vsel %vm11594_vm11, %v1760_v42, %v1768_v43  ;;  %vm1865_vm11 = vcmask 517120  }
 0x151   : > { %vm10742_vm5 = vmand %vm1865_vm11, %vm1224_vm2  ;;  %vm1926_vm11 = vcmask 523264  }
 0x152   : > { %8421 = vmatmul.mubr.msk.bf16.vlgmr.msra.gmra.mxu0 %vm11595_vm15, %v1432_v40 }
 0x153   : > { %8439 = vmatmul.mubr.msk.bf16.vlgmr.msra.gmra.mxu1 %vm11595_vm15, %v1637_v41  ;;  %8431 = vmatpush3.bf16.msra.mxu0 %v10654_v51  ;;  %v9380_v51 = vld [vmem:[%s11673_s16 + $0x38] sm:$0xff]  }
 0x154   : > { %8432 = vmatprep.mubr.msk.bf16.mxu0 %vm10238_vm0, %v10237_v0  ;;  %8449 = vmatpush3.bf16.msra.mxu1 %v1774_v60 }
 0x155   : > { %8450 = vmatprep.mubr.msk.bf16.mxu1 %vm10238_vm0, %v10237_v0  ;;  %8442 = vmatprep.subr.bf16.mxu0 %v10237_v0 }
 0x156   : > { %8466 = vmatprep.subr.bf16.mxu1 %v10237_v0 }
 0x15a   : > { %8433 = vmatmul.mubr.msk.bf16.vlgmr.msra.gmra.mxu0 %vm11595_vm15, %v1564_v44 }
 0x15b   : > { %8451 = vmatmul.mubr.msk.bf16.vlgmr.msra.gmra.mxu1 %vm11595_vm15, %v1769_v45  ;;  %8443 = vmatpush3.bf16.msra.mxu0 %v1701_v4 }
 0x15c   : > { %8444 = vmatprep.mubr.msk.bf16.mxu0 %vm10238_vm0, %v10237_v0  ;;  %8454 = vmatprep.subr.bf16.mxu0 %v10237_v0 }
 0x15d   : > { %8474 = vmatprep.mubr.msk.bf16.mxu1 %vm10238_vm0, %v10237_v0  ;;  %8467 = vmatpush3.bf16.msra.mxu1 %v9381_v52 }
 0x15e   : > { %8468 = vmatprep.subr.bf16.mxu1 %v10237_v0 }
 0x161   : > { %8469 = vmatpush3.bf16.msra.mxu1 %v9383_v54 }
 0x162   : > { %8445 = vmatmul.mubr.msk.bf16.vlgmr.msra.gmra.mxu0 %vm11595_vm15, %v1696_v46  ;;  %8470 = vmatprep.subr.bf16.mxu1 %v10237_v0  ;;  %vm1863_vm15 = vcmask 519168  }
 0x163   : > { %8462 = vmatprep.mubr.msk.bf16.mxu0 %vm10238_vm0, %v10237_v0  ;;  %8455 = vmatpush3.bf16.msra.mxu0 %v9380_v51 }
 0x164   : > { %8456 = vmatprep.subr.bf16.mxu0 %v10237_v0 }
 0x165   : > { %8471 = vmatpush3.bf16.msra.mxu1 %v9385_v56  ;;  %v9432_v56 = vld [vmem:[%s11682_s23 + $0x78] sm:$0xff]  }
 0x166   : > { %8472 = vmatprep.subr.bf16.mxu1 %v10237_v0 }
 0x167   : > { %8457 = vmatpush3.bf16.msra.mxu0 %v9382_v53 }
 0x168   : > { %8458 = vmatprep.subr.bf16.mxu0 %v10237_v0 }
 0x169   : > { %8473 = vmatpush3.bf16.msra.mxu1 %v9387_v58 }
 0x16a   : > { %8490 = vmatprep.subr.bf16.mxu1 %v10237_v0 }
 0x16b   : > { %8459 = vmatpush3.bf16.msra.mxu0 %v9384_v55 }
 0x16c   : > { %8460 = vmatprep.subr.bf16.mxu0 %v10237_v0 }
 0x16f   : > { %8461 = vmatpush3.bf16.msra.mxu0 %v9386_v57  ;;  %v1860_v57 = vld [vmem:[#allocation3] sm:$0xe] }
 0x170   : > { %8478 = vmatprep.subr.bf16.mxu0 %v10237_v0 }
 0x203   : > { %v1416_v59 = vpop.f32.mrf.mxu1 }
 0x205   : > { %v8416_v60 = vpop.f32.mrf.mxu1 }
 0x207   : > { %v1419_v61 = vpop.f32.mrf.mxu1 }
 0x209   : > { %v8417_v62 = vpop.f32.mrf.mxu1 }
 0x20a   : > { %v1370_v63 = vpop.f32.mrf.mxu0 }
 0x20b   : > { %v1546_v3 = vpop.f32.mrf.mxu1  ;;  %v1417_v13 = vadd.f32 %v1416_v59, %v1370_v63 }
 0x20c   : > { %v8410_v4 = vpop.f32.mrf.mxu0 }
 0x20d   : > { %v8428_v5 = vpop.f32.mrf.mxu1 }
 0x20e   : > { %v1373_v6 = vpop.f32.mrf.mxu0  ;;  %v9434_v5 = vld [vmem:[%s11682_s23 + $0x70] sm:$0xff]  }
 0x20f   : > { %v1549_v7 = vpop.f32.mrf.mxu1  ;;  %v1420_v19 = vadd.f32 %v1419_v61, %v1373_v6  ;;  %v1867_v6 = vld [vmem:[#allocation3 + $0x8] sm:$0x3] }
 0x210   : > { %v8411_v8 = vpop.f32.mrf.mxu0 }
 0x211   : > { %v8429_v9 = vpop.f32.mrf.mxu1 }
 0x212   : > { %v1473_v10 = vpop.f32.mrf.mxu0 }
 0x213   : > { %v1678_v11 = vpop.f32.mrf.mxu1  ;;  %v1480_v16 = vadd.f32 %v1473_v10, %v1417_v13 }
 0x214   : > { %v8422_v12 = vpop.f32.mrf.mxu0 }
 0x215   : > { %v8440_v14 = vpop.f32.mrf.mxu1  ;;  %v1553_v23 = vadd.f32 %v1546_v3, %v1480_v16 }
 0x216   : > { %v1476_v15 = vpop.f32.mrf.mxu0 }
 0x217   : > { %v1681_v17 = vpop.f32.mrf.mxu1  ;;  %v1481_v22 = vadd.f32 %v1476_v15, %v1420_v19  ;;  %v9390_v19 = vld [vmem:[%s11673_s16 + $0x58] sm:$0xff]  }
 0x218   : > { %v8423_v18 = vpop.f32.mrf.mxu0 }
 0x219   : > { %v8441_v20 = vpop.f32.mrf.mxu1  ;;  %v1554_v30 = vadd.f32 %v1549_v7, %v1481_v22 }
 0x21a   : > { %v1605_v21 = vpop.f32.mrf.mxu0 }
 0x21b   : > { %v1810_v24 = vpop.f32.mrf.mxu1  ;;  %v1612_v27 = vadd.f32 %v1605_v21, %v1553_v23 }
 0x21c   : > { %v8434_v25 = vpop.f32.mrf.mxu0 }
 0x21d   : > { %v8452_v28 = vpop.f32.mrf.mxu1  ;;  %v1685_v33 = vadd.f32 %v1678_v11, %v1612_v27 }
 0x21e   : > { %v1608_v29 = vpop.f32.mrf.mxu0  ;;  %v9392_v28 = vld [vmem:[%s11673_s16 + $0x78] sm:$0xff]  }
 0x21f   : > { %v1813_v31 = vpop.f32.mrf.mxu1  ;;  %v1613_v34 = vadd.f32 %v1608_v29, %v1554_v30  ;;  %v9393_v29 = vld [vmem:[%s11673_s16 + $0x50] sm:$0xff]  }
 0x220   : > { %v8435_v32 = vpop.f32.mrf.mxu0 }
 0x221   : > { %v8453_v35 = vpop.f32.mrf.mxu1  ;;  %v1686_v41 = vadd.f32 %v1681_v17, %v1613_v34 }
 0x222   : > { %v1737_v36 = vpop.f32.mrf.mxu0  ;;  %v9394_v35 = vld [vmem:[%s11673_s16 + $0x70] sm:$0xff]  }
 0x223   : > { %v1744_v37 = vadd.f32 %v1737_v36, %v1685_v33  ;;  %v9395_v36 = vld [vmem:[%s11673_s16 + $0x48] sm:$0xff]  }
 0x224   : > { %v8446_v39 = vpop.f32.mrf.mxu0 }
 0x225   : > { %v1817_v40 = vadd.f32 %v1810_v24, %v1744_v37 }
 0x226   : > { %v1740_v42 = vpop.f32.mrf.mxu0 }
 0x227   : > { %v1826_v43 = vadd.f32 %v7394_v38, %v1817_v40  ;;  %v1745_v44 = vadd.f32 %v1740_v42, %v1686_v41  ;;  %v9396_v41 = vld [vmem:[%s11673_s16 + $0x68] sm:$0xff]   ;;  %v9397_v42 = vld [vmem:[%s11673_s16 + $0x40] sm:$0xff]  }
 0x228   : > { %v8447_v45 = vpop.f32.mrf.mxu0 }
 0x229   : > { %v1828_v46 = vmax.f32 %v1826_v43, 0.0  ;;  %v1818_v47 = vadd.f32 %v1813_v31, %v1745_v44 }
 0x22b   : > { %v8074_v48 = vpack.c.bf16 %v1828_v46, %v1828_v46  ;;  %v1827_v49 = vadd.f32 %v7394_v38, %v1818_v47  ;;  %v9398_v47 = vld [vmem:[%s11673_s16 + $0x60] sm:$0xff]  }
 0x22d   : > { %v1837_v50 = vshrl.u32 %v8074_v48, 16  ;;  %v1840_v51 = vshll.u32 %v8074_v48, 16  ;;  %v1829_v52 = vmax.f32 %v1827_v49, 0.0  ;;  %v9400_v48 = vld [vmem:[%s11673_s16 + $0x98] sm:$0xff]  }
 0x22f   : > { %v1839_v53 = vrot.slane %v1837_v50, 6  ;;  %v1842_v54 = vrot.slane %v1840_v51, 7  ;;  %v8075_v55 = vpack.c.bf16 %v1829_v52, %v1829_v52 }
 0x231   : > { %v1843_v58 = vor.u32 %v1842_v54, %v1839_v53  ;;  %v1846_v59 = vshrl.u32 %v8075_v55, 16  ;;  %v1849_v60 = vshll.u32 %v8075_v55, 16  ;;  %v9402_v53 = vld [vmem:[%s11673_s16 + $0x90] sm:$0xff]  }
 0x233   : > { %v1861_v61 = vsel %vm10735_vm13, %v1843_v58, %v1860_v57  ;;  %v1848_v62 = vrot.slane %v1846_v59, 6  ;;  %v1851_v63 = vrot.slane %v1849_v60, 7  ;;  %v1844_v3 = vrot.slane %v1843_v58, 4  ;;  %v9403_v60 = vld [vmem:[%s11673_s16 + $0x88] sm:$0xff]  }
 0x234   : > { %1862 = vst [vmem:[#allocation3] sm:$0xe] %v1861_v61 }
 0x235   : > { %v1852_v4 = vor.u32 %v1851_v63, %v1848_v62 }
 0x237   : > { %v1853_v7 = vsel %vm10629_vm12, %v1844_v3, %v1852_v4  ;;  %v1854_v8 = vrot.slane %v1852_v4, 4  ;;  %v9404_v4 = vld [vmem:[%s11673_s16 + $0x80] sm:$0xff]  }
 0x238   : > { %1864 = vst.msk [vmem:[#allocation3 + $0x4] sm:$0xf] %vm1863_vm15, %v1853_v7 }
 0x239   : > { %v1868_v9 = vsel %vm10742_vm5, %v1854_v8, %v1867_v6 }
 0x23a   : > { %1869 = vst [vmem:[#allocation3 + $0x8] sm:$0x3] %v1868_v9  ;;  %v1243_v9 = vld [vmem:[#allocation4] sm:$0x3] }
 0x23b   : > { %v1881_v11 = vld [vmem:[#allocation3] sm:$0xe] }
 0x23c   : > { %v1870_v12 = vld [vmem:[#allocation3] sm:$0xf] }
 0x23d   : > { %v2154_v43 = vld [vmem:[#allocation3] sm:$0xc] }
 0x23f   : > { %v1871_v10 = vld [vmem:[#allocation3 + $0x4] sm:$0xf] }
 0x240   : > { %v7405_v13 = vcombine.low %v1881_v11, %v1871_v10  ;;  %v7412_v14 = vcombine.low %v1870_v12, %v1871_v10  ;;  %v7440_v44 = vcombine.low %v2154_v43, %v1871_v10  ;;  %v1244_v10 = vsel %vm10605_vm6, 0, %v1243_v9  ;;  %v1246_v11 = vld [vmem:[#allocation4 + $0x8] sm:$0xe] }
 0x241   : > { %v9389_v15 = vld [vmem:[#allocation3 + $0x8] ss:$0 sps:$4 sm:$0x11]   ;;  %1245 = vst [vmem:[#allocation4] sm:$0x3] %v1244_v10  ;;  %v1247_v12 = vsel %vm10611_vm7, 0, %v1246_v11 }
 0x242   : > { %v1899_v16 = vrot.slane %v7405_v13, 1  ;;  %v1977_v17 = vshll.u32 %v7412_v14, 16  ;;  %v1900_v18 = vrot.slane %v9389_v15, 1  ;;  %v1982_v20 = vshll.u32 %v9389_v15, 16  ;;  %1248 = vst [vmem:[#allocation4 + $0x8] sm:$0xe] %v1247_v12 }
 0x243   : > { %v1975_v21 = vshrl.u32 %v7412_v14, 16  ;;  %v9399_v25 = vld [vmem:[#allocation3 + $0x8] ss:$0 sps:$4 sm:$0x33]   ;;  %v2068_v31 = vshrl.u32 %v7405_v13, 16  ;;  %v2071_v32 = vshll.u32 %v7405_v13, 16 }
 0x244   : > { %v1979_v22 = vrot.slane %v1977_v17, 1  ;;  %v1901_v23 = vsel %vm1429_vm8, %v1899_v16, %v1900_v18  ;;  %v1984_v24 = vrot.slane %v1982_v20, 1  ;;  %v2076_v34 = vshrl.u32 %v9399_v25, 16  ;;  %v9405_v52 = vld [vmem:[#allocation3 + $0x8] ss:$0 sps:$4 sm:$0x77]  }
 0x245   : > { %8463 = vmatmul.mubr.msk.bf16.vlgmr.msra.gmra.mxu0 %vm1926_vm11, %v1901_v23  ;;  %v2079_v33 = vshll.u32 %v9399_v25, 16  ;;  %v2070_v37 = vrot.slane %v2068_v31, 1  ;;  %v2073_v38 = vrot.slane %v2071_v32, 2  ;;  %v2167_v49 = vrot.slane %v7440_v44, 2  ;;  %v9406_v13 = vld [vmem:[#allocation9 + $0x18] sm:$0xff]   ;;  %v9408_v15 = vld [vmem:[#allocation9 + $0x10] sm:$0xff]  }
 0x246   : > { %v1980_v27 = vor.u32 %v1979_v22, %v1975_v21  ;;  %8479 = vmatpush3.bf16.msra.mxu0 %v9390_v19  ;;  %8486 = vmatprep.mubr.msk.bf16.mxu0 %vm10238_vm0, %v10237_v0  ;;  %v2078_v39 = vrot.slane %v2076_v34, 1  ;;  %v2168_v50 = vrot.slane %v9399_v25, 2  ;;  %v2254_v55 = vshrl.u32 %v7440_v44, 16  ;;  %v9407_v14 = vld [vmem:[#allocation9 + $0x38] sm:$0xff]   ;;  %v9409_v16 = vld [vmem:[#allocation9 + $0x30] sm:$0xff]   ;;  %v9410_v17 = vld [vmem:[#allocation9 + $0x8] sm:$0xff]  }
 0x247   : > { %8480 = vmatprep.subr.bf16.mxu0 %v10237_v0  ;;  %v2081_v40 = vrot.slane %v2079_v33, 2  ;;  %v2074_v45 = vor.u32 %v2073_v38, %v2070_v37  ;;  %v2257_v57 = vshll.u32 %v7440_v44, 16  ;;  %v2262_v58 = vshrl.u32 %v9405_v52, 16  ;;  %v9411_v18 = vld [vmem:[#allocation9 + $0x28] sm:$0xff]   ;;  %v9412_v19 = vld [vmem:[#allocation9] sm:$0xff]  }
 0x248   : > { %v1985_v30 = vsel %vm1315_vm1, %v1980_v27, %v1984_v24  ;;  %v2169_v54 = vsel %vm1561_vm10, %v2167_v49, %v2168_v50  ;;  %v2265_v59 = vshll.u32 %v9405_v52, 16  ;;  %v2256_v61 = vrot.slane %v2254_v55, 2  ;;  %v9413_v20 = vld [vmem:[#allocation9 + $0x20] sm:$0xff]   ;;  %v7460_v44 = vld [vmem:[#allocation6] ss:$0 sm:$0xff] }
 0x249   : > { %8475 = vmatmul.mubr.msk.bf16.vlgmr.msra.gmra.mxu1 %vm1926_vm11, %v1985_v30  ;;  %v2082_v46 = vor.u32 %v2081_v40, %v2078_v39  ;;  %v2259_v62 = vrot.slane %v2257_v57, 3  ;;  %v2264_v63 = vrot.slane %v2262_v58, 2  ;;  %v2383_v11 = vld [vmem:[#allocation4 + $0x8] sm:$0x3] }
 0x24a   : > { %8491 = vmatpush3.bf16.msra.mxu1 %v9392_v28  ;;  %8498 = vmatprep.mubr.msk.bf16.mxu1 %vm10238_vm0, %v10237_v0  ;;  %v2267_v3 = vrot.slane %v2265_v59, 3 }
 0x24b   : > { %8481 = vmatpush3.bf16.msra.mxu0 %v9393_v29  ;;  %8492 = vmatprep.subr.bf16.mxu1 %v10237_v0  ;;  %v2083_v51 = vsel %vm1488_vm3, %v2074_v45, %v2082_v46  ;;  %v2260_v6 = vor.u32 %v2259_v62, %v2256_v61  ;;  %v2379_v62 = vld [vmem:[#allocation4] sm:$0xe] }
 0x24c   : > { %8482 = vmatprep.subr.bf16.mxu0 %v10237_v0  ;;  %v2268_v7 = vor.u32 %v2267_v3, %v2264_v63 }
 0x24e   : > { %8493 = vmatpush3.bf16.msra.mxu1 %v9394_v35  ;;  %v2269_v8 = vsel %vm1620_vm9, %v2260_v6, %v2268_v7 }
 0x24f   : > { %8483 = vmatpush3.bf16.msra.mxu0 %v9395_v36  ;;  %8494 = vmatprep.subr.bf16.mxu1 %v10237_v0 }
 0x250   : > { %8484 = vmatprep.subr.bf16.mxu0 %v10237_v0 }
 0x252   : > { %8495 = vmatpush3.bf16.msra.mxu1 %v9396_v41 }
 0x253   : > { %8485 = vmatpush3.bf16.msra.mxu0 %v9397_v42  ;;  %8496 = vmatprep.subr.bf16.mxu1 %v10237_v0 }
 0x254   : > { %8502 = vmatprep.subr.bf16.mxu0 %v10237_v0 }
 0x256   : > { %8497 = vmatpush3.bf16.msra.mxu1 %v9398_v47  ;;  %8487 = vmatmul.mubr.msk.bf16.vlgmr.msra.gmra.mxu0 %vm1926_vm11, %v2083_v51 }
 0x257   : > { %8503 = vmatpush3.bf16.msra.mxu0 %v9400_v48  ;;  %8510 = vmatprep.mubr.msk.bf16.mxu0 %vm10238_vm0, %v10237_v0 }
 0x258   : > { %8504 = vmatprep.subr.bf16.mxu0 %v10237_v0  ;;  %8514 = vmatprep.subr.bf16.mxu1 %v10237_v0 }
 0x259   : > { %8499 = vmatmul.mubr.msk.bf16.vlgmr.msra.gmra.mxu1 %vm1926_vm11, %v2169_v54 }
 0x25a   : > { %8522 = vmatprep.mubr.msk.bf16.mxu1 %vm10238_vm0, %v10237_v0  ;;  %8515 = vmatpush3.bf16.msra.mxu1 %v9407_v14  ;;  %v9421_v14 = vld [vmem:[#allocation2] sm:$0xfe]  }
 0x25b   : > { %8505 = vmatpush3.bf16.msra.mxu0 %v9402_v53  ;;  %8516 = vmatprep.subr.bf16.mxu1 %v10237_v0 }
 0x25c   : > { %8506 = vmatprep.subr.bf16.mxu0 %v10237_v0 }
 0x25e   : > { %8517 = vmatpush3.bf16.msra.mxu1 %v9409_v16  ;;  %v9422_v16 = vld [vmem:[#allocation2 + $0x8] ss:$0 sps:$4 sm:$0x33]  }
 0x25f   : > { %8507 = vmatpush3.bf16.msra.mxu0 %v9403_v60  ;;  %8518 = vmatprep.subr.bf16.mxu1 %v10237_v0 }
 0x260   : > { %8508 = vmatprep.subr.bf16.mxu0 %v10237_v0 }
 0x262   : > { %8519 = vmatpush3.bf16.msra.mxu1 %v9411_v18  ;;  %v2694_v18 = vshll.u32 %v9421_v14, 16 }
 0x263   : > { %8509 = vmatpush3.bf16.msra.mxu0 %v9404_v4  ;;  %8520 = vmatprep.subr.bf16.mxu1 %v10237_v0 }
 0x264   : > { %8526 = vmatprep.subr.bf16.mxu0 %v10237_v0 }
 0x266   : > { %8511 = vmatmul.mubr.msk.bf16.vlgmr.msra.gmra.mxu0 %vm1926_vm11, %v2269_v8  ;;  %8521 = vmatpush3.bf16.msra.mxu1 %v9413_v20 }
 0x267   : > { %8534 = vmatprep.mubr.msk.bf16.mxu0 %vm10238_vm0, %v10237_v0  ;;  %8527 = vmatpush3.bf16.msra.mxu0 %v9406_v13 }
 0x268   : > { %8528 = vmatprep.subr.bf16.mxu0 %v10237_v0  ;;  %8538 = vmatprep.subr.bf16.mxu1 %v10237_v0 }
 0x26b   : > { %8529 = vmatpush3.bf16.msra.mxu0 %v9408_v15 }
 0x26c   : > { %8530 = vmatprep.subr.bf16.mxu0 %v10237_v0 }
 0x26f   : > { %8531 = vmatpush3.bf16.msra.mxu0 %v9410_v17  ;;  %v2691_v17 = vshrl.u32 %v9421_v14, 16 }
 0x270   : > { %8532 = vmatprep.subr.bf16.mxu0 %v10237_v0 }
 0x273   : > { %8533 = vmatpush3.bf16.msra.mxu0 %v9412_v19  ;;  %v2699_v19 = vshrl.u32 %v9422_v16, 16 }
 0x274   : > { %8550 = vmatprep.subr.bf16.mxu0 %v10237_v0 }
 0x305   : > { %v1964_v21 = vpop.f32.mrf.mxu0 }
 0x307   : > { %v8464_v22 = vpop.f32.mrf.mxu0 }
 0x308   : > { %v2702_v22 = vshll.u32 %v9422_v16, 16 }
 0x309   : > { %v2047_v23 = vpop.f32.mrf.mxu1  ;;  %v1967_v24 = vpop.f32.mrf.mxu0 }
 0x30a   : > { %v2048_v37 = vadd.f32 %v2047_v23, %v1964_v21 }
 0x30b   : > { %v8476_v25 = vpop.f32.mrf.mxu1  ;;  %v8465_v27 = vpop.f32.mrf.mxu0 }
 0x30c   : > { %v2693_v25 = vrot.slane %v2691_v17, 1  ;;  %v2696_v27 = vrot.slane %v2694_v18, 2 }
 0x30d   : > { %v2050_v28 = vpop.f32.mrf.mxu1 }
 0x30e   : > { %v2051_v40 = vadd.f32 %v2050_v28, %v1967_v24  ;;  %v2674_v24 = vld [vmem:[#allocation12] sm:$0xf] }
 0x30f   : > { %v8477_v29 = vpop.f32.mrf.mxu1 }
 0x310   : > { %v2701_v29 = vrot.slane %v2699_v19, 1 }
 0x316   : > { %v2145_v30 = vpop.f32.mrf.mxu0 }
 0x317   : > { %v2152_v39 = vadd.f32 %v2145_v30, %v2048_v37 }
 0x318   : > { %v8488_v31 = vpop.f32.mrf.mxu0 }
 0x319   : > { %v2231_v32 = vpop.f32.mrf.mxu1 }
 0x31a   : > { %v2148_v34 = vpop.f32.mrf.mxu0  ;;  %v2238_v41 = vadd.f32 %v2231_v32, %v2152_v39 }
 0x31b   : > { %v8500_v33 = vpop.f32.mrf.mxu1  ;;  %v2153_v42 = vadd.f32 %v2148_v34, %v2051_v40 }
 0x31c   : > { %v8489_v35 = vpop.f32.mrf.mxu0 }
 0x31d   : > { %v2234_v36 = vpop.f32.mrf.mxu1  ;;  %v2704_v35 = vrot.slane %v2702_v22, 2 }
 0x31e   : > { %v2239_v47 = vadd.f32 %v2234_v36, %v2153_v42 }
 0x31f   : > { %v8501_v38 = vpop.f32.mrf.mxu1 }
 0x320   : > { %v2711_v38 = vsel %vm11679_vm14, %v2674_v24, 0  ;;  %vm11680_vm14 = vcmask 64512  }
 0x326   : > { %v2331_v43 = vpop.f32.mrf.mxu0 }
 0x327   : > { %v2338_v45 = vadd.f32 %v2331_v43, %v2238_v41 }
 0x328   : > { %v8512_v46 = vpop.f32.mrf.mxu0 }
 0x329   : > { %v2347_v48 = vadd.f32 %v7460_v44, %v2338_v45  ;;  %v2697_v45 = vor.u32 %v2696_v27, %v2693_v25  ;;  %v2705_v46 = vor.u32 %v2704_v35, %v2701_v29  ;;  %v7483_v25 = vld [vmem:[#allocation14] ss:$0 sm:$0xff] }
 0x32a   : > { %v2334_v49 = vpop.f32.mrf.mxu0 }
 0x32b   : > { %v2349_v50 = vmax.f32 %v2347_v48, 0.0  ;;  %v2339_v51 = vadd.f32 %v2334_v49, %v2239_v47  ;;  %v9417_v48 = vld [vmem:[#allocation9 + $0x58] sm:$0xff]  }
 0x32c   : > { %v8513_v52 = vpop.f32.mrf.mxu0 }
 0x32d   : > { %v8076_v53 = vpack.c.bf16 %v2349_v50, %v2349_v50  ;;  %v2348_v54 = vadd.f32 %v7460_v44, %v2339_v51  ;;  %v2706_v50 = vsel %vm1488_vm3, %v2697_v45, %v2705_v46  ;;  %v9418_v51 = vld [vmem:[#allocation9 + $0x50] sm:$0xff]   ;;  %v9419_v52 = vld [vmem:[#allocation9 + $0x48] sm:$0xff]  }
 0x32f   : > { %v2358_v55 = vshrl.u32 %v8076_v53, 16  ;;  %v2361_v57 = vshll.u32 %v8076_v53, 16  ;;  %v2350_v58 = vmax.f32 %v2348_v54, 0.0 }
 0x331   : > { %v2360_v59 = vrot.slane %v2358_v55, 6  ;;  %v2363_v60 = vrot.slane %v2361_v57, 7  ;;  %v8077_v61 = vpack.c.bf16 %v2350_v58, %v2350_v58  ;;  %v9420_v55 = vld [vmem:[#allocation9 + $0x40] sm:$0xff]  }
 0x333   : > { %v2364_v63 = vor.u32 %v2363_v60, %v2360_v59  ;;  %v2367_v3 = vshrl.u32 %v8077_v61, 16  ;;  %v2370_v4 = vshll.u32 %v8077_v61, 16  ;;  %v1250_v60 = vld [vmem:[#allocation5] sm:$0x3] }
 0x334   : > { %v1251_v61 = vsel %vm10605_vm6, 0, %v1250_v60 }
 0x335   : > { %v2380_v6 = vsel %vm10735_vm13, %v2364_v63, %v2379_v62  ;;  %v2369_v7 = vrot.slane %v2367_v3, 6  ;;  %v2372_v8 = vrot.slane %v2370_v4, 7  ;;  %v2365_v9 = vrot.slane %v2364_v63, 4  ;;  %1252 = vst [vmem:[#allocation5] sm:$0x3] %v1251_v61  ;;  %v9424_v3 = vld [vmem:[%s11681_s2 + $0x18] sm:$0xff]  }
 0x336   : > { %2381 = vst [vmem:[#allocation4] sm:$0xe] %v2380_v6  ;;  %v1253_v62 = vld [vmem:[#allocation5 + $0x8] sm:$0xe]  ;;  %v9425_v4 = vld [vmem:[%s11682_s23 + $0x10] sm:$0xff]   ;;  %s11705_s2 = sld [smem:[#allocation59_spill]] }
 0x337   : > { %v2373_v10 = vor.u32 %v2372_v8, %v2369_v7  ;;  %v1254_v63 = vsel %vm10611_vm7, 0, %v1253_v62  ;;  %v9426_v6 = vld [vmem:[%s11682_s23 + $0x38] sm:$0xff]   ;;  %v9427_v7 = vld [vmem:[%s11682_s23 + $0x8] sm:$0xff]   ;;  %v9428_v8 = vld [vmem:[%s11682_s23 + $0x30] sm:$0xff]  }
 0x338   : > { %1255 = vst [vmem:[#allocation5 + $0x8] sm:$0xe] %v1254_v63 }
 0x339   : > { %v2374_v12 = vsel %vm10629_vm12, %v2365_v9, %v2373_v10  ;;  %v2375_v13 = vrot.slane %v2373_v10, 4  ;;  %v9429_v9 = vld [vmem:[%s11682_s23] sm:$0xff]   ;;  %v9430_v10 = vld [vmem:[%s11682_s23 + $0x28] sm:$0xff]  }
 0x33a   : > { %2382 = vst.msk [vmem:[#allocation4 + $0x4] sm:$0xf] %vm1863_vm15, %v2374_v12 }
 0x33b   : > { %v2384_v15 = vsel %vm10742_vm5, %v2375_v13, %v2383_v11  ;;  %v9433_v11 = vld [vmem:[%s11682_s23 + $0x20] sm:$0xff]  }
 0x33c   : > { %2385 = vst [vmem:[#allocation4 + $0x8] sm:$0x3] %v2384_v15 }
 0x33d   : > { %v2386_v20 = vld [vmem:[#allocation4] sm:$0xe] }
 0x33e   : > { %v2574_v53 = vld [vmem:[#allocation4] sm:$0xc] }
 0x33f   : > { %v2790_v61 = vld [vmem:[#allocation5 + $0x8] sm:$0x3] }
 0x341   : > { %v2387_v21 = vld [vmem:[#allocation4 + $0x4] sm:$0xf] }
 0x342   : > { %v7463_v23 = vcombine.low %v2386_v20, %v2387_v21  ;;  %v7476_v54 = vcombine.low %v2574_v53, %v2387_v21 }
 0x343   : > { %v9415_v28 = vld [vmem:[#allocation4 + $0x8] ss:$0 sps:$4 sm:$0x11]  }
 0x344   : > { %v2503_v30 = vrot.slane %v7463_v23, 1  ;;  %v9416_v31 = vld [vmem:[#allocation4 + $0x8] ss:$0 sps:$4 sm:$0x33]   ;;  %v2504_v32 = vrot.slane %v9415_v28, 1  ;;  %v2416_v34 = vshrl.u32 %v7463_v23, 16 }
 0x345   : > { %v2419_v33 = vshll.u32 %v7463_v23, 16  ;;  %v2424_v36 = vshrl.u32 %v9416_v31, 16  ;;  %v2427_v37 = vshll.u32 %v9416_v31, 16  ;;  %v2587_v57 = vrot.slane %v7476_v54, 2  ;;  %v7482_v28 = vld [vmem:[#allocation11] ss:$0 sm:$0xff] }
 0x346   : > { %v2505_v39 = vsel %vm1429_vm8, %v2503_v30, %v2504_v32  ;;  %v2418_v40 = vrot.slane %v2416_v34, 1  ;;  %v2588_v58 = vrot.slane %v9416_v31, 2 }
 0x347   : > { %v2421_v41 = vrot.slane %v2419_v33, 2  ;;  %8535 = vmatmul.mubr.msk.bf16.vlgmr.msra.gmra.mxu0 %vm1926_vm11, %v2505_v39  ;;  %v2426_v42 = vrot.slane %v2424_v36, 1  ;;  %v2429_v43 = vrot.slane %v2427_v37, 2 }
 0x348   : > { %8551 = vmatpush3.bf16.msra.mxu0 %v2711_v38  ;;  %8552 = vmatprep.mubr.msk.bf16.mxu0 %vm10238_vm0, %v10237_v0  ;;  %v2589_v59 = vsel %vm1561_vm10, %v2587_v57, %v2588_v58 }
 0x349   : > { %v2422_v44 = vor.u32 %v2421_v41, %v2418_v40  ;;  %v2430_v47 = vor.u32 %v2429_v43, %v2426_v42  ;;  %8568 = vmatprep.subr.bf16.mxu0 %v10237_v0 }
 0x34b   : > { %v2431_v49 = vsel %vm1488_vm3, %v2422_v44, %v2430_v47 }
 0x34c   : > { %8523 = vmatmul.mubr.msk.bf16.vlgmr.msra.gmra.mxu1 %vm1926_vm11, %v2431_v49 }
 0x34d   : > { %8539 = vmatpush3.bf16.msra.mxu1 %v9417_v48  ;;  %8546 = vmatprep.mubr.msk.bf16.mxu1 %vm10238_vm0, %v10237_v0 }
 0x34e   : > { %8540 = vmatprep.subr.bf16.mxu1 %v10237_v0 }
 0x34f   : > { %8553 = vmatmul.mubr.msk.bf16.vlgmr.msra.gmra.mxu0 %vm11680_vm14, %v2706_v50  ;;  %vm5775_vm14 = vcmask 453633  }
 0x350   : > { %8576 = vmatprep.mubr.msk.bf16.mxu0 %vm10238_vm0, %v10237_v0  ;;  %8569 = vmatpush3.bf16.msra.mxu0 %v9424_v3 }
 0x351   : > { %8541 = vmatpush3.bf16.msra.mxu1 %v9418_v51  ;;  %8570 = vmatprep.subr.bf16.mxu0 %v10237_v0  ;;  %v2786_v51 = vld [vmem:[#allocation5] sm:$0xe] }
 0x352   : > { %8542 = vmatprep.subr.bf16.mxu1 %v10237_v0 }
 0x354   : > { %8571 = vmatpush3.bf16.msra.mxu0 %v9425_v4 }
 0x355   : > { %8543 = vmatpush3.bf16.msra.mxu1 %v9419_v52  ;;  %8572 = vmatprep.subr.bf16.mxu0 %v10237_v0 }
 0x356   : > { %8544 = vmatprep.subr.bf16.mxu1 %v10237_v0 }
 0x358   : > { %8573 = vmatpush3.bf16.msra.mxu0 %v9427_v7 }
 0x359   : > { %8545 = vmatpush3.bf16.msra.mxu1 %v9420_v55  ;;  %8574 = vmatprep.subr.bf16.mxu0 %v10237_v0 }
 0x35a   : > { %8556 = vmatprep.subr.bf16.mxu1 %v10237_v0 }
 0x35c   : > { %8547 = vmatmul.mubr.msk.bf16.vlgmr.msra.gmra.mxu1 %vm1926_vm11, %v2589_v59  ;;  %8575 = vmatpush3.bf16.msra.mxu0 %v9429_v9 }
 0x35d   : > { %8564 = vmatprep.mubr.msk.bf16.mxu1 %vm10238_vm0, %v10237_v0  ;;  %8557 = vmatpush3.bf16.msra.mxu1 %v9426_v6 }
 0x35e   : > { %8558 = vmatprep.subr.bf16.mxu1 %v10237_v0  ;;  %8592 = vmatprep.subr.bf16.mxu0 %v10237_v0 }
 0x361   : > { %8559 = vmatpush3.bf16.msra.mxu1 %v9428_v8 }
 0x362   : > { %8560 = vmatprep.subr.bf16.mxu1 %v10237_v0 }
 0x365   : > { %8561 = vmatpush3.bf16.msra.mxu1 %v9430_v10 }
 0x366   : > { %8562 = vmatprep.subr.bf16.mxu1 %v10237_v0 }
 0x369   : > { %8563 = vmatpush3.bf16.msra.mxu1 %v9433_v11 }
 0x36a   : > { %8580 = vmatprep.subr.bf16.mxu1 %v10237_v0 }
 0x407   : > { %v2567_v12 = vpop.f32.mrf.mxu0 }
 0x409   : > { %v8536_v13 = vpop.f32.mrf.mxu0 }
 0x40b   : > { %v2570_v14 = vpop.f32.mrf.mxu0 }
 0x40c   : > { %v2493_v15 = vpop.f32.mrf.mxu1 }
 0x40d   : > { %v8537_v16 = vpop.f32.mrf.mxu0  ;;  %v2568_v24 = vadd.f32 %v2567_v12, %v2493_v15 }
 0x40e   : > { %v8524_v17 = vpop.f32.mrf.mxu1 }
 0x40f   : > { %v2747_v18 = vpop.f32.mrf.mxu0 }
 0x410   : > { %v2496_v19 = vpop.f32.mrf.mxu1  ;;  %v2748_v32 = vadd.f32 %v7483_v25, %v2747_v18 }
 0x411   : > { %v8554_v20 = vpop.f32.mrf.mxu0  ;;  %v2571_v31 = vadd.f32 %v2570_v14, %v2496_v19 }
 0x412   : > { %v8525_v21 = vpop.f32.mrf.mxu1 }
 0x413   : > { %v2750_v22 = vpop.f32.mrf.mxu0 }
 0x414   : > { %v2751_v41 = vadd.f32 %v7483_v25, %v2750_v22  ;;  %v9436_v22 = vld [vmem:[%s11682_s23 + $0x58] sm:$0xff]  }
 0x415   : > { %v8555_v23 = vpop.f32.mrf.mxu0 }
 0x416   : > { %v9437_v23 = vld [vmem:[%s11682_s23 + $0x68] sm:$0xff]  }
 0x41c   : > { %v2651_v27 = vpop.f32.mrf.mxu1 }
 0x41d   : > { %v2658_v29 = vadd.f32 %v2651_v27, %v2568_v24 }
 0x41e   : > { %v8548_v30 = vpop.f32.mrf.mxu1 }
 0x41f   : > { %v2667_v34 = vadd.f32 %v7482_v28, %v2658_v29  ;;  %v9438_v30 = vld [vmem:[%s11682_s23 + $0x50] sm:$0xff]  }
 0x420   : > { %v2654_v33 = vpop.f32.mrf.mxu1 }
 0x421   : > { %v2669_v35 = vmax.f32 %v2667_v34, 0.0  ;;  %v2659_v36 = vadd.f32 %v2654_v33, %v2571_v31  ;;  %v9439_v31 = vld [vmem:[%s11682_s23 + $0x60] sm:$0xff]   ;;  %v9440_v33 = vld [vmem:[%s11682_s23 + $0x48] sm:$0xff]  }
 0x422   : > { %v8549_v37 = vpop.f32.mrf.mxu1 }
 0x423   : > { %v2754_v38 = vadd.f32 %v2748_v32, %v2669_v35  ;;  %v2668_v39 = vadd.f32 %v7482_v28, %v2659_v36  ;;  %v9443_v35 = vld [vmem:[%s11682_s23 + $0xb8] sm:$0xff]  }
 0x425   : > { %v2756_v40 = vmax.f32 %v2754_v38, 0.0  ;;  %v2670_v42 = vmax.f32 %v2668_v39, 0.0 }
 0x427   : > { %v8078_v43 = vpack.c.bf16 %v2756_v40, %v2756_v40  ;;  %v2755_v44 = vadd.f32 %v2751_v41, %v2670_v42  ;;  %v9444_v40 = vld [vmem:[%s11682_s23 + $0x40] sm:$0xff]   ;;  %v9445_v41 = vld [vmem:[%s11682_s23 + $0xb0] sm:$0xff]  }
 0x429   : > { %v2765_v45 = vshrl.u32 %v8078_v43, 16  ;;  %v2768_v46 = vshll.u32 %v8078_v43, 16  ;;  %v2757_v47 = vmax.f32 %v2755_v44, 0.0 }
 0x42b   : > { %v2767_v48 = vrot.slane %v2765_v45, 6  ;;  %v2770_v49 = vrot.slane %v2768_v46, 7  ;;  %v8079_v50 = vpack.c.bf16 %v2757_v47, %v2757_v47 }
 0x42d   : > { %v2771_v52 = vor.u32 %v2770_v49, %v2767_v48  ;;  %v2774_v53 = vshrl.u32 %v8079_v50, 16  ;;  %v2777_v54 = vshll.u32 %v8079_v50, 16  ;;  %v9446_v48 = vld [vmem:[%s11682_s23 + $0x98] sm:$0xff]   ;;  %v9447_v49 = vld [vmem:[%s11682_s23 + $0xa8] sm:$0xff]  }
 0x42f   : > { %v2787_v55 = vsel %vm10735_vm13, %v2771_v52, %v2786_v51  ;;  %v2776_v57 = vrot.slane %v2774_v53, 6  ;;  %v2779_v58 = vrot.slane %v2777_v54, 7  ;;  %v2772_v59 = vrot.slane %v2771_v52, 4 }
 0x430   : > { %2788 = vst [vmem:[#allocation5] sm:$0xe] %v2787_v55  ;;  %v9448_v55 = vld [vmem:[%s11682_s23 + $0x90] sm:$0xff]   ;;  %vm11694_vm13 = vcmask 1043456  }
 0x431   : > { %v2780_v60 = vor.u32 %v2779_v58, %v2776_v57  ;;  %v9449_v57 = vld [vmem:[%s11682_s23 + $0xa0] sm:$0xff]  }
 0x433   : > { %v2781_v62 = vsel %vm10629_vm12, %v2772_v59, %v2780_v60  ;;  %v2782_v63 = vrot.slane %v2780_v60, 4  ;;  %v9450_v60 = vld [vmem:[%s11682_s23 + $0x88] sm:$0xff]  }
 0x434   : > { %2789 = vst.msk [vmem:[#allocation5 + $0x4] sm:$0xf] %vm1863_vm15, %v2781_v62  ;;  %vm11685_vm15 = vcmask 1044480  }
 0x435   : > { %v2791_v3 = vsel %vm10742_vm5, %v2782_v63, %v2790_v61  ;;  %v9453_v61 = vld [vmem:[%s11682_s23 + $0xf8] sm:$0xff]   ;;  %vm11684_vm5 = vsmask.f32 4352 }
 0x436   : > { %2792 = vst [vmem:[#allocation5 + $0x8] sm:$0x3] %v2791_v3 }
 0x437   : > { %v2793_v4 = vld [vmem:[#allocation5] sm:$0xf] }
 0x438   : > { %v2968_v7 = vld [vmem:[#allocation5] sm:$0xe] }
 0x439   : > { %v3154_v36 = vld [vmem:[#allocation5] sm:$0xc] }
 0x43a   : > { %v3340_v62 = vld [vmem:[#allocation5] sm:$0x8] }
 0x43b   : > { %v10864_v6 = vld [vmem:[#allocation5 + $0x4] sm:$0xf] }
 0x43c   : > { %v7497_v8 = vcombine.low %v2793_v4, %v10864_v6  ;;  %v10868_v9 = vcombine.low %v2968_v7, %v10864_v6  ;;  %v10901_v38 = vcombine.low %v3154_v36, %v10864_v6  ;;  %v7573_v3 = vcombine.low %v3340_v62, %v10864_v6  ;;  %v9455_v7 = vld [vmem:[%s11682_s23 + $0xf0] sm:$0xff]   ;;  %v9470_v36 = vld [vmem:[%s11683_s18 + $0x60] sm:$0xff]  }
 0x43d   : > { %v10870_v10 = vld [vmem:[#allocation5 + $0x8] ss:$0 sps:$4 sm:$0x11]  }
 0x43e   : > { %8577 = vmatmul.mubr.msk.bf16.vlgmr.msra.gmra.mxu0 %vm1926_vm11, %v7497_v8  ;;  %v2824_v11 = vshll.u32 %v7497_v8, 16  ;;  %v2829_v12 = vshll.u32 %v10870_v10, 16  ;;  %v10877_v13 = vld [vmem:[#allocation5 + $0x8] ss:$0 sps:$4 sm:$0x33]   ;;  %v2822_v14 = vshrl.u32 %v7497_v8, 16 }
 0x43f   : > { %8593 = vmatpush3.bf16.msra.mxu0 %v9432_v56  ;;  %8600 = vmatprep.mubr.msk.bf16.mxu0 %vm10238_vm0, %v10237_v0  ;;  %v3068_v16 = vshrl.u32 %v10868_v9, 16  ;;  %v3071_v18 = vshll.u32 %v10868_v9, 16  ;;  %v3076_v19 = vshrl.u32 %v10877_v13, 16  ;;  %v3079_v20 = vshll.u32 %v10877_v13, 16  ;;  %v9462_v4 = vld [vmem:[#allocation5 + $0x8] ss:$0 sps:$4 sm:$0xff]  }
 0x440   : > { %8594 = vmatprep.subr.bf16.mxu0 %v10237_v0  ;;  %v2826_v15 = vrot.slane %v2824_v11, 1  ;;  %v2831_v17 = vrot.slane %v2829_v12, 1  ;;  %v10903_v39 = vld [vmem:[#allocation5 + $0x8] ss:$0 sps:$4 sm:$0x77]   ;;  %v2981_v42 = vrot.slane %v10868_v9, 1 }
 0x441   : > { %v3070_v25 = vrot.slane %v3068_v16, 1  ;;  %v3073_v27 = vrot.slane %v3071_v18, 2  ;;  %v3078_v28 = vrot.slane %v3076_v19, 1  ;;  %v3081_v29 = vrot.slane %v3079_v20, 2  ;;  %v9454_v56 = vld [vmem:[%s11682_s23 + $0x80] sm:$0xff]   ;;  %v9456_v12 = vld [vmem:[%s11682_s23 + $0xd8] sm:$0xff]  }
 0x442   : > { %v2827_v21 = vor.u32 %v2826_v15, %v2822_v14  ;;  %v2982_v43 = vrot.slane %v10870_v10, 1  ;;  %v3254_v44 = vshrl.u32 %v10901_v38, 16  ;;  %v3257_v45 = vshll.u32 %v10901_v38, 16  ;;  %v9457_v14 = vld [vmem:[%s11682_s23 + $0xe8] sm:$0xff]   ;;  %v9458_v19 = vld [vmem:[%s11682_s23 + $0xd0] sm:$0xff]   ;;  %v9459_v20 = vld [vmem:[%s11682_s23 + $0xe0] sm:$0xff]  }
 0x443   : > { %8595 = vmatpush3.bf16.msra.mxu0 %v9434_v5  ;;  %v3074_v32 = vor.u32 %v3073_v27, %v3070_v25  ;;  %v3082_v34 = vor.u32 %v3081_v29, %v3078_v28  ;;  %v3262_v46 = vshrl.u32 %v10903_v39, 16  ;;  %v3265_v47 = vshll.u32 %v10903_v39, 16  ;;  %v9463_v25 = vld [vmem:[%s11682_s23 + $0xc0] sm:$0xff]  }
 0x444   : > { %v2832_v24 = vsel %vm1315_vm1, %v2827_v21, %v2831_v17  ;;  %8596 = vmatprep.subr.bf16.mxu0 %v10237_v0  ;;  %v2983_v50 = vsel %vm1429_vm8, %v2981_v42, %v2982_v43  ;;  %v3256_v51 = vrot.slane %v3254_v44, 2  ;;  %v3259_v52 = vrot.slane %v3257_v45, 3  ;;  %v9476_v42 = vld [vmem:[%s11683_s18 + $0x48] sm:$0xff]   ;;  %v9478_v44 = vld [vmem:[%s11683_s18 + $0x40] sm:$0xff]  }
 0x445   : > { %8565 = vmatmul.mubr.msk.bf16.vlgmr.msra.gmra.mxu1 %vm1926_vm11, %v2832_v24  ;;  %v3083_v37 = vsel %vm1488_vm3, %v3074_v32, %v3082_v34  ;;  %v3264_v53 = vrot.slane %v3262_v46, 2  ;;  %v3267_v54 = vrot.slane %v3265_v47, 3  ;;  %v3167_v8 = vrot.slane %v10901_v38, 2  ;;  %v9466_v32 = vld [vmem:[%s11683_s18 + $0x70] sm:$0xff]   ;;  %v9472_v38 = vld [vmem:[%s11683_s18 + $0x58] sm:$0xff]   ;;  %v9477_v43 = vld [vmem:[%s11683_s18 + $0x8] sm:$0xff]  }
 0x446   : > { %8581 = vmatpush3.bf16.msra.mxu1 %v9436_v22  ;;  %8588 = vmatprep.mubr.msk.bf16.mxu1 %vm10238_vm0, %v10237_v0  ;;  %v3260_v58 = vor.u32 %v3259_v52, %v3256_v51  ;;  %v3168_v9 = vrot.slane %v10877_v13, 2  ;;  %v3440_v6 = vshrl.u32 %v7573_v3, 16  ;;  %v3443_v10 = vshll.u32 %v7573_v3, 16  ;;  %v9467_v34 = vld [vmem:[%s11683_s18 + $0x30] sm:$0xff]   ;;  %v9479_v45 = vld [vmem:[%s11683_s18] sm:$0xff]  }
 0x447   : > { %8597 = vmatpush3.bf16.msra.mxu0 %v9437_v23  ;;  %8582 = vmatprep.subr.bf16.mxu1 %v10237_v0  ;;  %v3268_v59 = vor.u32 %v3267_v54, %v3264_v53  ;;  %v3448_v11 = vshrl.u32 %v9462_v4, 16  ;;  %v3451_v5 = vshll.u32 %v9462_v4, 16  ;;  %v9460_v23 = vld [vmem:[%s11682_s23 + $0xc8] sm:$0xff]   ;;  %v3353_v27 = vrot.slane %v7573_v3, 3 }
 0x448   : > { %8598 = vmatprep.subr.bf16.mxu0 %v10237_v0  ;;  %v3169_v15 = vsel %vm1561_vm10, %v3167_v8, %v3168_v9  ;;  %v3442_v13 = vrot.slane %v3440_v6, 3  ;;  %v3445_v16 = vrot.slane %v3443_v10, 4  ;;  %v3354_v28 = vrot.slane %v10903_v39, 3  ;;  %v9473_v39 = vld [vmem:[%s11683_s18 + $0x18] sm:$0xff]  }
 0x449   : > { %v3269_v63 = vsel %vm1620_vm9, %v3260_v58, %v3268_v59  ;;  %v3450_v17 = vrot.slane %v3448_v11, 3  ;;  %v3453_v18 = vrot.slane %v3451_v5, 4 }
 0x44a   : > { %8583 = vmatpush3.bf16.msra.mxu1 %v9438_v30  ;;  %v3446_v21 = vor.u32 %v3445_v16, %v3442_v13  ;;  %v3355_v29 = vsel %vm11685_vm15, %v3353_v27, %v3354_v28  ;;  %v9464_v30 = vld [vmem:[%s11683_s18 + $0x78] sm:$0xff]  }
 0x44b   : > { %8599 = vmatpush3.bf16.msra.mxu0 %v9439_v31  ;;  %8584 = vmatprep.subr.bf16.mxu1 %v10237_v0  ;;  %v3454_v22 = vor.u32 %v3453_v18, %v3450_v17  ;;  %v9465_v31 = vld [vmem:[%s11683_s18 + $0x38] sm:$0xff]  }
 0x44c   : > { %8616 = vmatprep.subr.bf16.mxu0 %v10237_v0 }
 0x44d   : > { %v3455_v24 = vsel %vm11684_vm5, %v3446_v21, %v3454_v22 }
 0x44e   : > { %8585 = vmatpush3.bf16.msra.mxu1 %v9440_v33  ;;  %8601 = vmatmul.mubr.msk.bf16.vlgmr.msra.gmra.mxu0 %vm1926_vm11, %v3083_v37  ;;  %v9468_v33 = vld [vmem:[%s11683_s18 + $0x68] sm:$0xff]   ;;  %v9471_v37 = vld [vmem:[%s11683_s18 + $0x20] sm:$0xff]  }
 0x44f   : > { %8617 = vmatpush3.bf16.msra.mxu0 %v9443_v35  ;;  %8586 = vmatprep.subr.bf16.mxu1 %v10237_v0  ;;  %v9469_v35 = vld [vmem:[%s11683_s18 + $0x28] sm:$0xff]  }
 0x450   : > { %8618 = vmatprep.subr.bf16.mxu0 %v10237_v0  ;;  %8624 = vmatprep.mubr.msk.bf16.mxu0 %vm10238_vm0, %v10237_v0 }
 0x452   : > { %8587 = vmatpush3.bf16.msra.mxu1 %v9444_v40  ;;  %v9474_v40 = vld [vmem:[%s11683_s18 + $0x50] sm:$0xff]  }
 0x453   : > { %8619 = vmatpush3.bf16.msra.mxu0 %v9445_v41  ;;  %8604 = vmatprep.subr.bf16.mxu1 %v10237_v0  ;;  %v9475_v41 = vld [vmem:[%s11683_s18 + $0x10] sm:$0xff]  }
 0x454   : > { %8620 = vmatprep.subr.bf16.mxu0 %v10237_v0 }
 0x455   : > { %8589 = vmatmul.mubr.msk.bf16.vlgmr.msra.gmra.mxu1 %vm1926_vm11, %v2983_v50 }
 0x456   : > { %8605 = vmatpush3.bf16.msra.mxu1 %v9446_v48  ;;  %8612 = vmatprep.mubr.msk.bf16.mxu1 %vm10238_vm0, %v10237_v0 }
 0x457   : > { %8621 = vmatpush3.bf16.msra.mxu0 %v9447_v49  ;;  %8606 = vmatprep.subr.bf16.mxu1 %v10237_v0 }
 0x458   : > { %8622 = vmatprep.subr.bf16.mxu0 %v10237_v0 }
 0x45a   : > { %8607 = vmatpush3.bf16.msra.mxu1 %v9448_v55 }
 0x45b   : > { %8623 = vmatpush3.bf16.msra.mxu0 %v9449_v57  ;;  %8608 = vmatprep.subr.bf16.mxu1 %v10237_v0 }
 0x45c   : > { %8640 = vmatprep.subr.bf16.mxu0 %v10237_v0 }
 0x45e   : > { %8609 = vmatpush3.bf16.msra.mxu1 %v9450_v60  ;;  %8625 = vmatmul.mubr.msk.bf16.vlgmr.msra.gmra.mxu0 %vm1926_vm11, %v3269_v63 }
 0x45f   : > { %8641 = vmatpush3.bf16.msra.mxu0 %v9453_v61  ;;  %8610 = vmatprep.subr.bf16.mxu1 %v10237_v0 }
 0x460   : > { %8642 = vmatprep.subr.bf16.mxu0 %v10237_v0  ;;  %8648 = vmatprep.mubr.msk.bf16.mxu0 %vm10238_vm0, %v10237_v0 }
 0x462   : > { %8611 = vmatpush3.bf16.msra.mxu1 %v9454_v56 }
 0x463   : > { %8643 = vmatpush3.bf16.msra.mxu0 %v9455_v7  ;;  %8628 = vmatprep.subr.bf16.mxu1 %v10237_v0 }
 0x464   : > { %8644 = vmatprep.subr.bf16.mxu0 %v10237_v0 }
 0x465   : > { %8613 = vmatmul.mubr.msk.bf16.vlgmr.msra.gmra.mxu1 %vm1926_vm11, %v3169_v15 }
 0x466   : > { %8629 = vmatpush3.bf16.msra.mxu1 %v9456_v12  ;;  %8636 = vmatprep.mubr.msk.bf16.mxu1 %vm10238_vm0, %v10237_v0 }
 0x467   : > { %8645 = vmatpush3.bf16.msra.mxu0 %v9457_v14  ;;  %8630 = vmatprep.subr.bf16.mxu1 %v10237_v0 }
 0x468   : > { %8646 = vmatprep.subr.bf16.mxu0 %v10237_v0 }
 0x46a   : > { %8631 = vmatpush3.bf16.msra.mxu1 %v9458_v19 }
 0x46b   : > { %8647 = vmatpush3.bf16.msra.mxu0 %v9459_v20  ;;  %8632 = vmatprep.subr.bf16.mxu1 %v10237_v0 }
 0x46c   : > { %8672 = vmatprep.subr.bf16.mxu0 %v10237_v0 }
 0x46e   : > { %8633 = vmatpush3.bf16.msra.mxu1 %v9460_v23  ;;  %8649 = vmatmul.mubr.msk.bf16.vlgmr.msra.gmra.mxu0 %vm1926_vm11, %v3455_v24  ;;  %v7593_v24 = vld [vmem:[#allocation15] ss:$0 sm:$0xff] }
 0x46f   : > { %8634 = vmatprep.subr.bf16.mxu1 %v10237_v0  ;;  %8688 = vmatprep.mubr.msk.bf16.mxu0 %vm10238_vm0, %v10237_v0 }
 0x470   : > { %8673 = vmatpush3.bf16.msra.mxu0 %v9465_v31 }
 0x471   : > { %8674 = vmatprep.subr.bf16.mxu0 %v10237_v0 }
 0x472   : > { %8635 = vmatpush3.bf16.msra.mxu1 %v9463_v25 }
 0x473   : > { %8652 = vmatprep.subr.bf16.mxu1 %v10237_v0 }
 0x474   : > { %8675 = vmatpush3.bf16.msra.mxu0 %v9467_v34 }
 0x475   : > { %8637 = vmatmul.mubr.msk.bf16.vlgmr.msra.gmra.mxu1 %vm1926_vm11, %v3355_v29  ;;  %8676 = vmatprep.subr.bf16.mxu0 %v10237_v0 }
 0x476   : > { %8668 = vmatprep.mubr.msk.bf16.mxu1 %vm10238_vm0, %v10237_v0  ;;  %8653 = vmatpush3.bf16.msra.mxu1 %v9464_v30 }
 0x477   : > { %8654 = vmatprep.subr.bf16.mxu1 %v10237_v0 }
 0x478   : > { %8677 = vmatpush3.bf16.msra.mxu0 %v9469_v35 }
 0x479   : > { %8678 = vmatprep.subr.bf16.mxu0 %v10237_v0 }
 0x47a   : > { %8655 = vmatpush3.bf16.msra.mxu1 %v9466_v32 }
 0x47b   : > { %8656 = vmatprep.subr.bf16.mxu1 %v10237_v0 }
 0x47c   : > { %8679 = vmatpush3.bf16.msra.mxu0 %v9471_v37 }
 0x47d   : > { %8680 = vmatprep.subr.bf16.mxu0 %v10237_v0 }
 0x47e   : > { %8657 = vmatpush3.bf16.msra.mxu1 %v9468_v33 }
 0x47f   : > { %8658 = vmatprep.subr.bf16.mxu1 %v10237_v0 }
 0x480   : > { %8681 = vmatpush3.bf16.msra.mxu0 %v9473_v39 }
 0x481   : > { %8682 = vmatprep.subr.bf16.mxu0 %v10237_v0 }
 0x482   : > { %8659 = vmatpush3.bf16.msra.mxu1 %v9470_v36 }
 0x483   : > { %8660 = vmatprep.subr.bf16.mxu1 %v10237_v0 }
 0x484   : > { %8683 = vmatpush3.bf16.msra.mxu0 %v9475_v41 }
 0x485   : > { %8684 = vmatprep.subr.bf16.mxu0 %v10237_v0 }
 0x486   : > { %8661 = vmatpush3.bf16.msra.mxu1 %v9472_v38 }
 0x487   : > { %8662 = vmatprep.subr.bf16.mxu1 %v10237_v0 }
 0x488   : > { %8685 = vmatpush3.bf16.msra.mxu0 %v9477_v43  ;;  %v3565_v43 = vld [vmem:[#allocation2] sm:$0xe] }
 0x489   : > { %8686 = vmatprep.subr.bf16.mxu0 %v10237_v0 }
 0x48a   : > { %8663 = vmatpush3.bf16.msra.mxu1 %v9474_v40 }
 0x48b   : > { %8664 = vmatprep.subr.bf16.mxu1 %v10237_v0 }
 0x48c   : > { %8687 = vmatpush3.bf16.msra.mxu0 %v9479_v45 }
 0x48d   : > { %8712 = vmatprep.subr.bf16.mxu0 %v10237_v0 }
 0x48e   : > { %8665 = vmatpush3.bf16.msra.mxu1 %v9476_v42 }
 0x48f   : > { %8666 = vmatprep.subr.bf16.mxu1 %v10237_v0 }
 0x492   : > { %8667 = vmatpush3.bf16.msra.mxu1 %v9478_v44 }
 0x493   : > { %8692 = vmatprep.subr.bf16.mxu1 %v10237_v0 }
 0x4fe   : > { %v2961_v46 = vpop.f32.mrf.mxu0 }
 0x500   : > { %v8578_v47 = vpop.f32.mrf.mxu0 }
 0x502   : > { %v2964_v48 = vpop.f32.mrf.mxu0 }
 0x504   : > { %v8579_v49 = vpop.f32.mrf.mxu0 }
 0x505   : > { %v2894_v50 = vpop.f32.mrf.mxu1 }
 0x506   : > { %v2962_v9 = vadd.f32 %v2961_v46, %v2894_v50 }
 0x507   : > { %v8566_v51 = vpop.f32.mrf.mxu1 }
 0x509   : > { %v2897_v52 = vpop.f32.mrf.mxu1 }
 0x50a   : > { %v2965_v5 = vadd.f32 %v2964_v48, %v2897_v52  ;;  %v3569_v52 = vld [vmem:[#allocation2 + $0x8] sm:$0x3] }
 0x50b   : > { %v8567_v53 = vpop.f32.mrf.mxu1 }
 0x50e   : > { %v3145_v54 = vpop.f32.mrf.mxu0 }
 0x510   : > { %v8602_v55 = vpop.f32.mrf.mxu0 }
 0x512   : > { %v3148_v57 = vpop.f32.mrf.mxu0 }
 0x514   : > { %v8603_v58 = vpop.f32.mrf.mxu0 }
 0x515   : > { %v3045_v59 = vpop.f32.mrf.mxu1 }
 0x516   : > { %v3052_v10 = vadd.f32 %v3045_v59, %v2962_v9 }
 0x517   : > { %v8590_v60 = vpop.f32.mrf.mxu1 }
 0x518   : > { %v3152_v14 = vadd.f32 %v3145_v54, %v3052_v10 }
 0x519   : > { %v3048_v61 = vpop.f32.mrf.mxu1 }
 0x51a   : > { %v3053_v12 = vadd.f32 %v3048_v61, %v2965_v5  ;;  %v9484_v5 = vld [vmem:[%s11683_s18 + $0xf8] sm:$0xff]  }
 0x51b   : > { %v8591_v62 = vpop.f32.mrf.mxu1 }
 0x51c   : > { %v3153_v17 = vadd.f32 %v3148_v57, %v3053_v12  ;;  %v9485_v12 = vld [vmem:[%s11683_s18 + $0xb0] sm:$0xff]  }
 0x51e   : > { %v3331_v63 = vpop.f32.mrf.mxu0 }
 0x520   : > { %v8626_v3 = vpop.f32.mrf.mxu0 }
 0x522   : > { %v3334_v4 = vpop.f32.mrf.mxu0 }
 0x524   : > { %v8627_v56 = vpop.f32.mrf.mxu0 }
 0x525   : > { %v3231_v7 = vpop.f32.mrf.mxu1  ;;  %v9482_v56 = vld [vmem:[%s11683_s18 + $0xb8] sm:$0xff]  }
 0x526   : > { %v3238_v13 = vadd.f32 %v3231_v7, %v3152_v14 }
 0x527   : > { %v8614_v8 = vpop.f32.mrf.mxu1 }
 0x528   : > { %v3338_v21 = vadd.f32 %v3331_v63, %v3238_v13  ;;  %v9487_v13 = vld [vmem:[%s11683_s18 + $0xa8] sm:$0xff]  }
 0x529   : > { %v3234_v6 = vpop.f32.mrf.mxu1 }
 0x52a   : > { %v3239_v19 = vadd.f32 %v3234_v6, %v3153_v17  ;;  %v9489_v17 = vld [vmem:[%s11683_s18 + $0xa0] sm:$0xff]  }
 0x52b   : > { %v8615_v11 = vpop.f32.mrf.mxu1 }
 0x52c   : > { %v3339_v28 = vadd.f32 %v3334_v4, %v3239_v19  ;;  %v9491_v19 = vld [vmem:[%s11683_s18 + $0x98] sm:$0xff]  }
 0x52e   : > { %v3517_v15 = vpop.f32.mrf.mxu0 }
 0x530   : > { %v8650_v16 = vpop.f32.mrf.mxu0 }
 0x531   : > { %v9488_v16 = vld [vmem:[%s11683_s18 + $0xe8] sm:$0xff]  }
 0x532   : > { %v3520_v18 = vpop.f32.mrf.mxu0 }
 0x534   : > { %v8651_v20 = vpop.f32.mrf.mxu0 }
 0x535   : > { %v3417_v22 = vpop.f32.mrf.mxu1 }
 0x536   : > { %v3424_v23 = vadd.f32 %v3417_v22, %v3338_v21  ;;  %v9492_v21 = vld [vmem:[%s11683_s18 + $0xd8] sm:$0xff]   ;;  %v9493_v22 = vld [vmem:[%s11683_s18 + $0x90] sm:$0xff]  }
 0x537   : > { %v8638_v25 = vpop.f32.mrf.mxu1 }
 0x538   : > { %v3524_v27 = vadd.f32 %v3517_v15, %v3424_v23  ;;  %v9486_v15 = vld [vmem:[%s11683_s18 + $0xf0] sm:$0xff]  }
 0x539   : > { %v3420_v29 = vpop.f32.mrf.mxu1 }
 0x53a   : > { %v3533_v30 = vadd.f32 %v7593_v24, %v3524_v27  ;;  %v3425_v31 = vadd.f32 %v3420_v29, %v3339_v28  ;;  %v9494_v28 = vld [vmem:[%s11683_s18 + $0xd0] sm:$0xff]   ;;  %v9495_v29 = vld [vmem:[%s11683_s18 + $0x88] sm:$0xff]  }
 0x53b   : > { %v8639_v32 = vpop.f32.mrf.mxu1 }
 0x53c   : > { %v3535_v34 = vmax.f32 %v3533_v30, 0.0  ;;  %v3525_v33 = vadd.f32 %v3520_v18, %v3425_v31  ;;  %v9490_v18 = vld [vmem:[%s11683_s18 + $0xe0] sm:$0xff]  }
 0x53e   : > { %v8080_v35 = vpack.c.bf16 %v3535_v34, %v3535_v34  ;;  %v3534_v36 = vadd.f32 %v7593_v24, %v3525_v33  ;;  %v9496_v33 = vld [vmem:[%s11683_s18 + $0xc8] sm:$0xff]  }
 0x540   : > { %v3544_v37 = vshrl.u32 %v8080_v35, 16  ;;  %v3547_v38 = vshll.u32 %v8080_v35, 16  ;;  %v3536_v39 = vmax.f32 %v3534_v36, 0.0  ;;  %v9497_v35 = vld [vmem:[%s11683_s18 + $0x80] sm:$0xff]  }
 0x542   : > { %v3546_v40 = vrot.slane %v3544_v37, 6  ;;  %v3549_v41 = vrot.slane %v3547_v38, 7  ;;  %v8081_v42 = vpack.c.bf16 %v3536_v39, %v3536_v39 }
 0x544   : > { %v3550_v44 = vor.u32 %v3549_v41, %v3546_v40  ;;  %v3553_v45 = vshrl.u32 %v8081_v42, 16  ;;  %v3556_v46 = vshll.u32 %v8081_v42, 16  ;;  %v9498_v40 = vld [vmem:[%s11683_s18 + $0xc0] sm:$0xff]   ;;  %v9500_v41 = vld [vmem:[%s11683_s18 + $0x138] sm:$0xff]  }
 0x546   : > { %v3566_v47 = vsel %vm10611_vm7, %v3550_v44, %v3565_v43  ;;  %v3555_v48 = vrot.slane %v3553_v45, 6  ;;  %v3558_v49 = vrot.slane %v3556_v46, 7  ;;  %v3551_v50 = vrot.slane %v3550_v44, 4  ;;  %v9502_v45 = vld [vmem:[%s11683_s18 + $0x130] sm:$0xff]  }
 0x547   : > { %3567 = vst [vmem:[#allocation2] sm:$0xe] %v3566_v47  ;;  %v9503_v47 = vld [vmem:[%s11683_s18 + $0x128] sm:$0xff]  }
 0x548   : > { %v3559_v51 = vor.u32 %v3558_v49, %v3555_v48  ;;  %v9504_v48 = vld [vmem:[%s11683_s18 + $0x120] sm:$0xff]   ;;  %v9505_v49 = vld [vmem:[%s11683_s18 + $0x118] sm:$0xff]  }
 0x54a   : > { %v3560_v53 = vsel %vm10629_vm12, %v3551_v50, %v3559_v51  ;;  %v3561_v54 = vrot.slane %v3559_v51, 4  ;;  %v9506_v51 = vld [vmem:[%s11683_s18 + $0x110] sm:$0xff]  }
 0x54b   : > { %3568 = vst [vmem:[#allocation2 + $0x4] sm:$0xf] %v3560_v53 }
 0x54c   : > { %v3570_v55 = vsel %vm10605_vm6, %v3561_v54, %v3569_v52 }
 0x54d   : > { %3571 = vst [vmem:[#allocation2 + $0x8] sm:$0x3] %v3570_v55 }
 0x54e   : > { %v3591_v58 = vld [vmem:[#allocation2] sm:$0xe] }
 0x54f   : > { %v3572_v59 = vld [vmem:[#allocation2] sm:$0xf] }
 0x550   : > { %v3945_v36 = vld [vmem:[#allocation2] sm:$0xc] }
 0x552   : > { %v11010_v57 = vld [vmem:[#allocation2 + $0x4] sm:$0xf] }
 0x553   : > { %v7612_v60 = vcombine.low %v3591_v58, %v11010_v57  ;;  %v7622_v61 = vcombine.low %v3572_v59, %v11010_v57  ;;  %v7672_v37 = vcombine.low %v3945_v36, %v11010_v57  ;;  %v9507_v57 = vld [vmem:[%s11683_s18 + $0x108] sm:$0xff]  }
 0x554   : > { %v9481_v62 = vld [vmem:[#allocation2 + $0x8] ss:$0 sps:$4 sm:$0x11]  }
 0x555   : > { %v3617_v63 = vrot.slane %v7612_v60, 1  ;;  %v3716_v3 = vshll.u32 %v7622_v61, 16  ;;  %v3618_v4 = vrot.slane %v9481_v62, 1  ;;  %v3721_v7 = vshll.u32 %v9481_v62, 16  ;;  %v9508_v62 = vld [vmem:[%s11683_s18 + $0x100] sm:$0xff]  }
 0x556   : > { %v3714_v8 = vshrl.u32 %v7622_v61, 16  ;;  %v9499_v20 = vld [vmem:[#allocation2 + $0x8] ss:$0 sps:$4 sm:$0x33]   ;;  %v3837_v23 = vshrl.u32 %v7612_v60, 16  ;;  %v3840_v24 = vshll.u32 %v7612_v60, 16 }
 0x557   : > { %v3718_v9 = vrot.slane %v3716_v3, 1  ;;  %v3619_v6 = vsel %vm1429_vm8, %v3617_v63, %v3618_v4  ;;  %v3723_v10 = vrot.slane %v3721_v7, 1  ;;  %v3845_v25 = vshrl.u32 %v9499_v20, 16  ;;  %v9509_v50 = vld [vmem:[#allocation2 + $0x8] ss:$0 sps:$4 sm:$0x77]  }
 0x558   : > { %8669 = vmatmul.mubr.bf16.vlgmr.msra.gmra.mxu1 %v3619_v6  ;;  %v3848_v27 = vshll.u32 %v9499_v20, 16  ;;  %v3839_v30 = vrot.slane %v3837_v23, 1  ;;  %v3842_v31 = vrot.slane %v3840_v24, 2  ;;  %v3966_v42 = vrot.slane %v7672_v37, 2  ;;  %v9511_v7 = vld [vmem:[%s11686_s3 + $0x78] sm:$0xff]   ;;  %v9514_v6 = vld [vmem:[%s11686_s3 + $0x28] sm:$0xff]  }
 0x559   : > { %v3719_v11 = vor.u32 %v3718_v9, %v3714_v8  ;;  %8693 = vmatpush3.bf16.msra.mxu1 %v9482_v56  ;;  %8708 = vmatprep.mubr.msk.bf16.mxu1 %vm10238_vm0, %v10237_v0  ;;  %v3847_v32 = vrot.slane %v3845_v25, 1  ;;  %v3967_v43 = vrot.slane %v9499_v20, 2  ;;  %v4083_v52 = vshrl.u32 %v7672_v37, 16  ;;  %v9510_v56 = vld [vmem:[%s11686_s3 + $0x38] sm:$0xff]   ;;  %v9512_v8 = vld [vmem:[%s11686_s3 + $0x30] sm:$0xff]  }
 0x55a   : > { %8694 = vmatprep.subr.bf16.mxu1 %v10237_v0  ;;  %v3850_v34 = vrot.slane %v3848_v27, 2  ;;  %v3843_v38 = vor.u32 %v3842_v31, %v3839_v30  ;;  %v4086_v53 = vshll.u32 %v7672_v37, 16  ;;  %v4091_v54 = vshrl.u32 %v9509_v50, 16  ;;  %v9513_v9 = vld [vmem:[%s11686_s3 + $0x70] sm:$0xff]  }
 0x55b   : > { %v3724_v14 = vsel %vm1315_vm1, %v3719_v11, %v3723_v10  ;;  %v3968_v46 = vsel %vm1561_vm10, %v3966_v42, %v3967_v43  ;;  %v4094_v55 = vshll.u32 %v9509_v50, 16  ;;  %v4085_v58 = vrot.slane %v4083_v52, 2  ;;  %v9515_v10 = vld [vmem:[%s11686_s3 + $0x68] sm:$0xff]   ;;  %v9516_v11 = vld [vmem:[%s11686_s3 + $0x20] sm:$0xff]  }
 0x55c   : > { %8689 = vmatmul.mubr.bf16.vlgmr.msra.gmra.mxu0 %v3724_v14  ;;  %v3851_v39 = vor.u32 %v3850_v34, %v3847_v32  ;;  %v4088_v59 = vrot.slane %v4086_v53, 3  ;;  %v4093_v60 = vrot.slane %v4091_v54, 2  ;;  %v9519_v14 = vld [vmem:[%s11686_s3 + $0x58] sm:$0xff]   ;;  %v7706_v43 = vld [vmem:[#allocation17] ss:$0 sm:$0xff] }
 0x55d   : > { %8713 = vmatpush3.bf16.msra.mxu0 %v9484_v5  ;;  %8728 = vmatprep.mubr.msk.bf16.mxu0 %vm10238_vm0, %v10237_v0  ;;  %v4096_v61 = vrot.slane %v4094_v55, 3  ;;  %v9517_v5 = vld [vmem:[%s11686_s3 + $0x60] sm:$0xff]  }
 0x55e   : > { %8695 = vmatpush3.bf16.msra.mxu1 %v9485_v12  ;;  %8714 = vmatprep.subr.bf16.mxu0 %v10237_v0  ;;  %v3852_v44 = vsel %vm1488_vm3, %v3843_v38, %v3851_v39  ;;  %v4089_v63 = vor.u32 %v4088_v59, %v4085_v58  ;;  %v9518_v12 = vld [vmem:[%s11686_s3 + $0x18] sm:$0xff]  }
 0x55f   : > { %8696 = vmatprep.subr.bf16.mxu1 %v10237_v0  ;;  %v4097_v3 = vor.u32 %v4096_v61, %v4093_v60 }
 0x561   : > { %8715 = vmatpush3.bf16.msra.mxu0 %v9486_v15  ;;  %v4098_v4 = vsel %vm1620_vm9, %v4089_v63, %v4097_v3  ;;  %v9520_v15 = vld [vmem:[%s11686_s3 + $0x10] sm:$0xff]  }
 0x562   : > { %8697 = vmatpush3.bf16.msra.mxu1 %v9487_v13  ;;  %8716 = vmatprep.subr.bf16.mxu0 %v10237_v0  ;;  %v9521_v13 = vld [vmem:[%s11686_s3 + $0x50] sm:$0xff]  }
 0x563   : > { %8698 = vmatprep.subr.bf16.mxu1 %v10237_v0  ;;  %v4230_v3 = vld [vmem:[#allocation3] sm:$0xe] }
 0x565   : > { %8717 = vmatpush3.bf16.msra.mxu0 %v9488_v16  ;;  %v9522_v16 = vld [vmem:[%s11686_s3 + $0x8] sm:$0xff]  }
 0x566   : > { %8699 = vmatpush3.bf16.msra.mxu1 %v9489_v17  ;;  %8718 = vmatprep.subr.bf16.mxu0 %v10237_v0  ;;  %v9523_v17 = vld [vmem:[%s11686_s3 + $0x48] sm:$0xff]  }
 0x567   : > { %8700 = vmatprep.subr.bf16.mxu1 %v10237_v0 }
 0x569   : > { %8719 = vmatpush3.bf16.msra.mxu0 %v9490_v18  ;;  %v9524_v18 = vld [vmem:[%s11686_s3] sm:$0xff]  }
 0x56a   : > { %8701 = vmatpush3.bf16.msra.mxu1 %v9491_v19  ;;  %8720 = vmatprep.subr.bf16.mxu0 %v10237_v0  ;;  %v9525_v19 = vld [vmem:[%s11686_s3 + $0x40] sm:$0xff]  }
 0x56b   : > { %8702 = vmatprep.subr.bf16.mxu1 %v10237_v0 }
 0x56d   : > { %8721 = vmatpush3.bf16.msra.mxu0 %v9492_v21 }
 0x56e   : > { %8703 = vmatpush3.bf16.msra.mxu1 %v9493_v22  ;;  %8722 = vmatprep.subr.bf16.mxu0 %v10237_v0 }
 0x56f   : > { %8704 = vmatprep.subr.bf16.mxu1 %v10237_v0 }
 0x571   : > { %8723 = vmatpush3.bf16.msra.mxu0 %v9494_v28 }
 0x572   : > { %8705 = vmatpush3.bf16.msra.mxu1 %v9495_v29  ;;  %8724 = vmatprep.subr.bf16.mxu0 %v10237_v0 }
 0x573   : > { %8706 = vmatprep.subr.bf16.mxu1 %v10237_v0 }
 0x575   : > { %8725 = vmatpush3.bf16.msra.mxu0 %v9496_v33 }
 0x576   : > { %8707 = vmatpush3.bf16.msra.mxu1 %v9497_v35  ;;  %8726 = vmatprep.subr.bf16.mxu0 %v10237_v0 }
 0x577   : > { %8732 = vmatprep.subr.bf16.mxu1 %v10237_v0 }
 0x579   : > { %8727 = vmatpush3.bf16.msra.mxu0 %v9498_v40  ;;  %8709 = vmatmul.mubr.bf16.vlgmr.msra.gmra.mxu1 %v3852_v44 }
 0x57a   : > { %8733 = vmatpush3.bf16.msra.mxu1 %v9500_v41  ;;  %8748 = vmatprep.mubr.msk.bf16.mxu1 %vm10238_vm0, %v10237_v0 }
 0x57b   : > { %8734 = vmatprep.subr.bf16.mxu1 %v10237_v0  ;;  %8752 = vmatprep.subr.bf16.mxu0 %v10237_v0 }
 0x57c   : > { %8729 = vmatmul.mubr.bf16.vlgmr.msra.gmra.mxu0 %v3968_v46 }
 0x57d   : > { %8768 = vmatprep.mubr.msk.bf16.mxu0 %vm10238_vm0, %v10237_v0  ;;  %8753 = vmatpush3.bf16.msra.mxu0 %v9511_v7 }
 0x57e   : > { %8735 = vmatpush3.bf16.msra.mxu1 %v9502_v45  ;;  %8754 = vmatprep.subr.bf16.mxu0 %v10237_v0 }
 0x57f   : > { %8736 = vmatprep.subr.bf16.mxu1 %v10237_v0 }
 0x581   : > { %8755 = vmatpush3.bf16.msra.mxu0 %v9513_v9 }
 0x582   : > { %8737 = vmatpush3.bf16.msra.mxu1 %v9503_v47  ;;  %8756 = vmatprep.subr.bf16.mxu0 %v10237_v0 }
 0x583   : > { %8738 = vmatprep.subr.bf16.mxu1 %v10237_v0 }
 0x585   : > { %8757 = vmatpush3.bf16.msra.mxu0 %v9515_v10 }
 0x586   : > { %8739 = vmatpush3.bf16.msra.mxu1 %v9504_v48  ;;  %8758 = vmatprep.subr.bf16.mxu0 %v10237_v0 }
 0x587   : > { %8740 = vmatprep.subr.bf16.mxu1 %v10237_v0 }
 0x589   : > { %8759 = vmatpush3.bf16.msra.mxu0 %v9517_v5 }
 0x58a   : > { %8741 = vmatpush3.bf16.msra.mxu1 %v9505_v49  ;;  %8760 = vmatprep.subr.bf16.mxu0 %v10237_v0 }
 0x58b   : > { %8742 = vmatprep.subr.bf16.mxu1 %v10237_v0 }
 0x58d   : > { %8761 = vmatpush3.bf16.msra.mxu0 %v9519_v14 }
 0x58e   : > { %8743 = vmatpush3.bf16.msra.mxu1 %v9506_v51  ;;  %8762 = vmatprep.subr.bf16.mxu0 %v10237_v0 }
 0x58f   : > { %8744 = vmatprep.subr.bf16.mxu1 %v10237_v0 }
 0x591   : > { %8763 = vmatpush3.bf16.msra.mxu0 %v9521_v13 }
 0x592   : > { %8745 = vmatpush3.bf16.msra.mxu1 %v9507_v57  ;;  %8764 = vmatprep.subr.bf16.mxu0 %v10237_v0 }
 0x593   : > { %8746 = vmatprep.subr.bf16.mxu1 %v10237_v0 }
 0x595   : > { %8765 = vmatpush3.bf16.msra.mxu0 %v9523_v17 }
 0x596   : > { %8747 = vmatpush3.bf16.msra.mxu1 %v9508_v62  ;;  %8766 = vmatprep.subr.bf16.mxu0 %v10237_v0 }
 0x597   : > { %8772 = vmatprep.subr.bf16.mxu1 %v10237_v0 }
 0x599   : > { %8749 = vmatmul.mubr.bf16.vlgmr.msra.gmra.mxu1 %v4098_v4  ;;  %8767 = vmatpush3.bf16.msra.mxu0 %v9525_v19  ;;  %v9528_v19 = vld [vmem:[%s11687_s0 + $0x18] sm:$0xff]   ;;  %s11708_s0 = sld [smem:[#allocation60_spill]] }
 0x59a   : > { %8788 = vmatprep.mubr.msk.bf16.mxu1 %vm10238_vm0, %v10237_v0  ;;  %8773 = vmatpush3.bf16.msra.mxu1 %v9510_v56 }
 0x59b   : > { %8774 = vmatprep.subr.bf16.mxu1 %v10237_v0  ;;  %8792 = vmatprep.subr.bf16.mxu0 %v10237_v0 }
 0x59e   : > { %8775 = vmatpush3.bf16.msra.mxu1 %v9512_v8 }
 0x59f   : > { %8776 = vmatprep.subr.bf16.mxu1 %v10237_v0 }
 0x5a2   : > { %8777 = vmatpush3.bf16.msra.mxu1 %v9514_v6 }
 0x5a3   : > { %8778 = vmatprep.subr.bf16.mxu1 %v10237_v0 }
 0x5a6   : > { %8779 = vmatpush3.bf16.msra.mxu1 %v9516_v11  ;;  %v4234_v11 = vld [vmem:[#allocation3 + $0x8] sm:$0x3] }
 0x5a7   : > { %8780 = vmatprep.subr.bf16.mxu1 %v10237_v0 }
 0x5aa   : > { %8781 = vmatpush3.bf16.msra.mxu1 %v9518_v12 }
 0x5ab   : > { %8782 = vmatprep.subr.bf16.mxu1 %v10237_v0 }
 0x5ae   : > { %8783 = vmatpush3.bf16.msra.mxu1 %v9520_v15 }
 0x5af   : > { %8784 = vmatprep.subr.bf16.mxu1 %v10237_v0 }
 0x5b2   : > { %8785 = vmatpush3.bf16.msra.mxu1 %v9522_v16 }
 0x5b3   : > { %8786 = vmatprep.subr.bf16.mxu1 %v10237_v0 }
 0x5b6   : > { %8787 = vmatpush3.bf16.msra.mxu1 %v9524_v18 }
 0x5b7   : > { %8812 = vmatprep.subr.bf16.mxu1 %v10237_v0 }
 0x618   : > { %v3703_v20 = vpop.f32.mrf.mxu1 }
 0x61a   : > { %v8670_v21 = vpop.f32.mrf.mxu1 }
 0x61c   : > { %v3808_v22 = vpop.f32.mrf.mxu0  ;;  %v3706_v23 = vpop.f32.mrf.mxu1 }
 0x61d   : > { %v3809_v37 = vadd.f32 %v3808_v22, %v3703_v20 }
 0x61e   : > { %v8690_v24 = vpop.f32.mrf.mxu0  ;;  %v8671_v25 = vpop.f32.mrf.mxu1 }
 0x620   : > { %v3811_v27 = vpop.f32.mrf.mxu0 }
 0x621   : > { %v3812_v39 = vadd.f32 %v3811_v27, %v3706_v23 }
 0x622   : > { %v8691_v28 = vpop.f32.mrf.mxu0 }
 0x623   : > { %v9537_v28 = vld [vmem:[#allocation5 + $0x8] ss:$0 sps:$4 sm:$0x33]  }
 0x639   : > { %v3936_v29 = vpop.f32.mrf.mxu1 }
 0x63a   : > { %v3943_v38 = vadd.f32 %v3936_v29, %v3809_v37  ;;  %v4650_v37 = vshll.u32 %v9537_v28, 16 }
 0x63b   : > { %v8710_v30 = vpop.f32.mrf.mxu1 }
 0x63c   : > { %v4052_v31 = vpop.f32.mrf.mxu0 }
 0x63d   : > { %v3939_v32 = vpop.f32.mrf.mxu1  ;;  %v4059_v40 = vadd.f32 %v4052_v31, %v3943_v38 }
 0x63e   : > { %v8730_v34 = vpop.f32.mrf.mxu0  ;;  %v3944_v41 = vadd.f32 %v3939_v32, %v3812_v39  ;;  %v9531_v32 = vld [vmem:[%s11688_s10 + $0x10] sm:$0xff]   ;;  %v9533_v39 = vld [vmem:[%s11688_s10 + $0x8] sm:$0xff]  }
 0x63f   : > { %v8711_v33 = vpop.f32.mrf.mxu1  ;;  %v9536_v34 = vld [vmem:[#allocation5] sm:$0xfe]  }
 0x640   : > { %v4055_v35 = vpop.f32.mrf.mxu0 }
 0x641   : > { %v4060_v46 = vadd.f32 %v4055_v35, %v3944_v41  ;;  %v9530_v35 = vld [vmem:[%s11686_s3 + $0xb8] sm:$0xff]   ;;  %v4642_v41 = vshll.u32 %v9536_v34, 16 }
 0x642   : > { %v8731_v36 = vpop.f32.mrf.mxu0 }
 0x643   : > { %v4647_v36 = vshrl.u32 %v9537_v28, 16 }
 0x659   : > { %v4182_v42 = vpop.f32.mrf.mxu1 }
 0x65a   : > { %v4189_v44 = vadd.f32 %v4182_v42, %v4059_v40  ;;  %v4639_v40 = vshrl.u32 %v9536_v34, 16  ;;  %v9532_v42 = vld [vmem:[%s11686_s3 + $0xb0] sm:$0xff]  }
 0x65b   : > { %v8750_v45 = vpop.f32.mrf.mxu1 }
 0x65c   : > { %v4198_v47 = vadd.f32 %v7706_v43, %v4189_v44  ;;  %v4652_v44 = vrot.slane %v4650_v37, 2  ;;  %v9535_v45 = vld [vmem:[%s11688_s10] sm:$0xff]   ;;  %s10068_s10 = sshll.u32 %s10239_s8, 4  ;;  %s10069_s10 = int_to_ptr.vmem [resolvable:$false] %s10068_s10 }
 0x65d   : > { %v4185_v48 = vpop.f32.mrf.mxu1 }
 0x65e   : > { %v4200_v49 = vmax.f32 %v4198_v47, 0.0  ;;  %v4190_v50 = vadd.f32 %v4185_v48, %v4060_v46  ;;  %v4641_v46 = vrot.slane %v4639_v40, 1  ;;  %v4644_v47 = vrot.slane %v4642_v41, 2  ;;  %v9534_v48 = vld [vmem:[%s11686_s3 + $0xa8] sm:$0xff]  }
 0x65f   : > { %v8751_v51 = vpop.f32.mrf.mxu1 }
 0x660   : > { %v8082_v52 = vpack.c.bf16 %v4200_v49, %v4200_v49  ;;  %v4199_v53 = vadd.f32 %v7706_v43, %v4190_v50  ;;  %v4649_v43 = vrot.slane %v4647_v36, 1  ;;  %v4645_v50 = vor.u32 %v4644_v47, %v4641_v46  ;;  %v9538_v51 = vld [vmem:[%s11686_s3 + $0xa0] sm:$0xff]  }
 0x662   : > { %v4209_v54 = vshrl.u32 %v8082_v52, 16  ;;  %v4212_v55 = vshll.u32 %v8082_v52, 16  ;;  %v4201_v57 = vmax.f32 %v4199_v53, 0.0  ;;  %v4653_v49 = vor.u32 %v4652_v44, %v4649_v43  ;;  %v9539_v53 = vld [vmem:[%s11686_s3 + $0x98] sm:$0xff]  }
 0x664   : > { %v4211_v58 = vrot.slane %v4209_v54, 6  ;;  %v4214_v59 = vrot.slane %v4212_v55, 7  ;;  %v8083_v60 = vpack.c.bf16 %v4201_v57, %v4201_v57  ;;  %v4654_v52 = vsel %vm1488_vm3, %v4645_v50, %v4653_v49  ;;  %v9540_v54 = vld [vmem:[%s11686_s3 + $0x90] sm:$0xff]   ;;  %v9541_v55 = vld [vmem:[%s11686_s3 + $0x88] sm:$0xff]  }
 0x666   : > { %v4215_v61 = vor.u32 %v4214_v59, %v4211_v58  ;;  %v4218_v62 = vshrl.u32 %v8083_v60, 16  ;;  %v4221_v63 = vshll.u32 %v8083_v60, 16  ;;  %v9542_v59 = vld [vmem:[%s11686_s3 + $0x80] sm:$0xff]   ;;  %s11706_s3 = smov %s11705_s2 }
 0x668   : > { %v4231_v4 = vsel %vm10611_vm7, %v4215_v61, %v4230_v3  ;;  %v4220_v56 = vrot.slane %v4218_v62, 6  ;;  %v4223_v7 = vrot.slane %v4221_v63, 7  ;;  %v4216_v8 = vrot.slane %v4215_v61, 4  ;;  %v9544_v63 = vld [vmem:[%s11689_s28 + $0x38] sm:$0xff]   ;;  %v9545_v3 = vld [vmem:[%s11690_s11 + $0x30] sm:$0xff]   ;;  %s11710_s28 = sld [smem:[#allocation62_spill]] }
 0x669   : > { %4232 = vst [vmem:[#allocation3] sm:$0xe] %v4231_v4  ;;  %v9546_v4 = vld [vmem:[%s11690_s11 + $0x78] sm:$0xff]  }
 0x66a   : > { %v4224_v9 = vor.u32 %v4223_v7, %v4220_v56  ;;  %v9547_v56 = vld [vmem:[%s11690_s11 + $0x28] sm:$0xff]   ;;  %v9548_v7 = vld [vmem:[%s11690_s11 + $0x70] sm:$0xff]  }
 0x66c   : > { %v4225_v6 = vsel %vm10629_vm12, %v4216_v8, %v4224_v9  ;;  %v4226_v10 = vrot.slane %v4224_v9, 4  ;;  %v9549_v8 = vld [vmem:[%s11690_s11 + $0x20] sm:$0xff]   ;;  %v9550_v9 = vld [vmem:[%s11690_s11 + $0x68] sm:$0xff]  }
 0x66d   : > { %4233 = vst [vmem:[#allocation3 + $0x4] sm:$0xf] %v4225_v6  ;;  %v9551_v6 = vld [vmem:[%s11690_s11 + $0x18] sm:$0xff]  }
 0x66e   : > { %v4235_v5 = vsel %vm10605_vm6, %v4226_v10, %v4234_v11  ;;  %v9552_v10 = vld [vmem:[%s11690_s11 + $0x60] sm:$0xff]   ;;  %v9553_v11 = vld [vmem:[%s11690_s11 + $0x10] sm:$0xff]   ;;  %s11711_s4 = smov %s11710_s28 }
 0x66f   : > { %4236 = vst [vmem:[#allocation3 + $0x8] sm:$0x3] %v4235_v5  ;;  %v9554_v5 = vld [vmem:[%s11690_s11 + $0x58] sm:$0xff]  }
 0x670   : > { %v4237_v12 = vld [vmem:[#allocation3] sm:$0xe] }
 0x671   : > { %v4485_v57 = vld [vmem:[#allocation3] sm:$0xc] }
 0x674   : > { %v11116_v14 = vld [vmem:[#allocation3 + $0x4] sm:$0xf] }
 0x675   : > { %v7725_v15 = vcombine.low %v4237_v12, %v11116_v14  ;;  %v7760_v58 = vcombine.low %v4485_v57, %v11116_v14  ;;  %v9555_v12 = vld [vmem:[%s11690_s11 + $0x8] sm:$0xff]   ;;  %v9556_v14 = vld [vmem:[%s11690_s11 + $0x50] sm:$0xff]  }
 0x676   : > { %v9527_v13 = vld [vmem:[#allocation3 + $0x8] ss:$0 sps:$4 sm:$0x11]  }
 0x677   : > { %v4392_v16 = vrot.slane %v7725_v15, 1  ;;  %v11119_v17 = vld [vmem:[#allocation3 + $0x8] ss:$0 sps:$4 sm:$0x33]   ;;  %v4393_v18 = vrot.slane %v9527_v13, 1  ;;  %v4283_v20 = vshrl.u32 %v7725_v15, 16 }
 0x678   : > { %v4286_v21 = vshll.u32 %v7725_v15, 16  ;;  %v4291_v22 = vshrl.u32 %v11119_v17, 16  ;;  %v4294_v23 = vshll.u32 %v11119_v17, 16  ;;  %v4506_v60 = vrot.slane %v7760_v58, 2  ;;  %v9557_v15 = vld [vmem:[%s11690_s11] sm:$0xff]   ;;  %v9558_v13 = vld [vmem:[%s11690_s11 + $0x48] sm:$0xff]  }
 0x679   : > { %v4394_v24 = vsel %vm1429_vm8, %v4392_v16, %v4393_v18  ;;  %v4285_v25 = vrot.slane %v4283_v20, 1  ;;  %v4507_v61 = vrot.slane %v11119_v17, 2  ;;  %v9561_v16 = vld [vmem:[%s11690_s11 + $0x40] sm:$0xff]  }
 0x67a   : > { %v4288_v27 = vrot.slane %v4286_v21, 2  ;;  %8789 = vmatmul.mubr.bf16.vlgmr.msra.gmra.mxu1 %v4394_v24  ;;  %v4293_v29 = vrot.slane %v4291_v22, 1  ;;  %v4296_v30 = vrot.slane %v4294_v23, 2 }
 0x67b   : > { %8813 = vmatpush3.bf16.msra.mxu1 %v9528_v19  ;;  %8820 = vmatprep.mubr.msk.bf16.mxu1 %vm10238_vm0, %v10237_v0  ;;  %v4508_v62 = vsel %vm1561_vm10, %v4506_v60, %v4507_v61  ;;  %v4755_v60 = vld [vmem:[#allocation4] sm:$0xe] }
 0x67c   : > { %v4289_v31 = vor.u32 %v4288_v27, %v4285_v25  ;;  %8814 = vmatprep.subr.bf16.mxu1 %v10237_v0  ;;  %v4297_v33 = vor.u32 %v4296_v30, %v4293_v29 }
 0x67e   : > { %v4298_v38 = vsel %vm1488_vm3, %v4289_v31, %v4297_v33  ;;  %v7770_v33 = vld [vmem:[#allocation20] ss:$0 sm:$0xff] }
 0x67f   : > { %8769 = vmatmul.mubr.bf16.vlgmr.msra.gmra.mxu0 %v4298_v38  ;;  %8815 = vmatpush3.bf16.msra.mxu1 %v9531_v32  ;;  %v7769_v32 = vld [vmem:[#allocation18] ss:$0 sm:$0xff] }
 0x680   : > { %8793 = vmatpush3.bf16.msra.mxu0 %v9530_v35  ;;  %8816 = vmatprep.subr.bf16.mxu1 %v10237_v0 }
 0x681   : > { %8794 = vmatprep.subr.bf16.mxu0 %v10237_v0  ;;  %8808 = vmatprep.mubr.msk.bf16.mxu0 %vm10238_vm0, %v10237_v0 }
 0x683   : > { %8817 = vmatpush3.bf16.msra.mxu1 %v9533_v39 }
 0x684   : > { %8795 = vmatpush3.bf16.msra.mxu0 %v9532_v42  ;;  %8818 = vmatprep.subr.bf16.mxu1 %v10237_v0 }
 0x685   : > { %8796 = vmatprep.subr.bf16.mxu0 %v10237_v0 }
 0x687   : > { %8819 = vmatpush3.bf16.msra.mxu1 %v9535_v45 }
 0x688   : > { %8797 = vmatpush3.bf16.msra.mxu0 %v9534_v48  ;;  %8844 = vmatprep.subr.bf16.mxu1 %v10237_v0 }
 0x689   : > { %8798 = vmatprep.subr.bf16.mxu0 %v10237_v0 }
 0x68a   : > { %8821 = vmatmul.mubr.msk.bf16.vlgmr.msra.gmra.mxu1 %vm1926_vm11, %v4654_v52  ;;  %vm11695_vm11 = vmmov %vm11694_vm13 }
 0x68b   : > { %8860 = vmatprep.mubr.msk.bf16.mxu1 %vm10238_vm0, %v10237_v0  ;;  %8845 = vmatpush3.bf16.msra.mxu1 %v9544_v63 }
 0x68c   : > { %8799 = vmatpush3.bf16.msra.mxu0 %v9538_v51  ;;  %8846 = vmatprep.subr.bf16.mxu1 %v10237_v0 }
 0x68d   : > { %8800 = vmatprep.subr.bf16.mxu0 %v10237_v0 }
 0x68f   : > { %8847 = vmatpush3.bf16.msra.mxu1 %v9545_v3 }
 0x690   : > { %8801 = vmatpush3.bf16.msra.mxu0 %v9539_v53  ;;  %8848 = vmatprep.subr.bf16.mxu1 %v10237_v0 }
 0x691   : > { %8802 = vmatprep.subr.bf16.mxu0 %v10237_v0 }
 0x693   : > { %8849 = vmatpush3.bf16.msra.mxu1 %v9547_v56 }
 0x694   : > { %8803 = vmatpush3.bf16.msra.mxu0 %v9540_v54  ;;  %8850 = vmatprep.subr.bf16.mxu1 %v10237_v0 }
 0x695   : > { %8804 = vmatprep.subr.bf16.mxu0 %v10237_v0 }
 0x697   : > { %8851 = vmatpush3.bf16.msra.mxu1 %v9549_v8  ;;  %v4759_v8 = vld [vmem:[#allocation4 + $0x8] sm:$0x3] }
 0x698   : > { %8805 = vmatpush3.bf16.msra.mxu0 %v9541_v55  ;;  %8852 = vmatprep.subr.bf16.mxu1 %v10237_v0 }
 0x699   : > { %8806 = vmatprep.subr.bf16.mxu0 %v10237_v0 }
 0x69b   : > { %8853 = vmatpush3.bf16.msra.mxu1 %v9551_v6  ;;  %v9560_v6 = vld [vmem:[%s11690_s11 + $0xf8] sm:$0xff]  }
 0x69c   : > { %8807 = vmatpush3.bf16.msra.mxu0 %v9542_v59  ;;  %8854 = vmatprep.subr.bf16.mxu1 %v10237_v0 }
 0x69d   : > { %8824 = vmatprep.subr.bf16.mxu0 %v10237_v0 }
 0x69f   : > { %8809 = vmatmul.mubr.bf16.vlgmr.msra.gmra.mxu0 %v4508_v62  ;;  %8855 = vmatpush3.bf16.msra.mxu1 %v9553_v11 }
 0x6a0   : > { %8840 = vmatprep.mubr.msk.bf16.mxu0 %vm10238_vm0, %v10237_v0  ;;  %8825 = vmatpush3.bf16.msra.mxu0 %v9546_v4 }
 0x6a1   : > { %8826 = vmatprep.subr.bf16.mxu0 %v10237_v0  ;;  %8856 = vmatprep.subr.bf16.mxu1 %v10237_v0 }
 0x6a3   : > { %8857 = vmatpush3.bf16.msra.mxu1 %v9555_v12 }
 0x6a4   : > { %8827 = vmatpush3.bf16.msra.mxu0 %v9548_v7  ;;  %8858 = vmatprep.subr.bf16.mxu1 %v10237_v0 }
 0x6a5   : > { %8828 = vmatprep.subr.bf16.mxu0 %v10237_v0 }
 0x6a7   : > { %8859 = vmatpush3.bf16.msra.mxu1 %v9557_v15 }
 0x6a8   : > { %8829 = vmatpush3.bf16.msra.mxu0 %v9550_v9  ;;  %8884 = vmatprep.subr.bf16.mxu1 %v10237_v0 }
 0x6a9   : > { %8830 = vmatprep.subr.bf16.mxu0 %v10237_v0 }
 0x6ac   : > { %8831 = vmatpush3.bf16.msra.mxu0 %v9552_v10 }
 0x6ad   : > { %8832 = vmatprep.subr.bf16.mxu0 %v10237_v0 }
 0x6b0   : > { %8833 = vmatpush3.bf16.msra.mxu0 %v9554_v5 }
 0x6b1   : > { %8834 = vmatprep.subr.bf16.mxu0 %v10237_v0 }
 0x6b4   : > { %8835 = vmatpush3.bf16.msra.mxu0 %v9556_v14  ;;  %v9562_v14 = vld [vmem:[%s11690_s11 + $0xf0] sm:$0xff]  }
 0x6b5   : > { %8836 = vmatprep.subr.bf16.mxu0 %v10237_v0 }
 0x6b8   : > { %8837 = vmatpush3.bf16.msra.mxu0 %v9558_v13 }
 0x6b9   : > { %8838 = vmatprep.subr.bf16.mxu0 %v10237_v0 }
 0x6bc   : > { %8839 = vmatpush3.bf16.msra.mxu0 %v9561_v16 }
 0x6bd   : > { %8864 = vmatprep.subr.bf16.mxu0 %v10237_v0 }
 0x73a   : > { %v4478_v17 = vpop.f32.mrf.mxu1 }
 0x73c   : > { %v8790_v18 = vpop.f32.mrf.mxu1 }
 0x73d   : > { %v9564_v18 = vld [vmem:[%s11690_s11 + $0xb8] sm:$0xff]  }
 0x73e   : > { %v4481_v19 = vpop.f32.mrf.mxu1 }
 0x73f   : > { %v4382_v20 = vpop.f32.mrf.mxu0 }
 0x740   : > { %v8791_v21 = vpop.f32.mrf.mxu1  ;;  %v4479_v30 = vadd.f32 %v4478_v17, %v4382_v20 }
 0x741   : > { %v8770_v22 = vpop.f32.mrf.mxu0  ;;  %v9566_v21 = vld [vmem:[%s11690_s11 + $0xb0] sm:$0xff]  }
 0x742   : > { %v9567_v22 = vld [vmem:[%s11690_s11 + $0xe0] sm:$0xff]  }
 0x743   : > { %v4385_v23 = vpop.f32.mrf.mxu0 }
 0x744   : > { %v4482_v36 = vadd.f32 %v4481_v19, %v4385_v23  ;;  %v9565_v19 = vld [vmem:[%s11690_s11 + $0xe8] sm:$0xff]  }
 0x745   : > { %v8771_v24 = vpop.f32.mrf.mxu0  ;;  %v9568_v23 = vld [vmem:[%s11690_s11 + $0xa8] sm:$0xff]  }
 0x746   : > { %v9569_v24 = vld [vmem:[%s11690_s11 + $0xd8] sm:$0xff]  }
 0x74a   : > { %v4716_v25 = vpop.f32.mrf.mxu1 }
 0x74b   : > { %v4717_v39 = vadd.f32 %v7770_v33, %v4716_v25 }
 0x74c   : > { %v8822_v27 = vpop.f32.mrf.mxu1 }
 0x74e   : > { %v4719_v28 = vpop.f32.mrf.mxu1 }
 0x74f   : > { %v4720_v45 = vadd.f32 %v7770_v33, %v4719_v28 }
 0x750   : > { %v8823_v29 = vpop.f32.mrf.mxu1 }
 0x751   : > { %v9570_v29 = vld [vmem:[%s11690_s11 + $0xa0] sm:$0xff]  }
 0x75f   : > { %v4592_v31 = vpop.f32.mrf.mxu0 }
 0x760   : > { %v4599_v34 = vadd.f32 %v4592_v31, %v4479_v30  ;;  %v9571_v30 = vld [vmem:[%s11690_s11 + $0xd0] sm:$0xff]  }
 0x761   : > { %v8810_v35 = vpop.f32.mrf.mxu0 }
 0x762   : > { %v4608_v37 = vadd.f32 %v7769_v32, %v4599_v34  ;;  %v9572_v35 = vld [vmem:[%s11690_s11 + $0x98] sm:$0xff]  }
 0x763   : > { %v4595_v38 = vpop.f32.mrf.mxu0 }
 0x764   : > { %v4610_v40 = vmax.f32 %v4608_v37, 0.0  ;;  %v4600_v41 = vadd.f32 %v4595_v38, %v4482_v36  ;;  %v9573_v36 = vld [vmem:[%s11690_s11 + $0xc8] sm:$0xff]  }
 0x765   : > { %v8811_v42 = vpop.f32.mrf.mxu0 }
 0x766   : > { %v4723_v43 = vadd.f32 %v4717_v39, %v4610_v40  ;;  %v4609_v44 = vadd.f32 %v7769_v32, %v4600_v41  ;;  %v9574_v41 = vld [vmem:[%s11690_s11 + $0x90] sm:$0xff]   ;;  %v9575_v42 = vld [vmem:[%s11690_s11 + $0xc0] sm:$0xff]  }
 0x768   : > { %v4725_v46 = vmax.f32 %v4723_v43, 0.0  ;;  %v4611_v47 = vmax.f32 %v4609_v44, 0.0 }
 0x76a   : > { %v8084_v48 = vpack.c.bf16 %v4725_v46, %v4725_v46  ;;  %v4724_v49 = vadd.f32 %v4720_v45, %v4611_v47  ;;  %v9576_v45 = vld [vmem:[%s11690_s11 + $0x88] sm:$0xff]   ;;  %v9579_v46 = vld [vmem:[%s11690_s11 + $0x178] sm:$0xff]  }
 0x76c   : > { %v4734_v50 = vshrl.u32 %v8084_v48, 16  ;;  %v4737_v51 = vshll.u32 %v8084_v48, 16  ;;  %v4726_v52 = vmax.f32 %v4724_v49, 0.0  ;;  %v9580_v48 = vld [vmem:[%s11690_s11 + $0x80] sm:$0xff]   ;;  %v9581_v49 = vld [vmem:[%s11690_s11 + $0x170] sm:$0xff]  }
 0x76e   : > { %v4736_v53 = vrot.slane %v4734_v50, 6  ;;  %v4739_v54 = vrot.slane %v4737_v51, 7  ;;  %v8085_v55 = vpack.c.bf16 %v4726_v52, %v4726_v52  ;;  %v9582_v52 = vld [vmem:[%s11690_s11 + $0x138] sm:$0xff]  }
 0x770   : > { %v4740_v57 = vor.u32 %v4739_v54, %v4736_v53  ;;  %v4743_v58 = vshrl.u32 %v8085_v55, 16  ;;  %v4746_v59 = vshll.u32 %v8085_v55, 16  ;;  %v9583_v53 = vld [vmem:[%s11690_s11 + $0x168] sm:$0xff]   ;;  %v9584_v55 = vld [vmem:[%s11690_s11 + $0x130] sm:$0xff]  }
 0x772   : > { %v4756_v61 = vsel %vm10611_vm7, %v4740_v57, %v4755_v60  ;;  %v4745_v62 = vrot.slane %v4743_v58, 6  ;;  %v4748_v63 = vrot.slane %v4746_v59, 7  ;;  %v4741_v3 = vrot.slane %v4740_v57, 4  ;;  %v9585_v57 = vld [vmem:[%s11690_s11 + $0x160] sm:$0xff]   ;;  %v9586_v58 = vld [vmem:[%s11690_s11 + $0x128] sm:$0xff]   ;;  %v9587_v59 = vld [vmem:[%s11690_s11 + $0x158] sm:$0xff]  }
 0x773   : > { %4757 = vst [vmem:[#allocation4] sm:$0xe] %v4756_v61  ;;  %vm11693_vm7 = vmmov %vm11685_vm15  ;;  %vm5782_vm15 = vcmask 451584  }
 0x774   : > { %v4749_v4 = vor.u32 %v4748_v63, %v4745_v62  ;;  %v9588_v63 = vld [vmem:[%s11690_s11 + $0x120] sm:$0xff]  }
 0x776   : > { %v4750_v56 = vsel %vm10629_vm12, %v4741_v3, %v4749_v4  ;;  %v4751_v7 = vrot.slane %v4749_v4, 4  ;;  %v9589_v3 = vld [vmem:[%s11690_s11 + $0x150] sm:$0xff]  }
 0x777   : > { %4758 = vst [vmem:[#allocation4 + $0x4] sm:$0xf] %v4750_v56 }
 0x778   : > { %v4760_v9 = vsel %vm10605_vm6, %v4751_v7, %v4759_v8  ;;  %vm11692_vm6 = vmmov %vm11684_vm5 }
 0x779   : > { %4761 = vst [vmem:[#allocation4 + $0x8] sm:$0x3] %v4760_v9  ;;  %v9590_v9 = vld [vmem:[%s11690_s11 + $0x118] sm:$0xff]   ;;  %vm11358_vm5 = vmand %vm5775_vm14, %vm1230_vm4 }
 0x77a   : > { %v4762_v2 = vld [vmem:[#allocation4] sm:$0xf]  ;;  %vm11365_vm4 = vmand %vm5782_vm15, %vm1224_vm2  ;;  %vm5838_vm2 = vcmask 457728  }
 0x77b   : > { %v4998_v25 = vld [vmem:[#allocation4] sm:$0xe] }
 0x77c   : > { %v5244_v60 = vld [vmem:[#allocation4] sm:$0xc] }
 0x77e   : > { %v11201_v10 = vld [vmem:[#allocation4 + $0x4] sm:$0xf] }
 0x77f   : > { %v7796_v11 = vcombine.low %v4762_v2, %v11201_v10  ;;  %v7830_v27 = vcombine.low %v4998_v25, %v11201_v10  ;;  %v7880_v61 = vcombine.low %v5244_v60, %v11201_v10 }
 0x780   : > { %v11204_v5 = vld [vmem:[#allocation4 + $0x8] ss:$0 sps:$4 sm:$0x11]  }
 0x781   : > { %8861 = vmatmul.mubr.bf16.vlgmr.msra.gmra.mxu1 %v7796_v11  ;;  %v4809_v12 = vshll.u32 %v7796_v11, 16  ;;  %v4814_v15 = vshll.u32 %v11204_v5, 16  ;;  %v4807_v1 = vshrl.u32 %v7796_v11, 16  ;;  %v11226_v28 = vld [vmem:[#allocation4 + $0x8] ss:$0 sps:$4 sm:$0x33]  }
 0x782   : > { %8885 = vmatpush3.bf16.msra.mxu1 %v9560_v6  ;;  %8900 = vmatprep.mubr.msk.bf16.mxu1 %vm10238_vm0, %v10237_v0  ;;  %v5136_v31 = vshrl.u32 %v7830_v27, 16  ;;  %v5139_v32 = vshll.u32 %v7830_v27, 16  ;;  %v5144_v34 = vshrl.u32 %v11226_v28, 16  ;;  %v5147_v33 = vshll.u32 %v11226_v28, 16  ;;  %v9591_v6 = vld [vmem:[%s11690_s11 + $0x148] sm:$0xff]  }
 0x783   : > { %8886 = vmatprep.subr.bf16.mxu1 %v10237_v0  ;;  %v4811_v13 = vrot.slane %v4809_v12, 1  ;;  %v4816_v16 = vrot.slane %v4814_v15, 1  ;;  %v5019_v50 = vrot.slane %v7830_v27, 1  ;;  %v5020_v51 = vrot.slane %v11204_v5, 1  ;;  %v9593_v15 = vld [vmem:[%s11690_s11 + $0x140] sm:$0xff]   ;;  %v9602_v27 = vld [vmem:[%s11690_s11 + $0x1b0] sm:$0xff]  }
 0x784   : > { %v5138_v37 = vrot.slane %v5136_v31, 1  ;;  %v5141_v38 = vrot.slane %v5139_v32, 2  ;;  %v5146_v39 = vrot.slane %v5144_v34, 1  ;;  %v5149_v40 = vrot.slane %v5147_v33, 2  ;;  %v5490_v31 = vld [vmem:[#allocation4] sm:$0x8] }
 0x785   : > { %v4812_v17 = vor.u32 %v4811_v13, %v4807_v1  ;;  %v5021_v54 = vsel %vm1429_vm8, %v5019_v50, %v5020_v51  ;;  %v11270_v62 = vld [vmem:[#allocation4 + $0x8] ss:$0 sps:$4 sm:$0x77]   ;;  %v5382_v4 = vshrl.u32 %v7880_v61, 16  ;;  %v5385_v56 = vshll.u32 %v7880_v61, 16  ;;  %v9606_v33 = vld [vmem:[%s11690_s11 + $0x1a0] sm:$0xff]  }
 0x786   : > { %8887 = vmatpush3.bf16.msra.mxu1 %v9562_v14  ;;  %v5142_v43 = vor.u32 %v5141_v38, %v5138_v37  ;;  %v5150_v44 = vor.u32 %v5149_v40, %v5146_v39  ;;  %v5390_v7 = vshrl.u32 %v11270_v62, 16  ;;  %v5393_v8 = vshll.u32 %v11270_v62, 16  ;;  %v9592_v14 = vld [vmem:[%s11690_s11 + $0x110] sm:$0xff]   ;;  %v9614_v34 = vld [vmem:[#allocation4 + $0x8] ss:$0 sps:$4 sm:$0xff]   ;;  %v9608_v40 = vld [vmem:[%s11690_s11 + $0x198] sm:$0xff]  }
 0x787   : > { %v4817_v20 = vsel %vm1315_vm1, %v4812_v17, %v4816_v16  ;;  %8888 = vmatprep.subr.bf16.mxu1 %v10237_v0  ;;  %v5384_v2 = vrot.slane %v5382_v4, 2  ;;  %v5387_v11 = vrot.slane %v5385_v56, 3  ;;  %v9594_v16 = vld [vmem:[%s11690_s11 + $0x108] sm:$0xff]   ;;  %v9597_v17 = vld [vmem:[%s11690_s11 + $0x1f8] sm:$0xff]   ;;  %v7930_v32 = vcombine.low %v5490_v31, %v11201_v10  ;;  %v9615_v51 = vld [vmem:[%s11690_s11 + $0x180] sm:$0xff]  }
 0x788   : > { %8841 = vmatmul.mubr.bf16.vlgmr.msra.gmra.mxu0 %v4817_v20  ;;  %v5151_v47 = vsel %vm1488_vm3, %v5142_v43, %v5150_v44  ;;  %v5392_v5 = vrot.slane %v5390_v7, 2  ;;  %v5395_v12 = vrot.slane %v5393_v8, 3  ;;  %v9599_v20 = vld [vmem:[%s11690_s11 + $0x1f0] sm:$0xff]   ;;  %v5636_v38 = vshrl.u32 %v9614_v34, 16  ;;  %v9609_v10 = vld [vmem:[%s11690_s11 + $0x1c8] sm:$0xff]  }
 0x789   : > { %8865 = vmatpush3.bf16.msra.mxu0 %v9564_v18  ;;  %8880 = vmatprep.mubr.msk.bf16.mxu0 %vm10238_vm0, %v10237_v0  ;;  %v5388_v1 = vor.u32 %v5387_v11, %v5384_v2  ;;  %v5631_v37 = vshll.u32 %v7930_v32, 16  ;;  %v5639_v39 = vshll.u32 %v9614_v34, 16  ;;  %v9620_v56 = vld [vmem:[%s11691_s25 + $0x24] sm:$0xff]   ;;  %v9622_v2 = vld [vmem:[%s11691_s25 + $0x1c] sm:$0xff]  }
 0x78a   : > { %8889 = vmatpush3.bf16.msra.mxu1 %v9565_v19  ;;  %8866 = vmatprep.subr.bf16.mxu0 %v10237_v0  ;;  %v5396_v13 = vor.u32 %v5395_v12, %v5392_v5  ;;  %v9598_v19 = vld [vmem:[%s11690_s11 + $0x100] sm:$0xff]   ;;  %v5638_v43 = vrot.slane %v5636_v38, 3  ;;  %v9621_v7 = vld [vmem:[%s11691_s25 + $0x8] sm:$0xff]  }
 0x78b   : > { %8890 = vmatprep.subr.bf16.mxu1 %v10237_v0  ;;  %v5641_v44 = vrot.slane %v5639_v39, 4  ;;  %v9623_v11 = vld [vmem:[%s11691_s25] sm:$0xff]  }
 0x78c   : > { %v5397_v18 = vsel %vm1620_vm9, %v5388_v1, %v5396_v13 }
 0x78d   : > { %8867 = vmatpush3.bf16.msra.mxu0 %v9566_v21  ;;  %v5265_v21 = vrot.slane %v7880_v61, 2 }
 0x78e   : > { %8891 = vmatpush3.bf16.msra.mxu1 %v9567_v22  ;;  %8868 = vmatprep.subr.bf16.mxu0 %v10237_v0  ;;  %v5266_v22 = vrot.slane %v11226_v28, 2  ;;  %v9603_v28 = vld [vmem:[%s11690_s11 + $0x1e0] sm:$0xff]  }
 0x78f   : > { %8892 = vmatprep.subr.bf16.mxu1 %v10237_v0 }
 0x790   : > { %v5267_v25 = vsel %vm1561_vm10, %v5265_v21, %v5266_v22 }
 0x791   : > { %8869 = vmatpush3.bf16.msra.mxu0 %v9568_v23  ;;  %v9600_v23 = vld [vmem:[%s11690_s11 + $0x1b8] sm:$0xff]  }
 0x792   : > { %8893 = vmatpush3.bf16.msra.mxu1 %v9569_v24  ;;  %8870 = vmatprep.subr.bf16.mxu0 %v10237_v0  ;;  %v9601_v24 = vld [vmem:[%s11690_s11 + $0x1e8] sm:$0xff]  }
 0x793   : > { %8894 = vmatprep.subr.bf16.mxu1 %v10237_v0 }
 0x795   : > { %8871 = vmatpush3.bf16.msra.mxu0 %v9570_v29  ;;  %v9604_v29 = vld [vmem:[%s11690_s11 + $0x1a8] sm:$0xff]  }
 0x796   : > { %8895 = vmatpush3.bf16.msra.mxu1 %v9571_v30  ;;  %8872 = vmatprep.subr.bf16.mxu0 %v10237_v0  ;;  %v9605_v30 = vld [vmem:[%s11690_s11 + $0x1d8] sm:$0xff]  }
 0x797   : > { %8896 = vmatprep.subr.bf16.mxu1 %v10237_v0 }
 0x799   : > { %8873 = vmatpush3.bf16.msra.mxu0 %v9572_v35  ;;  %v9607_v35 = vld [vmem:[%s11690_s11 + $0x1d0] sm:$0xff]  }
 0x79a   : > { %8897 = vmatpush3.bf16.msra.mxu1 %v9573_v36  ;;  %8874 = vmatprep.subr.bf16.mxu0 %v10237_v0  ;;  %v5628_v36 = vshrl.u32 %v7930_v32, 16 }
 0x79b   : > { %8898 = vmatprep.subr.bf16.mxu1 %v10237_v0 }
 0x79d   : > { %8875 = vmatpush3.bf16.msra.mxu0 %v9574_v41  ;;  %v5630_v41 = vrot.slane %v5628_v36, 3 }
 0x79e   : > { %8899 = vmatpush3.bf16.msra.mxu1 %v9575_v42  ;;  %8876 = vmatprep.subr.bf16.mxu0 %v10237_v0  ;;  %v5633_v42 = vrot.slane %v5631_v37, 4 }
 0x79f   : > { %8924 = vmatprep.subr.bf16.mxu1 %v10237_v0 }
 0x7a1   : > { %8877 = vmatpush3.bf16.msra.mxu0 %v9576_v45  ;;  %8901 = vmatmul.mubr.bf16.vlgmr.msra.gmra.mxu1 %v5151_v47  ;;  %v9610_v45 = vld [vmem:[%s11690_s11 + $0x190] sm:$0xff]   ;;  %v5634_v47 = vor.u32 %v5633_v42, %v5630_v41 }
 0x7a2   : > { %8925 = vmatpush3.bf16.msra.mxu1 %v9579_v46  ;;  %8878 = vmatprep.subr.bf16.mxu0 %v10237_v0  ;;  %v9611_v46 = vld [vmem:[%s11690_s11 + $0x1c0] sm:$0xff]   ;;  %v7964_v42 = vld [vmem:[#allocation21] ss:$0 sm:$0xff] }
 0x7a3   : > { %8926 = vmatprep.subr.bf16.mxu1 %v10237_v0  ;;  %8940 = vmatprep.mubr.msk.bf16.mxu1 %vm10238_vm0, %v10237_v0 }
 0x7a5   : > { %8879 = vmatpush3.bf16.msra.mxu0 %v9580_v48  ;;  %v5642_v48 = vor.u32 %v5641_v44, %v5638_v43 }
 0x7a6   : > { %8927 = vmatpush3.bf16.msra.mxu1 %v9581_v49  ;;  %8904 = vmatprep.subr.bf16.mxu0 %v10237_v0  ;;  %v9612_v49 = vld [vmem:[%s11690_s11 + $0x188] sm:$0xff]   ;;  %s10070_s11 = scalar_lea.vmem %s10069_s10, 32 }
 0x7a7   : > { %8928 = vmatprep.subr.bf16.mxu1 %v10237_v0  ;;  %v5643_v50 = vsel %vm11692_vm6, %v5634_v47, %v5642_v48  ;;  %vm5780_vm6 = vcmask 453632  }
 0x7a8   : > { %8881 = vmatmul.mubr.bf16.vlgmr.msra.gmra.mxu0 %v5021_v54 }
 0x7a9   : > { %8905 = vmatpush3.bf16.msra.mxu0 %v9582_v52  ;;  %8920 = vmatprep.mubr.msk.bf16.mxu0 %vm10238_vm0, %v10237_v0  ;;  %v5511_v52 = vrot.slane %v7930_v32, 3 }
 0x7aa   : > { %8929 = vmatpush3.bf16.msra.mxu1 %v9583_v53  ;;  %8906 = vmatprep.subr.bf16.mxu0 %v10237_v0  ;;  %v5512_v53 = vrot.slane %v11270_v62, 3  ;;  %v9618_v62 = vld [vmem:[%s11691_s25 + $0x2c] sm:$0xff]  }
 0x7ab   : > { %8930 = vmatprep.subr.bf16.mxu1 %v10237_v0 }
 0x7ac   : > { %v5513_v54 = vsel %vm11693_vm7, %v5511_v52, %v5512_v53  ;;  %vm11700_vm7 = vmmov %vm11695_vm11 }
 0x7ad   : > { %8907 = vmatpush3.bf16.msra.mxu0 %v9584_v55  ;;  %v9616_v55 = vld [vmem:[%s11691_s25 + $0x34] ss:$0 sps:$4 sm:$0xff]  }
 0x7ae   : > { %8931 = vmatpush3.bf16.msra.mxu1 %v9585_v57  ;;  %8908 = vmatprep.subr.bf16.mxu0 %v10237_v0  ;;  %v9617_v57 = vld [vmem:[%s11691_s25 + $0x18] ss:$0 sps:$4 sm:$0xff]  }
 0x7af   : > { %8932 = vmatprep.subr.bf16.mxu1 %v10237_v0  ;;  %v5926_v60 = vsel %vm11695_vm11, %v9617_v57, 0 }
 0x7b1   : > { %8909 = vmatpush3.bf16.msra.mxu0 %v9586_v58 }
 0x7b2   : > { %8933 = vmatpush3.bf16.msra.mxu1 %v9587_v59  ;;  %8910 = vmatprep.subr.bf16.mxu0 %v10237_v0  ;;  %v5843_v59 = vsel %vm11694_vm13, %v9616_v55, 0  ;;  %vm11701_vm13 = vmmov %vm11700_vm7 }
 0x7b3   : > { %8934 = vmatprep.subr.bf16.mxu1 %v10237_v0 }
 0x7b5   : > { %8911 = vmatpush3.bf16.msra.mxu0 %v9588_v63  ;;  %v9619_v63 = vld [vmem:[%s11691_s25 + $0x10] sm:$0xff]  }
 0x7b6   : > { %8935 = vmatpush3.bf16.msra.mxu1 %v9589_v3  ;;  %8912 = vmatprep.subr.bf16.mxu0 %v10237_v0 }
 0x7b7   : > { %8936 = vmatprep.subr.bf16.mxu1 %v10237_v0 }
 0x7b9   : > { %8913 = vmatpush3.bf16.msra.mxu0 %v9590_v9 }
 0x7ba   : > { %8937 = vmatpush3.bf16.msra.mxu1 %v9591_v6  ;;  %8914 = vmatprep.subr.bf16.mxu0 %v10237_v0 }
 0x7bb   : > { %8938 = vmatprep.subr.bf16.mxu1 %v10237_v0 }
 0x7bd   : > { %8915 = vmatpush3.bf16.msra.mxu0 %v9592_v14 }
 0x7be   : > { %8939 = vmatpush3.bf16.msra.mxu1 %v9593_v15  ;;  %8916 = vmatprep.subr.bf16.mxu0 %v10237_v0 }
 0x7bf   : > { %8964 = vmatprep.subr.bf16.mxu1 %v10237_v0 }
 0x7c1   : > { %8917 = vmatpush3.bf16.msra.mxu0 %v9594_v16  ;;  %8941 = vmatmul.mubr.bf16.vlgmr.msra.gmra.mxu1 %v5397_v18 }
 0x7c2   : > { %8965 = vmatpush3.bf16.msra.mxu1 %v9597_v17  ;;  %8918 = vmatprep.subr.bf16.mxu0 %v10237_v0 }
 0x7c3   : > { %8966 = vmatprep.subr.bf16.mxu1 %v10237_v0  ;;  %8980 = vmatprep.mubr.msk.bf16.mxu1 %vm10238_vm0, %v10237_v0 }
 0x7c5   : > { %8919 = vmatpush3.bf16.msra.mxu0 %v9598_v19 }
 0x7c6   : > { %8967 = vmatpush3.bf16.msra.mxu1 %v9599_v20  ;;  %8944 = vmatprep.subr.bf16.mxu0 %v10237_v0 }
 0x7c7   : > { %8968 = vmatprep.subr.bf16.mxu1 %v10237_v0 }
 0x7c8   : > { %8921 = vmatmul.mubr.bf16.vlgmr.msra.gmra.mxu0 %v5267_v25 }
 0x7c9   : > { %8945 = vmatpush3.bf16.msra.mxu0 %v9600_v23  ;;  %8960 = vmatprep.mubr.msk.bf16.mxu0 %vm10238_vm0, %v10237_v0 }
 0x7ca   : > { %8969 = vmatpush3.bf16.msra.mxu1 %v9601_v24  ;;  %8946 = vmatprep.subr.bf16.mxu0 %v10237_v0 }
 0x7cb   : > { %8970 = vmatprep.subr.bf16.mxu1 %v10237_v0 }
 0x7cd   : > { %8947 = vmatpush3.bf16.msra.mxu0 %v9602_v27 }
 0x7ce   : > { %8971 = vmatpush3.bf16.msra.mxu1 %v9603_v28  ;;  %8948 = vmatprep.subr.bf16.mxu0 %v10237_v0 }
 0x7cf   : > { %8972 = vmatprep.subr.bf16.mxu1 %v10237_v0 }
 0x7d1   : > { %8949 = vmatpush3.bf16.msra.mxu0 %v9604_v29 }
 0x7d2   : > { %8973 = vmatpush3.bf16.msra.mxu1 %v9605_v30  ;;  %8950 = vmatprep.subr.bf16.mxu0 %v10237_v0 }
 0x7d3   : > { %8974 = vmatprep.subr.bf16.mxu1 %v10237_v0 }
 0x7d5   : > { %8951 = vmatpush3.bf16.msra.mxu0 %v9606_v33 }
 0x7d6   : > { %8975 = vmatpush3.bf16.msra.mxu1 %v9607_v35  ;;  %8952 = vmatprep.subr.bf16.mxu0 %v10237_v0 }
 0x7d7   : > { %8976 = vmatprep.subr.bf16.mxu1 %v10237_v0 }
 0x7d9   : > { %8953 = vmatpush3.bf16.msra.mxu0 %v9608_v40 }
 0x7da   : > { %8977 = vmatpush3.bf16.msra.mxu1 %v9609_v10  ;;  %8954 = vmatprep.subr.bf16.mxu0 %v10237_v0 }
 0x7db   : > { %8978 = vmatprep.subr.bf16.mxu1 %v10237_v0 }
 0x7dd   : > { %8955 = vmatpush3.bf16.msra.mxu0 %v9610_v45 }
 0x7de   : > { %8979 = vmatpush3.bf16.msra.mxu1 %v9611_v46  ;;  %8956 = vmatprep.subr.bf16.mxu0 %v10237_v0 }
 0x7df   : > { %8996 = vmatprep.subr.bf16.mxu1 %v10237_v0 }
 0x7e1   : > { %8957 = vmatpush3.bf16.msra.mxu0 %v9612_v49  ;;  %8981 = vmatmul.mubr.bf16.vlgmr.msra.gmra.mxu1 %v5643_v50 }
 0x7e2   : > { %8958 = vmatprep.subr.bf16.mxu0 %v10237_v0  ;;  %9004 = vmatprep.mubr.msk.bf16.mxu1 %vm10238_vm0, %v10237_v0 }
 0x7e3   : > { %8997 = vmatpush3.bf16.msra.mxu1 %v5926_v60 }
 0x7e4   : > { %8998 = vmatprep.subr.bf16.mxu1 %v10237_v0 }
 0x7e5   : > { %8959 = vmatpush3.bf16.msra.mxu0 %v9615_v51 }
 0x7e6   : > { %8984 = vmatprep.subr.bf16.mxu0 %v10237_v0 }
 0x7e7   : > { %8999 = vmatpush3.bf16.msra.mxu1 %v9619_v63 }
 0x7e8   : > { %8961 = vmatmul.mubr.bf16.vlgmr.msra.gmra.mxu0 %v5513_v54  ;;  %9000 = vmatprep.subr.bf16.mxu1 %v10237_v0 }
 0x7e9   : > { %8992 = vmatprep.mubr.msk.bf16.mxu0 %vm10238_vm0, %v10237_v0  ;;  %8985 = vmatpush3.bf16.msra.mxu0 %v5843_v59 }
 0x7ea   : > { %8986 = vmatprep.subr.bf16.mxu0 %v10237_v0 }
 0x7eb   : > { %9001 = vmatpush3.bf16.msra.mxu1 %v9621_v7 }
 0x7ec   : > { %9002 = vmatprep.subr.bf16.mxu1 %v10237_v0 }
 0x7ed   : > { %8987 = vmatpush3.bf16.msra.mxu0 %v9618_v62 }
 0x7ee   : > { %8988 = vmatprep.subr.bf16.mxu0 %v10237_v0 }
 0x7ef   : > { %9003 = vmatpush3.bf16.msra.mxu1 %v9623_v11 }
 0x7f0   : > { %9020 = vmatprep.subr.bf16.mxu1 %v10237_v0 }
 0x7f1   : > { %8989 = vmatpush3.bf16.msra.mxu0 %v9620_v56 }
 0x7f2   : > { %8990 = vmatprep.subr.bf16.mxu0 %v10237_v0 }
 0x7f5   : > { %8991 = vmatpush3.bf16.msra.mxu0 %v9622_v2 }
 0x7f6   : > { %9008 = vmatprep.subr.bf16.mxu0 %v10237_v0 }
 0x841   : > { %v4991_v58 = vpop.f32.mrf.mxu1 }
 0x843   : > { %v8862_v61 = vpop.f32.mrf.mxu1 }
 0x845   : > { %v4994_v3 = vpop.f32.mrf.mxu1 }
 0x847   : > { %v8863_v4 = vpop.f32.mrf.mxu1 }
 0x848   : > { %v4901_v8 = vpop.f32.mrf.mxu0  ;;  %v5777_v4 = vld [vmem:[#allocation5] sm:$0xe] }
 0x849   : > { %v4992_v9 = vadd.f32 %v4991_v58, %v4901_v8 }
 0x84a   : > { %v8842_v6 = vpop.f32.mrf.mxu0 }
 0x84c   : > { %v4904_v5 = vpop.f32.mrf.mxu0 }
 0x84d   : > { %v4995_v12 = vadd.f32 %v4994_v3, %v4904_v5 }
 0x84e   : > { %v8843_v14 = vpop.f32.mrf.mxu0 }
 0x861   : > { %v5235_v15 = vpop.f32.mrf.mxu1 }
 0x863   : > { %v8902_v1 = vpop.f32.mrf.mxu1 }
 0x865   : > { %v5238_v13 = vpop.f32.mrf.mxu1 }
 0x867   : > { %v8903_v16 = vpop.f32.mrf.mxu1 }
 0x868   : > { %v5105_v17 = vpop.f32.mrf.mxu0 }
 0x869   : > { %v5112_v18 = vadd.f32 %v5105_v17, %v4992_v9  ;;  %v9626_v17 = vld [vmem:[%s11691_s25 + $0x50] ss:$0 sps:$4 sm:$0xff]  }
 0x86a   : > { %v8882_v19 = vpop.f32.mrf.mxu0 }
 0x86b   : > { %v5242_v20 = vadd.f32 %v5235_v15, %v5112_v18 }
 0x86c   : > { %v5108_v21 = vpop.f32.mrf.mxu0 }
 0x86d   : > { %v5113_v22 = vadd.f32 %v5108_v21, %v4995_v12  ;;  %v5784_v12 = vld [vmem:[#allocation5 + $0x8] sm:$0x3] }
 0x86e   : > { %v8883_v23 = vpop.f32.mrf.mxu0 }
 0x86f   : > { %v5243_v24 = vadd.f32 %v5238_v13, %v5113_v22 }
 0x881   : > { %v5481_v25 = vpop.f32.mrf.mxu1 }
 0x883   : > { %v8942_v27 = vpop.f32.mrf.mxu1 }
 0x885   : > { %v5484_v28 = vpop.f32.mrf.mxu1 }
 0x887   : > { %v8943_v29 = vpop.f32.mrf.mxu1 }
 0x888   : > { %v5351_v30 = vpop.f32.mrf.mxu0 }
 0x889   : > { %v5358_v35 = vadd.f32 %v5351_v30, %v5242_v20 }
 0x88a   : > { %v8922_v31 = vpop.f32.mrf.mxu0 }
 0x88b   : > { %v5488_v40 = vadd.f32 %v5481_v25, %v5358_v35  ;;  %v6023_v25 = vsel %vm11700_vm7, %v9626_v17, 0  ;;  %v9644_v17 = vld [vmem:[#allocation24 + $0x10] sm:$0xff]  }
 0x88c   : > { %v5354_v32 = vpop.f32.mrf.mxu0 }
 0x88d   : > { %v5359_v38 = vadd.f32 %v5354_v32, %v5243_v24  ;;  %v9628_v24 = vld [vmem:[%s11691_s25 + $0x6c] ss:$0 sps:$4 sm:$0xff]  }
 0x88e   : > { %v8923_v34 = vpop.f32.mrf.mxu0 }
 0x88f   : > { %v5489_v45 = vadd.f32 %v5484_v28, %v5359_v38  ;;  %v6108_v34 = vsel %vm11701_vm13, %v9628_v24, 0 }
 0x8a1   : > { %v5727_v33 = vpop.f32.mrf.mxu1 }
 0x8a3   : > { %v8982_v36 = vpop.f32.mrf.mxu1 }
 0x8a5   : > { %v5730_v37 = vpop.f32.mrf.mxu1 }
 0x8a7   : > { %v8983_v39 = vpop.f32.mrf.mxu1 }
 0x8a8   : > { %v5597_v10 = vpop.f32.mrf.mxu0 }
 0x8a9   : > { %v5604_v41 = vadd.f32 %v5597_v10, %v5488_v40  ;;  %v9630_v40 = vld [vmem:[%s11691_s25 + $0x64] sm:$0xff]  }
 0x8aa   : > { %v8962_v43 = vpop.f32.mrf.mxu0  ;;  %v9631_v10 = vld [vmem:[%s11691_s25 + $0x40] sm:$0xff]  }
 0x8ab   : > { %v5734_v44 = vadd.f32 %v5727_v33, %v5604_v41  ;;  %v9629_v33 = vld [vmem:[%s11691_s25 + $0x48] sm:$0xff]  }
 0x8ac   : > { %v5600_v46 = vpop.f32.mrf.mxu0 }
 0x8ad   : > { %v5743_v47 = vadd.f32 %v7964_v42, %v5734_v44  ;;  %v5605_v48 = vadd.f32 %v5600_v46, %v5489_v45  ;;  %v9632_v45 = vld [vmem:[%s11691_s25 + $0x5c] sm:$0xff]  }
 0x8ae   : > { %v8963_v49 = vpop.f32.mrf.mxu0  ;;  %v9633_v46 = vld [vmem:[%s11691_s25 + $0x38] sm:$0xff]  }
 0x8af   : > { %v5745_v50 = vmax.f32 %v5743_v47, 0.0  ;;  %v5735_v51 = vadd.f32 %v5730_v37, %v5605_v48  ;;  %v9636_v48 = vld [vmem:[%s11691_s25 + $0x88] ss:$0 sps:$4 sm:$0xff]  }
 0x8b1   : > { %v8086_v52 = vpack.c.bf16 %v5745_v50, %v5745_v50  ;;  %v5744_v53 = vadd.f32 %v7964_v42, %v5735_v51 }
 0x8b3   : > { %v5754_v54 = vshrl.u32 %v8086_v52, 16  ;;  %v5757_v55 = vshll.u32 %v8086_v52, 16  ;;  %v5746_v57 = vmax.f32 %v5744_v53, 0.0  ;;  %v9634_v52 = vld [vmem:[%s11691_s25 + $0x54] sm:$0xff]  }
 0x8b5   : > { %v5756_v58 = vrot.slane %v5754_v54, 6  ;;  %v5759_v59 = vrot.slane %v5757_v55, 7  ;;  %v8087_v60 = vpack.c.bf16 %v5746_v57, %v5746_v57 }
 0x8b7   : > { %v5760_v62 = vor.u32 %v5759_v59, %v5756_v58  ;;  %v5763_v63 = vshrl.u32 %v8087_v60, 16  ;;  %v5766_v3 = vshll.u32 %v8087_v60, 16  ;;  %v9638_v59 = vld [vmem:[%s11691_s25 + $0x80] sm:$0xff]  }
 0x8b9   : > { %v5778_v56 = vsel %vm11358_vm5, %v5760_v62, %v5777_v4  ;;  %v5765_v7 = vrot.slane %v5763_v63, 6  ;;  %v5768_v8 = vrot.slane %v5766_v3, 7  ;;  %v5761_v9 = vrot.slane %v5760_v62, 4 }
 0x8ba   : > { %5779 = vst [vmem:[#allocation5] sm:$0xe] %v5778_v56  ;;  %v9639_v56 = vld [vmem:[%s11691_s25 + $0x78] sm:$0xff]  }
 0x8bb   : > { %v5769_v6 = vor.u32 %v5768_v8, %v5765_v7 }
 0x8bd   : > { %v5770_v11 = vsel %vm10629_vm12, %v5761_v9, %v5769_v6  ;;  %v5771_v5 = vrot.slane %v5769_v6, 4 }
 0x8be   : > { %5781 = vst.msk [vmem:[#allocation5 + $0x4] sm:$0xf] %vm5780_vm6, %v5770_v11  ;;  %v9640_v11 = vld [vmem:[%s11691_s25 + $0x70] sm:$0xff]  }
 0x8bf   : > { %v5785_v14 = vsel %vm11365_vm4, %v5771_v5, %v5784_v12 }
 0x8c0   : > { %5786 = vst [vmem:[#allocation5 + $0x8] sm:$0x3] %v5785_v14 }
 0x8c1   : > { %v5797_v1 = vld [vmem:[#allocation5] sm:$0xe] }
 0x8c2   : > { %v5787_v13 = vld [vmem:[#allocation5] sm:$0xf] }
 0x8c3   : > { %v6068_v47 = vld [vmem:[#allocation5] sm:$0xc] }
 0x8c5   : > { %v5788_v15 = vld [vmem:[#allocation5 + $0x4] sm:$0xf] }
 0x8c6   : > { %v7974_v16 = vcombine.low %v5797_v1, %v5788_v15  ;;  %v7981_v18 = vcombine.low %v5787_v13, %v5788_v15  ;;  %v8007_v49 = vcombine.low %v6068_v47, %v5788_v15  ;;  %v9642_v15 = vld [vmem:[#allocation24 + $0x18] ss:$0 sps:$4 sm:$0xff]   ;;  %v9643_v1 = vld [vmem:[#allocation24 + $0x34] ss:$0 sps:$4 sm:$0xff]  }
 0x8c7   : > { %v9625_v19 = vld [vmem:[#allocation5 + $0x8] ss:$0 sps:$4 sm:$0x11]  }
 0x8c8   : > { %v5814_v20 = vrot.slane %v7974_v16, 1  ;;  %v5892_v21 = vshll.u32 %v7981_v18, 16  ;;  %v5815_v22 = vrot.slane %v9625_v19, 1  ;;  %v5897_v23 = vshll.u32 %v9625_v19, 16  ;;  %v9646_v19 = vld [vmem:[#allocation24 + $0x8] sm:$0xff]  }
 0x8c9   : > { %v5890_v27 = vshrl.u32 %v7981_v18, 16  ;;  %v9635_v31 = vld [vmem:[#allocation5 + $0x8] ss:$0 sps:$4 sm:$0x33]   ;;  %v5982_v36 = vshrl.u32 %v7974_v16, 16  ;;  %v5985_v37 = vshll.u32 %v7974_v16, 16 }
 0x8ca   : > { %v5894_v28 = vrot.slane %v5892_v21, 1  ;;  %v5816_v29 = vsel %vm1429_vm8, %v5814_v20, %v5815_v22  ;;  %v5899_v30 = vrot.slane %v5897_v23, 1  ;;  %v5990_v38 = vshrl.u32 %v9635_v31, 16  ;;  %v9641_v58 = vld [vmem:[#allocation5 + $0x8] ss:$0 sps:$4 sm:$0x77]  }
 0x8cb   : > { %8993 = vmatmul.mubr.msk.bf16.vlgmr.msra.gmra.mxu0 %vm5838_vm2, %v5816_v29  ;;  %v5993_v39 = vshll.u32 %v9635_v31, 16  ;;  %v5984_v41 = vrot.slane %v5982_v36, 1  ;;  %v5987_v42 = vrot.slane %v5985_v37, 2  ;;  %v6080_v54 = vrot.slane %v8007_v49, 2  ;;  %v9645_v18 = vld [vmem:[#allocation24 + $0x2c] sm:$0xff]   ;;  %v9647_v20 = vld [vmem:[#allocation24 + $0x24] sm:$0xff]  }
 0x8cc   : > { %v5895_v32 = vor.u32 %v5894_v28, %v5890_v27  ;;  %9009 = vmatpush3.bf16.msra.mxu0 %v6023_v25  ;;  %9016 = vmatprep.mubr.msk.bf16.mxu0 %vm10238_vm0, %v10237_v0  ;;  %v5992_v43 = vrot.slane %v5990_v38, 1  ;;  %v6081_v55 = vrot.slane %v9635_v31, 2  ;;  %v6166_v62 = vshrl.u32 %v8007_v49, 16  ;;  %v9648_v21 = vld [vmem:[#allocation24] sm:$0xff]  }
 0x8cd   : > { %9010 = vmatprep.subr.bf16.mxu0 %v10237_v0  ;;  %v5995_v44 = vrot.slane %v5993_v39, 2  ;;  %v5988_v50 = vor.u32 %v5987_v42, %v5984_v41  ;;  %v6169_v63 = vshll.u32 %v8007_v49, 16  ;;  %v6174_v3 = vshrl.u32 %v9641_v58, 16  ;;  %v9649_v22 = vld [vmem:[#allocation24 + $0x1c] sm:$0xff]  }
 0x8ce   : > { %v5900_v35 = vsel %vm1315_vm1, %v5895_v32, %v5899_v30  ;;  %vm11702_vm1 = vmmov %vm11700_vm7  ;;  %v6082_v60 = vsel %vm1561_vm10, %v6080_v54, %v6081_v55  ;;  %v6177_v4 = vshll.u32 %v9641_v58, 16  ;;  %v6168_v7 = vrot.slane %v6166_v62, 2 }
 0x8cf   : > { %9005 = vmatmul.mubr.msk.bf16.vlgmr.msra.gmra.mxu1 %vm5838_vm2, %v5900_v35  ;;  %v5996_v51 = vor.u32 %v5995_v44, %v5992_v43  ;;  %v6207_v53 = vsel %vm11702_vm1, %v9636_v48, 0  ;;  %v6171_v8 = vrot.slane %v6169_v63, 3  ;;  %v6176_v9 = vrot.slane %v6174_v3, 2  ;;  %vm11703_vm11 = vmmov %vm11702_vm1 }
 0x8d0   : > { %9021 = vmatpush3.bf16.msra.mxu1 %v6108_v34  ;;  %9028 = vmatprep.mubr.msk.bf16.mxu1 %vm10238_vm0, %v10237_v0  ;;  %v6179_v6 = vrot.slane %v6177_v4, 3  ;;  %v6441_v13 = vsel %vm11703_vm11, %v9642_v15, 0  ;;  %vm11704_vm14 = vmmov %vm11702_vm1  ;;  %v6295_v15 = vld [vmem:[#allocation2 + $0x8] sm:$0x3] }
 0x8d1   : > { %9011 = vmatpush3.bf16.msra.mxu0 %v9629_v33  ;;  %9022 = vmatprep.subr.bf16.mxu1 %v10237_v0  ;;  %v5997_v57 = vsel %vm1488_vm3, %v5988_v50, %v5996_v51  ;;  %v6172_v5 = vor.u32 %v6171_v8, %v6168_v7  ;;  %v6367_v16 = vsel %vm11704_vm14, %v9643_v1, 0  ;;  %v6291_v7 = vld [vmem:[#allocation2] sm:$0xe] }
 0x8d2   : > { %9012 = vmatprep.subr.bf16.mxu0 %v10237_v0  ;;  %v6180_v12 = vor.u32 %v6179_v6, %v6176_v9 }
 0x8d4   : > { %9023 = vmatpush3.bf16.msra.mxu1 %v9630_v40  ;;  %v6181_v14 = vsel %vm1620_vm9, %v6172_v5, %v6180_v12  ;;  %vm11707_vm9 = vmmov %vm11702_vm1 }
 0x8d5   : > { %9013 = vmatpush3.bf16.msra.mxu0 %v9631_v10  ;;  %9024 = vmatprep.subr.bf16.mxu1 %v10237_v0 }
 0x8d6   : > { %9014 = vmatprep.subr.bf16.mxu0 %v10237_v0 }
 0x8d8   : > { %9025 = vmatpush3.bf16.msra.mxu1 %v9632_v45  ;;  %v8026_v45 = vld [vmem:[#allocation23] ss:$0 sm:$0xff] }
 0x8d9   : > { %9015 = vmatpush3.bf16.msra.mxu0 %v9633_v46  ;;  %9026 = vmatprep.subr.bf16.mxu1 %v10237_v0 }
 0x8da   : > { %9032 = vmatprep.subr.bf16.mxu0 %v10237_v0 }
 0x8dc   : > { %9027 = vmatpush3.bf16.msra.mxu1 %v9634_v52  ;;  %9017 = vmatmul.mubr.msk.bf16.vlgmr.msra.gmra.mxu0 %vm5838_vm2, %v5997_v57 }
 0x8dd   : > { %9033 = vmatpush3.bf16.msra.mxu0 %v6207_v53  ;;  %9040 = vmatprep.mubr.msk.bf16.mxu0 %vm10238_vm0, %v10237_v0 }
 0x8de   : > { %9034 = vmatprep.subr.bf16.mxu0 %v10237_v0  ;;  %9044 = vmatprep.subr.bf16.mxu1 %v10237_v0 }
 0x8df   : > { %9029 = vmatmul.mubr.msk.bf16.vlgmr.msra.gmra.mxu1 %vm5838_vm2, %v6082_v60 }
 0x8e0   : > { %9052 = vmatprep.mubr.msk.bf16.mxu1 %vm10238_vm0, %v10237_v0  ;;  %9045 = vmatpush3.bf16.msra.mxu1 %v6367_v16 }
 0x8e1   : > { %9035 = vmatpush3.bf16.msra.mxu0 %v9638_v59  ;;  %9046 = vmatprep.subr.bf16.mxu1 %v10237_v0 }
 0x8e2   : > { %9036 = vmatprep.subr.bf16.mxu0 %v10237_v0 }
 0x8e4   : > { %9047 = vmatpush3.bf16.msra.mxu1 %v9645_v18 }
 0x8e5   : > { %9037 = vmatpush3.bf16.msra.mxu0 %v9639_v56  ;;  %9048 = vmatprep.subr.bf16.mxu1 %v10237_v0 }
 0x8e6   : > { %9038 = vmatprep.subr.bf16.mxu0 %v10237_v0 }
 0x8e8   : > { %9049 = vmatpush3.bf16.msra.mxu1 %v9647_v20 }
 0x8e9   : > { %9039 = vmatpush3.bf16.msra.mxu0 %v9640_v11  ;;  %9050 = vmatprep.subr.bf16.mxu1 %v10237_v0 }
 0x8ea   : > { %9056 = vmatprep.subr.bf16.mxu0 %v10237_v0 }
 0x8ec   : > { %9041 = vmatmul.mubr.msk.bf16.vlgmr.msra.gmra.mxu0 %vm5838_vm2, %v6181_v14  ;;  %9051 = vmatpush3.bf16.msra.mxu1 %v9649_v22  ;;  %v9652_v22 = vld [vmem:[%s11705_s2 + $0x38] sm:$0xff]   ;;  %s11498_s2 = sand.u32 1, %s10178_s1  }
 0x8ed   : > { %9064 = vmatprep.mubr.msk.bf16.mxu0 %vm10238_vm0, %v10237_v0  ;;  %9057 = vmatpush3.bf16.msra.mxu0 %v6441_v13 }
 0x8ee   : > { %9058 = vmatprep.subr.bf16.mxu0 %v10237_v0  ;;  %9068 = vmatprep.subr.bf16.mxu1 %v10237_v0 }
 0x8f1   : > { %9059 = vmatpush3.bf16.msra.mxu0 %v9644_v17 }
 0x8f2   : > { %9060 = vmatprep.subr.bf16.mxu0 %v10237_v0 }
 0x8f5   : > { %9061 = vmatpush3.bf16.msra.mxu0 %v9646_v19 }
 0x8f6   : > { %9062 = vmatprep.subr.bf16.mxu0 %v10237_v0 }
 0x8f9   : > { %9063 = vmatpush3.bf16.msra.mxu0 %v9648_v21 }
 0x8fa   : > { %9080 = vmatprep.subr.bf16.mxu0 %v10237_v0 }
 0x98b   : > { %v5879_v23 = vpop.f32.mrf.mxu0 }
 0x98d   : > { %v8994_v24 = vpop.f32.mrf.mxu0 }
 0x98f   : > { %v5962_v25 = vpop.f32.mrf.mxu1  ;;  %v5882_v27 = vpop.f32.mrf.mxu0 }
 0x990   : > { %v5963_v39 = vadd.f32 %v5962_v25, %v5879_v23 }
 0x991   : > { %v9006_v28 = vpop.f32.mrf.mxu1  ;;  %v8995_v29 = vpop.f32.mrf.mxu0 }
 0x993   : > { %v5965_v30 = vpop.f32.mrf.mxu1 }
 0x994   : > { %v5966_v41 = vadd.f32 %v5965_v30, %v5882_v27 }
 0x995   : > { %v9007_v31 = vpop.f32.mrf.mxu1 }
 0x996   : > { %v9654_v31 = vld [vmem:[#allocation24 + $0x50] ss:$0 sps:$4 sm:$0xff]  }
 0x99c   : > { %v6059_v32 = vpop.f32.mrf.mxu0 }
 0x99d   : > { %v6066_v10 = vadd.f32 %v6059_v32, %v5963_v39  ;;  %v9657_v39 = vld [vmem:[%s11706_s3 + $0x28] sm:$0xff]  }
 0x99e   : > { %v9018_v34 = vpop.f32.mrf.mxu0 }
 0x99f   : > { %v6144_v33 = vpop.f32.mrf.mxu1 }
 0x9a0   : > { %v6062_v35 = vpop.f32.mrf.mxu0  ;;  %v6151_v42 = vadd.f32 %v6144_v33, %v6066_v10  ;;  %v9659_v10 = vld [vmem:[%s11706_s3 + $0x20] sm:$0xff]  }
 0x9a1   : > { %v9030_v36 = vpop.f32.mrf.mxu1  ;;  %v6067_v43 = vadd.f32 %v6062_v35, %v5966_v41  ;;  %v9655_v35 = vld [vmem:[%s11706_s3 + $0x30] sm:$0xff]  }
 0x9a2   : > { %v9019_v37 = vpop.f32.mrf.mxu0  ;;  %v9658_v41 = vld [vmem:[#allocation24 + $0x40] sm:$0xff]  }
 0x9a3   : > { %v6147_v38 = vpop.f32.mrf.mxu1  ;;  %v6524_v37 = vsel %vm11707_vm9, %v9654_v31, 0 }
 0x9a4   : > { %v6152_v48 = vadd.f32 %v6147_v38, %v6067_v43 }
 0x9a5   : > { %v9031_v40 = vpop.f32.mrf.mxu1 }
 0x9a6   : > { %v9656_v40 = vld [vmem:[#allocation24 + $0x48] sm:$0xff]  }
 0x9ac   : > { %v6243_v44 = vpop.f32.mrf.mxu0 }
 0x9ad   : > { %v6250_v46 = vadd.f32 %v6243_v44, %v6151_v42  ;;  %v9661_v44 = vld [vmem:[%s11706_s3 + $0x18] sm:$0xff]  }
 0x9ae   : > { %v9042_v47 = vpop.f32.mrf.mxu0 }
 0x9af   : > { %v6259_v49 = vadd.f32 %v8026_v45, %v6250_v46  ;;  %v9667_v46 = vld [vmem:[#allocation4 + $0x8] ss:$0 sps:$4 sm:$0x33]  }
 0x9b0   : > { %v6246_v50 = vpop.f32.mrf.mxu0 }
 0x9b1   : > { %v6261_v51 = vmax.f32 %v6259_v49, 0.0  ;;  %v6251_v52 = vadd.f32 %v6246_v50, %v6152_v48  ;;  %v9663_v49 = vld [vmem:[%s11706_s3 + $0x10] sm:$0xff]   ;;  %v9666_v50 = vld [vmem:[#allocation4] sm:$0xfe]  }
 0x9b2   : > { %v9043_v53 = vpop.f32.mrf.mxu0 }
 0x9b3   : > { %v8088_v54 = vpack.c.bf16 %v6261_v51, %v6261_v51  ;;  %v6260_v55 = vadd.f32 %v8026_v45, %v6251_v52  ;;  %v9660_v45 = vld [vmem:[#allocation24 + $0x38] sm:$0xff]   ;;  %v6623_v51 = vshrl.u32 %v9667_v46, 16  ;;  %v6626_v52 = vshll.u32 %v9667_v46, 16 }
 0x9b4   : > { %v6753_v46 = vld [vmem:[#allocation3] sm:$0xe] }
 0x9b5   : > { %v6270_v57 = vshrl.u32 %v8088_v54, 16  ;;  %v6273_v58 = vshll.u32 %v8088_v54, 16  ;;  %v6262_v59 = vmax.f32 %v6260_v55, 0.0  ;;  %v9664_v54 = vld [vmem:[%s11706_s3 + $0x8] sm:$0xff]   ;;  %v6615_v55 = vshrl.u32 %v9666_v50, 16 }
 0x9b7   : > { %v6272_v60 = vrot.slane %v6270_v57, 6  ;;  %v6275_v62 = vrot.slane %v6273_v58, 7  ;;  %v8089_v63 = vpack.c.bf16 %v6262_v59, %v6262_v59  ;;  %v6618_v57 = vshll.u32 %v9666_v50, 16 }
 0x9b8   : > { %v6625_v58 = vrot.slane %v6623_v51, 1  ;;  %v6628_v59 = vrot.slane %v6626_v52, 2 }
 0x9b9   : > { %v6276_v3 = vor.u32 %v6275_v62, %v6272_v60  ;;  %v6279_v4 = vshrl.u32 %v8089_v63, 16  ;;  %v6282_v56 = vshll.u32 %v8089_v63, 16  ;;  %v9665_v60 = vld [vmem:[%s11706_s3] sm:$0xff]   ;;  %v6617_v62 = vrot.slane %v6615_v55, 1  ;;  %s11709_s3 = smov %s11708_s0 }
 0x9ba   : > { %v6620_v63 = vrot.slane %v6618_v57, 2 }
 0x9bb   : > { %v6292_v8 = vsel %vm11358_vm5, %v6276_v3, %v6291_v7  ;;  %v6281_v9 = vrot.slane %v6279_v4, 6  ;;  %v6284_v6 = vrot.slane %v6282_v56, 7  ;;  %v6277_v11 = vrot.slane %v6276_v3, 4 }
 0x9bc   : > { %6293 = vst [vmem:[#allocation2] sm:$0xe] %v6292_v8  ;;  %v6629_v3 = vor.u32 %v6628_v59, %v6625_v58  ;;  %v6621_v4 = vor.u32 %v6620_v63, %v6617_v62 }
 0x9bd   : > { %v6285_v5 = vor.u32 %v6284_v6, %v6281_v9 }
 0x9be   : > { %v6630_v56 = vsel %vm1488_vm3, %v6621_v4, %v6629_v3 }
 0x9bf   : > { %v6286_v12 = vsel %vm10629_vm12, %v6277_v11, %v6285_v5  ;;  %v6287_v14 = vrot.slane %v6285_v5, 4 }
 0x9c0   : > { %6294 = vst.msk [vmem:[#allocation2 + $0x4] sm:$0xf] %vm5780_vm6, %v6286_v12 }
 0x9c1   : > { %v6296_v1 = vsel %vm11365_vm4, %v6287_v14, %v6295_v15 }
 0x9c2   : > { %6297 = vst [vmem:[#allocation2 + $0x8] sm:$0x3] %v6296_v1 }
 0x9c3   : > { %v6298_v13 = vld [vmem:[#allocation2] sm:$0xe] }
 0x9c4   : > { %v6484_v42 = vld [vmem:[#allocation2] sm:$0xc] }
 0x9c7   : > { %v6299_v16 = vld [vmem:[#allocation2 + $0x4] sm:$0xf] }
 0x9c8   : > { %v8029_v17 = vcombine.low %v6298_v13, %v6299_v16  ;;  %v8042_v43 = vcombine.low %v6484_v42, %v6299_v16 }
 0x9c9   : > { %v9651_v18 = vld [vmem:[#allocation2 + $0x8] ss:$0 sps:$4 sm:$0x11]  }
 0x9ca   : > { %v6413_v19 = vrot.slane %v8029_v17, 1  ;;  %v9653_v20 = vld [vmem:[#allocation2 + $0x8] ss:$0 sps:$4 sm:$0x33]   ;;  %v6414_v21 = vrot.slane %v9651_v18, 1  ;;  %v6326_v23 = vshrl.u32 %v8029_v17, 16 }
 0x9cb   : > { %v6329_v24 = vshll.u32 %v8029_v17, 16  ;;  %v6334_v25 = vshrl.u32 %v9653_v20, 16  ;;  %v6337_v27 = vshll.u32 %v9653_v20, 16  ;;  %v6496_v47 = vrot.slane %v8042_v43, 2  ;;  %v8048_v18 = vld [vmem:[#allocation26] ss:$0 sm:$0xff] }
 0x9cc   : > { %v6415_v28 = vsel %vm1429_vm8, %v6413_v19, %v6414_v21  ;;  %v6328_v29 = vrot.slane %v6326_v23, 1  ;;  %v6497_v48 = vrot.slane %v9653_v20, 2  ;;  %v8049_v23 = vld [vmem:[#allocation27] ss:$0 sm:$0xff] }
 0x9cd   : > { %v6331_v30 = vrot.slane %v6329_v24, 2  ;;  %9065 = vmatmul.mubr.msk.bf16.vlgmr.msra.gmra.mxu0 %vm5838_vm2, %v6415_v28  ;;  %v6336_v32 = vrot.slane %v6334_v25, 1  ;;  %v6339_v34 = vrot.slane %v6337_v27, 2 }
 0x9ce   : > { %9081 = vmatpush3.bf16.msra.mxu0 %v9652_v22  ;;  %9096 = vmatprep.mubr.msk.bf16.mxu0 %vm10238_vm0, %v10237_v0  ;;  %v6498_v53 = vsel %vm1561_vm10, %v6496_v47, %v6497_v48  ;;  %vm7008_vm10 = vcmask 57344  }
 0x9cf   : > { %v6332_v33 = vor.u32 %v6331_v30, %v6328_v29  ;;  %9082 = vmatprep.subr.bf16.mxu0 %v10237_v0  ;;  %v6340_v36 = vor.u32 %v6339_v34, %v6336_v32 }
 0x9d1   : > { %v6341_v38 = vsel %vm1488_vm3, %v6332_v33, %v6340_v36 }
 0x9d2   : > { %9053 = vmatmul.mubr.msk.bf16.vlgmr.msra.gmra.mxu1 %vm5838_vm2, %v6341_v38  ;;  %9083 = vmatpush3.bf16.msra.mxu0 %v9655_v35 }
 0x9d3   : > { %9069 = vmatpush3.bf16.msra.mxu1 %v6524_v37  ;;  %9084 = vmatprep.subr.bf16.mxu0 %v10237_v0 }
 0x9d4   : > { %9070 = vmatprep.subr.bf16.mxu1 %v10237_v0  ;;  %9076 = vmatprep.mubr.msk.bf16.mxu1 %vm10238_vm0, %v10237_v0 }
 0x9d6   : > { %9085 = vmatpush3.bf16.msra.mxu0 %v9657_v39 }
 0x9d7   : > { %9071 = vmatpush3.bf16.msra.mxu1 %v9656_v40  ;;  %9086 = vmatprep.subr.bf16.mxu0 %v10237_v0 }
 0x9d8   : > { %9072 = vmatprep.subr.bf16.mxu1 %v10237_v0 }
 0x9da   : > { %9087 = vmatpush3.bf16.msra.mxu0 %v9659_v10 }
 0x9db   : > { %9073 = vmatpush3.bf16.msra.mxu1 %v9658_v41  ;;  %9088 = vmatprep.subr.bf16.mxu0 %v10237_v0 }
 0x9dc   : > { %9074 = vmatprep.subr.bf16.mxu1 %v10237_v0 }
 0x9de   : > { %9089 = vmatpush3.bf16.msra.mxu0 %v9661_v44 }
 0x9df   : > { %9075 = vmatpush3.bf16.msra.mxu1 %v9660_v45  ;;  %9090 = vmatprep.subr.bf16.mxu0 %v10237_v0 }
 0x9e0   : > { %9100 = vmatprep.subr.bf16.mxu1 %v10237_v0 }
 0x9e2   : > { %9077 = vmatmul.mubr.msk.bf16.vlgmr.msra.gmra.mxu1 %vm5838_vm2, %v6498_v53  ;;  %9091 = vmatpush3.bf16.msra.mxu0 %v9663_v49 }
 0x9e3   : > { %9092 = vmatprep.subr.bf16.mxu0 %v10237_v0  ;;  %9102 = vmatprep.mubr.msk.bf16.mxu1 %vm10238_vm0, %v10237_v0 }
 0x9e6   : > { %9093 = vmatpush3.bf16.msra.mxu0 %v9664_v54  ;;  %v6757_v54 = vld [vmem:[#allocation3 + $0x8] sm:$0x3] }
 0x9e7   : > { %9094 = vmatprep.subr.bf16.mxu0 %v10237_v0 }
 0x9ea   : > { %9095 = vmatpush3.bf16.msra.mxu0 %v9665_v60 }
 0x9ed   : > { %9097 = vmatmul.mubr.bf16.vlgmr.msra.gmra.mxu0 %v6630_v56 }
 0xa8d   : > { %v6477_v7 = vpop.f32.mrf.mxu0 }
 0xa8f   : > { %v9066_v8 = vpop.f32.mrf.mxu0 }
 0xa90   : > { %v6763_v8 = vld [vmem:[%s10394_s17] sm:$0x1] }
 0xa91   : > { %v6480_v9 = vpop.f32.mrf.mxu0 }
 0xa92   : > { %v6403_v6 = vpop.f32.mrf.mxu1 }
 0xa93   : > { %v9067_v11 = vpop.f32.mrf.mxu0  ;;  %v6478_v1 = vadd.f32 %v6477_v7, %v6403_v6  ;;  %v6840_v6 = vld [vmem:[%s11709_s3 + $0x28] sm:$0xff] }
 0xa94   : > { %v9054_v5 = vpop.f32.mrf.mxu1  ;;  %v6839_v11 = vld [vmem:[%s11709_s3 + $0x20] sm:$0xff] }
 0xa95   : > { %v6838_v5 = vld [vmem:[%s11709_s3 + $0x18] sm:$0xff] }
 0xa96   : > { %v6406_v12 = vpop.f32.mrf.mxu1 }
 0xa97   : > { %v6481_v19 = vadd.f32 %v6480_v9, %v6406_v12  ;;  %v6841_v9 = vld [vmem:[%s11708_s0 + $0x30] sm:$0xff]  ;;  %s11599_s0 = scalar_lea.vmem [#allocation30], %s11498_s2 }
 0xa98   : > { %v9055_v14 = vpop.f32.mrf.mxu1  ;;  %v6837_v12 = vld [vmem:[%s11709_s3 + $0x10] sm:$0xff] }
 0xa99   : > { %v6836_v14 = vld [vmem:[%s11709_s3 + $0x8] sm:$0xff] }
 0xaa2   : > { %v6560_v15 = vpop.f32.mrf.mxu1 }
 0xaa3   : > { %v6567_v16 = vadd.f32 %v6560_v15, %v6478_v1  ;;  %v6835_v15 = vld [vmem:[%s11709_s3] sm:$0xff] }
 0xaa4   : > { %v9078_v13 = vpop.f32.mrf.mxu1 }
 0xaa5   : > { %v6576_v21 = vadd.f32 %v8048_v18, %v6567_v16  ;;  %v6922_v16 = vld [vmem:[%s11710_s28 + $0x30] sm:$0xff]  ;;  %s11712_s28 = sld [smem:[#allocation63_spill]] }
 0xaa6   : > { %v6563_v17 = vpop.f32.mrf.mxu1 }
 0xaa7   : > { %v6568_v22 = vadd.f32 %v6563_v17, %v6481_v19  ;;  %v6578_v25 = vmax.f32 %v6576_v21, 0.0  ;;  %v6920_v21 = vld [vmem:[%s11711_s4 + $0x20] sm:$0xff] }
 0xaa8   : > { %v9079_v20 = vpop.f32.mrf.mxu1 }
 0xaa9   : > { %v6577_v27 = vadd.f32 %v8048_v18, %v6568_v22  ;;  %v6921_v18 = vld [vmem:[%s11711_s4 + $0x28] sm:$0xff] }
 0xaab   : > { %v6579_v32 = vmax.f32 %v6577_v27, 0.0  ;;  %v6917_v27 = vld [vmem:[%s11711_s4 + $0x8] sm:$0xff] }
 0xaad   : > { %v6714_v24 = vpop.f32.mrf.mxu0 }
 0xaae   : > { %v6715_v28 = vadd.f32 %v8049_v23, %v6714_v24  ;;  %v6919_v24 = vld [vmem:[%s11711_s4 + $0x18] sm:$0xff] }
 0xaaf   : > { %v9098_v29 = vpop.f32.mrf.mxu0 }
 0xab0   : > { %v6721_v30 = vadd.f32 %v6715_v28, %v6578_v25  ;;  %v6918_v25 = vld [vmem:[%s11711_s4 + $0x10] sm:$0xff]  ;;  %v6916_v28 = vld [vmem:[%s11711_s4] sm:$0xff]  ;;  %v6842_v29 = vld [vmem:[#allocation29] sm:$0x1]  ;;  %s7019_s4 = scalar_lea.sflag [#allocation8], %s11498_s2 }
 0xab1   : > { %v6717_v31 = vpop.f32.mrf.mxu0 }
 0xab2   : > { %v6723_v34 = vmax.f32 %v6721_v30, 0.0  ;;  %v6718_v33 = vadd.f32 %v8049_v23, %v6717_v31 }
 0xab3   : > { %v9099_v35 = vpop.f32.mrf.mxu0 }
 0xab4   : > { %v8090_v36 = vpack.c.bf16 %v6723_v34, %v6723_v34  ;;  %v6722_v37 = vadd.f32 %v6718_v33, %v6579_v32  ;;  %v6998_v34 = vld [vmem:[%s11712_s28] sm:$0x1]  ;;  %s11713_s28 = scalar_lea.vmem [#allocation30], %s11498_s2 }
 0xab5   : > { %s7038_s3 = sshll.u32 %s11713_s28, 4  ;;  %s7039_s3 = int_to_ptr.vmem [resolvable:$true] %s7038_s3 }
 0xab6   : > { %v6732_v38 = vshrl.u32 %v8090_v36, 16  ;;  %v6735_v39 = vshll.u32 %v8090_v36, 16  ;;  %v6724_v40 = vmax.f32 %v6722_v37, 0.0  ;;  %s10064_s6 = scalar_lea.vmem %s7039_s3, 16  ;;  %p10071_p10 = scmp.lt.s32.totalorder %s7039_s3, %s10069_s10 }
 0xab7   : > { %p10065_p3 = scmp.ne.s32.totalorder %s7039_s3, %s10064_s6  ;;  %p10072_p4 = scmp.lt.s32.totalorder %s10070_s11, %s10064_s6 }
 0xab8   : > { %v6734_v10 = vrot.slane %v6732_v38, 6  ;;  %v6737_v41 = vrot.slane %v6735_v39, 7  ;;  %v8091_v42 = vpack.c.bf16 %v6724_v40, %v6724_v40  ;;  %v7004_v40 = vlaneseq }
 0xab9   : > { %p10066_p12 = pnand %p10065_p3, %p11714_p5  ;;  %p10073_p7 = por %p10072_p4, %p10071_p10 }
 0xaba   : > { %v6738_v43 = vor.u32 %v6737_v41, %v6734_v10  ;;  %v6741_v44 = vshrl.u32 %v8091_v42, 16  ;;  %v6744_v45 = vshll.u32 %v8091_v42, 16  ;;  %v7005_v10 = vand.u32 127, %v7004_v40 }
 0xabb   : > { %p10067_p2 = pneg %p10066_p12 }
 0xabc   : > { %v6754_v47 = vsel %vm11358_vm5, %v6738_v43, %v6753_v46  ;;  %v6743_v48 = vrot.slane %v6741_v44, 6  ;;  %v6746_v49 = vrot.slane %v6744_v45, 7  ;;  %v6739_v50 = vrot.slane %v6738_v43, 4 }
 0xabd   : > { %6755 = vst [vmem:[#allocation3] sm:$0xe] %v6754_v47  ;;  %vm7006_vm8 = vcmp.lt.s32.totalorder %v7005_v10, 4  ;;  %p10074_p8 = pnand %p10073_p7, %p10067_p2 }
 0xabe   : > { %v6747_v51 = vor.u32 %v6746_v49, %v6743_v48 }
 0xac0   : > { %v6748_v52 = vsel %vm10629_vm12, %v6739_v50, %v6747_v51  ;;  %v6749_v53 = vrot.slane %v6747_v51, 4  ;;  %vm6790_vm12 = vcmask 130048  }
 0xac1   : > { %6756 = vst.msk [vmem:[#allocation3 + $0x4] sm:$0xf] %vm5780_vm6, %v6748_v52 }
 0xac2   : > { %v6758_v55 = vsel %vm11365_vm4, %v6749_v53, %v6757_v54 }
 0xac3   : > { %6759 = vst [vmem:[#allocation3 + $0x8] sm:$0x3] %v6758_v55 }
 0xac8   : > { %v9668_v57 = vld [vmem:[#allocation3] sm:$0xfe]  }
 0xac9   : > { %v6773_v58 = vshrl.u32 %v9668_v57, 16  ;;  %v6776_v59 = vshll.u32 %v9668_v57, 16 }
 0xaca   : > { %v9669_v61 = vld [vmem:[#allocation3 + $0x8] ss:$0 sps:$4 sm:$0x33]  }
 0xacb   : > { %v6775_v60 = vrot.slane %v6773_v58, 1  ;;  %v6781_v62 = vshrl.u32 %v9669_v61, 16  ;;  %v6784_v63 = vshll.u32 %v9669_v61, 16  ;;  %v6778_v26 = vrot.slane %v6776_v59, 2 }
 0xacd   : > { %v6783_v3 = vrot.slane %v6781_v62, 1  ;;  %v6786_v4 = vrot.slane %v6784_v63, 2  ;;  %v6779_v56 = vor.u32 %v6778_v26, %v6775_v60 }
 0xacf   : > { %v6787_v7 = vor.u32 %v6786_v4, %v6783_v3 }
 0xad1   : > { %v6788_v2 = vsel %vm1488_vm3, %v6779_v56, %v6787_v7  ;;  %vm6994_vm3 = vcmask 450560  }
 0xad2   : > { %9101 = vmatpush3.bf16.msra.mxu1 %v6788_v2 }
 0xad3   : > { %9106 = vmatprep.subr.mxu1 %v10237_v0 }
 0xad5   : > { %9103 = vmatmul.mubr.msk.bf16.vlgmr.msra.gmra.mxu1 %vm6790_vm12, %v6763_v8 }
 0xad6   : > { %9107 = vmatpush3.msra.mxu1 %v6841_v9  ;;  %9120 = vmatprep.mubr.msk.f32.mxu1 %vm10238_vm0, %v10237_v0 }
 0xad7   : > { %9108 = vmatprep.subr.mxu1 %v10237_v0 }
 0xad8   : > { %9109 = vmatpush3.msra.mxu1 %v6840_v6 }
 0xad9   : > { %9110 = vmatprep.subr.mxu1 %v10237_v0 }
 0xada   : > { %9111 = vmatpush3.msra.mxu1 %v6839_v11 }
 0xadb   : > { %9112 = vmatprep.subr.mxu1 %v10237_v0 }
 0xadc   : > { %9113 = vmatpush3.msra.mxu1 %v6838_v5 }
 0xadd   : > { %9114 = vmatprep.subr.mxu1 %v10237_v0 }
 0xade   : > { %9115 = vmatpush3.msra.mxu1 %v6837_v12 }
 0xadf   : > { %9116 = vmatprep.subr.mxu1 %v10237_v0 }
 0xae0   : > { %9117 = vmatpush3.msra.mxu1 %v6836_v14 }
 0xae1   : > { %9118 = vmatprep.subr.mxu1 %v10237_v0 }
 0xae2   : > { %9119 = vmatpush3.msra.mxu1 %v6835_v15 }
 0xae3   : > { %9123 = vmatprep.subr.mxu1 %v10237_v0 }
 0xb95   : > { %v6828_v1 = vpop.f32.mrf.mxu1 }
 0xb96   : > { %v6834_v13 = vmul.f32 0.0625, %v6828_v1 }
 0xb97   : > { %v9104_v17 = vpop.f32.mrf.mxu1 }
 0xb98   : > { %9121 = vmatmul.mubr.msk.f32.vlgmr.msra.gmra.mxu1 %vm5838_vm2, %v6834_v13  ;;  %v6993_v19 = vmul.f32 %v6834_v13, %v6834_v13  ;;  %7014 = vst.msk [vmem:[%s11599_s0] sm:$0x1] %vm6994_vm3, %v6834_v13  ;;  %s1221_s0 = scalar_lea.vmem %s10404_s20, %s10601_s15  ;;  %s8067_s15 = sshll.u32 %s10432_s7, 4 }
 0xb99   : > { %9124 = vmatpush3.msra.mxu1 %v6922_v16  ;;  %v6831_v20 = vpop.f32.mrf.mxu1  ;;  %9137 = vmatprep.mubr.msk.f32.mxu1 %vm10238_vm0, %v10237_v0  ;;  %vm7015_vm0 = vcmask 122880  }
 0xb9a   : > { %9125 = vmatprep.subr.mxu1 %v10237_v0  ;;  %v6995_v22 = vsel %vm6994_vm3, %v6993_v19, 0.0 }
 0xb9b   : > { %9126 = vmatpush3.msra.mxu1 %v6921_v18  ;;  %v9105_v23 = vpop.f32.mrf.mxu1  ;;  %6996 = vadd.xlane.f32.xlu0 %v6995_v22 }
 0xb9c   : > { %9127 = vmatprep.subr.mxu1 %v10237_v0 }
 0xb9d   : > { %9128 = vmatpush3.msra.mxu1 %v6920_v21 }
 0xb9e   : > { %9129 = vmatprep.subr.mxu1 %v10237_v0 }
 0xb9f   : > { %9130 = vmatpush3.msra.mxu1 %v6919_v24 }
 0xba0   : > { %9131 = vmatprep.subr.mxu1 %v10237_v0 }
 0xba1   : > { %9132 = vmatpush3.msra.mxu1 %v6918_v25 }
 0xba2   : > { %9133 = vmatprep.subr.mxu1 %v10237_v0 }
 0xba3   : > { %9134 = vmatpush3.msra.mxu1 %v6917_v27 }
 0xba4   : > { %9135 = vmatprep.subr.mxu1 %v10237_v0 }
 0xba5   : > { %9136 = vmatpush3.msra.mxu1 %v6916_v28 }
 0xba6   : > { %9138 = vmatmul.mubr.msk.f32.vlgmr.msra.gmra.mxu1 %vm5838_vm2, %v6834_v13 }
 0xc24   : > { %v6997_v33 = vpop.xlane.xlu0 %6996 }
 0xc25   : > { %v6999_v36 = vadd.f32 %v6998_v34, %v6997_v33 }
 0xc58   : > { %v6912_v30 = vpop.f32.mrf.mxu1 }
 0xc59   : > { %v6913_v31 = vadd.f32 %v6912_v30, %v6842_v29 }
 0xc5a   : > { %v9122_v32 = vpop.f32.mrf.mxu1 }
 0xc5b   : > { %7016 = vst.msk [vmem:[%s1221_s0] sm:$0x1] %vm7015_vm0, %v6913_v31  ;;  %s7036_s0 = scalar_lea.hbm %s11627_s9, %s8067_s15 }
 0xc66   : > { %v6989_v35 = vpop.f32.mrf.mxu1 }
 0xc67   : > { %v7000_v37 = vmul.f32 2.0, %v6989_v35 }
 0xc68   : > { %v9139_v0 = vpop.f32.mrf.mxu1 }
 0xc69   : > { %v7001_v38 = vsub.f32 %v6999_v36, %v7000_v37 }
 0xc6b   : > { %v7002_v39 = vadd.f32 1.0, %v7001_v38 }
 0xc6d   : > { %9670 = vrcp.f32 %v7002_v39 }
 0xc7a   : > { %v9671_v41 = vpop.eup %9670 }
 0xc7b   : > { %v7007_v42 = vsel %vm7006_vm8, %v9671_v41, 0.0 }
 0xc7c   : > { %v7009_v43 = vsel %vm7008_vm10, %v7007_v42, 0.0 }
 0xc7d   : > { %7010 = vadd.xlane.f32.xlu0 %v7009_v43 }
 0xc7e   : > { %10077 = shalt.err (!%p10074_p8)
}
 0xc7f   : > { %s10078_s12 = scalar_lea.hbm %s7036_s0, 16  ;;  %s10082_s28 = scalar_lea.hbm %s11627_s9, 32 }
 0xc80   : > { %p10079_p11 = scmp.ne.s32.totalorder %s7036_s0, %s10078_s12  ;;  %p10083_p9 = scmp.lt.s32.totalorder %s7036_s0, %s11627_s9 }
 0xc81   : > { %p10084_p1 = scmp.lt.s32.totalorder %s10082_s28, %s10078_s12 }
 0xc82   : > { %p10080_p0 = pnand %p10079_p11, %p11714_p5 }
 0xc83   : > { %p10085_p13 = por %p10084_p1, %p10083_p9 }
 0xc84   : > { %p10081_p6 = pneg %p10080_p0 }
 0xc86   : > { %p10086_p3 = pnand %p10085_p13, %p10081_p6 }
 0xc88   : > { %10089 = shalt.err (!%p10086_p3)
}
 0xc89   : > { %9200 = dma.vmem_to_hbm [thread:$0]  (%p11714_p5), %s7039_s3, 16, %s7036_s0, %s7019_s4  }
 0xc8a   : > { %s1213_s8 = scalar_lea.vmem [#allocation31], %s11498_s2  ;;  %s7052_s10 = scalar_lea.hbm %s10409_s5, %s8067_s15 }
 0xc8b   : > { %s7054_s6 = sshll.u32 %s1213_s8, 4  ;;  %s7026_s12 = scalar_lea.sflag [#allocation32], %s11498_s2  ;;  %s7055_s6 = int_to_ptr.vmem [resolvable:$true] %s7054_s6 }
 0xc8c   : > { %s10090_s11 = scalar_lea.vmem %s7055_s6, 16  ;;  %s10240_s28 = smov [#allocation31]  }
 0xc8d   : > { %p10091_p12 = scmp.ne.s32.totalorder %s7055_s6, %s10090_s11  ;;  %s10094_s9 = sshll.u32 %s10240_s28, 4  ;;  %s10095_s9 = int_to_ptr.vmem [resolvable:$false] %s10094_s9 }
 0xc8e   : > { %s10096_s4 = scalar_lea.vmem %s10095_s9, 32  ;;  %p10097_p4 = scmp.lt.s32.totalorder %s7055_s6, %s10095_s9 }
 0xc8f   : > { %p10092_p2 = pnand %p10091_p12, %p11714_p5  ;;  %p10098_p7 = scmp.lt.s32.totalorder %s10096_s4, %s10090_s11 }
 0xc91   : > { %p10093_p10 = pneg %p10092_p2  ;;  %p10099_p8 = por %p10098_p7, %p10097_p4 }
 0xc93   : > { %p10100_p11 = pnand %p10099_p8, %p10093_p10 }
 0xd06   : > { %v7011_v44 = vpop.xlane.xlu0 %7010 }
 0xd07   : > { %9672 = vrcp.f32 %v7011_v44 }
 0xd14   : > { %v9673_v45 = vpop.eup %9672 }
 0xd15   : > { %v7013_v46 = vmul.f32 %v9673_v45, %v7007_v42 }
 0xd17   : > { %7017 = vst.msk [vmem:[%s1213_s8] sm:$0x1] %vm7008_vm10, %v7013_v46 }
 0xd18   : > { %10103 = shalt.err (!%p10100_p11)
}
 0xd19   : > { %s10104_s7 = scalar_lea.hbm %s7052_s10, 16  ;;  %s10108_s3 = scalar_lea.hbm %s10409_s5, 32 }
 0xd1a   : > { %p10105_p0 = scmp.ne.s32.totalorder %s7052_s10, %s10104_s7  ;;  %p10109_p1 = scmp.lt.s32.totalorder %s7052_s10, %s10409_s5 }
 0xd1b   : > { %p10110_p13 = scmp.lt.s32.totalorder %s10108_s3, %s10104_s7 }
 0xd1c   : > { %p10106_p6 = pnand %p10105_p0, %p11714_p5 }
 0xd1d   : > { %p10111_p3 = por %p10110_p13, %p10109_p1 }
 0xd1e   : > { %p10107_p9 = pneg %p10106_p6 }
 0xd20   : > { %p10112_p12 = pnand %p10111_p3, %p10107_p9 }
 0xd22   : > { %10115 = shalt.err (!%p10112_p12)
}
 0xd23   : > { %9201 = dma.vmem_to_hbm [thread:$0]  (%p11714_p5), %s7055_s6, 16, %s7052_s10, %s7026_s12  }
 0xd24 PF: > { %s11715_s9 = sld [smem:[#allocation67_spill]] }
 0xd25   : > { %s11716_s2 = sld [smem:[#allocation65_spill]] }
 0xd26   : > { %s11717_s15 = sld [smem:[#allocation70_spill]] }
 0xd2a   : > { %p9287_p2 = scmp.ge.s32.totalorder %s11715_s9, 2 }
 0xd2b   : > { %s7066_s0 = sand.u32 1, %s11716_s2  }
 0xd2c   : > { %p11718_p10 = scmp.ne.s32.totalorder %s11717_s15, 0  ;;  %s7067_s8 = scalar_lea.sflag [#allocation8], %s7066_s0 }
 0xd2e   : > { %p9251_p4 = pnand %p9287_p2, %p11718_p10 }
 0xd30   : > { %p9252_p7 = pneg %p9251_p4 }
 0xd32   : > { %10165 = dma.done.wait (%p9252_p7), %s7067_s8, 16  }
 0xd33   : > { %10167 = vsyncadd (%p9252_p7), %s7067_s8, 4294967280  ;;  %s7081_s11 = scalar_lea.sflag [#allocation32], %s7066_s0 }
 0xd34   : > { %10169 = dma.done.wait (%p9252_p7), %s7081_s11, 16  }
 0xd35   : > { %10171 = vsyncadd (%p9252_p7), %s7081_s11, 4294967280  ;;  %s11719_s0 = sld [smem:[#allocation68_spill]]  ;;  %s11722_s28 = smov %s10178_s1 }
 0xd36   : > { %s11720_s4 = sld [smem:[#allocation66_spill]] }
 0xd37   : > { %s11721_s2 = sld [smem:[#allocation69_spill]] }
 0xd3b   : > { %p89_p5 = scmp.ge.s32.totalorder %s11719_s0, 4  }
 0xd3c   : > { %s11723_s1 = smov %s11720_s4 }
 0xd3d   :  { %91 = sbr.rel (!%p89_p5) target bundleno = 71 (0x47), region = 341 }
 0xd42   :  { %7085 = vsyncpa [#allocation7], 1 }
 0xd43   :  { %7087 = vsyncpa [#allocation7 + $0x1], 1 }
 0xd44   :  { %7088 = vsyncpa [#allocation10], 1 }
 0xd45   :  { %7089 = vsyncpa [#allocation13], 1 }
 0xd46   :  { %7090 = vsyncpa [#allocation16], 1 }
 0xd47   :  { %7091 = vsyncpa [#allocation19], 1 }
 0xd48   :  { %7092 = vsyncpa [#allocation22], 1 }
 0xd49   :  { %7093 = vsyncpa [#allocation25], 1 }
 0xd4a   :  { %7094 = vsyncpa [#allocation28], 1 }
 0xd4b   :  { %7095 = vsyncpa [#allocation8], 1 }
 0xd4c   :  { %7097 = vsyncpa [#allocation8 + $0x1], 1 }
 0xd4d   :  { %7098 = vsyncpa [#allocation32], 1 }
 0xd4e   :  { %7100 = vsyncpa [#allocation32 + $0x1], 1 }

// kernel: autoencoder_forward.3
= control target key start
LH: loop header
LB: loop body
LE: loop exit
PB: predicated region body
PF: predicated region fallthrough
CT: control target
= control target key end

     0   :  { %s11342_s0 = inlined_call_operand.vmem [shape: f32[2,16,8], index: 0, kind: input, shape index: {}]   ;;  %s11343_s1 = inlined_call_operand.vmem [shape: bf16[8,8,64], index: 1, kind: input, shape index: {}]   ;;  %s11344_s2 = inlined_call_operand.vmem [shape: f32[1,64], index: 2, kind: input, shape index: {}]   ;;  %s11345_s3 = inlined_call_operand.vmem [shape: bf16[5,64,64], index: 3, kind: input, shape index: {}]   ;;  %s11346_s4 = inlined_call_operand.vmem [shape: f32[1,64], index: 4, kind: input, shape index: {}]   ;;  %s11347_s5 = inlined_call_operand.vmem [shape: bf16[3,64,64], index: 5, kind: input, shape index: {}]   ;;  %s11348_s6 = inlined_call_operand.vmem [shape: f32[1,64], index: 6, kind: input, shape index: {}]   ;;  %s11349_s7 = inlined_call_operand.vmem [shape: bf16[1,8,64], index: 7, kind: input, shape index: {}]   ;;  %s11350_s8 = inlined_call_operand.vmem [shape: f32[1,64], index: 8, kind: input, shape index: {}]   ;;  %s11351_s9 = inlined_call_operand.vmem [shape: bf16[8,64,128], index: 9, kind: input, shape index: {}]   ;;  %s11352_s10 = inlined_call_operand.vmem [shape: f32[1,128], index: 10, kind: input, shape index: {}]   ;;  %s11353_s11 = inlined_call_operand.vmem [shape: bf16[5,128,128], index: 11, kind: input, shape index: {}]   ;;  %s11354_s12 = inlined_call_operand.vmem [shape: f32[1,128], index: 12, kind: input, shape index: {}]   ;;  %s11355_s13 = inlined_call_operand.vmem [shape: bf16[3,128,128], index: 13, kind: input, shape index: {}]   ;;  %s11356_s14 = inlined_call_operand.vmem [shape: f32[1,128], index: 14, kind: input, shape index: {}]   ;;  %s11357_s15 = inlined_call_operand.vmem [shape: bf16[1,64,128], index: 15, kind: input, shape index: {}]   ;;  %s11358_s16 = inlined_call_operand.vmem [shape: f32[1,128], index: 16, kind: input, shape index: {}]   ;;  %s11359_s17 = inlined_call_operand.vmem [shape: bf16[8,128,128], index: 17, kind: input, shape index: {}]   ;;  %s11360_s18 = inlined_call_operand.vmem [shape: f32[1,128], index: 18, kind: input, shape index: {}]   ;;  %s11361_s19 = inlined_call_operand.vmem [shape: bf16[5,128,128], index: 19, kind: input, shape index: {}]   ;;  %s11362_s20 = inlined_call_operand.vmem [shape: f32[1,128], index: 20, kind: input, shape index: {}]   ;;  %s11363_s21 = inlined_call_operand.vmem [shape: bf16[3,128,128], index: 21, kind: input, shape index: {}]   ;;  %s11364_s22 = inlined_call_operand.vmem [shape: f32[1,128], index: 22, kind: input, shape index: {}]   ;;  %s11365_s23 = inlined_call_operand.vmem [shape: bf16[1,128,128], index: 23, kind: input, shape index: {}]   ;;  %s11366_s24 = inlined_call_operand.vmem [shape: f32[1,128], index: 24, kind: input, shape index: {}]   ;;  %s11367_s25 = inlined_call_operand.vmem [shape: bf16[3,128,8], index: 25, kind: input, shape index: {}]   ;;  %s11368_s26 = inlined_call_operand.vmem [shape: f32[1,8], index: 26, kind: input, shape index: {}]   ;;  %s11369_s27 = inlined_call_operand.vmem [shape: f32[16,1], index: 27, kind: input, shape index: {}]   ;;  %s11370_s28 = inlined_call_operand.vmem [shape: f32[2,16,8], index: 28, kind: output, shape index: {}]  }
   0x1   :  { %11380 = sst [smem:[#allocation6_spill]] %s11342_s0 }
   0x2   :  { %11381 = sst [smem:[#allocation7_spill]] %s11343_s1 }
   0x3   :  { %11382 = sst [smem:[#allocation8_spill]] %s11344_s2 }
   0x4   :  { %11383 = sst [smem:[#allocation9_spill]] %s11345_s3 }
   0x5   :  { %11384 = sst [smem:[#allocation10_spill]] %s11346_s4 }
   0x6   :  { %11385 = sst [smem:[#allocation11_spill]] %s11347_s5 }
   0x7   :  { %11386 = sst [smem:[#allocation12_spill]] %s11348_s6 }
   0x8   :  { %11387 = sst [smem:[#allocation13_spill]] %s11349_s7 }
   0x9   :  { %11388 = sst [smem:[#allocation14_spill]] %s11350_s8  ;;  %s9646_s8 = smov 0  }
   0xa   :  { %11389 = sst [smem:[#allocation15_spill]] %s11351_s9 }
   0xb   :  { %11390 = sst [smem:[#allocation16_spill]] %s11352_s10 }
   0xc   :  { %11391 = sst [smem:[#allocation17_spill]] %s11353_s11 }
   0xd   :  { %11392 = sst [smem:[#allocation18_spill]] %s11354_s12 }
   0xe LB: > { %s7056_s5 = sadd.s32 4294967295, %s9497_s8   ;;  %p7060_p0 = scmp.ge.s32.totalorder %s9497_s8, 1  ;;  %s9497_s8 = sphi %s9646_s8, %s38_s8  }
   0xf   : > { %p762_p1 = scmp.lt.s32.totalorder %s9497_s8, 3 }
  0x11   : > { %p763_p2 = pnand %p7060_p0, %p762_p1 }
  0x12   : > { %s11393_s30 = sld [smem:[#allocation7_spill]] (!%p763_p2)  ;;  %p836_p3 = scmp.lt.s32.totalorder (!%p763_p2), %s7056_s5, 1 }
  0x13   : > { %766 = sbr.rel (%p763_p2) target bundleno = 2774 (0xad6), region = 132  ;;  %s11398_s29 = sld [smem:[#allocation6_spill]] (!%p763_p2) }
  0x14   : > { %s11403_s1 = sld [smem:[#allocation9_spill]] (!%p763_p2) }
  0x15   : > { %s11404_s0 = sld [smem:[#allocation8_spill]] (!%p763_p2) }
  0x16   : > { %s11409_s12 = sld [smem:[#allocation11_spill]] (!%p763_p2) }
  0x17   : > { %s11410_s11 = sld [smem:[#allocation10_spill]] (!%p763_p2) }
  0x18   : > { %v927_v0 = vld [vmem:[%s11393_s30] sm:$0xf]  ;;  %vm11379_vm0 = vcmask 1043456   ;;  %v9499_v1 = vmov 0.0   ;;  %v7067_v3 = vld [vmem:[%s11393_s30 + $0x4] sm:$0xf] }
  0x19   : > { %8312 = vmatprep.subr.bf16.mxu1 %v9499_v1  ;;  %v1004_v2 = vsel %vm11379_vm0, %v927_v0, 0  ;;  %8306 = vmatprep.subr.bf16.mxu0 %v9499_v1  ;;  %vm847_vm1 = vcmask 1041408   ;;  %vm853_vm2 = vcmask 1043457   ;;  %vm9500_vm3 = vmmov 0   ;;  %v850_v5 = vld [vmem:[#allocation2] sm:$0x3] }
  0x1a   : > { %8313 = vmatpush3.bf16.msra.mxu1 %v1004_v2  ;;  %8314 = vmatprep.mubr.msk.bf16.mxu1 %vm9500_vm3, %v9499_v1  ;;  %v958_v4 = vsel %vm11379_vm0, %v7067_v3, 0  ;;  %vm848_vm4 = vsmask.f32 1280  ;;  %s11427_s5 = smov (!%p836_p3, %s7056_s5), 1  ;;  %vm854_vm6 = vsmask.f32 7942 }
  0x1b   : > { %8307 = vmatpush3.bf16.msra.mxu0 %v958_v4  ;;  %vm9669_vm5 = vmand %vm847_vm1, %vm848_vm4  ;;  %8308 = vmatprep.mubr.msk.bf16.mxu0 %vm9500_vm3, %v9499_v1  ;;  %v856_v9 = vld [vmem:[#allocation2 + $0x8] sm:$0xe]  ;;  %s7929_s10 = sshll.u32 %s11427_s5, 4  ;;  %vm913_vm8 = vcmask 60417   ;;  %vm889_vm9 = vsmask.f32 5392 }
  0x1c   : > { %v851_v7 = vsel %vm9669_vm5, 0, %v850_v5  ;;  %vm9678_vm7 = vmand %vm853_vm2, %vm854_vm6  ;;  %8318 = vmatprep.subr.bf16.mxu0 %v9499_v1  ;;  %8324 = vmatprep.subr.bf16.mxu1 %v9499_v1  ;;  %s840_s2 = scalar_lea.vmem %s11398_s29, %s7929_s10  ;;  %v7072_v11 = vld [vmem:[%s11393_s30 + $0x8] sm:$0xf]  ;;  %v7075_v14 = vld [vmem:[%s11393_s30 + $0xc] sm:$0xf]  ;;  %vm918_vm10 = vcmask 60416   ;;  %s845_s6 = scalar_lea.vmem %s11370_s28, %s7929_s10 }
  0x1d   : > { %852 = vst [vmem:[#allocation2] sm:$0x3] %v851_v7  ;;  %v857_v10 = vsel %vm9678_vm7, 0, %v856_v9  ;;  %v881_v12 = vld [vmem:[%s840_s2] sm:$0xff]  ;;  %v882_v13 = vld [vmem:[%s840_s2 + $0x8] sm:$0xff]  ;;  %vm920_vm11 = vcmask 58368   ;;  %vm9711_vm12 = vmor %vm848_vm4, %vm889_vm9 }
  0x1e   : > { %858 = vst [vmem:[#allocation2 + $0x8] sm:$0xe] %v857_v10  ;;  %v7931_v15 = vpack.c.bf16 %v881_v12, %v881_v12  ;;  %v7932_v16 = vpack.c.bf16 %v882_v13, %v882_v13  ;;  %v7078_v17 = vld [vmem:[%s11393_s30 + $0x10] sm:$0xf]  ;;  %v7081_v18 = vld [vmem:[%s11393_s30 + $0x14] sm:$0xf]  ;;  %vm9717_vm13 = vmand %vm913_vm8, %vm854_vm6 }
  0x1f   : > { %v7084_v19 = vld [vmem:[%s11393_s30 + $0x18] sm:$0xf]  ;;  %v9708_v20 = vsel %vm11379_vm0, %v7072_v11, 0  ;;  %v1134_v27 = vsel %vm11379_vm0, %v7075_v14, 0  ;;  %v9723_v28 = vsel %vm11379_vm0, %v7078_v17, 0  ;;  %v9726_v29 = vsel %vm11379_vm0, %v7081_v18, 0  ;;  %vm921_vm14 = vmand %vm920_vm11, %vm848_vm4 }
  0x20   : > { %v892_v22 = vshrl.u32 %v7931_v15, 16  ;;  %v895_v23 = vshll.u32 %v7931_v15, 16  ;;  %v901_v24 = vshrl.u32 %v7932_v16, 16  ;;  %v904_v25 = vshll.u32 %v7932_v16, 16  ;;  %v7087_v44 = vld [vmem:[%s11393_s30 + $0x1c] sm:$0xf] }
  0x21   : > { %v9729_v30 = vsel %vm11379_vm0, %v7084_v19, 0  ;;  %vm11378_vm15 = vcmask 64512   ;;  %vm939_vm1 = vsmask.f32 7424  ;;  %vm1112_vm2 = vsmask.f32 6400 }
  0x22   : > { %v894_v31 = vrot.slane %v892_v22, 6  ;;  %v897_v32 = vrot.slane %v895_v23, 7  ;;  %v903_v33 = vrot.slane %v901_v24, 6  ;;  %v906_v34 = vrot.slane %v904_v25, 7  ;;  %s11411_s7 = sld [smem:[#allocation13_spill]] }
  0x23   : > { %v9752_v56 = vsel %vm11379_vm0, %v7087_v44, 0  ;;  %vm1053_vm8 = vcmask 1046528   ;;  %vm1244_vm9 = vsmask.f32 5376  ;;  %vm11377_vm11 = vsmask.f32 4352 }
  0x24   : > { %v915_v35 = vld [vmem:[#allocation2] sm:$0xe]  ;;  %v898_v37 = vor.u32 %v897_v32, %v894_v31  ;;  %v907_v38 = vor.u32 %v906_v34, %v903_v33  ;;  %s11414_s4 = sld [smem:[#allocation15_spill]] }
  0x25   : > { %v922_v36 = vld [vmem:[#allocation2 + $0x8] sm:$0x3]  ;;  %s11415_s2 = sld [smem:[#allocation14_spill]] }
  0x26   : > { %v899_v39 = vrot.slane %v898_v37, 4  ;;  %v916_v40 = vsel %vm9717_vm13, %v898_v37, %v915_v35  ;;  %v909_v41 = vrot.slane %v907_v38, 4  ;;  %vm11376_vm13 = vcmask 1044480   ;;  %s11416_s27 = sld [smem:[#allocation12_spill]] }
  0x27   : > { %917 = vst [vmem:[#allocation2] sm:$0xe] %v916_v40  ;;  %s11421_s3 = sld [smem:[#allocation18_spill]] }
  0x28   : > { %v908_v42 = vsel %vm9711_vm12, %v899_v39, %v907_v38  ;;  %v923_v43 = vsel %vm921_vm14, %v909_v41, %v922_v36  ;;  %vm1482_vm14 = vcmask 519169  }
  0x29   : > { %919 = vst.msk [vmem:[#allocation2 + $0x4] sm:$0xf] %vm918_vm10, %v908_v42  ;;  %924 = vst [vmem:[#allocation2 + $0x8] sm:$0x3] %v923_v43  ;;  %vm1185_vm10 = vcmask 1045504  }
  0x2e   : > { %v925_v45 = vld [vmem:[#allocation2] sm:$0xf] }
  0x2f   : > { %v1047_v46 = vld [vmem:[#allocation2] sm:$0xe] }
  0x30   : > { %v1179_v47 = vld [vmem:[#allocation2] sm:$0xc]  ;;  %v926_v49 = vld [vmem:[#allocation2 + $0x4] sm:$0xf]  ;;  %v9142_v7 = vld [vmem:[#allocation2 + $0x8] ss:$0 sps:$4 sm:$0xff]  }
  0x31   : > { %v1311_v48 = vld [vmem:[#allocation2] sm:$0x8]  ;;  %v7068_v50 = vcombine.low %v925_v45, %v926_v49  ;;  %v9741_v51 = vld [vmem:[#allocation2 + $0x8] ss:$0 sps:$4 sm:$0x11]   ;;  %v9743_v52 = vcombine.low %v1047_v46, %v926_v49  ;;  %v9747_v54 = vcombine.low %v1179_v47, %v926_v49  ;;  %v1386_v35 = vshrl.u32 %v9142_v7, 16 }
  0x32   : > { %v9745_v53 = vld [vmem:[#allocation2 + $0x8] ss:$0 sps:$4 sm:$0x33]   ;;  %v948_v59 = vshll.u32 %v9741_v51, 16  ;;  %v9762_v0 = vcombine.low %v1311_v48, %v926_v49  ;;  %v1055_v23 = vrot.slane %v9741_v51, 1  ;;  %v1389_v36 = vshll.u32 %v9142_v7, 16 }
  0x33   : > { %v9749_v55 = vld [vmem:[#allocation2 + $0x8] ss:$0 sps:$4 sm:$0x77]   ;;  %8315 = vmatmul.mubr.msk.bf16.vlgmr.msra.gmra.mxu1 %vm11378_vm15, %v7068_v50  ;;  %v941_v57 = vshrl.u32 %v7068_v50, 16  ;;  %v943_v58 = vshll.u32 %v7068_v50, 16  ;;  %v1114_v60 = vshrl.u32 %v9743_v52, 16 }
  0x34   : > { %8325 = vmatpush3.bf16.msra.mxu1 %v1134_v27  ;;  %8326 = vmatprep.mubr.msk.bf16.mxu1 %vm9500_vm3, %v9499_v1  ;;  %v1117_v61 = vshll.u32 %v9743_v52, 16  ;;  %v1122_v62 = vshrl.u32 %v9745_v53, 16  ;;  %v1125_v63 = vshll.u32 %v9745_v53, 16  ;;  %v950_v3 = vrot.slane %v948_v59, 1  ;;  %v860_v49 = vld [vmem:[#allocation3] sm:$0x3] }
  0x35   : > { %v945_v2 = vrot.slane %v943_v58, 1  ;;  %v1116_v4 = vrot.slane %v1114_v60, 1  ;;  %v1054_v5 = vrot.slane %v9743_v52, 1  ;;  %8336 = vmatprep.subr.bf16.mxu1 %v9499_v1  ;;  %v1246_v12 = vshrl.u32 %v9747_v54, 16  ;;  %v863_v50 = vld [vmem:[#allocation3 + $0x8] sm:$0xe] }
  0x36   : > { %v1119_v9 = vrot.slane %v1117_v61, 2  ;;  %v1124_v10 = vrot.slane %v1122_v62, 1  ;;  %v1127_v11 = vrot.slane %v1125_v63, 2  ;;  %v1249_v14 = vshll.u32 %v9747_v54, 16  ;;  %v9143_v52 = vld [vmem:[%s11403_s1 + $0x38] sm:$0xff]   ;;  %v9149_v58 = vld [vmem:[%s11403_s1 + $0x20] sm:$0xff]  }
  0x37   : > { %v946_v13 = vor.u32 %v945_v2, %v941_v57  ;;  %v1254_v15 = vshrl.u32 %v9749_v55, 16  ;;  %v1248_v18 = vrot.slane %v1246_v12, 2  ;;  %v1257_v19 = vshll.u32 %v9749_v55, 16  ;;  %v9148_v57 = vld [vmem:[%s11403_s1 + $0x8] sm:$0xff]   ;;  %v9150_v59 = vld [vmem:[%s11403_s1] sm:$0xff]  }
  0x38   : > { %v1120_v16 = vor.u32 %v1119_v9, %v1116_v4  ;;  %v1128_v17 = vor.u32 %v1127_v11, %v1124_v10  ;;  %v1251_v24 = vrot.slane %v1249_v14, 3  ;;  %v1186_v31 = vrot.slane %v9747_v54, 2  ;;  %v9145_v54 = vld [vmem:[%s11403_s1 + $0x30] sm:$0xff]  }
  0x39   : > { %v951_v22 = vsel %vm939_vm1, %v946_v13, %v950_v3  ;;  %v1256_v25 = vrot.slane %v1254_v15, 2  ;;  %v1259_v27 = vrot.slane %v1257_v19, 3  ;;  %v1378_v32 = vshrl.u32 %v9762_v0, 16 }
  0x3a   : > { %8309 = vmatmul.mubr.msk.bf16.vlgmr.msra.gmra.mxu0 %vm11378_vm15, %v951_v22  ;;  %v1129_v26 = vsel %vm1112_vm2, %v1120_v16, %v1128_v17  ;;  %v1187_v33 = vrot.slane %v9745_v53, 2  ;;  %v1381_v34 = vshll.u32 %v9762_v0, 16  ;;  %v1252_v37 = vor.u32 %v1251_v24, %v1248_v18  ;;  %v9144_v53 = vld [vmem:[%s11403_s1 + $0x18] sm:$0xff]  }
  0x3b   : > { %8319 = vmatpush3.bf16.msra.mxu0 %v9708_v20  ;;  %8327 = vmatmul.mubr.msk.bf16.vlgmr.msra.gmra.mxu1 %vm11378_vm15, %v1129_v26  ;;  %v1260_v38 = vor.u32 %v1259_v27, %v1256_v25  ;;  %v1380_v39 = vrot.slane %v1378_v32, 3  ;;  %v1318_v40 = vrot.slane %v9762_v0, 3  ;;  %v1388_v41 = vrot.slane %v1386_v35, 3 }
  0x3c   : > { %8320 = vmatprep.mubr.msk.bf16.mxu0 %vm9500_vm3, %v9499_v1  ;;  %8330 = vmatprep.subr.bf16.mxu0 %v9499_v1  ;;  %v1383_v20 = vrot.slane %v1381_v34, 4  ;;  %v1391_v42 = vrot.slane %v1389_v36, 4  ;;  %v1319_v43 = vrot.slane %v9749_v55, 3  ;;  %v1056_v44 = vsel %vm1053_vm8, %v1054_v5, %v1055_v23  ;;  %v9146_v55 = vld [vmem:[%s11403_s1 + $0x10] sm:$0xff]  }
  0x3d   : > { %8337 = vmatpush3.bf16.msra.mxu1 %v9726_v29  ;;  %8338 = vmatprep.mubr.msk.bf16.mxu1 %vm9500_vm3, %v9499_v1  ;;  %v1261_v45 = vsel %vm1244_vm9, %v1252_v37, %v1260_v38  ;;  %v1188_v47 = vsel %vm1185_vm10, %v1186_v31, %v1187_v33  ;;  %v864_v51 = vsel %vm9678_vm7, 0, %v863_v50 }
  0x3e   : > { %8348 = vmatprep.subr.bf16.mxu1 %v9499_v1  ;;  %v1384_v29 = vor.u32 %v1383_v20, %v1380_v39  ;;  %v1392_v46 = vor.u32 %v1391_v42, %v1388_v41  ;;  %v1320_v48 = vsel %vm11376_vm13, %v1318_v40, %v1319_v43  ;;  %865 = vst [vmem:[#allocation3 + $0x8] sm:$0xe] %v864_v51  ;;  %v7090_v42 = vld [vmem:[%s11404_s0] ss:$0 sm:$0xff]  ;;  %vm9855_vm13 = vmand %vm1482_vm14, %vm854_vm6  ;;  %vm11412_vm6 = vcmask 1043456  }
  0x42   : > { %8321 = vmatmul.mubr.msk.bf16.vlgmr.msra.gmra.mxu0 %vm11378_vm15, %v1056_v44 }
  0x43   : > { %8331 = vmatpush3.bf16.msra.mxu0 %v9723_v28  ;;  %8339 = vmatmul.mubr.msk.bf16.vlgmr.msra.gmra.mxu1 %vm11378_vm15, %v1261_v45  ;;  %v1393_v28 = vsel %vm11377_vm11, %v1384_v29, %v1392_v46  ;;  %vm1489_vm11 = vcmask 517120  }
  0x44   : > { %8332 = vmatprep.mubr.msk.bf16.mxu0 %vm9500_vm3, %v9499_v1  ;;  %8342 = vmatprep.subr.bf16.mxu0 %v9499_v1  ;;  %vm9862_vm0 = vmand %vm1489_vm11, %vm848_vm4  ;;  %vm1550_vm4 = vcmask 523264   ;;  %vm11413_vm11 = vcmask 64512  }
  0x45   : > { %8349 = vmatpush3.bf16.msra.mxu1 %v9752_v56  ;;  %8350 = vmatprep.mubr.msk.bf16.mxu1 %vm9500_vm3, %v9499_v1  ;;  %v9147_v56 = vld [vmem:[%s11403_s1 + $0x28] sm:$0xff]  }
  0x46   : > { %8366 = vmatprep.subr.bf16.mxu1 %v9499_v1 }
  0x4a   : > { %8333 = vmatmul.mubr.msk.bf16.vlgmr.msra.gmra.mxu0 %vm11378_vm15, %v1188_v47 }
  0x4b   : > { %8343 = vmatpush3.bf16.msra.mxu0 %v9729_v30  ;;  %8351 = vmatmul.mubr.msk.bf16.vlgmr.msra.gmra.mxu1 %vm11378_vm15, %v1393_v28  ;;  %v861_v30 = vsel %vm9669_vm5, 0, %v860_v49 }
  0x4c   : > { %8344 = vmatprep.mubr.msk.bf16.mxu0 %vm9500_vm3, %v9499_v1  ;;  %8354 = vmatprep.subr.bf16.mxu0 %v9499_v1  ;;  %862 = vst [vmem:[#allocation3] sm:$0x3] %v861_v30 }
  0x4d   : > { %8374 = vmatprep.mubr.msk.bf16.mxu1 %vm9500_vm3, %v9499_v1  ;;  %8367 = vmatpush3.bf16.msra.mxu1 %v9144_v53 }
  0x4e   : > { %8368 = vmatprep.subr.bf16.mxu1 %v9499_v1 }
  0x51   : > { %8369 = vmatpush3.bf16.msra.mxu1 %v9146_v55 }
  0x52   : > { %8345 = vmatmul.mubr.msk.bf16.vlgmr.msra.gmra.mxu0 %vm11378_vm15, %v1320_v48  ;;  %8370 = vmatprep.subr.bf16.mxu1 %v9499_v1  ;;  %vm1487_vm15 = vcmask 519168  }
  0x53   : > { %8362 = vmatprep.mubr.msk.bf16.mxu0 %vm9500_vm3, %v9499_v1  ;;  %8355 = vmatpush3.bf16.msra.mxu0 %v9143_v52 }
  0x54   : > { %8356 = vmatprep.subr.bf16.mxu0 %v9499_v1 }
  0x55   : > { %8371 = vmatpush3.bf16.msra.mxu1 %v9148_v57  ;;  %v9195_v57 = vld [vmem:[%s11414_s4 + $0x78] sm:$0xff]  }
  0x56   : > { %8372 = vmatprep.subr.bf16.mxu1 %v9499_v1 }
  0x57   : > { %8357 = vmatpush3.bf16.msra.mxu0 %v9145_v54 }
  0x58   : > { %8358 = vmatprep.subr.bf16.mxu0 %v9499_v1 }
  0x59   : > { %8373 = vmatpush3.bf16.msra.mxu1 %v9150_v59 }
  0x5a   : > { %8390 = vmatprep.subr.bf16.mxu1 %v9499_v1 }
  0x5b   : > { %8359 = vmatpush3.bf16.msra.mxu0 %v9147_v56 }
  0x5c   : > { %8360 = vmatprep.subr.bf16.mxu0 %v9499_v1 }
  0x5f   : > { %8361 = vmatpush3.bf16.msra.mxu0 %v9149_v58  ;;  %v1484_v58 = vld [vmem:[#allocation3] sm:$0xe] }
  0x60   : > { %8378 = vmatprep.subr.bf16.mxu0 %v9499_v1 }
  0xf3   : > { %v1040_v60 = vpop.f32.mrf.mxu1 }
  0xf5   : > { %v8316_v61 = vpop.f32.mrf.mxu1 }
  0xf7   : > { %v1043_v62 = vpop.f32.mrf.mxu1 }
  0xf9   : > { %v8317_v63 = vpop.f32.mrf.mxu1 }
  0xfa   : > { %v994_v0 = vpop.f32.mrf.mxu0 }
  0xfb   : > { %v1170_v2 = vpop.f32.mrf.mxu1  ;;  %v1041_v14 = vadd.f32 %v1040_v60, %v994_v0 }
  0xfc   : > { %v8310_v3 = vpop.f32.mrf.mxu0 }
  0xfd   : > { %v8328_v4 = vpop.f32.mrf.mxu1 }
  0xfe   : > { %v997_v5 = vpop.f32.mrf.mxu0 }
  0xff   : > { %v1173_v7 = vpop.f32.mrf.mxu1  ;;  %v1044_v22 = vadd.f32 %v1043_v62, %v997_v5  ;;  %v1491_v5 = vld [vmem:[#allocation3 + $0x8] sm:$0x3] }
 0x100   : > { %v8311_v9 = vpop.f32.mrf.mxu0 }
 0x101   : > { %v8329_v10 = vpop.f32.mrf.mxu1 }
 0x102   : > { %v1097_v11 = vpop.f32.mrf.mxu0 }
 0x103   : > { %v1302_v12 = vpop.f32.mrf.mxu1  ;;  %v1104_v17 = vadd.f32 %v1097_v11, %v1041_v14 }
 0x104   : > { %v8322_v13 = vpop.f32.mrf.mxu0 }
 0x105   : > { %v8340_v15 = vpop.f32.mrf.mxu1  ;;  %v1177_v26 = vadd.f32 %v1170_v2, %v1104_v17 }
 0x106   : > { %v1100_v16 = vpop.f32.mrf.mxu0 }
 0x107   : > { %v1305_v18 = vpop.f32.mrf.mxu1  ;;  %v1105_v25 = vadd.f32 %v1100_v16, %v1044_v22  ;;  %v9153_v22 = vld [vmem:[%s11403_s1 + $0x58] sm:$0xff]  }
 0x108   : > { %v8323_v19 = vpop.f32.mrf.mxu0 }
 0x109   : > { %v8341_v23 = vpop.f32.mrf.mxu1  ;;  %v1178_v35 = vadd.f32 %v1173_v7, %v1105_v25 }
 0x10a   : > { %v1229_v24 = vpop.f32.mrf.mxu0 }
 0x10b   : > { %v1434_v27 = vpop.f32.mrf.mxu1  ;;  %v1236_v32 = vadd.f32 %v1229_v24, %v1177_v26 }
 0x10c   : > { %v8334_v31 = vpop.f32.mrf.mxu0 }
 0x10d   : > { %v8352_v33 = vpop.f32.mrf.mxu1  ;;  %v1309_v39 = vadd.f32 %v1302_v12, %v1236_v32 }
 0x10e   : > { %v1232_v34 = vpop.f32.mrf.mxu0  ;;  %v9155_v33 = vld [vmem:[%s11403_s1 + $0x78] sm:$0xff]  }
 0x10f   : > { %v1437_v36 = vpop.f32.mrf.mxu1  ;;  %v1237_v38 = vadd.f32 %v1232_v34, %v1178_v35  ;;  %v9156_v34 = vld [vmem:[%s11403_s1 + $0x50] sm:$0xff]  }
 0x110   : > { %v8335_v37 = vpop.f32.mrf.mxu0 }
 0x111   : > { %v8353_v40 = vpop.f32.mrf.mxu1  ;;  %v1310_v45 = vadd.f32 %v1305_v18, %v1237_v38 }
 0x112   : > { %v1361_v20 = vpop.f32.mrf.mxu0  ;;  %v9157_v40 = vld [vmem:[%s11403_s1 + $0x70] sm:$0xff]  }
 0x113   : > { %v1368_v41 = vadd.f32 %v1361_v20, %v1309_v39  ;;  %v9158_v20 = vld [vmem:[%s11403_s1 + $0x48] sm:$0xff]  }
 0x114   : > { %v8346_v43 = vpop.f32.mrf.mxu0 }
 0x115   : > { %v1441_v44 = vadd.f32 %v1434_v27, %v1368_v41 }
 0x116   : > { %v1364_v29 = vpop.f32.mrf.mxu0 }
 0x117   : > { %v1450_v46 = vadd.f32 %v7090_v42, %v1441_v44  ;;  %v1369_v47 = vadd.f32 %v1364_v29, %v1310_v45  ;;  %v9159_v45 = vld [vmem:[%s11403_s1 + $0x68] sm:$0xff]   ;;  %v9160_v29 = vld [vmem:[%s11403_s1 + $0x40] sm:$0xff]  }
 0x118   : > { %v8347_v28 = vpop.f32.mrf.mxu0 }
 0x119   : > { %v1452_v48 = vmax.f32 %v1450_v46, 0.0  ;;  %v1442_v49 = vadd.f32 %v1437_v36, %v1369_v47 }
 0x11b   : > { %v7933_v30 = vpack.c.bf16 %v1452_v48, %v1452_v48  ;;  %v1451_v50 = vadd.f32 %v7090_v42, %v1442_v49  ;;  %v9161_v49 = vld [vmem:[%s11403_s1 + $0x60] sm:$0xff]  }
 0x11d   : > { %v1461_v51 = vshrl.u32 %v7933_v30, 16  ;;  %v1464_v52 = vshll.u32 %v7933_v30, 16  ;;  %v1453_v53 = vmax.f32 %v1451_v50, 0.0  ;;  %v9163_v30 = vld [vmem:[%s11403_s1 + $0x98] sm:$0xff]  }
 0x11f   : > { %v1463_v54 = vrot.slane %v1461_v51, 6  ;;  %v1466_v55 = vrot.slane %v1464_v52, 7  ;;  %v7934_v56 = vpack.c.bf16 %v1453_v53, %v1453_v53 }
 0x121   : > { %v1467_v59 = vor.u32 %v1466_v55, %v1463_v54  ;;  %v1470_v60 = vshrl.u32 %v7934_v56, 16  ;;  %v1473_v61 = vshll.u32 %v7934_v56, 16  ;;  %v9165_v54 = vld [vmem:[%s11403_s1 + $0x90] sm:$0xff]  }
 0x123   : > { %v1485_v62 = vsel %vm9855_vm13, %v1467_v59, %v1484_v58  ;;  %v1472_v63 = vrot.slane %v1470_v60, 6  ;;  %v1475_v0 = vrot.slane %v1473_v61, 7  ;;  %v1468_v2 = vrot.slane %v1467_v59, 4  ;;  %v9166_v61 = vld [vmem:[%s11403_s1 + $0x88] sm:$0xff]  }
 0x124   : > { %1486 = vst [vmem:[#allocation3] sm:$0xe] %v1485_v62 }
 0x125   : > { %v1476_v3 = vor.u32 %v1475_v0, %v1472_v63 }
 0x127   : > { %v1477_v7 = vsel %vm9711_vm12, %v1468_v2, %v1476_v3  ;;  %v1478_v9 = vrot.slane %v1476_v3, 4  ;;  %v9167_v3 = vld [vmem:[%s11403_s1 + $0x80] sm:$0xff]  }
 0x128   : > { %1488 = vst.msk [vmem:[#allocation3 + $0x4] sm:$0xf] %vm1487_vm15, %v1477_v7 }
 0x129   : > { %v1492_v10 = vsel %vm9862_vm0, %v1478_v9, %v1491_v5 }
 0x12a   : > { %1493 = vst [vmem:[#allocation3 + $0x8] sm:$0x3] %v1492_v10  ;;  %v867_v10 = vld [vmem:[#allocation4] sm:$0x3] }
 0x12b   : > { %v1505_v12 = vld [vmem:[#allocation3] sm:$0xe] }
 0x12c   : > { %v1494_v13 = vld [vmem:[#allocation3] sm:$0xf] }
 0x12d   : > { %v1778_v46 = vld [vmem:[#allocation3] sm:$0xc] }
 0x12f   : > { %v1495_v11 = vld [vmem:[#allocation3 + $0x4] sm:$0xf] }
 0x130   : > { %v7101_v14 = vcombine.low %v1505_v12, %v1495_v11  ;;  %v7108_v15 = vcombine.low %v1494_v13, %v1495_v11  ;;  %v7136_v47 = vcombine.low %v1778_v46, %v1495_v11  ;;  %v868_v11 = vsel %vm9669_vm5, 0, %v867_v10  ;;  %v870_v12 = vld [vmem:[#allocation4 + $0x8] sm:$0xe] }
 0x131   : > { %v9152_v16 = vld [vmem:[#allocation3 + $0x8] ss:$0 sps:$4 sm:$0x11]   ;;  %869 = vst [vmem:[#allocation4] sm:$0x3] %v868_v11  ;;  %v871_v13 = vsel %vm9678_vm7, 0, %v870_v12 }
 0x132   : > { %v1523_v17 = vrot.slane %v7101_v14, 1  ;;  %v1601_v18 = vshll.u32 %v7108_v15, 16  ;;  %v1524_v19 = vrot.slane %v9152_v16, 1  ;;  %v1606_v23 = vshll.u32 %v9152_v16, 16  ;;  %872 = vst [vmem:[#allocation4 + $0x8] sm:$0xe] %v871_v13 }
 0x133   : > { %v1599_v24 = vshrl.u32 %v7108_v15, 16  ;;  %v9162_v31 = vld [vmem:[#allocation3 + $0x8] ss:$0 sps:$4 sm:$0x33]   ;;  %v1692_v36 = vshrl.u32 %v7101_v14, 16  ;;  %v1695_v37 = vshll.u32 %v7101_v14, 16 }
 0x134   : > { %v1603_v25 = vrot.slane %v1601_v18, 1  ;;  %v1525_v26 = vsel %vm1053_vm8, %v1523_v17, %v1524_v19  ;;  %v1608_v27 = vrot.slane %v1606_v23, 1  ;;  %v1700_v38 = vshrl.u32 %v9162_v31, 16  ;;  %v9168_v53 = vld [vmem:[#allocation3 + $0x8] ss:$0 sps:$4 sm:$0x77]  }
 0x135   : > { %8363 = vmatmul.mubr.msk.bf16.vlgmr.msra.gmra.mxu0 %vm1550_vm4, %v1525_v26  ;;  %v1703_v39 = vshll.u32 %v9162_v31, 16  ;;  %v1694_v41 = vrot.slane %v1692_v36, 1  ;;  %v1697_v42 = vrot.slane %v1695_v37, 2  ;;  %v1791_v50 = vrot.slane %v7136_v47, 2  ;;  %v9169_v14 = vld [vmem:[%s11409_s12 + $0x18] sm:$0xff]   ;;  %v9171_v16 = vld [vmem:[%s11409_s12 + $0x10] sm:$0xff]  }
 0x136   : > { %v1604_v32 = vor.u32 %v1603_v25, %v1599_v24  ;;  %8379 = vmatpush3.bf16.msra.mxu0 %v9153_v22  ;;  %8386 = vmatprep.mubr.msk.bf16.mxu0 %vm9500_vm3, %v9499_v1  ;;  %v1702_v43 = vrot.slane %v1700_v38, 1  ;;  %v1792_v51 = vrot.slane %v9162_v31, 2  ;;  %v1878_v56 = vshrl.u32 %v7136_v47, 16  ;;  %v9170_v15 = vld [vmem:[%s11409_s12 + $0x38] sm:$0xff]   ;;  %v9172_v17 = vld [vmem:[%s11409_s12 + $0x30] sm:$0xff]   ;;  %v9173_v18 = vld [vmem:[%s11409_s12 + $0x8] sm:$0xff]  }
 0x137   : > { %8380 = vmatprep.subr.bf16.mxu0 %v9499_v1  ;;  %v1705_v44 = vrot.slane %v1703_v39, 2  ;;  %v1698_v28 = vor.u32 %v1697_v42, %v1694_v41  ;;  %v1881_v58 = vshll.u32 %v7136_v47, 16  ;;  %v1886_v59 = vshrl.u32 %v9168_v53, 16  ;;  %v9174_v19 = vld [vmem:[%s11409_s12 + $0x28] sm:$0xff]   ;;  %v9175_v22 = vld [vmem:[%s11409_s12] sm:$0xff]  }
 0x138   : > { %v1609_v35 = vsel %vm939_vm1, %v1604_v32, %v1608_v27  ;;  %v1793_v55 = vsel %vm1185_vm10, %v1791_v50, %v1792_v51  ;;  %v1889_v60 = vshll.u32 %v9168_v53, 16  ;;  %v1880_v62 = vrot.slane %v1878_v56, 2  ;;  %v9176_v23 = vld [vmem:[%s11409_s12 + $0x20] sm:$0xff]  }
 0x139   : > { %8375 = vmatmul.mubr.msk.bf16.vlgmr.msra.gmra.mxu1 %vm1550_vm4, %v1609_v35  ;;  %v1706_v48 = vor.u32 %v1705_v44, %v1702_v43  ;;  %v1883_v63 = vrot.slane %v1881_v58, 3  ;;  %v1888_v0 = vrot.slane %v1886_v59, 2  ;;  %v7156_v47 = vld [vmem:[%s11410_s11] ss:$0 sm:$0xff]  ;;  %v2007_v12 = vld [vmem:[#allocation4 + $0x8] sm:$0x3] }
 0x13a   : > { %8391 = vmatpush3.bf16.msra.mxu1 %v9155_v33  ;;  %8398 = vmatprep.mubr.msk.bf16.mxu1 %vm9500_vm3, %v9499_v1  ;;  %v1891_v2 = vrot.slane %v1889_v60, 3 }
 0x13b   : > { %8381 = vmatpush3.bf16.msra.mxu0 %v9156_v34  ;;  %8392 = vmatprep.subr.bf16.mxu1 %v9499_v1  ;;  %v1707_v52 = vsel %vm1112_vm2, %v1698_v28, %v1706_v48  ;;  %v1884_v5 = vor.u32 %v1883_v63, %v1880_v62  ;;  %v2003_v63 = vld [vmem:[#allocation4] sm:$0xe] }
 0x13c   : > { %8382 = vmatprep.subr.bf16.mxu0 %v9499_v1  ;;  %v1892_v7 = vor.u32 %v1891_v2, %v1888_v0 }
 0x13e   : > { %8393 = vmatpush3.bf16.msra.mxu1 %v9157_v40  ;;  %v1893_v9 = vsel %vm1244_vm9, %v1884_v5, %v1892_v7 }
 0x13f   : > { %8383 = vmatpush3.bf16.msra.mxu0 %v9158_v20  ;;  %8394 = vmatprep.subr.bf16.mxu1 %v9499_v1 }
 0x140   : > { %8384 = vmatprep.subr.bf16.mxu0 %v9499_v1 }
 0x142   : > { %8395 = vmatpush3.bf16.msra.mxu1 %v9159_v45 }
 0x143   : > { %8385 = vmatpush3.bf16.msra.mxu0 %v9160_v29  ;;  %8396 = vmatprep.subr.bf16.mxu1 %v9499_v1 }
 0x144   : > { %8402 = vmatprep.subr.bf16.mxu0 %v9499_v1 }
 0x146   : > { %8397 = vmatpush3.bf16.msra.mxu1 %v9161_v49  ;;  %8387 = vmatmul.mubr.msk.bf16.vlgmr.msra.gmra.mxu0 %vm1550_vm4, %v1707_v52 }
 0x147   : > { %8403 = vmatpush3.bf16.msra.mxu0 %v9163_v30  ;;  %8410 = vmatprep.mubr.msk.bf16.mxu0 %vm9500_vm3, %v9499_v1 }
 0x148   : > { %8404 = vmatprep.subr.bf16.mxu0 %v9499_v1  ;;  %8414 = vmatprep.subr.bf16.mxu1 %v9499_v1 }
 0x149   : > { %8399 = vmatmul.mubr.msk.bf16.vlgmr.msra.gmra.mxu1 %vm1550_vm4, %v1793_v55 }
 0x14a   : > { %8422 = vmatprep.mubr.msk.bf16.mxu1 %vm9500_vm3, %v9499_v1  ;;  %8415 = vmatpush3.bf16.msra.mxu1 %v9170_v15  ;;  %v9184_v15 = vld [vmem:[#allocation2] sm:$0xfe]  }
 0x14b   : > { %8405 = vmatpush3.bf16.msra.mxu0 %v9165_v54  ;;  %8416 = vmatprep.subr.bf16.mxu1 %v9499_v1 }
 0x14c   : > { %8406 = vmatprep.subr.bf16.mxu0 %v9499_v1 }
 0x14e   : > { %8417 = vmatpush3.bf16.msra.mxu1 %v9172_v17  ;;  %v9185_v17 = vld [vmem:[#allocation2 + $0x8] ss:$0 sps:$4 sm:$0x33]  }
 0x14f   : > { %8407 = vmatpush3.bf16.msra.mxu0 %v9166_v61  ;;  %8418 = vmatprep.subr.bf16.mxu1 %v9499_v1 }
 0x150   : > { %8408 = vmatprep.subr.bf16.mxu0 %v9499_v1 }
 0x152   : > { %8419 = vmatpush3.bf16.msra.mxu1 %v9174_v19  ;;  %v2318_v19 = vshll.u32 %v9184_v15, 16 }
 0x153   : > { %8409 = vmatpush3.bf16.msra.mxu0 %v9167_v3  ;;  %8420 = vmatprep.subr.bf16.mxu1 %v9499_v1 }
 0x154   : > { %8426 = vmatprep.subr.bf16.mxu0 %v9499_v1 }
 0x156   : > { %8411 = vmatmul.mubr.msk.bf16.vlgmr.msra.gmra.mxu0 %vm1550_vm4, %v1893_v9  ;;  %8421 = vmatpush3.bf16.msra.mxu1 %v9176_v23 }
 0x157   : > { %8434 = vmatprep.mubr.msk.bf16.mxu0 %vm9500_vm3, %v9499_v1  ;;  %8427 = vmatpush3.bf16.msra.mxu0 %v9169_v14 }
 0x158   : > { %8428 = vmatprep.subr.bf16.mxu0 %v9499_v1  ;;  %8438 = vmatprep.subr.bf16.mxu1 %v9499_v1 }
 0x15b   : > { %8429 = vmatpush3.bf16.msra.mxu0 %v9171_v16 }
 0x15c   : > { %8430 = vmatprep.subr.bf16.mxu0 %v9499_v1 }
 0x15f   : > { %8431 = vmatpush3.bf16.msra.mxu0 %v9173_v18  ;;  %v2315_v18 = vshrl.u32 %v9184_v15, 16 }
 0x160   : > { %8432 = vmatprep.subr.bf16.mxu0 %v9499_v1 }
 0x163   : > { %8433 = vmatpush3.bf16.msra.mxu0 %v9175_v22  ;;  %v2323_v22 = vshrl.u32 %v9185_v17, 16 }
 0x164   : > { %8450 = vmatprep.subr.bf16.mxu0 %v9499_v1 }
 0x1f5   : > { %v1588_v24 = vpop.f32.mrf.mxu0 }
 0x1f7   : > { %v8364_v25 = vpop.f32.mrf.mxu0 }
 0x1f8   : > { %v2326_v25 = vshll.u32 %v9185_v17, 16 }
 0x1f9   : > { %v1671_v26 = vpop.f32.mrf.mxu1  ;;  %v1591_v27 = vpop.f32.mrf.mxu0 }
 0x1fa   : > { %v1672_v41 = vadd.f32 %v1671_v26, %v1588_v24 }
 0x1fb   : > { %v8376_v31 = vpop.f32.mrf.mxu1  ;;  %v8365_v32 = vpop.f32.mrf.mxu0 }
 0x1fc   : > { %v2317_v31 = vrot.slane %v2315_v18, 1  ;;  %v2320_v32 = vrot.slane %v2318_v19, 2 }
 0x1fd   : > { %v1674_v33 = vpop.f32.mrf.mxu1 }
 0x1fe   : > { %v1675_v44 = vadd.f32 %v1674_v33, %v1591_v27  ;;  %v2298_v27 = vld [vmem:[%s11411_s7] sm:$0xf]  ;;  %s11420_s7 = sld [smem:[#allocation16_spill]] }
 0x1ff   : > { %v8377_v34 = vpop.f32.mrf.mxu1 }
 0x200   : > { %v2325_v34 = vrot.slane %v2323_v22, 1 }
 0x206   : > { %v1769_v35 = vpop.f32.mrf.mxu0 }
 0x207   : > { %v1776_v43 = vadd.f32 %v1769_v35, %v1672_v41 }
 0x208   : > { %v8388_v36 = vpop.f32.mrf.mxu0 }
 0x209   : > { %v1855_v37 = vpop.f32.mrf.mxu1 }
 0x20a   : > { %v1772_v38 = vpop.f32.mrf.mxu0  ;;  %v1862_v45 = vadd.f32 %v1855_v37, %v1776_v43 }
 0x20b   : > { %v8400_v39 = vpop.f32.mrf.mxu1  ;;  %v1777_v29 = vadd.f32 %v1772_v38, %v1675_v44 }
 0x20c   : > { %v8389_v40 = vpop.f32.mrf.mxu0 }
 0x20d   : > { %v1858_v20 = vpop.f32.mrf.mxu1  ;;  %v2328_v40 = vrot.slane %v2326_v25, 2 }
 0x20e   : > { %v1863_v49 = vadd.f32 %v1858_v20, %v1777_v29 }
 0x20f   : > { %v8401_v42 = vpop.f32.mrf.mxu1 }
 0x210   : > { %v2335_v42 = vsel %vm11412_vm6, %v2298_v27, 0 }
 0x216   : > { %v1955_v46 = vpop.f32.mrf.mxu0 }
 0x217   : > { %v1962_v28 = vadd.f32 %v1955_v46, %v1862_v45 }
 0x218   : > { %v8412_v48 = vpop.f32.mrf.mxu0 }
 0x219   : > { %v1971_v30 = vadd.f32 %v7156_v47, %v1962_v28  ;;  %v2321_v28 = vor.u32 %v2320_v32, %v2317_v31  ;;  %v2329_v48 = vor.u32 %v2328_v40, %v2325_v34  ;;  %v7195_v31 = vld [vmem:[%s11415_s2] ss:$0 sm:$0xff]  ;;  %s11419_s2 = sld [smem:[#allocation17_spill]] }
 0x21a   : > { %v1958_v50 = vpop.f32.mrf.mxu0 }
 0x21b   : > { %v1973_v51 = vmax.f32 %v1971_v30, 0.0  ;;  %v1963_v52 = vadd.f32 %v1958_v50, %v1863_v49  ;;  %v9180_v30 = vld [vmem:[%s11409_s12 + $0x58] sm:$0xff]  }
 0x21c   : > { %v8413_v53 = vpop.f32.mrf.mxu0 }
 0x21d   : > { %v7935_v54 = vpack.c.bf16 %v1973_v51, %v1973_v51  ;;  %v1972_v55 = vadd.f32 %v7156_v47, %v1963_v52  ;;  %v2330_v51 = vsel %vm1112_vm2, %v2321_v28, %v2329_v48  ;;  %v9181_v52 = vld [vmem:[%s11409_s12 + $0x50] sm:$0xff]   ;;  %v9182_v53 = vld [vmem:[%s11409_s12 + $0x48] sm:$0xff]  }
 0x21f   : > { %v1982_v56 = vshrl.u32 %v7935_v54, 16  ;;  %v1985_v58 = vshll.u32 %v7935_v54, 16  ;;  %v1974_v59 = vmax.f32 %v1972_v55, 0.0 }
 0x221   : > { %v1984_v60 = vrot.slane %v1982_v56, 6  ;;  %v1987_v61 = vrot.slane %v1985_v58, 7  ;;  %v7936_v62 = vpack.c.bf16 %v1974_v59, %v1974_v59  ;;  %v9183_v56 = vld [vmem:[%s11409_s12 + $0x40] sm:$0xff]  }
 0x223   : > { %v1988_v0 = vor.u32 %v1987_v61, %v1984_v60  ;;  %v1991_v2 = vshrl.u32 %v7936_v62, 16  ;;  %v1994_v3 = vshll.u32 %v7936_v62, 16  ;;  %v874_v61 = vld [vmem:[#allocation5] sm:$0x3] }
 0x224   : > { %v875_v62 = vsel %vm9669_vm5, 0, %v874_v61 }
 0x225   : > { %v2004_v5 = vsel %vm9855_vm13, %v1988_v0, %v2003_v63  ;;  %v1993_v7 = vrot.slane %v1991_v2, 6  ;;  %v1996_v9 = vrot.slane %v1994_v3, 7  ;;  %v1989_v10 = vrot.slane %v1988_v0, 4  ;;  %876 = vst [vmem:[#allocation5] sm:$0x3] %v875_v62  ;;  %v9187_v2 = vld [vmem:[%s11414_s4 + $0x18] sm:$0xff]  }
 0x226   : > { %2005 = vst [vmem:[#allocation4] sm:$0xe] %v2004_v5  ;;  %v877_v63 = vld [vmem:[#allocation5 + $0x8] sm:$0xe]  ;;  %v9188_v3 = vld [vmem:[%s11414_s4 + $0x10] sm:$0xff]  }
 0x227   : > { %v1997_v11 = vor.u32 %v1996_v9, %v1993_v7  ;;  %v878_v0 = vsel %vm9678_vm7, 0, %v877_v63  ;;  %v9189_v5 = vld [vmem:[%s11414_s4 + $0x38] sm:$0xff]   ;;  %v9190_v7 = vld [vmem:[%s11414_s4 + $0x8] sm:$0xff]   ;;  %v9191_v9 = vld [vmem:[%s11414_s4 + $0x30] sm:$0xff]  }
 0x228   : > { %879 = vst [vmem:[#allocation5 + $0x8] sm:$0xe] %v878_v0 }
 0x229   : > { %v1998_v13 = vsel %vm9711_vm12, %v1989_v10, %v1997_v11  ;;  %v1999_v14 = vrot.slane %v1997_v11, 4  ;;  %v9192_v10 = vld [vmem:[%s11414_s4] sm:$0xff]   ;;  %v9193_v11 = vld [vmem:[%s11414_s4 + $0x28] sm:$0xff]  }
 0x22a   : > { %2006 = vst.msk [vmem:[#allocation4 + $0x4] sm:$0xf] %vm1487_vm15, %v1998_v13 }
 0x22b   : > { %v2008_v16 = vsel %vm9862_vm0, %v1999_v14, %v2007_v12  ;;  %v9196_v12 = vld [vmem:[%s11414_s4 + $0x20] sm:$0xff]  }
 0x22c   : > { %2009 = vst [vmem:[#allocation4 + $0x8] sm:$0x3] %v2008_v16 }
 0x22d   : > { %v2010_v23 = vld [vmem:[#allocation4] sm:$0xe] }
 0x22e   : > { %v2198_v54 = vld [vmem:[#allocation4] sm:$0xc] }
 0x22f   : > { %v2414_v62 = vld [vmem:[#allocation5 + $0x8] sm:$0x3] }
 0x231   : > { %v2011_v24 = vld [vmem:[#allocation4 + $0x4] sm:$0xf] }
 0x232   : > { %v7167_v26 = vcombine.low %v2010_v23, %v2011_v24  ;;  %v7188_v55 = vcombine.low %v2198_v54, %v2011_v24 }
 0x233   : > { %v9178_v33 = vld [vmem:[#allocation4 + $0x8] ss:$0 sps:$4 sm:$0x11]  }
 0x234   : > { %v2127_v35 = vrot.slane %v7167_v26, 1  ;;  %v9179_v36 = vld [vmem:[#allocation4 + $0x8] ss:$0 sps:$4 sm:$0x33]   ;;  %v2128_v37 = vrot.slane %v9178_v33, 1  ;;  %v2040_v38 = vshrl.u32 %v7167_v26, 16 }
 0x235   : > { %v2043_v39 = vshll.u32 %v7167_v26, 16  ;;  %v2048_v20 = vshrl.u32 %v9179_v36, 16  ;;  %v2051_v41 = vshll.u32 %v9179_v36, 16  ;;  %v2211_v58 = vrot.slane %v7188_v55, 2  ;;  %v7194_v33 = vld [vmem:[%s11416_s27] ss:$0 sm:$0xff] }
 0x236   : > { %v2129_v43 = vsel %vm1053_vm8, %v2127_v35, %v2128_v37  ;;  %v2042_v44 = vrot.slane %v2040_v38, 1  ;;  %v2212_v59 = vrot.slane %v9179_v36, 2 }
 0x237   : > { %v2045_v45 = vrot.slane %v2043_v39, 2  ;;  %8435 = vmatmul.mubr.msk.bf16.vlgmr.msra.gmra.mxu0 %vm1550_vm4, %v2129_v43  ;;  %v2050_v29 = vrot.slane %v2048_v20, 1  ;;  %v2053_v46 = vrot.slane %v2051_v41, 2 }
 0x238   : > { %8451 = vmatpush3.bf16.msra.mxu0 %v2335_v42  ;;  %8452 = vmatprep.mubr.msk.bf16.mxu0 %vm9500_vm3, %v9499_v1  ;;  %v2213_v60 = vsel %vm1185_vm10, %v2211_v58, %v2212_v59 }
 0x239   : > { %v2046_v47 = vor.u32 %v2045_v45, %v2042_v44  ;;  %v2054_v49 = vor.u32 %v2053_v46, %v2050_v29  ;;  %8468 = vmatprep.subr.bf16.mxu0 %v9499_v1 }
 0x23b   : > { %v2055_v50 = vsel %vm1112_vm2, %v2046_v47, %v2054_v49 }
 0x23c   : > { %8423 = vmatmul.mubr.msk.bf16.vlgmr.msra.gmra.mxu1 %vm1550_vm4, %v2055_v50 }
 0x23d   : > { %8439 = vmatpush3.bf16.msra.mxu1 %v9180_v30  ;;  %8446 = vmatprep.mubr.msk.bf16.mxu1 %vm9500_vm3, %v9499_v1 }
 0x23e   : > { %8440 = vmatprep.subr.bf16.mxu1 %v9499_v1 }
 0x23f   : > { %8453 = vmatmul.mubr.msk.bf16.vlgmr.msra.gmra.mxu0 %vm11413_vm11, %v2330_v51 }
 0x240   : > { %8476 = vmatprep.mubr.msk.bf16.mxu0 %vm9500_vm3, %v9499_v1  ;;  %8469 = vmatpush3.bf16.msra.mxu0 %v9187_v2 }
 0x241   : > { %8441 = vmatpush3.bf16.msra.mxu1 %v9181_v52  ;;  %8470 = vmatprep.subr.bf16.mxu0 %v9499_v1  ;;  %v2410_v52 = vld [vmem:[#allocation5] sm:$0xe] }
 0x242   : > { %8442 = vmatprep.subr.bf16.mxu1 %v9499_v1 }
 0x244   : > { %8471 = vmatpush3.bf16.msra.mxu0 %v9188_v3 }
 0x245   : > { %8443 = vmatpush3.bf16.msra.mxu1 %v9182_v53  ;;  %8472 = vmatprep.subr.bf16.mxu0 %v9499_v1 }
 0x246   : > { %8444 = vmatprep.subr.bf16.mxu1 %v9499_v1 }
 0x248   : > { %8473 = vmatpush3.bf16.msra.mxu0 %v9190_v7 }
 0x249   : > { %8445 = vmatpush3.bf16.msra.mxu1 %v9183_v56  ;;  %8474 = vmatprep.subr.bf16.mxu0 %v9499_v1 }
 0x24a   : > { %8456 = vmatprep.subr.bf16.mxu1 %v9499_v1 }
 0x24c   : > { %8447 = vmatmul.mubr.msk.bf16.vlgmr.msra.gmra.mxu1 %vm1550_vm4, %v2213_v60  ;;  %8475 = vmatpush3.bf16.msra.mxu0 %v9192_v10 }
 0x24d   : > { %8464 = vmatprep.mubr.msk.bf16.mxu1 %vm9500_vm3, %v9499_v1  ;;  %8457 = vmatpush3.bf16.msra.mxu1 %v9189_v5 }
 0x24e   : > { %8458 = vmatprep.subr.bf16.mxu1 %v9499_v1  ;;  %8492 = vmatprep.subr.bf16.mxu0 %v9499_v1 }
 0x251   : > { %8459 = vmatpush3.bf16.msra.mxu1 %v9191_v9 }
 0x252   : > { %8460 = vmatprep.subr.bf16.mxu1 %v9499_v1 }
 0x255   : > { %8461 = vmatpush3.bf16.msra.mxu1 %v9193_v11 }
 0x256   : > { %8462 = vmatprep.subr.bf16.mxu1 %v9499_v1 }
 0x259   : > { %8463 = vmatpush3.bf16.msra.mxu1 %v9196_v12  ;;  %v9197_v12 = vld [vmem:[%s11414_s4 + $0x70] sm:$0xff]  }
 0x25a   : > { %8480 = vmatprep.subr.bf16.mxu1 %v9499_v1 }
 0x2f7   : > { %v2191_v13 = vpop.f32.mrf.mxu0 }
 0x2f9   : > { %v8436_v14 = vpop.f32.mrf.mxu0 }
 0x2fb   : > { %v2194_v15 = vpop.f32.mrf.mxu0 }
 0x2fc   : > { %v2117_v16 = vpop.f32.mrf.mxu1 }
 0x2fd   : > { %v8437_v17 = vpop.f32.mrf.mxu0  ;;  %v2192_v27 = vadd.f32 %v2191_v13, %v2117_v16 }
 0x2fe   : > { %v8424_v18 = vpop.f32.mrf.mxu1 }
 0x2ff   : > { %v2371_v19 = vpop.f32.mrf.mxu0 }
 0x300   : > { %v2120_v22 = vpop.f32.mrf.mxu1  ;;  %v2372_v37 = vadd.f32 %v7195_v31, %v2371_v19 }
 0x301   : > { %v8454_v23 = vpop.f32.mrf.mxu0  ;;  %v2195_v36 = vadd.f32 %v2194_v15, %v2120_v22 }
 0x302   : > { %v8425_v24 = vpop.f32.mrf.mxu1 }
 0x303   : > { %v2374_v25 = vpop.f32.mrf.mxu0 }
 0x304   : > { %v2375_v45 = vadd.f32 %v7195_v31, %v2374_v25  ;;  %v9199_v25 = vld [vmem:[%s11414_s4 + $0x58] sm:$0xff]  }
 0x305   : > { %v8455_v26 = vpop.f32.mrf.mxu0 }
 0x306   : > { %v9200_v26 = vld [vmem:[%s11414_s4 + $0x68] sm:$0xff]  }
 0x30c   : > { %v2275_v32 = vpop.f32.mrf.mxu1 }
 0x30d   : > { %v2282_v34 = vadd.f32 %v2275_v32, %v2192_v27 }
 0x30e   : > { %v8448_v35 = vpop.f32.mrf.mxu1 }
 0x30f   : > { %v2291_v38 = vadd.f32 %v7194_v33, %v2282_v34  ;;  %v9201_v35 = vld [vmem:[%s11414_s4 + $0x50] sm:$0xff]  }
 0x310   : > { %v2278_v39 = vpop.f32.mrf.mxu1 }
 0x311   : > { %v2293_v40 = vmax.f32 %v2291_v38, 0.0  ;;  %v2283_v20 = vadd.f32 %v2278_v39, %v2195_v36  ;;  %v9202_v36 = vld [vmem:[%s11414_s4 + $0x60] sm:$0xff]   ;;  %v9203_v39 = vld [vmem:[%s11414_s4 + $0x48] sm:$0xff]  }
 0x312   : > { %v8449_v41 = vpop.f32.mrf.mxu1 }
 0x313   : > { %v2378_v42 = vadd.f32 %v2372_v37, %v2293_v40  ;;  %v2292_v43 = vadd.f32 %v7194_v33, %v2283_v20  ;;  %v9206_v40 = vld [vmem:[%s11414_s4 + $0xb8] sm:$0xff]  }
 0x315   : > { %v2380_v44 = vmax.f32 %v2378_v42, 0.0  ;;  %v2294_v29 = vmax.f32 %v2292_v43, 0.0 }
 0x317   : > { %v7937_v46 = vpack.c.bf16 %v2380_v44, %v2380_v44  ;;  %v2379_v47 = vadd.f32 %v2375_v45, %v2294_v29  ;;  %v9207_v44 = vld [vmem:[%s11414_s4 + $0x40] sm:$0xff]   ;;  %v9208_v45 = vld [vmem:[%s11414_s4 + $0xb0] sm:$0xff]  }
 0x319   : > { %v2389_v28 = vshrl.u32 %v7937_v46, 16  ;;  %v2392_v48 = vshll.u32 %v7937_v46, 16  ;;  %v2381_v49 = vmax.f32 %v2379_v47, 0.0 }
 0x31b   : > { %v2391_v30 = vrot.slane %v2389_v28, 6  ;;  %v2394_v50 = vrot.slane %v2392_v48, 7  ;;  %v7938_v51 = vpack.c.bf16 %v2381_v49, %v2381_v49 }
 0x31d   : > { %v2395_v53 = vor.u32 %v2394_v50, %v2391_v30  ;;  %v2398_v54 = vshrl.u32 %v7938_v51, 16  ;;  %v2401_v55 = vshll.u32 %v7938_v51, 16  ;;  %v9209_v30 = vld [vmem:[%s11414_s4 + $0x98] sm:$0xff]   ;;  %v9210_v50 = vld [vmem:[%s11414_s4 + $0xa8] sm:$0xff]  }
 0x31f   : > { %v2411_v56 = vsel %vm9855_vm13, %v2395_v53, %v2410_v52  ;;  %v2400_v58 = vrot.slane %v2398_v54, 6  ;;  %v2403_v59 = vrot.slane %v2401_v55, 7  ;;  %v2396_v60 = vrot.slane %v2395_v53, 4 }
 0x320   : > { %2412 = vst [vmem:[#allocation5] sm:$0xe] %v2411_v56  ;;  %v9211_v56 = vld [vmem:[%s11414_s4 + $0x90] sm:$0xff]  }
 0x321   : > { %v2404_v61 = vor.u32 %v2403_v59, %v2400_v58  ;;  %v9212_v58 = vld [vmem:[%s11414_s4 + $0xa0] sm:$0xff]  }
 0x323   : > { %v2405_v63 = vsel %vm9711_vm12, %v2396_v60, %v2404_v61  ;;  %v2406_v0 = vrot.slane %v2404_v61, 4  ;;  %v9213_v61 = vld [vmem:[%s11414_s4 + $0x88] sm:$0xff]  }
 0x324   : > { %2413 = vst.msk [vmem:[#allocation5 + $0x4] sm:$0xf] %vm1487_vm15, %v2405_v63  ;;  %vm11418_vm15 = vcmask 1044480  }
 0x325   : > { %v2415_v2 = vsel %vm9862_vm0, %v2406_v0, %v2414_v62  ;;  %v9216_v62 = vld [vmem:[%s11414_s4 + $0xf8] sm:$0xff]   ;;  %vm11417_vm0 = vsmask.f32 4352  ;;  %vm11423_vm14 = vmmov %vm11418_vm15 }
 0x326   : > { %2416 = vst [vmem:[#allocation5 + $0x8] sm:$0x3] %v2415_v2  ;;  %vm11422_vm13 = vmmov %vm11417_vm0 }
 0x327   : > { %v2417_v3 = vld [vmem:[#allocation5] sm:$0xf] }
 0x328   : > { %v2592_v7 = vld [vmem:[#allocation5] sm:$0xe] }
 0x329   : > { %v2778_v20 = vld [vmem:[#allocation5] sm:$0xc] }
 0x32a   : > { %v2964_v63 = vld [vmem:[#allocation5] sm:$0x8] }
 0x32b   : > { %v10074_v5 = vld [vmem:[#allocation5 + $0x4] sm:$0xf] }
 0x32c   : > { %v7209_v9 = vcombine.low %v2417_v3, %v10074_v5  ;;  %v10078_v10 = vcombine.low %v2592_v7, %v10074_v5  ;;  %v10125_v42 = vcombine.low %v2778_v20, %v10074_v5  ;;  %v7285_v2 = vcombine.low %v2964_v63, %v10074_v5  ;;  %v9218_v7 = vld [vmem:[%s11414_s4 + $0xf0] sm:$0xff]   ;;  %v9233_v20 = vld [vmem:[%s11419_s2 + $0x60] sm:$0xff]  }
 0x32d   : > { %v10080_v11 = vld [vmem:[#allocation5 + $0x8] ss:$0 sps:$4 sm:$0x11]  }
 0x32e   : > { %8477 = vmatmul.mubr.msk.bf16.vlgmr.msra.gmra.mxu0 %vm1550_vm4, %v7209_v9  ;;  %v2448_v4 = vshll.u32 %v7209_v9, 16  ;;  %v2453_v13 = vshll.u32 %v10080_v11, 16  ;;  %v10089_v14 = vld [vmem:[#allocation5 + $0x8] ss:$0 sps:$4 sm:$0x33]   ;;  %v2446_v15 = vshrl.u32 %v7209_v9, 16 }
 0x32f   : > { %8493 = vmatpush3.bf16.msra.mxu0 %v9195_v57  ;;  %8500 = vmatprep.mubr.msk.bf16.mxu0 %vm9500_vm3, %v9499_v1  ;;  %v2692_v17 = vshrl.u32 %v10078_v10, 16  ;;  %v2695_v19 = vshll.u32 %v10078_v10, 16  ;;  %v2700_v22 = vshrl.u32 %v10089_v14, 16  ;;  %v2703_v23 = vshll.u32 %v10089_v14, 16  ;;  %v9225_v3 = vld [vmem:[#allocation5 + $0x8] ss:$0 sps:$4 sm:$0xff]  }
 0x330   : > { %8494 = vmatprep.subr.bf16.mxu0 %v9499_v1  ;;  %v2450_v16 = vrot.slane %v2448_v4, 1  ;;  %v2455_v18 = vrot.slane %v2453_v13, 1  ;;  %v10127_v43 = vld [vmem:[#allocation5 + $0x8] ss:$0 sps:$4 sm:$0x77]   ;;  %v2605_v29 = vrot.slane %v10078_v10, 1 }
 0x331   : > { %v2694_v31 = vrot.slane %v2692_v17, 1  ;;  %v2697_v32 = vrot.slane %v2695_v19, 2  ;;  %v2702_v33 = vrot.slane %v2700_v22, 1  ;;  %v2705_v34 = vrot.slane %v2703_v23, 2  ;;  %v9217_v57 = vld [vmem:[%s11414_s4 + $0x80] sm:$0xff]   ;;  %v9219_v13 = vld [vmem:[%s11414_s4 + $0xd8] sm:$0xff]  }
 0x332   : > { %v2451_v24 = vor.u32 %v2450_v16, %v2446_v15  ;;  %v2606_v46 = vrot.slane %v10080_v11, 1  ;;  %v2878_v47 = vshrl.u32 %v10125_v42, 16  ;;  %v2881_v28 = vshll.u32 %v10125_v42, 16  ;;  %v9220_v15 = vld [vmem:[%s11414_s4 + $0xe8] sm:$0xff]   ;;  %v9221_v22 = vld [vmem:[%s11414_s4 + $0xd0] sm:$0xff]   ;;  %v9222_v23 = vld [vmem:[%s11414_s4 + $0xe0] sm:$0xff]  }
 0x333   : > { %8495 = vmatpush3.bf16.msra.mxu0 %v9197_v12  ;;  %v2698_v37 = vor.u32 %v2697_v32, %v2694_v31  ;;  %v2706_v38 = vor.u32 %v2705_v34, %v2702_v33  ;;  %v2886_v48 = vshrl.u32 %v10127_v43, 16  ;;  %v2889_v49 = vshll.u32 %v10127_v43, 16  ;;  %v9226_v31 = vld [vmem:[%s11414_s4 + $0xc0] sm:$0xff]  }
 0x334   : > { %v2456_v27 = vsel %vm939_vm1, %v2451_v24, %v2455_v18  ;;  %8496 = vmatprep.subr.bf16.mxu0 %v9499_v1  ;;  %v2607_v51 = vsel %vm1053_vm8, %v2605_v29, %v2606_v46  ;;  %v2880_v52 = vrot.slane %v2878_v47, 2  ;;  %v2883_v53 = vrot.slane %v2881_v28, 3  ;;  %v9239_v29 = vld [vmem:[%s11419_s2 + $0x48] sm:$0xff]   ;;  %v9241_v47 = vld [vmem:[%s11419_s2 + $0x40] sm:$0xff]  }
 0x335   : > { %8465 = vmatmul.mubr.msk.bf16.vlgmr.msra.gmra.mxu1 %vm1550_vm4, %v2456_v27  ;;  %v2707_v41 = vsel %vm1112_vm2, %v2698_v37, %v2706_v38  ;;  %v2888_v54 = vrot.slane %v2886_v48, 2  ;;  %v2891_v55 = vrot.slane %v2889_v49, 3  ;;  %v2791_v9 = vrot.slane %v10125_v42, 2  ;;  %v9229_v37 = vld [vmem:[%s11419_s2 + $0x70] sm:$0xff]   ;;  %v9235_v42 = vld [vmem:[%s11419_s2 + $0x58] sm:$0xff]   ;;  %v9240_v46 = vld [vmem:[%s11419_s2 + $0x8] sm:$0xff]  }
 0x336   : > { %8481 = vmatpush3.bf16.msra.mxu1 %v9199_v25  ;;  %8488 = vmatprep.mubr.msk.bf16.mxu1 %vm9500_vm3, %v9499_v1  ;;  %v2884_v59 = vor.u32 %v2883_v53, %v2880_v52  ;;  %v2792_v5 = vrot.slane %v10089_v14, 2  ;;  %v3064_v10 = vshrl.u32 %v7285_v2, 16  ;;  %v3067_v11 = vshll.u32 %v7285_v2, 16  ;;  %v9230_v38 = vld [vmem:[%s11419_s2 + $0x30] sm:$0xff]   ;;  %v9242_v28 = vld [vmem:[%s11419_s2] sm:$0xff]  }
 0x337   : > { %8497 = vmatpush3.bf16.msra.mxu0 %v9200_v26  ;;  %8482 = vmatprep.subr.bf16.mxu1 %v9499_v1  ;;  %v2892_v60 = vor.u32 %v2891_v55, %v2888_v54  ;;  %v3072_v4 = vshrl.u32 %v9225_v3, 16  ;;  %v3075_v12 = vshll.u32 %v9225_v3, 16  ;;  %v9223_v26 = vld [vmem:[%s11414_s4 + $0xc8] sm:$0xff]   ;;  %v2977_v32 = vrot.slane %v7285_v2, 3 }
 0x338   : > { %8498 = vmatprep.subr.bf16.mxu0 %v9499_v1  ;;  %v2793_v14 = vsel %vm1185_vm10, %v2791_v9, %v2792_v5  ;;  %v3066_v16 = vrot.slane %v3064_v10, 3  ;;  %v3069_v17 = vrot.slane %v3067_v11, 4  ;;  %v2978_v33 = vrot.slane %v10127_v43, 3  ;;  %v9236_v43 = vld [vmem:[%s11419_s2 + $0x18] sm:$0xff]  }
 0x339   : > { %v2893_v0 = vsel %vm1244_vm9, %v2884_v59, %v2892_v60  ;;  %v3074_v18 = vrot.slane %v3072_v4, 3  ;;  %v3077_v19 = vrot.slane %v3075_v12, 4 }
 0x33a   : > { %8483 = vmatpush3.bf16.msra.mxu1 %v9201_v35  ;;  %v3070_v24 = vor.u32 %v3069_v17, %v3066_v16  ;;  %v2979_v34 = vsel %vm11418_vm15, %v2977_v32, %v2978_v33  ;;  %v9227_v35 = vld [vmem:[%s11419_s2 + $0x78] sm:$0xff]  }
 0x33b   : > { %8499 = vmatpush3.bf16.msra.mxu0 %v9202_v36  ;;  %8484 = vmatprep.subr.bf16.mxu1 %v9499_v1  ;;  %v3078_v25 = vor.u32 %v3077_v19, %v3074_v18  ;;  %v9228_v36 = vld [vmem:[%s11419_s2 + $0x38] sm:$0xff]  }
 0x33c   : > { %8516 = vmatprep.subr.bf16.mxu0 %v9499_v1 }
 0x33d   : > { %v3079_v27 = vsel %vm11417_vm0, %v3070_v24, %v3078_v25 }
 0x33e   : > { %8485 = vmatpush3.bf16.msra.mxu1 %v9203_v39  ;;  %8501 = vmatmul.mubr.msk.bf16.vlgmr.msra.gmra.mxu0 %vm1550_vm4, %v2707_v41  ;;  %v9231_v39 = vld [vmem:[%s11419_s2 + $0x68] sm:$0xff]   ;;  %v9234_v41 = vld [vmem:[%s11419_s2 + $0x20] sm:$0xff]  }
 0x33f   : > { %8517 = vmatpush3.bf16.msra.mxu0 %v9206_v40  ;;  %8486 = vmatprep.subr.bf16.mxu1 %v9499_v1  ;;  %v9232_v40 = vld [vmem:[%s11419_s2 + $0x28] sm:$0xff]  }
 0x340   : > { %8518 = vmatprep.subr.bf16.mxu0 %v9499_v1  ;;  %8524 = vmatprep.mubr.msk.bf16.mxu0 %vm9500_vm3, %v9499_v1 }
 0x342   : > { %8487 = vmatpush3.bf16.msra.mxu1 %v9207_v44  ;;  %v9237_v44 = vld [vmem:[%s11419_s2 + $0x50] sm:$0xff]  }
 0x343   : > { %8519 = vmatpush3.bf16.msra.mxu0 %v9208_v45  ;;  %8504 = vmatprep.subr.bf16.mxu1 %v9499_v1  ;;  %v9238_v45 = vld [vmem:[%s11419_s2 + $0x10] sm:$0xff]  }
 0x344   : > { %8520 = vmatprep.subr.bf16.mxu0 %v9499_v1 }
 0x345   : > { %8489 = vmatmul.mubr.msk.bf16.vlgmr.msra.gmra.mxu1 %vm1550_vm4, %v2607_v51 }
 0x346   : > { %8505 = vmatpush3.bf16.msra.mxu1 %v9209_v30  ;;  %8512 = vmatprep.mubr.msk.bf16.mxu1 %vm9500_vm3, %v9499_v1 }
 0x347   : > { %8521 = vmatpush3.bf16.msra.mxu0 %v9210_v50  ;;  %8506 = vmatprep.subr.bf16.mxu1 %v9499_v1 }
 0x348   : > { %8522 = vmatprep.subr.bf16.mxu0 %v9499_v1 }
 0x34a   : > { %8507 = vmatpush3.bf16.msra.mxu1 %v9211_v56 }
 0x34b   : > { %8523 = vmatpush3.bf16.msra.mxu0 %v9212_v58  ;;  %8508 = vmatprep.subr.bf16.mxu1 %v9499_v1 }
 0x34c   : > { %8540 = vmatprep.subr.bf16.mxu0 %v9499_v1 }
 0x34e   : > { %8509 = vmatpush3.bf16.msra.mxu1 %v9213_v61  ;;  %8525 = vmatmul.mubr.msk.bf16.vlgmr.msra.gmra.mxu0 %vm1550_vm4, %v2893_v0 }
 0x34f   : > { %8541 = vmatpush3.bf16.msra.mxu0 %v9216_v62  ;;  %8510 = vmatprep.subr.bf16.mxu1 %v9499_v1 }
 0x350   : > { %8542 = vmatprep.subr.bf16.mxu0 %v9499_v1  ;;  %8548 = vmatprep.mubr.msk.bf16.mxu0 %vm9500_vm3, %v9499_v1 }
 0x352   : > { %8511 = vmatpush3.bf16.msra.mxu1 %v9217_v57 }
 0x353   : > { %8543 = vmatpush3.bf16.msra.mxu0 %v9218_v7  ;;  %8528 = vmatprep.subr.bf16.mxu1 %v9499_v1 }
 0x354   : > { %8544 = vmatprep.subr.bf16.mxu0 %v9499_v1 }
 0x355   : > { %8513 = vmatmul.mubr.msk.bf16.vlgmr.msra.gmra.mxu1 %vm1550_vm4, %v2793_v14 }
 0x356   : > { %8529 = vmatpush3.bf16.msra.mxu1 %v9219_v13  ;;  %8536 = vmatprep.mubr.msk.bf16.mxu1 %vm9500_vm3, %v9499_v1 }
 0x357   : > { %8545 = vmatpush3.bf16.msra.mxu0 %v9220_v15  ;;  %8530 = vmatprep.subr.bf16.mxu1 %v9499_v1 }
 0x358   : > { %8546 = vmatprep.subr.bf16.mxu0 %v9499_v1 }
 0x35a   : > { %8531 = vmatpush3.bf16.msra.mxu1 %v9221_v22 }
 0x35b   : > { %8547 = vmatpush3.bf16.msra.mxu0 %v9222_v23  ;;  %8532 = vmatprep.subr.bf16.mxu1 %v9499_v1 }
 0x35c   : > { %8572 = vmatprep.subr.bf16.mxu0 %v9499_v1 }
 0x35e   : > { %8533 = vmatpush3.bf16.msra.mxu1 %v9223_v26  ;;  %8549 = vmatmul.mubr.msk.bf16.vlgmr.msra.gmra.mxu0 %vm1550_vm4, %v3079_v27  ;;  %v7305_v27 = vld [vmem:[%s11420_s7] ss:$0 sm:$0xff] }
 0x35f   : > { %8534 = vmatprep.subr.bf16.mxu1 %v9499_v1  ;;  %8588 = vmatprep.mubr.msk.bf16.mxu0 %vm9500_vm3, %v9499_v1 }
 0x360   : > { %8573 = vmatpush3.bf16.msra.mxu0 %v9228_v36 }
 0x361   : > { %8574 = vmatprep.subr.bf16.mxu0 %v9499_v1 }
 0x362   : > { %8535 = vmatpush3.bf16.msra.mxu1 %v9226_v31 }
 0x363   : > { %8552 = vmatprep.subr.bf16.mxu1 %v9499_v1 }
 0x364   : > { %8575 = vmatpush3.bf16.msra.mxu0 %v9230_v38 }
 0x365   : > { %8537 = vmatmul.mubr.msk.bf16.vlgmr.msra.gmra.mxu1 %vm1550_vm4, %v2979_v34  ;;  %8576 = vmatprep.subr.bf16.mxu0 %v9499_v1 }
 0x366   : > { %8568 = vmatprep.mubr.msk.bf16.mxu1 %vm9500_vm3, %v9499_v1  ;;  %8553 = vmatpush3.bf16.msra.mxu1 %v9227_v35 }
 0x367   : > { %8554 = vmatprep.subr.bf16.mxu1 %v9499_v1 }
 0x368   : > { %8577 = vmatpush3.bf16.msra.mxu0 %v9232_v40 }
 0x369   : > { %8578 = vmatprep.subr.bf16.mxu0 %v9499_v1 }
 0x36a   : > { %8555 = vmatpush3.bf16.msra.mxu1 %v9229_v37 }
 0x36b   : > { %8556 = vmatprep.subr.bf16.mxu1 %v9499_v1 }
 0x36c   : > { %8579 = vmatpush3.bf16.msra.mxu0 %v9234_v41 }
 0x36d   : > { %8580 = vmatprep.subr.bf16.mxu0 %v9499_v1 }
 0x36e   : > { %8557 = vmatpush3.bf16.msra.mxu1 %v9231_v39 }
 0x36f   : > { %8558 = vmatprep.subr.bf16.mxu1 %v9499_v1 }
 0x370   : > { %8581 = vmatpush3.bf16.msra.mxu0 %v9236_v43 }
 0x371   : > { %8582 = vmatprep.subr.bf16.mxu0 %v9499_v1 }
 0x372   : > { %8559 = vmatpush3.bf16.msra.mxu1 %v9233_v20 }
 0x373   : > { %8560 = vmatprep.subr.bf16.mxu1 %v9499_v1 }
 0x374   : > { %8583 = vmatpush3.bf16.msra.mxu0 %v9238_v45 }
 0x375   : > { %8584 = vmatprep.subr.bf16.mxu0 %v9499_v1 }
 0x376   : > { %8561 = vmatpush3.bf16.msra.mxu1 %v9235_v42 }
 0x377   : > { %8562 = vmatprep.subr.bf16.mxu1 %v9499_v1 }
 0x378   : > { %8585 = vmatpush3.bf16.msra.mxu0 %v9240_v46  ;;  %v3189_v46 = vld [vmem:[#allocation2] sm:$0xe] }
 0x379   : > { %8586 = vmatprep.subr.bf16.mxu0 %v9499_v1 }
 0x37a   : > { %8563 = vmatpush3.bf16.msra.mxu1 %v9237_v44 }
 0x37b   : > { %8564 = vmatprep.subr.bf16.mxu1 %v9499_v1 }
 0x37c   : > { %8587 = vmatpush3.bf16.msra.mxu0 %v9242_v28 }
 0x37d   : > { %8612 = vmatprep.subr.bf16.mxu0 %v9499_v1 }
 0x37e   : > { %8565 = vmatpush3.bf16.msra.mxu1 %v9239_v29 }
 0x37f   : > { %8566 = vmatprep.subr.bf16.mxu1 %v9499_v1 }
 0x382   : > { %8567 = vmatpush3.bf16.msra.mxu1 %v9241_v47 }
 0x383   : > { %8592 = vmatprep.subr.bf16.mxu1 %v9499_v1 }
 0x3ee   : > { %v2585_v48 = vpop.f32.mrf.mxu0 }
 0x3f0   : > { %v8478_v49 = vpop.f32.mrf.mxu0 }
 0x3f2   : > { %v2588_v30 = vpop.f32.mrf.mxu0 }
 0x3f4   : > { %v8479_v50 = vpop.f32.mrf.mxu0 }
 0x3f5   : > { %v2518_v51 = vpop.f32.mrf.mxu1 }
 0x3f6   : > { %v2586_v5 = vadd.f32 %v2585_v48, %v2518_v51 }
 0x3f7   : > { %v8466_v52 = vpop.f32.mrf.mxu1 }
 0x3f9   : > { %v2521_v53 = vpop.f32.mrf.mxu1 }
 0x3fa   : > { %v2589_v12 = vadd.f32 %v2588_v30, %v2521_v53  ;;  %v3193_v53 = vld [vmem:[#allocation2 + $0x8] sm:$0x3] }
 0x3fb   : > { %v8467_v54 = vpop.f32.mrf.mxu1 }
 0x3fe   : > { %v2769_v55 = vpop.f32.mrf.mxu0 }
 0x400   : > { %v8502_v56 = vpop.f32.mrf.mxu0 }
 0x402   : > { %v2772_v58 = vpop.f32.mrf.mxu0 }
 0x404   : > { %v8503_v59 = vpop.f32.mrf.mxu0 }
 0x405   : > { %v2669_v60 = vpop.f32.mrf.mxu1 }
 0x406   : > { %v2676_v11 = vadd.f32 %v2669_v60, %v2586_v5 }
 0x407   : > { %v8490_v61 = vpop.f32.mrf.mxu1 }
 0x408   : > { %v2776_v15 = vadd.f32 %v2769_v55, %v2676_v11 }
 0x409   : > { %v2672_v62 = vpop.f32.mrf.mxu1 }
 0x40a   : > { %v2677_v13 = vadd.f32 %v2672_v62, %v2589_v12  ;;  %v9247_v12 = vld [vmem:[%s11419_s2 + $0xf8] sm:$0xff]  }
 0x40b   : > { %v8491_v63 = vpop.f32.mrf.mxu1 }
 0x40c   : > { %v2777_v18 = vadd.f32 %v2772_v58, %v2677_v13  ;;  %v9248_v13 = vld [vmem:[%s11419_s2 + $0xb0] sm:$0xff]  }
 0x40e   : > { %v2955_v0 = vpop.f32.mrf.mxu0 }
 0x410   : > { %v8526_v2 = vpop.f32.mrf.mxu0 }
 0x412   : > { %v2958_v3 = vpop.f32.mrf.mxu0 }
 0x414   : > { %v8527_v57 = vpop.f32.mrf.mxu0 }
 0x415   : > { %v2855_v7 = vpop.f32.mrf.mxu1  ;;  %v9245_v57 = vld [vmem:[%s11419_s2 + $0xb8] sm:$0xff]  }
 0x416   : > { %v2862_v16 = vadd.f32 %v2855_v7, %v2776_v15 }
 0x417   : > { %v8514_v9 = vpop.f32.mrf.mxu1 }
 0x418   : > { %v2962_v24 = vadd.f32 %v2955_v0, %v2862_v16  ;;  %v9250_v16 = vld [vmem:[%s11419_s2 + $0xa8] sm:$0xff]  }
 0x419   : > { %v2858_v10 = vpop.f32.mrf.mxu1 }
 0x41a   : > { %v2863_v22 = vadd.f32 %v2858_v10, %v2777_v18  ;;  %v9252_v18 = vld [vmem:[%s11419_s2 + $0xa0] sm:$0xff]  }
 0x41b   : > { %v8515_v4 = vpop.f32.mrf.mxu1 }
 0x41c   : > { %v2963_v33 = vadd.f32 %v2958_v3, %v2863_v22  ;;  %v9254_v22 = vld [vmem:[%s11419_s2 + $0x98] sm:$0xff]  }
 0x41e   : > { %v3141_v14 = vpop.f32.mrf.mxu0 }
 0x420   : > { %v8550_v17 = vpop.f32.mrf.mxu0 }
 0x421   : > { %v9251_v17 = vld [vmem:[%s11419_s2 + $0xe8] sm:$0xff]  }
 0x422   : > { %v3144_v19 = vpop.f32.mrf.mxu0 }
 0x424   : > { %v8551_v23 = vpop.f32.mrf.mxu0 }
 0x425   : > { %v3041_v25 = vpop.f32.mrf.mxu1 }
 0x426   : > { %v3048_v26 = vadd.f32 %v3041_v25, %v2962_v24  ;;  %v9255_v24 = vld [vmem:[%s11419_s2 + $0xd8] sm:$0xff]   ;;  %v9256_v25 = vld [vmem:[%s11419_s2 + $0x90] sm:$0xff]  }
 0x427   : > { %v8538_v31 = vpop.f32.mrf.mxu1 }
 0x428   : > { %v3148_v32 = vadd.f32 %v3141_v14, %v3048_v26  ;;  %v9249_v14 = vld [vmem:[%s11419_s2 + $0xf0] sm:$0xff]  }
 0x429   : > { %v3044_v34 = vpop.f32.mrf.mxu1 }
 0x42a   : > { %v3157_v35 = vadd.f32 %v7305_v27, %v3148_v32  ;;  %v3049_v36 = vadd.f32 %v3044_v34, %v2963_v33  ;;  %v9257_v33 = vld [vmem:[%s11419_s2 + $0xd0] sm:$0xff]   ;;  %v9258_v34 = vld [vmem:[%s11419_s2 + $0x88] sm:$0xff]  }
 0x42b   : > { %v8539_v37 = vpop.f32.mrf.mxu1 }
 0x42c   : > { %v3159_v38 = vmax.f32 %v3157_v35, 0.0  ;;  %v3149_v39 = vadd.f32 %v3144_v19, %v3049_v36  ;;  %v9253_v19 = vld [vmem:[%s11419_s2 + $0xe0] sm:$0xff]  }
 0x42e   : > { %v7939_v40 = vpack.c.bf16 %v3159_v38, %v3159_v38  ;;  %v3158_v20 = vadd.f32 %v7305_v27, %v3149_v39  ;;  %v9259_v39 = vld [vmem:[%s11419_s2 + $0xc8] sm:$0xff]  }
 0x430   : > { %v3168_v41 = vshrl.u32 %v7939_v40, 16  ;;  %v3171_v42 = vshll.u32 %v7939_v40, 16  ;;  %v3160_v43 = vmax.f32 %v3158_v20, 0.0  ;;  %v9260_v40 = vld [vmem:[%s11419_s2 + $0x80] sm:$0xff]  }
 0x432   : > { %v3170_v44 = vrot.slane %v3168_v41, 6  ;;  %v3173_v45 = vrot.slane %v3171_v42, 7  ;;  %v7940_v29 = vpack.c.bf16 %v3160_v43, %v3160_v43 }
 0x434   : > { %v3174_v47 = vor.u32 %v3173_v45, %v3170_v44  ;;  %v3177_v28 = vshrl.u32 %v7940_v29, 16  ;;  %v3180_v48 = vshll.u32 %v7940_v29, 16  ;;  %v9261_v44 = vld [vmem:[%s11419_s2 + $0xc0] sm:$0xff]   ;;  %v9263_v45 = vld [vmem:[%s11419_s2 + $0x138] sm:$0xff]  }
 0x436   : > { %v3190_v49 = vsel %vm9678_vm7, %v3174_v47, %v3189_v46  ;;  %v3179_v30 = vrot.slane %v3177_v28, 6  ;;  %v3182_v50 = vrot.slane %v3180_v48, 7  ;;  %v3175_v51 = vrot.slane %v3174_v47, 4  ;;  %v9265_v28 = vld [vmem:[%s11419_s2 + $0x130] sm:$0xff]  }
 0x437   : > { %3191 = vst [vmem:[#allocation2] sm:$0xe] %v3190_v49  ;;  %v9266_v49 = vld [vmem:[%s11419_s2 + $0x128] sm:$0xff]  }
 0x438   : > { %v3183_v52 = vor.u32 %v3182_v50, %v3179_v30  ;;  %v9267_v30 = vld [vmem:[%s11419_s2 + $0x120] sm:$0xff]   ;;  %v9268_v50 = vld [vmem:[%s11419_s2 + $0x118] sm:$0xff]  }
 0x43a   : > { %v3184_v54 = vsel %vm9711_vm12, %v3175_v51, %v3183_v52  ;;  %v3185_v55 = vrot.slane %v3183_v52, 4  ;;  %v9269_v52 = vld [vmem:[%s11419_s2 + $0x110] sm:$0xff]  }
 0x43b   : > { %3192 = vst [vmem:[#allocation2 + $0x4] sm:$0xf] %v3184_v54 }
 0x43c   : > { %v3194_v56 = vsel %vm9669_vm5, %v3185_v55, %v3193_v53 }
 0x43d   : > { %3195 = vst [vmem:[#allocation2 + $0x8] sm:$0x3] %v3194_v56 }
 0x43e   : > { %v3215_v59 = vld [vmem:[#allocation2] sm:$0xe] }
 0x43f   : > { %v3196_v60 = vld [vmem:[#allocation2] sm:$0xf] }
 0x440   : > { %v3569_v20 = vld [vmem:[#allocation2] sm:$0xc] }
 0x442   : > { %v10301_v58 = vld [vmem:[#allocation2 + $0x4] sm:$0xf] }
 0x443   : > { %v7324_v61 = vcombine.low %v3215_v59, %v10301_v58  ;;  %v7334_v62 = vcombine.low %v3196_v60, %v10301_v58  ;;  %v7384_v41 = vcombine.low %v3569_v20, %v10301_v58  ;;  %v9270_v58 = vld [vmem:[%s11419_s2 + $0x108] sm:$0xff]  }
 0x444   : > { %v9244_v63 = vld [vmem:[#allocation2 + $0x8] ss:$0 sps:$4 sm:$0x11]  }
 0x445   : > { %v3241_v0 = vrot.slane %v7324_v61, 1  ;;  %v3340_v2 = vshll.u32 %v7334_v62, 16  ;;  %v3242_v3 = vrot.slane %v9244_v63, 1  ;;  %v3345_v7 = vshll.u32 %v9244_v63, 16  ;;  %v9271_v63 = vld [vmem:[%s11419_s2 + $0x100] sm:$0xff]  }
 0x446   : > { %v3338_v9 = vshrl.u32 %v7334_v62, 16  ;;  %v9262_v23 = vld [vmem:[#allocation2 + $0x8] ss:$0 sps:$4 sm:$0x33]   ;;  %v3461_v26 = vshrl.u32 %v7324_v61, 16  ;;  %v3464_v27 = vshll.u32 %v7324_v61, 16 }
 0x447   : > { %v3342_v5 = vrot.slane %v3340_v2, 1  ;;  %v3243_v10 = vsel %vm1053_vm8, %v3241_v0, %v3242_v3  ;;  %v3347_v11 = vrot.slane %v3345_v7, 1  ;;  %v3469_v31 = vshrl.u32 %v9262_v23, 16  ;;  %v9272_v51 = vld [vmem:[#allocation2 + $0x8] ss:$0 sps:$4 sm:$0x77]  }
 0x448   : > { %8569 = vmatmul.mubr.bf16.vlgmr.msra.gmra.mxu1 %v3243_v10  ;;  %v3472_v32 = vshll.u32 %v9262_v23, 16  ;;  %v3463_v35 = vrot.slane %v3461_v26, 1  ;;  %v3466_v36 = vrot.slane %v3464_v27, 2  ;;  %v3590_v29 = vrot.slane %v7384_v41, 2  ;;  %v9274_v7 = vld [vmem:[%s11355_s13 + $0x78] sm:$0xff]   ;;  %v9277_v10 = vld [vmem:[%s11355_s13 + $0x28] sm:$0xff]  }
 0x449   : > { %v3343_v4 = vor.u32 %v3342_v5, %v3338_v9  ;;  %8593 = vmatpush3.bf16.msra.mxu1 %v9245_v57  ;;  %8608 = vmatprep.mubr.msk.bf16.mxu1 %vm9500_vm3, %v9499_v1  ;;  %v3471_v37 = vrot.slane %v3469_v31, 1  ;;  %v3591_v46 = vrot.slane %v9262_v23, 2  ;;  %v3707_v53 = vshrl.u32 %v7384_v41, 16  ;;  %v9273_v57 = vld [vmem:[%s11355_s13 + $0x38] sm:$0xff]   ;;  %v9275_v9 = vld [vmem:[%s11355_s13 + $0x30] sm:$0xff]  }
 0x44a   : > { %8594 = vmatprep.subr.bf16.mxu1 %v9499_v1  ;;  %v3474_v38 = vrot.slane %v3472_v32, 2  ;;  %v3467_v42 = vor.u32 %v3466_v36, %v3463_v35  ;;  %v3710_v54 = vshll.u32 %v7384_v41, 16  ;;  %v3715_v55 = vshrl.u32 %v9272_v51, 16  ;;  %v9276_v5 = vld [vmem:[%s11355_s13 + $0x70] sm:$0xff]  }
 0x44b   : > { %v3348_v15 = vsel %vm939_vm1, %v3343_v4, %v3347_v11  ;;  %v3592_v48 = vsel %vm1185_vm10, %v3590_v29, %v3591_v46  ;;  %v3718_v56 = vshll.u32 %v9272_v51, 16  ;;  %v3709_v59 = vrot.slane %v3707_v53, 2  ;;  %v9278_v11 = vld [vmem:[%s11355_s13 + $0x68] sm:$0xff]   ;;  %v9279_v4 = vld [vmem:[%s11355_s13 + $0x20] sm:$0xff]  }
 0x44c   : > { %8589 = vmatmul.mubr.bf16.vlgmr.msra.gmra.mxu0 %v3348_v15  ;;  %v3475_v43 = vor.u32 %v3474_v38, %v3471_v37  ;;  %v3712_v60 = vrot.slane %v3710_v54, 3  ;;  %v3717_v61 = vrot.slane %v3715_v55, 2  ;;  %v9282_v15 = vld [vmem:[%s11355_s13 + $0x58] sm:$0xff]   ;;  %v7418_v46 = vld [vmem:[%s11421_s3] ss:$0 sm:$0xff] }
 0x44d   : > { %8613 = vmatpush3.bf16.msra.mxu0 %v9247_v12  ;;  %8628 = vmatprep.mubr.msk.bf16.mxu0 %vm9500_vm3, %v9499_v1  ;;  %v3720_v62 = vrot.slane %v3718_v56, 3  ;;  %v9280_v12 = vld [vmem:[%s11355_s13 + $0x60] sm:$0xff]  }
 0x44e   : > { %8595 = vmatpush3.bf16.msra.mxu1 %v9248_v13  ;;  %8614 = vmatprep.subr.bf16.mxu0 %v9499_v1  ;;  %v3476_v47 = vsel %vm1112_vm2, %v3467_v42, %v3475_v43  ;;  %v3713_v0 = vor.u32 %v3712_v60, %v3709_v59  ;;  %v9281_v13 = vld [vmem:[%s11355_s13 + $0x18] sm:$0xff]  }
 0x44f   : > { %8596 = vmatprep.subr.bf16.mxu1 %v9499_v1  ;;  %v3721_v2 = vor.u32 %v3720_v62, %v3717_v61 }
 0x451   : > { %8615 = vmatpush3.bf16.msra.mxu0 %v9249_v14  ;;  %v3722_v3 = vsel %vm1244_vm9, %v3713_v0, %v3721_v2  ;;  %v9283_v14 = vld [vmem:[%s11355_s13 + $0x10] sm:$0xff]  }
 0x452   : > { %8597 = vmatpush3.bf16.msra.mxu1 %v9250_v16  ;;  %8616 = vmatprep.subr.bf16.mxu0 %v9499_v1  ;;  %v9284_v16 = vld [vmem:[%s11355_s13 + $0x50] sm:$0xff]  }
 0x453   : > { %8598 = vmatprep.subr.bf16.mxu1 %v9499_v1  ;;  %v3854_v2 = vld [vmem:[#allocation3] sm:$0xe] }
 0x455   : > { %8617 = vmatpush3.bf16.msra.mxu0 %v9251_v17  ;;  %v9285_v17 = vld [vmem:[%s11355_s13 + $0x8] sm:$0xff]  }
 0x456   : > { %8599 = vmatpush3.bf16.msra.mxu1 %v9252_v18  ;;  %8618 = vmatprep.subr.bf16.mxu0 %v9499_v1  ;;  %v9286_v18 = vld [vmem:[%s11355_s13 + $0x48] sm:$0xff]  }
 0x457   : > { %8600 = vmatprep.subr.bf16.mxu1 %v9499_v1 }
 0x459   : > { %8619 = vmatpush3.bf16.msra.mxu0 %v9253_v19  ;;  %v9287_v19 = vld [vmem:[%s11355_s13] sm:$0xff]  }
 0x45a   : > { %8601 = vmatpush3.bf16.msra.mxu1 %v9254_v22  ;;  %8620 = vmatprep.subr.bf16.mxu0 %v9499_v1  ;;  %v9288_v22 = vld [vmem:[%s11355_s13 + $0x40] sm:$0xff]  }
 0x45b   : > { %8602 = vmatprep.subr.bf16.mxu1 %v9499_v1 }
 0x45d   : > { %8621 = vmatpush3.bf16.msra.mxu0 %v9255_v24 }
 0x45e   : > { %8603 = vmatpush3.bf16.msra.mxu1 %v9256_v25  ;;  %8622 = vmatprep.subr.bf16.mxu0 %v9499_v1 }
 0x45f   : > { %8604 = vmatprep.subr.bf16.mxu1 %v9499_v1 }
 0x461   : > { %8623 = vmatpush3.bf16.msra.mxu0 %v9257_v33 }
 0x462   : > { %8605 = vmatpush3.bf16.msra.mxu1 %v9258_v34  ;;  %8624 = vmatprep.subr.bf16.mxu0 %v9499_v1 }
 0x463   : > { %8606 = vmatprep.subr.bf16.mxu1 %v9499_v1 }
 0x465   : > { %8625 = vmatpush3.bf16.msra.mxu0 %v9259_v39 }
 0x466   : > { %8607 = vmatpush3.bf16.msra.mxu1 %v9260_v40  ;;  %8626 = vmatprep.subr.bf16.mxu0 %v9499_v1 }
 0x467   : > { %8632 = vmatprep.subr.bf16.mxu1 %v9499_v1 }
 0x469   : > { %8627 = vmatpush3.bf16.msra.mxu0 %v9261_v44  ;;  %8609 = vmatmul.mubr.bf16.vlgmr.msra.gmra.mxu1 %v3476_v47 }
 0x46a   : > { %8633 = vmatpush3.bf16.msra.mxu1 %v9263_v45  ;;  %8648 = vmatprep.mubr.msk.bf16.mxu1 %vm9500_vm3, %v9499_v1 }
 0x46b   : > { %8634 = vmatprep.subr.bf16.mxu1 %v9499_v1  ;;  %8652 = vmatprep.subr.bf16.mxu0 %v9499_v1 }
 0x46c   : > { %8629 = vmatmul.mubr.bf16.vlgmr.msra.gmra.mxu0 %v3592_v48 }
 0x46d   : > { %8668 = vmatprep.mubr.msk.bf16.mxu0 %vm9500_vm3, %v9499_v1  ;;  %8653 = vmatpush3.bf16.msra.mxu0 %v9274_v7 }
 0x46e   : > { %8635 = vmatpush3.bf16.msra.mxu1 %v9265_v28  ;;  %8654 = vmatprep.subr.bf16.mxu0 %v9499_v1 }
 0x46f   : > { %8636 = vmatprep.subr.bf16.mxu1 %v9499_v1 }
 0x471   : > { %8655 = vmatpush3.bf16.msra.mxu0 %v9276_v5 }
 0x472   : > { %8637 = vmatpush3.bf16.msra.mxu1 %v9266_v49  ;;  %8656 = vmatprep.subr.bf16.mxu0 %v9499_v1 }
 0x473   : > { %8638 = vmatprep.subr.bf16.mxu1 %v9499_v1 }
 0x475   : > { %8657 = vmatpush3.bf16.msra.mxu0 %v9278_v11 }
 0x476   : > { %8639 = vmatpush3.bf16.msra.mxu1 %v9267_v30  ;;  %8658 = vmatprep.subr.bf16.mxu0 %v9499_v1 }
 0x477   : > { %8640 = vmatprep.subr.bf16.mxu1 %v9499_v1 }
 0x479   : > { %8659 = vmatpush3.bf16.msra.mxu0 %v9280_v12 }
 0x47a   : > { %8641 = vmatpush3.bf16.msra.mxu1 %v9268_v50  ;;  %8660 = vmatprep.subr.bf16.mxu0 %v9499_v1 }
 0x47b   : > { %8642 = vmatprep.subr.bf16.mxu1 %v9499_v1 }
 0x47d   : > { %8661 = vmatpush3.bf16.msra.mxu0 %v9282_v15 }
 0x47e   : > { %8643 = vmatpush3.bf16.msra.mxu1 %v9269_v52  ;;  %8662 = vmatprep.subr.bf16.mxu0 %v9499_v1 }
 0x47f   : > { %8644 = vmatprep.subr.bf16.mxu1 %v9499_v1 }
 0x481   : > { %8663 = vmatpush3.bf16.msra.mxu0 %v9284_v16 }
 0x482   : > { %8645 = vmatpush3.bf16.msra.mxu1 %v9270_v58  ;;  %8664 = vmatprep.subr.bf16.mxu0 %v9499_v1 }
 0x483   : > { %8646 = vmatprep.subr.bf16.mxu1 %v9499_v1 }
 0x485   : > { %8665 = vmatpush3.bf16.msra.mxu0 %v9286_v18 }
 0x486   : > { %8647 = vmatpush3.bf16.msra.mxu1 %v9271_v63  ;;  %8666 = vmatprep.subr.bf16.mxu0 %v9499_v1 }
 0x487   : > { %8672 = vmatprep.subr.bf16.mxu1 %v9499_v1 }
 0x489   : > { %8649 = vmatmul.mubr.bf16.vlgmr.msra.gmra.mxu1 %v3722_v3  ;;  %8667 = vmatpush3.bf16.msra.mxu0 %v9288_v22  ;;  %v9291_v22 = vld [vmem:[%s11357_s15 + $0x18] sm:$0xff]  }
 0x48a   : > { %8688 = vmatprep.mubr.msk.bf16.mxu1 %vm9500_vm3, %v9499_v1  ;;  %8673 = vmatpush3.bf16.msra.mxu1 %v9273_v57 }
 0x48b   : > { %8674 = vmatprep.subr.bf16.mxu1 %v9499_v1  ;;  %8692 = vmatprep.subr.bf16.mxu0 %v9499_v1 }
 0x48e   : > { %8675 = vmatpush3.bf16.msra.mxu1 %v9275_v9 }
 0x48f   : > { %8676 = vmatprep.subr.bf16.mxu1 %v9499_v1 }
 0x492   : > { %8677 = vmatpush3.bf16.msra.mxu1 %v9277_v10 }
 0x493   : > { %8678 = vmatprep.subr.bf16.mxu1 %v9499_v1 }
 0x496   : > { %8679 = vmatpush3.bf16.msra.mxu1 %v9279_v4  ;;  %v3858_v4 = vld [vmem:[#allocation3 + $0x8] sm:$0x3] }
 0x497   : > { %8680 = vmatprep.subr.bf16.mxu1 %v9499_v1 }
 0x49a   : > { %8681 = vmatpush3.bf16.msra.mxu1 %v9281_v13 }
 0x49b   : > { %8682 = vmatprep.subr.bf16.mxu1 %v9499_v1 }
 0x49e   : > { %8683 = vmatpush3.bf16.msra.mxu1 %v9283_v14 }
 0x49f   : > { %8684 = vmatprep.subr.bf16.mxu1 %v9499_v1 }
 0x4a2   : > { %8685 = vmatpush3.bf16.msra.mxu1 %v9285_v17 }
 0x4a3   : > { %8686 = vmatprep.subr.bf16.mxu1 %v9499_v1 }
 0x4a6   : > { %8687 = vmatpush3.bf16.msra.mxu1 %v9287_v19 }
 0x4a7   : > { %8712 = vmatprep.subr.bf16.mxu1 %v9499_v1 }
 0x508   : > { %v3327_v23 = vpop.f32.mrf.mxu1 }
 0x50a   : > { %v8570_v24 = vpop.f32.mrf.mxu1 }
 0x50c   : > { %v3432_v25 = vpop.f32.mrf.mxu0  ;;  %v3330_v26 = vpop.f32.mrf.mxu1 }
 0x50d   : > { %v3433_v41 = vadd.f32 %v3432_v25, %v3327_v23 }
 0x50e   : > { %v8590_v27 = vpop.f32.mrf.mxu0  ;;  %v8571_v31 = vpop.f32.mrf.mxu1 }
 0x510   : > { %v3435_v32 = vpop.f32.mrf.mxu0 }
 0x511   : > { %v3436_v43 = vadd.f32 %v3435_v32, %v3330_v26 }
 0x512   : > { %v8591_v33 = vpop.f32.mrf.mxu0 }
 0x513   : > { %v9300_v33 = vld [vmem:[#allocation5 + $0x8] ss:$0 sps:$4 sm:$0x33]  }
 0x529   : > { %v3560_v34 = vpop.f32.mrf.mxu1 }
 0x52a   : > { %v3567_v42 = vadd.f32 %v3560_v34, %v3433_v41  ;;  %v4274_v41 = vshll.u32 %v9300_v33, 16 }
 0x52b   : > { %v8610_v35 = vpop.f32.mrf.mxu1 }
 0x52c   : > { %v3676_v36 = vpop.f32.mrf.mxu0 }
 0x52d   : > { %v3563_v37 = vpop.f32.mrf.mxu1  ;;  %v3683_v44 = vadd.f32 %v3676_v36, %v3567_v42 }
 0x52e   : > { %v8630_v38 = vpop.f32.mrf.mxu0  ;;  %v3568_v45 = vadd.f32 %v3563_v37, %v3436_v43  ;;  %v9294_v37 = vld [vmem:[%s11357_s15 + $0x10] sm:$0xff]   ;;  %v9296_v43 = vld [vmem:[%s11357_s15 + $0x8] sm:$0xff]  }
 0x52f   : > { %v8611_v39 = vpop.f32.mrf.mxu1  ;;  %v9299_v38 = vld [vmem:[#allocation5] sm:$0xfe]  }
 0x530   : > { %v3679_v40 = vpop.f32.mrf.mxu0 }
 0x531   : > { %v3684_v48 = vadd.f32 %v3679_v40, %v3568_v45  ;;  %v9293_v40 = vld [vmem:[%s11355_s13 + $0xb8] sm:$0xff]   ;;  %v4266_v45 = vshll.u32 %v9299_v38, 16 }
 0x532   : > { %v8631_v20 = vpop.f32.mrf.mxu0 }
 0x533   : > { %v4271_v20 = vshrl.u32 %v9300_v33, 16 }
 0x549   : > { %v3806_v29 = vpop.f32.mrf.mxu1 }
 0x54a   : > { %v3813_v47 = vadd.f32 %v3806_v29, %v3683_v44  ;;  %v4263_v44 = vshrl.u32 %v9299_v38, 16  ;;  %v9295_v29 = vld [vmem:[%s11355_s13 + $0xb0] sm:$0xff]  }
 0x54b   : > { %v8650_v28 = vpop.f32.mrf.mxu1 }
 0x54c   : > { %v3822_v49 = vadd.f32 %v7418_v46, %v3813_v47  ;;  %v4276_v47 = vrot.slane %v4274_v41, 2  ;;  %v9298_v28 = vld [vmem:[%s11357_s15] sm:$0xff]  }
 0x54d   : > { %v3809_v30 = vpop.f32.mrf.mxu1 }
 0x54e   : > { %v3824_v50 = vmax.f32 %v3822_v49, 0.0  ;;  %v3814_v51 = vadd.f32 %v3809_v30, %v3684_v48  ;;  %v4265_v48 = vrot.slane %v4263_v44, 1  ;;  %v4268_v49 = vrot.slane %v4266_v45, 2  ;;  %v9297_v30 = vld [vmem:[%s11355_s13 + $0xa8] sm:$0xff]  }
 0x54f   : > { %v8651_v52 = vpop.f32.mrf.mxu1 }
 0x550   : > { %v7941_v53 = vpack.c.bf16 %v3824_v50, %v3824_v50  ;;  %v3823_v54 = vadd.f32 %v7418_v46, %v3814_v51  ;;  %v4273_v46 = vrot.slane %v4271_v20, 1  ;;  %v4269_v51 = vor.u32 %v4268_v49, %v4265_v48  ;;  %v9301_v52 = vld [vmem:[%s11355_s13 + $0xa0] sm:$0xff]  }
 0x552   : > { %v3833_v55 = vshrl.u32 %v7941_v53, 16  ;;  %v3836_v56 = vshll.u32 %v7941_v53, 16  ;;  %v3825_v58 = vmax.f32 %v3823_v54, 0.0  ;;  %v4277_v50 = vor.u32 %v4276_v47, %v4273_v46  ;;  %v9302_v54 = vld [vmem:[%s11355_s13 + $0x98] sm:$0xff]  }
 0x554   : > { %v3835_v59 = vrot.slane %v3833_v55, 6  ;;  %v3838_v60 = vrot.slane %v3836_v56, 7  ;;  %v7942_v61 = vpack.c.bf16 %v3825_v58, %v3825_v58  ;;  %v4278_v53 = vsel %vm1112_vm2, %v4269_v51, %v4277_v50  ;;  %v9303_v55 = vld [vmem:[%s11355_s13 + $0x90] sm:$0xff]   ;;  %v9304_v56 = vld [vmem:[%s11355_s13 + $0x88] sm:$0xff]  }
 0x556   : > { %v3839_v62 = vor.u32 %v3838_v60, %v3835_v59  ;;  %v3842_v63 = vshrl.u32 %v7942_v61, 16  ;;  %v3845_v0 = vshll.u32 %v7942_v61, 16  ;;  %v9305_v60 = vld [vmem:[%s11355_s13 + $0x80] sm:$0xff]  }
 0x558   : > { %v3855_v3 = vsel %vm9678_vm7, %v3839_v62, %v3854_v2  ;;  %v3844_v57 = vrot.slane %v3842_v63, 6  ;;  %v3847_v7 = vrot.slane %v3845_v0, 7  ;;  %v3840_v9 = vrot.slane %v3839_v62, 4  ;;  %v9307_v0 = vld [vmem:[%s11359_s17 + $0x38] sm:$0xff]   ;;  %v9308_v2 = vld [vmem:[%s11359_s17 + $0x30] sm:$0xff]  }
 0x559   : > { %3856 = vst [vmem:[#allocation3] sm:$0xe] %v3855_v3  ;;  %v9309_v3 = vld [vmem:[%s11359_s17 + $0x78] sm:$0xff]  }
 0x55a   : > { %v3848_v5 = vor.u32 %v3847_v7, %v3844_v57  ;;  %v9310_v57 = vld [vmem:[%s11359_s17 + $0x28] sm:$0xff]   ;;  %v9311_v7 = vld [vmem:[%s11359_s17 + $0x70] sm:$0xff]  }
 0x55c   : > { %v3849_v10 = vsel %vm9711_vm12, %v3840_v9, %v3848_v5  ;;  %v3850_v11 = vrot.slane %v3848_v5, 4  ;;  %v9312_v9 = vld [vmem:[%s11359_s17 + $0x20] sm:$0xff]   ;;  %v9313_v5 = vld [vmem:[%s11359_s17 + $0x68] sm:$0xff]  }
 0x55d   : > { %3857 = vst [vmem:[#allocation3 + $0x4] sm:$0xf] %v3849_v10  ;;  %v9314_v10 = vld [vmem:[%s11359_s17 + $0x18] sm:$0xff]  }
 0x55e   : > { %v3859_v12 = vsel %vm9669_vm5, %v3850_v11, %v3858_v4  ;;  %v9315_v11 = vld [vmem:[%s11359_s17 + $0x60] sm:$0xff]   ;;  %v9316_v4 = vld [vmem:[%s11359_s17 + $0x10] sm:$0xff]  }
 0x55f   : > { %3860 = vst [vmem:[#allocation3 + $0x8] sm:$0x3] %v3859_v12  ;;  %v9317_v12 = vld [vmem:[%s11359_s17 + $0x58] sm:$0xff]  }
 0x560   : > { %v3861_v13 = vld [vmem:[#allocation3] sm:$0xe] }
 0x561   : > { %v4109_v58 = vld [vmem:[#allocation3] sm:$0xc] }
 0x564   : > { %v10490_v15 = vld [vmem:[#allocation3 + $0x4] sm:$0xf] }
 0x565   : > { %v7437_v14 = vcombine.low %v3861_v13, %v10490_v15  ;;  %v7472_v59 = vcombine.low %v4109_v58, %v10490_v15  ;;  %v9318_v13 = vld [vmem:[%s11359_s17 + $0x8] sm:$0xff]   ;;  %v9319_v15 = vld [vmem:[%s11359_s17 + $0x50] sm:$0xff]  }
 0x566   : > { %v9290_v16 = vld [vmem:[#allocation3 + $0x8] ss:$0 sps:$4 sm:$0x11]  }
 0x567   : > { %v4016_v17 = vrot.slane %v7437_v14, 1  ;;  %v10493_v18 = vld [vmem:[#allocation3 + $0x8] ss:$0 sps:$4 sm:$0x33]   ;;  %v4017_v19 = vrot.slane %v9290_v16, 1  ;;  %v3907_v23 = vshrl.u32 %v7437_v14, 16 }
 0x568   : > { %v3910_v24 = vshll.u32 %v7437_v14, 16  ;;  %v3915_v25 = vshrl.u32 %v10493_v18, 16  ;;  %v3918_v26 = vshll.u32 %v10493_v18, 16  ;;  %v4130_v61 = vrot.slane %v7472_v59, 2  ;;  %v9320_v14 = vld [vmem:[%s11359_s17] sm:$0xff]   ;;  %v9321_v16 = vld [vmem:[%s11359_s17 + $0x48] sm:$0xff]  }
 0x569   : > { %v4018_v27 = vsel %vm1053_vm8, %v4016_v17, %v4017_v19  ;;  %v3909_v31 = vrot.slane %v3907_v23, 1  ;;  %v4131_v62 = vrot.slane %v10493_v18, 2  ;;  %v9324_v17 = vld [vmem:[%s11359_s17 + $0x40] sm:$0xff]  }
 0x56a   : > { %v3912_v32 = vrot.slane %v3910_v24, 2  ;;  %8689 = vmatmul.mubr.bf16.vlgmr.msra.gmra.mxu1 %v4018_v27  ;;  %v3917_v34 = vrot.slane %v3915_v25, 1  ;;  %v3920_v35 = vrot.slane %v3918_v26, 2 }
 0x56b   : > { %8713 = vmatpush3.bf16.msra.mxu1 %v9291_v22  ;;  %8720 = vmatprep.mubr.msk.bf16.mxu1 %vm9500_vm3, %v9499_v1  ;;  %v4132_v63 = vsel %vm1185_vm10, %v4130_v61, %v4131_v62  ;;  %v4379_v61 = vld [vmem:[#allocation4] sm:$0xe] }
 0x56c   : > { %v3913_v36 = vor.u32 %v3912_v32, %v3909_v31  ;;  %8714 = vmatprep.subr.bf16.mxu1 %v9499_v1  ;;  %v3921_v39 = vor.u32 %v3920_v35, %v3917_v34 }
 0x56e   : > { %v3922_v42 = vsel %vm1112_vm2, %v3913_v36, %v3921_v39  ;;  %v7482_v39 = vld [vmem:[%s11358_s16] ss:$0 sm:$0xff] }
 0x56f   : > { %8669 = vmatmul.mubr.bf16.vlgmr.msra.gmra.mxu0 %v3922_v42  ;;  %8715 = vmatpush3.bf16.msra.mxu1 %v9294_v37  ;;  %v7481_v37 = vld [vmem:[%s11356_s14] ss:$0 sm:$0xff] }
 0x570   : > { %8693 = vmatpush3.bf16.msra.mxu0 %v9293_v40  ;;  %8716 = vmatprep.subr.bf16.mxu1 %v9499_v1 }
 0x571   : > { %8694 = vmatprep.subr.bf16.mxu0 %v9499_v1  ;;  %8708 = vmatprep.mubr.msk.bf16.mxu0 %vm9500_vm3, %v9499_v1 }
 0x573   : > { %8717 = vmatpush3.bf16.msra.mxu1 %v9296_v43 }
 0x574   : > { %8695 = vmatpush3.bf16.msra.mxu0 %v9295_v29  ;;  %8718 = vmatprep.subr.bf16.mxu1 %v9499_v1 }
 0x575   : > { %8696 = vmatprep.subr.bf16.mxu0 %v9499_v1 }
 0x577   : > { %8719 = vmatpush3.bf16.msra.mxu1 %v9298_v28 }
 0x578   : > { %8697 = vmatpush3.bf16.msra.mxu0 %v9297_v30  ;;  %8744 = vmatprep.subr.bf16.mxu1 %v9499_v1 }
 0x579   : > { %8698 = vmatprep.subr.bf16.mxu0 %v9499_v1 }
 0x57a   : > { %8721 = vmatmul.mubr.msk.bf16.vlgmr.msra.gmra.mxu1 %vm1550_vm4, %v4278_v53 }
 0x57b   : > { %8760 = vmatprep.mubr.msk.bf16.mxu1 %vm9500_vm3, %v9499_v1  ;;  %8745 = vmatpush3.bf16.msra.mxu1 %v9307_v0 }
 0x57c   : > { %8699 = vmatpush3.bf16.msra.mxu0 %v9301_v52  ;;  %8746 = vmatprep.subr.bf16.mxu1 %v9499_v1 }
 0x57d   : > { %8700 = vmatprep.subr.bf16.mxu0 %v9499_v1 }
 0x57f   : > { %8747 = vmatpush3.bf16.msra.mxu1 %v9308_v2 }
 0x580   : > { %8701 = vmatpush3.bf16.msra.mxu0 %v9302_v54  ;;  %8748 = vmatprep.subr.bf16.mxu1 %v9499_v1 }
 0x581   : > { %8702 = vmatprep.subr.bf16.mxu0 %v9499_v1 }
 0x583   : > { %8749 = vmatpush3.bf16.msra.mxu1 %v9310_v57 }
 0x584   : > { %8703 = vmatpush3.bf16.msra.mxu0 %v9303_v55  ;;  %8750 = vmatprep.subr.bf16.mxu1 %v9499_v1 }
 0x585   : > { %8704 = vmatprep.subr.bf16.mxu0 %v9499_v1 }
 0x587   : > { %8751 = vmatpush3.bf16.msra.mxu1 %v9312_v9  ;;  %v4383_v9 = vld [vmem:[#allocation4 + $0x8] sm:$0x3] }
 0x588   : > { %8705 = vmatpush3.bf16.msra.mxu0 %v9304_v56  ;;  %8752 = vmatprep.subr.bf16.mxu1 %v9499_v1 }
 0x589   : > { %8706 = vmatprep.subr.bf16.mxu0 %v9499_v1 }
 0x58b   : > { %8753 = vmatpush3.bf16.msra.mxu1 %v9314_v10  ;;  %v9323_v10 = vld [vmem:[%s11359_s17 + $0xf8] sm:$0xff]  }
 0x58c   : > { %8707 = vmatpush3.bf16.msra.mxu0 %v9305_v60  ;;  %8754 = vmatprep.subr.bf16.mxu1 %v9499_v1 }
 0x58d   : > { %8724 = vmatprep.subr.bf16.mxu0 %v9499_v1 }
 0x58f   : > { %8709 = vmatmul.mubr.bf16.vlgmr.msra.gmra.mxu0 %v4132_v63  ;;  %8755 = vmatpush3.bf16.msra.mxu1 %v9316_v4 }
 0x590   : > { %8740 = vmatprep.mubr.msk.bf16.mxu0 %vm9500_vm3, %v9499_v1  ;;  %8725 = vmatpush3.bf16.msra.mxu0 %v9309_v3 }
 0x591   : > { %8726 = vmatprep.subr.bf16.mxu0 %v9499_v1  ;;  %8756 = vmatprep.subr.bf16.mxu1 %v9499_v1 }
 0x593   : > { %8757 = vmatpush3.bf16.msra.mxu1 %v9318_v13 }
 0x594   : > { %8727 = vmatpush3.bf16.msra.mxu0 %v9311_v7  ;;  %8758 = vmatprep.subr.bf16.mxu1 %v9499_v1 }
 0x595   : > { %8728 = vmatprep.subr.bf16.mxu0 %v9499_v1 }
 0x597   : > { %8759 = vmatpush3.bf16.msra.mxu1 %v9320_v14  ;;  %v9325_v14 = vld [vmem:[%s11359_s17 + $0xf0] sm:$0xff]  }
 0x598   : > { %8729 = vmatpush3.bf16.msra.mxu0 %v9313_v5  ;;  %8784 = vmatprep.subr.bf16.mxu1 %v9499_v1 }
 0x599   : > { %8730 = vmatprep.subr.bf16.mxu0 %v9499_v1 }
 0x59c   : > { %8731 = vmatpush3.bf16.msra.mxu0 %v9315_v11 }
 0x59d   : > { %8732 = vmatprep.subr.bf16.mxu0 %v9499_v1 }
 0x5a0   : > { %8733 = vmatpush3.bf16.msra.mxu0 %v9317_v12 }
 0x5a1   : > { %8734 = vmatprep.subr.bf16.mxu0 %v9499_v1 }
 0x5a4   : > { %8735 = vmatpush3.bf16.msra.mxu0 %v9319_v15 }
 0x5a5   : > { %8736 = vmatprep.subr.bf16.mxu0 %v9499_v1 }
 0x5a8   : > { %8737 = vmatpush3.bf16.msra.mxu0 %v9321_v16 }
 0x5a9   : > { %8738 = vmatprep.subr.bf16.mxu0 %v9499_v1 }
 0x5ac   : > { %8739 = vmatpush3.bf16.msra.mxu0 %v9324_v17 }
 0x5ad   : > { %8764 = vmatprep.subr.bf16.mxu0 %v9499_v1 }
 0x62a   : > { %v4102_v18 = vpop.f32.mrf.mxu1 }
 0x62c   : > { %v8690_v19 = vpop.f32.mrf.mxu1 }
 0x62e   : > { %v4105_v22 = vpop.f32.mrf.mxu1 }
 0x62f   : > { %v4006_v23 = vpop.f32.mrf.mxu0 }
 0x630   : > { %v8691_v24 = vpop.f32.mrf.mxu1  ;;  %v4103_v35 = vadd.f32 %v4102_v18, %v4006_v23  ;;  %v9327_v23 = vld [vmem:[%s11359_s17 + $0xb8] sm:$0xff]  }
 0x631   : > { %v8670_v25 = vpop.f32.mrf.mxu0  ;;  %v9328_v24 = vld [vmem:[%s11359_s17 + $0xe8] sm:$0xff]  }
 0x633   : > { %v4009_v26 = vpop.f32.mrf.mxu0 }
 0x634   : > { %v4106_v20 = vadd.f32 %v4105_v22, %v4009_v26  ;;  %v9329_v26 = vld [vmem:[%s11359_s17 + $0xb0] sm:$0xff]  }
 0x635   : > { %v8671_v27 = vpop.f32.mrf.mxu0 }
 0x636   : > { %v9330_v27 = vld [vmem:[%s11359_s17 + $0xe0] sm:$0xff]  }
 0x63a   : > { %v4340_v31 = vpop.f32.mrf.mxu1 }
 0x63b   : > { %v4341_v43 = vadd.f32 %v7482_v39, %v4340_v31  ;;  %v9331_v31 = vld [vmem:[%s11359_s17 + $0xa8] sm:$0xff]  }
 0x63c   : > { %v8722_v32 = vpop.f32.mrf.mxu1 }
 0x63d   : > { %v9332_v32 = vld [vmem:[%s11359_s17 + $0xd8] sm:$0xff]  }
 0x63e   : > { %v4343_v33 = vpop.f32.mrf.mxu1 }
 0x63f   : > { %v4344_v28 = vadd.f32 %v7482_v39, %v4343_v33 }
 0x640   : > { %v8723_v34 = vpop.f32.mrf.mxu1 }
 0x64f   : > { %v4216_v36 = vpop.f32.mrf.mxu0 }
 0x650   : > { %v4223_v38 = vadd.f32 %v4216_v36, %v4103_v35  ;;  %v9333_v36 = vld [vmem:[%s11359_s17 + $0xa0] sm:$0xff]  }
 0x651   : > { %v8710_v40 = vpop.f32.mrf.mxu0 }
 0x652   : > { %v4232_v41 = vadd.f32 %v7481_v37, %v4223_v38 }
 0x653   : > { %v4219_v42 = vpop.f32.mrf.mxu0 }
 0x654   : > { %v4234_v44 = vmax.f32 %v4232_v41, 0.0  ;;  %v4224_v45 = vadd.f32 %v4219_v42, %v4106_v20  ;;  %v9335_v41 = vld [vmem:[%s11359_s17 + $0x98] sm:$0xff]   ;;  %v9336_v42 = vld [vmem:[%s11359_s17 + $0xc8] sm:$0xff]  }
 0x655   : > { %v8711_v29 = vpop.f32.mrf.mxu0 }
 0x656   : > { %v4347_v46 = vadd.f32 %v4341_v43, %v4234_v44  ;;  %v4233_v47 = vadd.f32 %v7481_v37, %v4224_v45  ;;  %v9334_v37 = vld [vmem:[%s11359_s17 + $0xd0] sm:$0xff]  }
 0x658   : > { %v4349_v48 = vmax.f32 %v4347_v46, 0.0  ;;  %v4235_v49 = vmax.f32 %v4233_v47, 0.0  ;;  %v9337_v46 = vld [vmem:[%s11359_s17 + $0x90] sm:$0xff]   ;;  %v9338_v47 = vld [vmem:[%s11359_s17 + $0xc0] sm:$0xff]  }
 0x65a   : > { %v7943_v30 = vpack.c.bf16 %v4349_v48, %v4349_v48  ;;  %v4348_v50 = vadd.f32 %v4344_v28, %v4235_v49  ;;  %v9339_v49 = vld [vmem:[%s11359_s17 + $0x88] sm:$0xff]  }
 0x65c   : > { %v4358_v51 = vshrl.u32 %v7943_v30, 16  ;;  %v4361_v52 = vshll.u32 %v7943_v30, 16  ;;  %v4350_v53 = vmax.f32 %v4348_v50, 0.0  ;;  %v9342_v30 = vld [vmem:[%s11359_s17 + $0x178] sm:$0xff]  }
 0x65e   : > { %v4360_v54 = vrot.slane %v4358_v51, 6  ;;  %v4363_v55 = vrot.slane %v4361_v52, 7  ;;  %v7944_v56 = vpack.c.bf16 %v4350_v53, %v4350_v53  ;;  %v9343_v51 = vld [vmem:[%s11359_s17 + $0x80] sm:$0xff]   ;;  %v9344_v52 = vld [vmem:[%s11359_s17 + $0x170] sm:$0xff]  }
 0x660   : > { %v4364_v58 = vor.u32 %v4363_v55, %v4360_v54  ;;  %v4367_v59 = vshrl.u32 %v7944_v56, 16  ;;  %v4370_v60 = vshll.u32 %v7944_v56, 16  ;;  %v9345_v55 = vld [vmem:[%s11359_s17 + $0x138] sm:$0xff]   ;;  %v9346_v56 = vld [vmem:[%s11359_s17 + $0x168] sm:$0xff]  }
 0x662   : > { %v4380_v62 = vsel %vm9678_vm7, %v4364_v58, %v4379_v61  ;;  %v4369_v63 = vrot.slane %v4367_v59, 6  ;;  %v4372_v0 = vrot.slane %v4370_v60, 7  ;;  %v4365_v2 = vrot.slane %v4364_v58, 4  ;;  %v9347_v59 = vld [vmem:[%s11359_s17 + $0x130] sm:$0xff]   ;;  %v9348_v60 = vld [vmem:[%s11359_s17 + $0x160] sm:$0xff]   ;;  %v9349_v61 = vld [vmem:[%s11359_s17 + $0x128] sm:$0xff]  }
 0x663   : > { %4381 = vst [vmem:[#allocation4] sm:$0xe] %v4380_v62  ;;  %v9350_v62 = vld [vmem:[%s11359_s17 + $0x158] sm:$0xff]  }
 0x664   : > { %v4373_v3 = vor.u32 %v4372_v0, %v4369_v63 }
 0x666   : > { %v4374_v57 = vsel %vm9711_vm12, %v4365_v2, %v4373_v3  ;;  %v4375_v7 = vrot.slane %v4373_v3, 4  ;;  %v9351_v3 = vld [vmem:[%s11359_s17 + $0x120] sm:$0xff]  }
 0x667   : > { %4382 = vst [vmem:[#allocation4 + $0x4] sm:$0xf] %v4374_v57  ;;  %v9352_v57 = vld [vmem:[%s11359_s17 + $0x150] sm:$0xff]  }
 0x668   : > { %v4384_v5 = vsel %vm9669_vm5, %v4375_v7, %v4383_v9 }
 0x669   : > { %4385 = vst [vmem:[#allocation4 + $0x8] sm:$0x3] %v4384_v5 }
 0x66a   : > { %v4386_v11 = vld [vmem:[#allocation4] sm:$0xf] }
 0x66b   : > { %v4622_v33 = vld [vmem:[#allocation4] sm:$0xe] }
 0x66c   : > { %v4868_v63 = vld [vmem:[#allocation4] sm:$0xc] }
 0x66e   : > { %v10639_v4 = vld [vmem:[#allocation4 + $0x4] sm:$0xf] }
 0x66f   : > { %v7508_v12 = vcombine.low %v4386_v11, %v10639_v4  ;;  %v7542_v34 = vcombine.low %v4622_v33, %v10639_v4  ;;  %v7592_v0 = vcombine.low %v4868_v63, %v10639_v4  ;;  %v9353_v11 = vld [vmem:[%s11359_s17 + $0x118] sm:$0xff]   ;;  %v9381_v63 = vld [vmem:[%s11361_s19 + $0x70] sm:$0xff]  }
 0x670   : > { %v10642_v13 = vld [vmem:[#allocation4 + $0x8] ss:$0 sps:$4 sm:$0x11]   ;;  %v9363_v33 = vld [vmem:[%s11359_s17 + $0x1b8] sm:$0xff]  }
 0x671   : > { %8761 = vmatmul.mubr.bf16.vlgmr.msra.gmra.mxu1 %v7508_v12  ;;  %v4433_v15 = vshll.u32 %v7508_v12, 16  ;;  %v4438_v16 = vshll.u32 %v10642_v13, 16  ;;  %v4431_v17 = vshrl.u32 %v7508_v12, 16  ;;  %v10678_v35 = vld [vmem:[#allocation4 + $0x8] ss:$0 sps:$4 sm:$0x33]  }
 0x672   : > { %8785 = vmatpush3.bf16.msra.mxu1 %v9323_v10  ;;  %8800 = vmatprep.mubr.msk.bf16.mxu1 %vm9500_vm3, %v9499_v1  ;;  %v4760_v38 = vshrl.u32 %v7542_v34, 16  ;;  %v4763_v39 = vshll.u32 %v7542_v34, 16  ;;  %v4768_v40 = vshrl.u32 %v10678_v35, 16  ;;  %v4771_v20 = vshll.u32 %v10678_v35, 16  ;;  %v9354_v12 = vld [vmem:[%s11359_s17 + $0x148] sm:$0xff]  }
 0x673   : > { %8786 = vmatprep.subr.bf16.mxu1 %v9499_v1  ;;  %v4435_v18 = vrot.slane %v4433_v15, 1  ;;  %v4440_v19 = vrot.slane %v4438_v16, 1  ;;  %v4643_v53 = vrot.slane %v7542_v34, 1  ;;  %v4644_v54 = vrot.slane %v10642_v13, 1  ;;  %v9364_v34 = vld [vmem:[%s11359_s17 + $0x1e8] sm:$0xff]  }
 0x674   : > { %v4762_v43 = vrot.slane %v4760_v38, 1  ;;  %v4765_v44 = vrot.slane %v4763_v39, 2  ;;  %v4770_v45 = vrot.slane %v4768_v40, 1  ;;  %v4773_v29 = vrot.slane %v4771_v20, 2  ;;  %v9367_v38 = vld [vmem:[%s11359_s17 + $0x1a8] sm:$0xff]   ;;  %v9368_v39 = vld [vmem:[%s11359_s17 + $0x1d8] sm:$0xff]  }
 0x675   : > { %v4436_v22 = vor.u32 %v4435_v18, %v4431_v17  ;;  %v4645_v58 = vsel %vm1053_vm8, %v4643_v53, %v4644_v54  ;;  %v10754_v2 = vld [vmem:[#allocation4 + $0x8] ss:$0 sps:$4 sm:$0x77]   ;;  %v5006_v7 = vshrl.u32 %v7592_v0, 16  ;;  %v5009_v9 = vshll.u32 %v7592_v0, 16  ;;  %v9355_v17 = vld [vmem:[%s11359_s17 + $0x110] sm:$0xff]  }
 0x676   : > { %8787 = vmatpush3.bf16.msra.mxu1 %v9325_v14  ;;  %v4766_v28 = vor.u32 %v4765_v44, %v4762_v43  ;;  %v4774_v48 = vor.u32 %v4773_v29, %v4770_v45  ;;  %v5014_v5 = vshrl.u32 %v10754_v2, 16  ;;  %v5017_v10 = vshll.u32 %v10754_v2, 16  ;;  %v9356_v18 = vld [vmem:[%s11359_s17 + $0x140] sm:$0xff]   ;;  %v9370_v43 = vld [vmem:[%s11359_s17 + $0x1d0] sm:$0xff]   ;;  %v9375_v54 = vld [vmem:[%s11359_s17 + $0x188] sm:$0xff]  }
 0x677   : > { %v4441_v25 = vsel %vm939_vm1, %v4436_v22, %v4440_v19  ;;  %8788 = vmatprep.subr.bf16.mxu1 %v9499_v1  ;;  %v5008_v13 = vrot.slane %v5006_v7, 2  ;;  %v5011_v15 = vrot.slane %v5009_v9, 3  ;;  %v5114_v40 = vld [vmem:[#allocation4] sm:$0x8] }
 0x678   : > { %8741 = vmatmul.mubr.bf16.vlgmr.msra.gmra.mxu0 %v4441_v25  ;;  %v4775_v50 = vsel %vm1112_vm2, %v4766_v28, %v4774_v48  ;;  %v5016_v14 = vrot.slane %v5014_v5, 2  ;;  %v5019_v16 = vrot.slane %v5017_v10, 3  ;;  %v7642_v20 = vcombine.low %v5114_v40, %v10639_v4  ;;  %v9371_v4 = vld [vmem:[%s11359_s17 + $0x198] sm:$0xff]   ;;  %v9386_v7 = vld [vmem:[%s11361_s19 + $0x20] sm:$0xff]  }
 0x679   : > { %8765 = vmatpush3.bf16.msra.mxu0 %v9327_v23  ;;  %8780 = vmatprep.mubr.msk.bf16.mxu0 %vm9500_vm3, %v9499_v1  ;;  %v5012_v19 = vor.u32 %v5011_v15, %v5008_v13  ;;  %v9357_v23 = vld [vmem:[%s11359_s17 + $0x108] sm:$0xff]   ;;  %v9387_v5 = vld [vmem:[%s11361_s19 + $0x58] sm:$0xff]   ;;  %v9389_v13 = vld [vmem:[%s11361_s19 + $0x50] sm:$0xff]  }
 0x67a   : > { %8789 = vmatpush3.bf16.msra.mxu1 %v9328_v24  ;;  %8766 = vmatprep.subr.bf16.mxu0 %v9499_v1  ;;  %v5020_v22 = vor.u32 %v5019_v16, %v5016_v14  ;;  %v9360_v24 = vld [vmem:[%s11359_s17 + $0x1f8] sm:$0xff]   ;;  %v5252_v44 = vshrl.u32 %v7642_v20, 16  ;;  %v5255_v45 = vshll.u32 %v7642_v20, 16  ;;  %v9390_v16 = vld [vmem:[%s11361_s19 + $0x10] sm:$0xff]  }
 0x67b   : > { %8790 = vmatprep.subr.bf16.mxu1 %v9499_v1 }
 0x67c   : > { %v5021_v25 = vsel %vm1244_vm9, %v5012_v19, %v5020_v22  ;;  %v5254_v28 = vrot.slane %v5252_v44, 3  ;;  %v5257_v48 = vrot.slane %v5255_v45, 4 }
 0x67d   : > { %8767 = vmatpush3.bf16.msra.mxu0 %v9329_v26  ;;  %v9361_v26 = vld [vmem:[%s11359_s17 + $0x100] sm:$0xff]  }
 0x67e   : > { %8791 = vmatpush3.bf16.msra.mxu1 %v9330_v27  ;;  %8768 = vmatprep.subr.bf16.mxu0 %v9499_v1  ;;  %v9362_v27 = vld [vmem:[%s11359_s17 + $0x1f0] sm:$0xff]  }
 0x67f   : > { %8792 = vmatprep.subr.bf16.mxu1 %v9499_v1 }
 0x681   : > { %8769 = vmatpush3.bf16.msra.mxu0 %v9331_v31  ;;  %v4889_v31 = vrot.slane %v7592_v0, 2  ;;  %v9382_v0 = vld [vmem:[%s11361_s19 + $0x30] sm:$0xff]  }
 0x682   : > { %8793 = vmatpush3.bf16.msra.mxu1 %v9332_v32  ;;  %8770 = vmatprep.subr.bf16.mxu0 %v9499_v1  ;;  %v4890_v32 = vrot.slane %v10678_v35, 2  ;;  %v9365_v35 = vld [vmem:[%s11359_s17 + $0x1b0] sm:$0xff]  }
 0x683   : > { %8794 = vmatprep.subr.bf16.mxu1 %v9499_v1 }
 0x685   : > { %8771 = vmatpush3.bf16.msra.mxu0 %v9333_v36  ;;  %v4891_v36 = vsel %vm1185_vm10, %v4889_v31, %v4890_v32 }
 0x686   : > { %8795 = vmatpush3.bf16.msra.mxu1 %v9334_v37  ;;  %8772 = vmatprep.subr.bf16.mxu0 %v9499_v1  ;;  %v9366_v37 = vld [vmem:[%s11359_s17 + $0x1e0] sm:$0xff]  }
 0x687   : > { %8796 = vmatprep.subr.bf16.mxu1 %v9499_v1 }
 0x689   : > { %8773 = vmatpush3.bf16.msra.mxu0 %v9335_v41  ;;  %v9377_v41 = vld [vmem:[#allocation4 + $0x8] ss:$0 sps:$4 sm:$0xff]  }
 0x68a   : > { %8797 = vmatpush3.bf16.msra.mxu1 %v9336_v42  ;;  %8774 = vmatprep.subr.bf16.mxu0 %v9499_v1  ;;  %v9369_v42 = vld [vmem:[%s11359_s17 + $0x1a0] sm:$0xff]   ;;  %v5260_v29 = vshrl.u32 %v9377_v41, 16 }
 0x68b   : > { %8798 = vmatprep.subr.bf16.mxu1 %v9499_v1 }
 0x68d   : > { %8775 = vmatpush3.bf16.msra.mxu0 %v9337_v46  ;;  %v5263_v46 = vshll.u32 %v9377_v41, 16 }
 0x68e   : > { %8799 = vmatpush3.bf16.msra.mxu1 %v9338_v47  ;;  %8776 = vmatprep.subr.bf16.mxu0 %v9499_v1  ;;  %v9372_v47 = vld [vmem:[%s11359_s17 + $0x1c8] sm:$0xff]  }
 0x68f   : > { %8824 = vmatprep.subr.bf16.mxu1 %v9499_v1 }
 0x691   : > { %8777 = vmatpush3.bf16.msra.mxu0 %v9339_v49  ;;  %8801 = vmatmul.mubr.bf16.vlgmr.msra.gmra.mxu1 %v4775_v50  ;;  %v5262_v49 = vrot.slane %v5260_v29, 3  ;;  %v9373_v50 = vld [vmem:[%s11359_s17 + $0x190] sm:$0xff]  }
 0x692   : > { %8825 = vmatpush3.bf16.msra.mxu1 %v9342_v30  ;;  %8778 = vmatprep.subr.bf16.mxu0 %v9499_v1  ;;  %v5265_v30 = vrot.slane %v5263_v46, 4 }
 0x693   : > { %8826 = vmatprep.subr.bf16.mxu1 %v9499_v1  ;;  %8840 = vmatprep.mubr.msk.bf16.mxu1 %vm9500_vm3, %v9499_v1 }
 0x694   : > { %v5266_v53 = vor.u32 %v5265_v30, %v5262_v49 }
 0x695   : > { %8779 = vmatpush3.bf16.msra.mxu0 %v9343_v51  ;;  %v9374_v51 = vld [vmem:[%s11359_s17 + $0x1c0] sm:$0xff]  }
 0x696   : > { %8827 = vmatpush3.bf16.msra.mxu1 %v9344_v52  ;;  %8804 = vmatprep.subr.bf16.mxu0 %v9499_v1  ;;  %v5258_v52 = vor.u32 %v5257_v48, %v5254_v28 }
 0x697   : > { %8828 = vmatprep.subr.bf16.mxu1 %v9499_v1 }
 0x698   : > { %8781 = vmatmul.mubr.bf16.vlgmr.msra.gmra.mxu0 %v4645_v58  ;;  %v5135_v58 = vrot.slane %v7642_v20, 3 }
 0x699   : > { %8805 = vmatpush3.bf16.msra.mxu0 %v9345_v55  ;;  %8820 = vmatprep.mubr.msk.bf16.mxu0 %vm9500_vm3, %v9499_v1  ;;  %v5267_v55 = vsel %vm11422_vm13, %v5258_v52, %v5266_v53 }
 0x69a   : > { %8829 = vmatpush3.bf16.msra.mxu1 %v9346_v56  ;;  %8806 = vmatprep.subr.bf16.mxu0 %v9499_v1  ;;  %v9378_v56 = vld [vmem:[%s11359_s17 + $0x180] sm:$0xff]  }
 0x69b   : > { %8830 = vmatprep.subr.bf16.mxu1 %v9499_v1 }
 0x69d   : > { %8807 = vmatpush3.bf16.msra.mxu0 %v9347_v59  ;;  %v5136_v59 = vrot.slane %v10754_v2, 3  ;;  %v9383_v2 = vld [vmem:[%s11361_s19 + $0x68] sm:$0xff]  }
 0x69e   : > { %8831 = vmatpush3.bf16.msra.mxu1 %v9348_v60  ;;  %8808 = vmatprep.subr.bf16.mxu0 %v9499_v1 }
 0x69f   : > { %8832 = vmatprep.subr.bf16.mxu1 %v9499_v1  ;;  %v5137_v60 = vsel %vm11423_vm14, %v5135_v58, %v5136_v59 }
 0x6a1   : > { %8809 = vmatpush3.bf16.msra.mxu0 %v9349_v61  ;;  %v9379_v61 = vld [vmem:[%s11361_s19 + $0x78] sm:$0xff]  }
 0x6a2   : > { %8833 = vmatpush3.bf16.msra.mxu1 %v9350_v62  ;;  %8810 = vmatprep.subr.bf16.mxu0 %v9499_v1  ;;  %v9380_v62 = vld [vmem:[%s11361_s19 + $0x38] sm:$0xff]  }
 0x6a3   : > { %8834 = vmatprep.subr.bf16.mxu1 %v9499_v1 }
 0x6a5   : > { %8811 = vmatpush3.bf16.msra.mxu0 %v9351_v3  ;;  %v9384_v3 = vld [vmem:[%s11361_s19 + $0x28] sm:$0xff]  }
 0x6a6   : > { %8835 = vmatpush3.bf16.msra.mxu1 %v9352_v57  ;;  %8812 = vmatprep.subr.bf16.mxu0 %v9499_v1  ;;  %v9385_v57 = vld [vmem:[%s11361_s19 + $0x60] sm:$0xff]  }
 0x6a7   : > { %8836 = vmatprep.subr.bf16.mxu1 %v9499_v1 }
 0x6a9   : > { %8813 = vmatpush3.bf16.msra.mxu0 %v9353_v11  ;;  %v9388_v11 = vld [vmem:[%s11361_s19 + $0x18] sm:$0xff]  }
 0x6aa   : > { %8837 = vmatpush3.bf16.msra.mxu1 %v9354_v12  ;;  %8814 = vmatprep.subr.bf16.mxu0 %v9499_v1 }
 0x6ab   : > { %8838 = vmatprep.subr.bf16.mxu1 %v9499_v1 }
 0x6ad   : > { %8815 = vmatpush3.bf16.msra.mxu0 %v9355_v17 }
 0x6ae   : > { %8839 = vmatpush3.bf16.msra.mxu1 %v9356_v18  ;;  %8816 = vmatprep.subr.bf16.mxu0 %v9499_v1  ;;  %v9391_v18 = vld [vmem:[%s11361_s19 + $0x48] sm:$0xff]  }
 0x6af   : > { %8864 = vmatprep.subr.bf16.mxu1 %v9499_v1 }
 0x6b1   : > { %8817 = vmatpush3.bf16.msra.mxu0 %v9357_v23  ;;  %8841 = vmatmul.mubr.bf16.vlgmr.msra.gmra.mxu1 %v5021_v25  ;;  %v9392_v23 = vld [vmem:[%s11361_s19 + $0x8] sm:$0xff]   ;;  %v9393_v25 = vld [vmem:[%s11361_s19 + $0x40] sm:$0xff]  }
 0x6b2   : > { %8865 = vmatpush3.bf16.msra.mxu1 %v9360_v24  ;;  %8818 = vmatprep.subr.bf16.mxu0 %v9499_v1 }
 0x6b3   : > { %8866 = vmatprep.subr.bf16.mxu1 %v9499_v1  ;;  %8880 = vmatprep.mubr.msk.bf16.mxu1 %vm9500_vm3, %v9499_v1 }
 0x6b5   : > { %8819 = vmatpush3.bf16.msra.mxu0 %v9361_v26 }
 0x6b6   : > { %8867 = vmatpush3.bf16.msra.mxu1 %v9362_v27  ;;  %8844 = vmatprep.subr.bf16.mxu0 %v9499_v1  ;;  %v9394_v27 = vld [vmem:[%s11361_s19] sm:$0xff]  }
 0x6b7   : > { %8868 = vmatprep.subr.bf16.mxu1 %v9499_v1 }
 0x6b8   : > { %8821 = vmatmul.mubr.bf16.vlgmr.msra.gmra.mxu0 %v4891_v36 }
 0x6b9   : > { %8845 = vmatpush3.bf16.msra.mxu0 %v9363_v33  ;;  %8860 = vmatprep.mubr.msk.bf16.mxu0 %vm9500_vm3, %v9499_v1 }
 0x6ba   : > { %8869 = vmatpush3.bf16.msra.mxu1 %v9364_v34  ;;  %8846 = vmatprep.subr.bf16.mxu0 %v9499_v1 }
 0x6bb   : > { %8870 = vmatprep.subr.bf16.mxu1 %v9499_v1 }
 0x6bd   : > { %8847 = vmatpush3.bf16.msra.mxu0 %v9365_v35 }
 0x6be   : > { %8871 = vmatpush3.bf16.msra.mxu1 %v9366_v37  ;;  %8848 = vmatprep.subr.bf16.mxu0 %v9499_v1 }
 0x6bf   : > { %8872 = vmatprep.subr.bf16.mxu1 %v9499_v1 }
 0x6c1   : > { %8849 = vmatpush3.bf16.msra.mxu0 %v9367_v38 }
 0x6c2   : > { %8873 = vmatpush3.bf16.msra.mxu1 %v9368_v39  ;;  %8850 = vmatprep.subr.bf16.mxu0 %v9499_v1 }
 0x6c3   : > { %8874 = vmatprep.subr.bf16.mxu1 %v9499_v1 }
 0x6c5   : > { %8851 = vmatpush3.bf16.msra.mxu0 %v9369_v42 }
 0x6c6   : > { %8875 = vmatpush3.bf16.msra.mxu1 %v9370_v43  ;;  %8852 = vmatprep.subr.bf16.mxu0 %v9499_v1 }
 0x6c7   : > { %8876 = vmatprep.subr.bf16.mxu1 %v9499_v1 }
 0x6c9   : > { %8853 = vmatpush3.bf16.msra.mxu0 %v9371_v4 }
 0x6ca   : > { %8877 = vmatpush3.bf16.msra.mxu1 %v9372_v47  ;;  %8854 = vmatprep.subr.bf16.mxu0 %v9499_v1 }
 0x6cb   : > { %8878 = vmatprep.subr.bf16.mxu1 %v9499_v1 }
 0x6cd   : > { %8855 = vmatpush3.bf16.msra.mxu0 %v9373_v50 }
 0x6ce   : > { %8879 = vmatpush3.bf16.msra.mxu1 %v9374_v51  ;;  %8856 = vmatprep.subr.bf16.mxu0 %v9499_v1 }
 0x6cf   : > { %8904 = vmatprep.subr.bf16.mxu1 %v9499_v1 }
 0x6d1   : > { %8857 = vmatpush3.bf16.msra.mxu0 %v9375_v54  ;;  %8881 = vmatmul.mubr.bf16.vlgmr.msra.gmra.mxu1 %v5267_v55  ;;  %v7676_v55 = vld [vmem:[%s11360_s18] ss:$0 sm:$0xff] }
 0x6d2   : > { %8858 = vmatprep.subr.bf16.mxu0 %v9499_v1  ;;  %8920 = vmatprep.mubr.msk.bf16.mxu1 %vm9500_vm3, %v9499_v1 }
 0x6d3   : > { %8905 = vmatpush3.bf16.msra.mxu1 %v9380_v62 }
 0x6d4   : > { %8906 = vmatprep.subr.bf16.mxu1 %v9499_v1 }
 0x6d5   : > { %8859 = vmatpush3.bf16.msra.mxu0 %v9378_v56 }
 0x6d6   : > { %8884 = vmatprep.subr.bf16.mxu0 %v9499_v1 }
 0x6d7   : > { %8907 = vmatpush3.bf16.msra.mxu1 %v9382_v0 }
 0x6d8   : > { %8861 = vmatmul.mubr.bf16.vlgmr.msra.gmra.mxu0 %v5137_v60  ;;  %8908 = vmatprep.subr.bf16.mxu1 %v9499_v1 }
 0x6d9   : > { %8900 = vmatprep.mubr.msk.bf16.mxu0 %vm9500_vm3, %v9499_v1  ;;  %8885 = vmatpush3.bf16.msra.mxu0 %v9379_v61 }
 0x6da   : > { %8886 = vmatprep.subr.bf16.mxu0 %v9499_v1 }
 0x6db   : > { %8909 = vmatpush3.bf16.msra.mxu1 %v9384_v3 }
 0x6dc   : > { %8910 = vmatprep.subr.bf16.mxu1 %v9499_v1 }
 0x6dd   : > { %8887 = vmatpush3.bf16.msra.mxu0 %v9381_v63 }
 0x6de   : > { %8888 = vmatprep.subr.bf16.mxu0 %v9499_v1 }
 0x6df   : > { %8911 = vmatpush3.bf16.msra.mxu1 %v9386_v7 }
 0x6e0   : > { %8912 = vmatprep.subr.bf16.mxu1 %v9499_v1 }
 0x6e1   : > { %8889 = vmatpush3.bf16.msra.mxu0 %v9383_v2 }
 0x6e2   : > { %8890 = vmatprep.subr.bf16.mxu0 %v9499_v1 }
 0x6e3   : > { %8913 = vmatpush3.bf16.msra.mxu1 %v9388_v11 }
 0x6e4   : > { %8914 = vmatprep.subr.bf16.mxu1 %v9499_v1 }
 0x6e5   : > { %8891 = vmatpush3.bf16.msra.mxu0 %v9385_v57 }
 0x6e6   : > { %8892 = vmatprep.subr.bf16.mxu0 %v9499_v1 }
 0x6e7   : > { %8915 = vmatpush3.bf16.msra.mxu1 %v9390_v16  ;;  %v5399_v16 = vld [vmem:[#allocation5] sm:$0xe] }
 0x6e8   : > { %8916 = vmatprep.subr.bf16.mxu1 %v9499_v1 }
 0x6e9   : > { %8893 = vmatpush3.bf16.msra.mxu0 %v9387_v5 }
 0x6ea   : > { %8894 = vmatprep.subr.bf16.mxu0 %v9499_v1 }
 0x6eb   : > { %8917 = vmatpush3.bf16.msra.mxu1 %v9392_v23 }
 0x6ec   : > { %8918 = vmatprep.subr.bf16.mxu1 %v9499_v1 }
 0x6ed   : > { %8895 = vmatpush3.bf16.msra.mxu0 %v9389_v13 }
 0x6ee   : > { %8896 = vmatprep.subr.bf16.mxu0 %v9499_v1 }
 0x6ef   : > { %8919 = vmatpush3.bf16.msra.mxu1 %v9394_v27 }
 0x6f0   : > { %8944 = vmatprep.subr.bf16.mxu1 %v9499_v1 }
 0x6f1   : > { %8897 = vmatpush3.bf16.msra.mxu0 %v9391_v18 }
 0x6f2   : > { %8898 = vmatprep.subr.bf16.mxu0 %v9499_v1 }
 0x6f5   : > { %8899 = vmatpush3.bf16.msra.mxu0 %v9393_v25 }
 0x6f6   : > { %8924 = vmatprep.subr.bf16.mxu0 %v9499_v1 }
 0x731   : > { %v4615_v9 = vpop.f32.mrf.mxu1 }
 0x733   : > { %v8762_v10 = vpop.f32.mrf.mxu1 }
 0x735   : > { %v4618_v12 = vpop.f32.mrf.mxu1 }
 0x737   : > { %v8763_v15 = vpop.f32.mrf.mxu1 }
 0x738   : > { %v4525_v14 = vpop.f32.mrf.mxu0 }
 0x739   : > { %v4616_v17 = vadd.f32 %v4615_v9, %v4525_v14 }
 0x73a   : > { %v8742_v19 = vpop.f32.mrf.mxu0 }
 0x73c   : > { %v4528_v22 = vpop.f32.mrf.mxu0 }
 0x73d   : > { %v4619_v24 = vadd.f32 %v4618_v12, %v4528_v22 }
 0x73e   : > { %v8743_v26 = vpop.f32.mrf.mxu0 }
 0x73f   : > { %v5403_v26 = vld [vmem:[#allocation5 + $0x8] sm:$0x3] }
 0x751   : > { %v4859_v31 = vpop.f32.mrf.mxu1 }
 0x753   : > { %v8802_v32 = vpop.f32.mrf.mxu1 }
 0x755   : > { %v4862_v33 = vpop.f32.mrf.mxu1 }
 0x757   : > { %v8803_v34 = vpop.f32.mrf.mxu1 }
 0x758   : > { %v4729_v36 = vpop.f32.mrf.mxu0 }
 0x759   : > { %v4736_v35 = vadd.f32 %v4729_v36, %v4616_v17 }
 0x75a   : > { %v8782_v37 = vpop.f32.mrf.mxu0 }
 0x75b   : > { %v4866_v38 = vadd.f32 %v4859_v31, %v4736_v35 }
 0x75c   : > { %v4732_v39 = vpop.f32.mrf.mxu0 }
 0x75d   : > { %v4737_v40 = vadd.f32 %v4732_v39, %v4619_v24 }
 0x75e   : > { %v8783_v20 = vpop.f32.mrf.mxu0 }
 0x75f   : > { %v4867_v41 = vadd.f32 %v4862_v33, %v4737_v40  ;;  %v9397_v40 = vld [vmem:[%s11361_s19 + $0xb8] sm:$0xff]  }
 0x771   : > { %v5105_v42 = vpop.f32.mrf.mxu1 }
 0x773   : > { %v8842_v43 = vpop.f32.mrf.mxu1 }
 0x775   : > { %v5108_v44 = vpop.f32.mrf.mxu1 }
 0x777   : > { %v8843_v45 = vpop.f32.mrf.mxu1 }
 0x778   : > { %v4975_v29 = vpop.f32.mrf.mxu0 }
 0x779   : > { %v4982_v48 = vadd.f32 %v4975_v29, %v4866_v38  ;;  %v9399_v29 = vld [vmem:[%s11361_s19 + $0xf8] sm:$0xff]  }
 0x77a   : > { %v8822_v46 = vpop.f32.mrf.mxu0 }
 0x77b   : > { %v5112_v52 = vadd.f32 %v5105_v42, %v4982_v48  ;;  %v9400_v46 = vld [vmem:[%s11361_s19 + $0xb0] sm:$0xff]   ;;  %v9403_v48 = vld [vmem:[%s11361_s19 + $0xe8] sm:$0xff]  }
 0x77c   : > { %v4978_v4 = vpop.f32.mrf.mxu0 }
 0x77d   : > { %v4983_v50 = vadd.f32 %v4978_v4, %v4867_v41 }
 0x77e   : > { %v8823_v47 = vpop.f32.mrf.mxu0 }
 0x77f   : > { %v5113_v59 = vadd.f32 %v5108_v44, %v4983_v50  ;;  %v9401_v47 = vld [vmem:[%s11361_s19 + $0xf0] sm:$0xff]   ;;  %v9406_v50 = vld [vmem:[%s11361_s19 + $0x98] sm:$0xff]  }
 0x791   : > { %v5351_v28 = vpop.f32.mrf.mxu1 }
 0x793   : > { %v8882_v49 = vpop.f32.mrf.mxu1 }
 0x794   : > { %v9404_v49 = vld [vmem:[%s11361_s19 + $0xa0] sm:$0xff]  }
 0x795   : > { %v5354_v30 = vpop.f32.mrf.mxu1 }
 0x797   : > { %v8883_v51 = vpop.f32.mrf.mxu1 }
 0x798   : > { %v5221_v53 = vpop.f32.mrf.mxu0 }
 0x799   : > { %v5228_v54 = vadd.f32 %v5221_v53, %v5112_v52  ;;  %v9407_v52 = vld [vmem:[%s11361_s19 + $0xd8] sm:$0xff]   ;;  %v9408_v53 = vld [vmem:[%s11361_s19 + $0x90] sm:$0xff]  }
 0x79a   : > { %v8862_v56 = vpop.f32.mrf.mxu0 }
 0x79b   : > { %v5358_v58 = vadd.f32 %v5351_v28, %v5228_v54  ;;  %v9402_v28 = vld [vmem:[%s11361_s19 + $0xa8] sm:$0xff]  }
 0x79c   : > { %v5224_v60 = vpop.f32.mrf.mxu0 }
 0x79d   : > { %v5367_v61 = vadd.f32 %v7676_v55, %v5358_v58  ;;  %v5229_v62 = vadd.f32 %v5224_v60, %v5113_v59  ;;  %v9409_v59 = vld [vmem:[%s11361_s19 + $0xd0] sm:$0xff]   ;;  %v9410_v60 = vld [vmem:[%s11361_s19 + $0x88] sm:$0xff]  }
 0x79e   : > { %v8863_v63 = vpop.f32.mrf.mxu0 }
 0x79f   : > { %v5369_v0 = vmax.f32 %v5367_v61, 0.0  ;;  %v5359_v2 = vadd.f32 %v5354_v30, %v5229_v62  ;;  %v9405_v30 = vld [vmem:[%s11361_s19 + $0xe0] sm:$0xff]  }
 0x7a1   : > { %v7945_v3 = vpack.c.bf16 %v5369_v0, %v5369_v0  ;;  %v5368_v57 = vadd.f32 %v7676_v55, %v5359_v2  ;;  %v9411_v2 = vld [vmem:[%s11361_s19 + $0xc8] sm:$0xff]  }
 0x7a3   : > { %v5378_v7 = vshrl.u32 %v7945_v3, 16  ;;  %v5381_v9 = vshll.u32 %v7945_v3, 16  ;;  %v5370_v5 = vmax.f32 %v5368_v57, 0.0  ;;  %v9412_v3 = vld [vmem:[%s11361_s19 + $0x80] sm:$0xff]  }
 0x7a5   : > { %v5380_v10 = vrot.slane %v5378_v7, 6  ;;  %v5383_v11 = vrot.slane %v5381_v9, 7  ;;  %v7946_v12 = vpack.c.bf16 %v5370_v5, %v5370_v5 }
 0x7a7   : > { %v5384_v13 = vor.u32 %v5383_v11, %v5380_v10  ;;  %v5387_v15 = vshrl.u32 %v7946_v12, 16  ;;  %v5390_v14 = vshll.u32 %v7946_v12, 16  ;;  %v9413_v10 = vld [vmem:[%s11361_s19 + $0xc0] sm:$0xff]   ;;  %v9415_v11 = vld [vmem:[%s11361_s19 + $0x138] sm:$0xff]  }
 0x7a9   : > { %v5400_v17 = vsel %vm9678_vm7, %v5384_v13, %v5399_v16  ;;  %v5389_v18 = vrot.slane %v5387_v15, 6  ;;  %v5392_v19 = vrot.slane %v5390_v14, 7  ;;  %v5385_v22 = vrot.slane %v5384_v13, 4  ;;  %v9417_v14 = vld [vmem:[%s11361_s19 + $0x130] sm:$0xff]  }
 0x7aa   : > { %5401 = vst [vmem:[#allocation5] sm:$0xe] %v5400_v17  ;;  %v9418_v17 = vld [vmem:[%s11361_s19 + $0x128] sm:$0xff]  }
 0x7ab   : > { %v5393_v23 = vor.u32 %v5392_v19, %v5389_v18  ;;  %v9419_v18 = vld [vmem:[%s11361_s19 + $0x120] sm:$0xff]   ;;  %v9420_v19 = vld [vmem:[%s11361_s19 + $0x118] sm:$0xff]  }
 0x7ad   : > { %v5394_v24 = vsel %vm9711_vm12, %v5385_v22, %v5393_v23  ;;  %v5395_v25 = vrot.slane %v5393_v23, 4  ;;  %v9421_v23 = vld [vmem:[%s11361_s19 + $0x110] sm:$0xff]  }
 0x7ae   : > { %5402 = vst [vmem:[#allocation5 + $0x4] sm:$0xf] %v5394_v24 }
 0x7af   : > { %v5404_v27 = vsel %vm9669_vm5, %v5395_v25, %v5403_v26 }
 0x7b0   : > { %5405 = vst [vmem:[#allocation5 + $0x8] sm:$0x3] %v5404_v27 }
 0x7b1   : > { %v5425_v32 = vld [vmem:[#allocation5] sm:$0xe] }
 0x7b2   : > { %v5406_v33 = vld [vmem:[#allocation5] sm:$0xf] }
 0x7b3   : > { %v5779_v57 = vld [vmem:[#allocation5] sm:$0xc] }
 0x7b5   : > { %v10944_v31 = vld [vmem:[#allocation5 + $0x4] sm:$0xf] }
 0x7b6   : > { %v7695_v34 = vcombine.low %v5425_v32, %v10944_v31  ;;  %v7705_v36 = vcombine.low %v5406_v33, %v10944_v31  ;;  %v7755_v7 = vcombine.low %v5779_v57, %v10944_v31  ;;  %v9422_v31 = vld [vmem:[%s11361_s19 + $0x108] sm:$0xff]  }
 0x7b7   : > { %v9396_v35 = vld [vmem:[#allocation5 + $0x8] ss:$0 sps:$4 sm:$0x11]  }
 0x7b8   : > { %v5451_v37 = vrot.slane %v7695_v34, 1  ;;  %v5550_v38 = vshll.u32 %v7705_v36, 16  ;;  %v5452_v39 = vrot.slane %v9396_v35, 1  ;;  %v5555_v20 = vshll.u32 %v9396_v35, 16  ;;  %v9423_v35 = vld [vmem:[%s11361_s19 + $0x100] sm:$0xff]  }
 0x7b9   : > { %v5548_v41 = vshrl.u32 %v7705_v36, 16  ;;  %v9414_v51 = vld [vmem:[#allocation5 + $0x8] ss:$0 sps:$4 sm:$0x33]   ;;  %v5671_v54 = vshrl.u32 %v7695_v34, 16  ;;  %v5674_v55 = vshll.u32 %v7695_v34, 16 }
 0x7ba   : > { %v5552_v42 = vrot.slane %v5550_v38, 1  ;;  %v5453_v43 = vsel %vm1053_vm8, %v5451_v37, %v5452_v39  ;;  %v5557_v44 = vrot.slane %v5555_v20, 1  ;;  %v5679_v56 = vshrl.u32 %v9414_v51, 16  ;;  %v9424_v22 = vld [vmem:[#allocation5 + $0x8] ss:$0 sps:$4 sm:$0x77]  }
 0x7bb   : > { %8901 = vmatmul.mubr.bf16.vlgmr.msra.gmra.mxu0 %v5453_v43  ;;  %v5682_v58 = vshll.u32 %v9414_v51, 16  ;;  %v5673_v61 = vrot.slane %v5671_v54, 1  ;;  %v5676_v62 = vrot.slane %v5674_v55, 2  ;;  %v5800_v12 = vrot.slane %v7755_v7, 2  ;;  %v9426_v20 = vld [vmem:[%s11363_s21 + $0x78] sm:$0xff]   ;;  %v9429_v43 = vld [vmem:[%s11363_s21 + $0x28] sm:$0xff]  }
 0x7bc   : > { %v5553_v45 = vor.u32 %v5552_v42, %v5548_v41  ;;  %8925 = vmatpush3.bf16.msra.mxu0 %v9397_v40  ;;  %8940 = vmatprep.mubr.msk.bf16.mxu0 %vm9500_vm3, %v9499_v1  ;;  %v5681_v63 = vrot.slane %v5679_v56, 1  ;;  %v5801_v13 = vrot.slane %v9414_v51, 2  ;;  %v5917_v24 = vshrl.u32 %v7755_v7, 16  ;;  %v9425_v40 = vld [vmem:[%s11363_s21 + $0x38] sm:$0xff]   ;;  %v9427_v41 = vld [vmem:[%s11363_s21 + $0x30] sm:$0xff]  }
 0x7bd   : > { %8926 = vmatprep.subr.bf16.mxu0 %v9499_v1  ;;  %v5684_v0 = vrot.slane %v5682_v58, 2  ;;  %v5677_v9 = vor.u32 %v5676_v62, %v5673_v61  ;;  %v5920_v25 = vshll.u32 %v7755_v7, 16  ;;  %v5925_v26 = vshrl.u32 %v9424_v22, 16  ;;  %v9428_v42 = vld [vmem:[%s11363_s21 + $0x70] sm:$0xff]  }
 0x7be   : > { %v5558_v4 = vsel %vm939_vm1, %v5553_v45, %v5557_v44  ;;  %v5802_v16 = vsel %vm1185_vm10, %v5800_v12, %v5801_v13  ;;  %v5928_v27 = vshll.u32 %v9424_v22, 16  ;;  %v5919_v32 = vrot.slane %v5917_v24, 2  ;;  %v9430_v44 = vld [vmem:[%s11363_s21 + $0x68] sm:$0xff]   ;;  %v9431_v45 = vld [vmem:[%s11363_s21 + $0x20] sm:$0xff]  }
 0x7bf   : > { %8921 = vmatmul.mubr.bf16.vlgmr.msra.gmra.mxu1 %v5558_v4  ;;  %v5685_v5 = vor.u32 %v5684_v0, %v5681_v63  ;;  %v5922_v33 = vrot.slane %v5920_v25, 3  ;;  %v5927_v34 = vrot.slane %v5925_v26, 2  ;;  %v9434_v4 = vld [vmem:[%s11363_s21 + $0x58] sm:$0xff]   ;;  %v7789_v13 = vld [vmem:[%s11362_s20] ss:$0 sm:$0xff] }
 0x7c0   : > { %8945 = vmatpush3.bf16.msra.mxu1 %v9399_v29  ;;  %8960 = vmatprep.mubr.msk.bf16.mxu1 %vm9500_vm3, %v9499_v1  ;;  %v5930_v36 = vrot.slane %v5928_v27, 3  ;;  %v9432_v29 = vld [vmem:[%s11363_s21 + $0x60] sm:$0xff]  }
 0x7c1   : > { %8927 = vmatpush3.bf16.msra.mxu0 %v9400_v46  ;;  %8946 = vmatprep.subr.bf16.mxu1 %v9499_v1  ;;  %v5686_v15 = vsel %vm1112_vm2, %v5677_v9, %v5685_v5  ;;  %v5923_v37 = vor.u32 %v5922_v33, %v5919_v32  ;;  %v9433_v46 = vld [vmem:[%s11363_s21 + $0x18] sm:$0xff]  }
 0x7c2   : > { %8928 = vmatprep.subr.bf16.mxu0 %v9499_v1  ;;  %v5931_v38 = vor.u32 %v5930_v36, %v5927_v34 }
 0x7c4   : > { %8947 = vmatpush3.bf16.msra.mxu1 %v9401_v47  ;;  %v5932_v39 = vsel %vm1244_vm9, %v5923_v37, %v5931_v38  ;;  %v9435_v47 = vld [vmem:[%s11363_s21 + $0x10] sm:$0xff]   ;;  %v6064_v38 = vld [vmem:[#allocation2] sm:$0xe] }
 0x7c5   : > { %8929 = vmatpush3.bf16.msra.mxu0 %v9402_v28  ;;  %8948 = vmatprep.subr.bf16.mxu1 %v9499_v1  ;;  %v9436_v28 = vld [vmem:[%s11363_s21 + $0x50] sm:$0xff]  }
 0x7c6   : > { %8930 = vmatprep.subr.bf16.mxu0 %v9499_v1 }
 0x7c8   : > { %8949 = vmatpush3.bf16.msra.mxu1 %v9403_v48  ;;  %v9437_v48 = vld [vmem:[%s11363_s21 + $0x8] sm:$0xff]  }
 0x7c9   : > { %8931 = vmatpush3.bf16.msra.mxu0 %v9404_v49  ;;  %8950 = vmatprep.subr.bf16.mxu1 %v9499_v1  ;;  %v9438_v49 = vld [vmem:[%s11363_s21 + $0x48] sm:$0xff]  }
 0x7ca   : > { %8932 = vmatprep.subr.bf16.mxu0 %v9499_v1 }
 0x7cc   : > { %8951 = vmatpush3.bf16.msra.mxu1 %v9405_v30  ;;  %v9439_v30 = vld [vmem:[%s11363_s21] sm:$0xff]  }
 0x7cd   : > { %8933 = vmatpush3.bf16.msra.mxu0 %v9406_v50  ;;  %8952 = vmatprep.subr.bf16.mxu1 %v9499_v1  ;;  %v9440_v50 = vld [vmem:[%s11363_s21 + $0x40] sm:$0xff]  }
 0x7ce   : > { %8934 = vmatprep.subr.bf16.mxu0 %v9499_v1 }
 0x7d0   : > { %8953 = vmatpush3.bf16.msra.mxu1 %v9407_v52 }
 0x7d1   : > { %8935 = vmatpush3.bf16.msra.mxu0 %v9408_v53  ;;  %8954 = vmatprep.subr.bf16.mxu1 %v9499_v1 }
 0x7d2   : > { %8936 = vmatprep.subr.bf16.mxu0 %v9499_v1 }
 0x7d4   : > { %8955 = vmatpush3.bf16.msra.mxu1 %v9409_v59 }
 0x7d5   : > { %8937 = vmatpush3.bf16.msra.mxu0 %v9410_v60  ;;  %8956 = vmatprep.subr.bf16.mxu1 %v9499_v1 }
 0x7d6   : > { %8938 = vmatprep.subr.bf16.mxu0 %v9499_v1 }
 0x7d8   : > { %8957 = vmatpush3.bf16.msra.mxu1 %v9411_v2 }
 0x7d9   : > { %8939 = vmatpush3.bf16.msra.mxu0 %v9412_v3  ;;  %8958 = vmatprep.subr.bf16.mxu1 %v9499_v1 }
 0x7da   : > { %8964 = vmatprep.subr.bf16.mxu0 %v9499_v1 }
 0x7dc   : > { %8959 = vmatpush3.bf16.msra.mxu1 %v9413_v10  ;;  %8941 = vmatmul.mubr.bf16.vlgmr.msra.gmra.mxu0 %v5686_v15 }
 0x7dd   : > { %8965 = vmatpush3.bf16.msra.mxu0 %v9415_v11  ;;  %8980 = vmatprep.mubr.msk.bf16.mxu0 %vm9500_vm3, %v9499_v1 }
 0x7de   : > { %8966 = vmatprep.subr.bf16.mxu0 %v9499_v1  ;;  %8984 = vmatprep.subr.bf16.mxu1 %v9499_v1 }
 0x7df   : > { %8961 = vmatmul.mubr.bf16.vlgmr.msra.gmra.mxu1 %v5802_v16 }
 0x7e0   : > { %9000 = vmatprep.mubr.msk.bf16.mxu1 %vm9500_vm3, %v9499_v1  ;;  %8985 = vmatpush3.bf16.msra.mxu1 %v9426_v20 }
 0x7e1   : > { %8967 = vmatpush3.bf16.msra.mxu0 %v9417_v14  ;;  %8986 = vmatprep.subr.bf16.mxu1 %v9499_v1 }
 0x7e2   : > { %8968 = vmatprep.subr.bf16.mxu0 %v9499_v1 }
 0x7e4   : > { %8987 = vmatpush3.bf16.msra.mxu1 %v9428_v42 }
 0x7e5   : > { %8969 = vmatpush3.bf16.msra.mxu0 %v9418_v17  ;;  %8988 = vmatprep.subr.bf16.mxu1 %v9499_v1 }
 0x7e6   : > { %8970 = vmatprep.subr.bf16.mxu0 %v9499_v1 }
 0x7e8   : > { %8989 = vmatpush3.bf16.msra.mxu1 %v9430_v44 }
 0x7e9   : > { %8971 = vmatpush3.bf16.msra.mxu0 %v9419_v18  ;;  %8990 = vmatprep.subr.bf16.mxu1 %v9499_v1 }
 0x7ea   : > { %8972 = vmatprep.subr.bf16.mxu0 %v9499_v1 }
 0x7ec   : > { %8991 = vmatpush3.bf16.msra.mxu1 %v9432_v29 }
 0x7ed   : > { %8973 = vmatpush3.bf16.msra.mxu0 %v9420_v19  ;;  %8992 = vmatprep.subr.bf16.mxu1 %v9499_v1 }
 0x7ee   : > { %8974 = vmatprep.subr.bf16.mxu0 %v9499_v1 }
 0x7f0   : > { %8993 = vmatpush3.bf16.msra.mxu1 %v9434_v4 }
 0x7f1   : > { %8975 = vmatpush3.bf16.msra.mxu0 %v9421_v23  ;;  %8994 = vmatprep.subr.bf16.mxu1 %v9499_v1 }
 0x7f2   : > { %8976 = vmatprep.subr.bf16.mxu0 %v9499_v1 }
 0x7f4   : > { %8995 = vmatpush3.bf16.msra.mxu1 %v9436_v28 }
 0x7f5   : > { %8977 = vmatpush3.bf16.msra.mxu0 %v9422_v31  ;;  %8996 = vmatprep.subr.bf16.mxu1 %v9499_v1 }
 0x7f6   : > { %8978 = vmatprep.subr.bf16.mxu0 %v9499_v1 }
 0x7f8   : > { %8997 = vmatpush3.bf16.msra.mxu1 %v9438_v49 }
 0x7f9   : > { %8979 = vmatpush3.bf16.msra.mxu0 %v9423_v35  ;;  %8998 = vmatprep.subr.bf16.mxu1 %v9499_v1 }
 0x7fa   : > { %9004 = vmatprep.subr.bf16.mxu0 %v9499_v1 }
 0x7fc   : > { %8981 = vmatmul.mubr.bf16.vlgmr.msra.gmra.mxu0 %v5932_v39  ;;  %8999 = vmatpush3.bf16.msra.mxu1 %v9440_v50  ;;  %v9443_v50 = vld [vmem:[%s11365_s23 + $0x38] sm:$0xff]  }
 0x7fd   : > { %9020 = vmatprep.mubr.msk.bf16.mxu0 %vm9500_vm3, %v9499_v1  ;;  %9005 = vmatpush3.bf16.msra.mxu0 %v9425_v40 }
 0x7fe   : > { %9006 = vmatprep.subr.bf16.mxu0 %v9499_v1  ;;  %9024 = vmatprep.subr.bf16.mxu1 %v9499_v1 }
 0x801   : > { %9007 = vmatpush3.bf16.msra.mxu0 %v9427_v41 }
 0x802   : > { %9008 = vmatprep.subr.bf16.mxu0 %v9499_v1 }
 0x805   : > { %9009 = vmatpush3.bf16.msra.mxu0 %v9429_v43 }
 0x806   : > { %9010 = vmatprep.subr.bf16.mxu0 %v9499_v1 }
 0x809   : > { %9011 = vmatpush3.bf16.msra.mxu0 %v9431_v45  ;;  %v6068_v45 = vld [vmem:[#allocation2 + $0x8] sm:$0x3] }
 0x80a   : > { %9012 = vmatprep.subr.bf16.mxu0 %v9499_v1 }
 0x80d   : > { %9013 = vmatpush3.bf16.msra.mxu0 %v9433_v46 }
 0x80e   : > { %9014 = vmatprep.subr.bf16.mxu0 %v9499_v1 }
 0x811   : > { %9015 = vmatpush3.bf16.msra.mxu0 %v9435_v47 }
 0x812   : > { %9016 = vmatprep.subr.bf16.mxu0 %v9499_v1 }
 0x815   : > { %9017 = vmatpush3.bf16.msra.mxu0 %v9437_v48 }
 0x816   : > { %9018 = vmatprep.subr.bf16.mxu0 %v9499_v1 }
 0x819   : > { %9019 = vmatpush3.bf16.msra.mxu0 %v9439_v30 }
 0x81a   : > { %9044 = vmatprep.subr.bf16.mxu0 %v9499_v1 }
 0x87b   : > { %v5537_v51 = vpop.f32.mrf.mxu0 }
 0x87d   : > { %v8902_v52 = vpop.f32.mrf.mxu0 }
 0x87f   : > { %v5642_v53 = vpop.f32.mrf.mxu1  ;;  %v5540_v54 = vpop.f32.mrf.mxu0 }
 0x880   : > { %v5643_v7 = vadd.f32 %v5642_v53, %v5537_v51 }
 0x881   : > { %v8922_v55 = vpop.f32.mrf.mxu1  ;;  %v8903_v56 = vpop.f32.mrf.mxu0 }
 0x883   : > { %v5645_v58 = vpop.f32.mrf.mxu1 }
 0x884   : > { %v5646_v5 = vadd.f32 %v5645_v58, %v5540_v54 }
 0x885   : > { %v8923_v59 = vpop.f32.mrf.mxu1 }
 0x89c   : > { %v5770_v60 = vpop.f32.mrf.mxu0 }
 0x89d   : > { %v5777_v9 = vadd.f32 %v5770_v60, %v5643_v7  ;;  %v9450_v7 = vld [vmem:[%s11365_s23 + $0x20] sm:$0xff]  }
 0x89e   : > { %v8942_v61 = vpop.f32.mrf.mxu0 }
 0x89f   : > { %v5886_v62 = vpop.f32.mrf.mxu1 }
 0x8a0   : > { %v5773_v63 = vpop.f32.mrf.mxu0  ;;  %v5893_v10 = vadd.f32 %v5886_v62, %v5777_v9  ;;  %v9446_v62 = vld [vmem:[%s11365_s23 + $0x30] sm:$0xff]   ;;  %v9449_v9 = vld [vmem:[%s11363_s21 + $0xa8] sm:$0xff]  }
 0x8a1   : > { %v8962_v0 = vpop.f32.mrf.mxu1  ;;  %v5778_v11 = vadd.f32 %v5773_v63, %v5646_v5  ;;  %v9452_v5 = vld [vmem:[%s11365_s23 + $0x18] sm:$0xff]  }
 0x8a2   : > { %v8943_v2 = vpop.f32.mrf.mxu0  ;;  %v9445_v0 = vld [vmem:[%s11363_s21 + $0xb8] sm:$0xff]  }
 0x8a3   : > { %v5889_v3 = vpop.f32.mrf.mxu1 }
 0x8a4   : > { %v5894_v16 = vadd.f32 %v5889_v3, %v5778_v11  ;;  %v9448_v3 = vld [vmem:[%s11365_s23 + $0x28] sm:$0xff]  }
 0x8a5   : > { %v8963_v57 = vpop.f32.mrf.mxu1  ;;  %v9460_v11 = vld [vmem:[#allocation4 + $0x8] ss:$0 sps:$4 sm:$0x33]  }
 0x8a6   : > { %v9447_v57 = vld [vmem:[%s11363_s21 + $0xb0] sm:$0xff]  }
 0x8bc   : > { %v6016_v12 = vpop.f32.mrf.mxu0 }
 0x8bd   : > { %v6023_v15 = vadd.f32 %v6016_v12, %v5893_v10  ;;  %v9451_v10 = vld [vmem:[%s11363_s21 + $0xa0] sm:$0xff]   ;;  %v9454_v12 = vld [vmem:[%s11365_s23 + $0x10] sm:$0xff]  }
 0x8be   : > { %v8982_v14 = vpop.f32.mrf.mxu0 }
 0x8bf   : > { %v6032_v17 = vadd.f32 %v7789_v13, %v6023_v15  ;;  %v9453_v15 = vld [vmem:[%s11363_s21 + $0x98] sm:$0xff]   ;;  %v6489_v14 = vshrl.u32 %v9460_v11, 16 }
 0x8c0   : > { %v6019_v18 = vpop.f32.mrf.mxu0 }
 0x8c1   : > { %v6034_v19 = vmax.f32 %v6032_v17, 0.0  ;;  %v6024_v22 = vadd.f32 %v6019_v18, %v5894_v16  ;;  %v6492_v16 = vshll.u32 %v9460_v11, 16  ;;  %v9456_v17 = vld [vmem:[%s11365_s23 + $0x8] sm:$0xff]  }
 0x8c2   : > { %v8983_v23 = vpop.f32.mrf.mxu0 }
 0x8c3   : > { %v7947_v24 = vpack.c.bf16 %v6034_v19, %v6034_v19  ;;  %v6033_v25 = vadd.f32 %v7789_v13, %v6024_v22  ;;  %v9459_v13 = vld [vmem:[#allocation4] sm:$0xfe]   ;;  %v9455_v22 = vld [vmem:[%s11363_s21 + $0x90] sm:$0xff]   ;;  %v6491_v23 = vrot.slane %v6489_v14, 1 }
 0x8c4   : > { %v6481_v18 = vshrl.u32 %v9459_v13, 16  ;;  %v6484_v19 = vshll.u32 %v9459_v13, 16 }
 0x8c5   : > { %v6043_v26 = vshrl.u32 %v7947_v24, 16  ;;  %v6046_v27 = vshll.u32 %v7947_v24, 16  ;;  %v6035_v31 = vmax.f32 %v6033_v25, 0.0  ;;  %v6494_v24 = vrot.slane %v6492_v16, 2  ;;  %v9458_v25 = vld [vmem:[%s11365_s23] sm:$0xff]  }
 0x8c7   : > { %v6045_v32 = vrot.slane %v6043_v26, 6  ;;  %v6048_v33 = vrot.slane %v6046_v27, 7  ;;  %v7948_v34 = vpack.c.bf16 %v6035_v31, %v6035_v31  ;;  %v6483_v26 = vrot.slane %v6481_v18, 1  ;;  %v9457_v31 = vld [vmem:[%s11363_s21 + $0x88] sm:$0xff]  }
 0x8c8   : > { %v6486_v27 = vrot.slane %v6484_v19, 2 }
 0x8c9   : > { %v6049_v36 = vor.u32 %v6048_v33, %v6045_v32  ;;  %v6052_v35 = vshrl.u32 %v7948_v34, 16  ;;  %v6055_v37 = vshll.u32 %v7948_v34, 16  ;;  %v6495_v32 = vor.u32 %v6494_v24, %v6491_v23 }
 0x8cb   : > { %v6065_v39 = vsel %vm9678_vm7, %v6049_v36, %v6064_v38  ;;  %v6054_v40 = vrot.slane %v6052_v35, 6  ;;  %v6057_v20 = vrot.slane %v6055_v37, 7  ;;  %v6050_v41 = vrot.slane %v6049_v36, 4  ;;  %v9461_v35 = vld [vmem:[%s11363_s21 + $0x80] sm:$0xff]  }
 0x8cc   : > { %6066 = vst [vmem:[#allocation2] sm:$0xe] %v6065_v39  ;;  %v6487_v36 = vor.u32 %v6486_v27, %v6483_v26 }
 0x8cd   : > { %v6058_v42 = vor.u32 %v6057_v20, %v6054_v40  ;;  %v9463_v20 = vld [vmem:[%s11367_s25 + $0x38] sm:$0xff]  }
 0x8ce   : > { %v6496_v37 = vsel %vm1112_vm2, %v6487_v36, %v6495_v32 }
 0x8cf   : > { %v6059_v43 = vsel %vm9711_vm12, %v6050_v41, %v6058_v42  ;;  %v6060_v44 = vrot.slane %v6058_v42, 4  ;;  %v9464_v41 = vld [vmem:[%s11367_s25 + $0x78] sm:$0xff]   ;;  %v9465_v42 = vld [vmem:[%s11367_s25 + $0x30] sm:$0xff]  }
 0x8d0   : > { %6067 = vst [vmem:[#allocation2 + $0x4] sm:$0xf] %v6059_v43  ;;  %v9466_v43 = vld [vmem:[%s11367_s25 + $0x70] sm:$0xff]  }
 0x8d1   : > { %v6069_v29 = vsel %vm9669_vm5, %v6060_v44, %v6068_v45  ;;  %v9467_v44 = vld [vmem:[%s11367_s25 + $0x28] sm:$0xff]  }
 0x8d2   : > { %6070 = vst [vmem:[#allocation2 + $0x8] sm:$0x3] %v6069_v29  ;;  %v9468_v45 = vld [vmem:[%s11367_s25 + $0x68] sm:$0xff]   ;;  %v9469_v29 = vld [vmem:[%s11367_s25 + $0x20] sm:$0xff]  }
 0x8d3   : > { %v6071_v46 = vld [vmem:[#allocation2] sm:$0xe] }
 0x8d4   : > { %v6319_v33 = vld [vmem:[#allocation2] sm:$0xc] }
 0x8d7   : > { %v11133_v4 = vld [vmem:[#allocation2 + $0x4] sm:$0xf] }
 0x8d8   : > { %v7808_v47 = vcombine.low %v6071_v46, %v11133_v4  ;;  %v7843_v34 = vcombine.low %v6319_v33, %v11133_v4  ;;  %v9470_v46 = vld [vmem:[%s11367_s25 + $0x60] sm:$0xff]   ;;  %v9471_v4 = vld [vmem:[%s11367_s25 + $0x18] sm:$0xff]  }
 0x8d9   : > { %v9442_v28 = vld [vmem:[#allocation2 + $0x8] ss:$0 sps:$4 sm:$0x11]  }
 0x8da   : > { %v6226_v48 = vrot.slane %v7808_v47, 1  ;;  %v11136_v49 = vld [vmem:[#allocation2 + $0x8] ss:$0 sps:$4 sm:$0x33]   ;;  %v6227_v30 = vrot.slane %v9442_v28, 1  ;;  %v6117_v51 = vshrl.u32 %v7808_v47, 16 }
 0x8db   : > { %v6120_v52 = vshll.u32 %v7808_v47, 16  ;;  %v6125_v53 = vshrl.u32 %v11136_v49, 16  ;;  %v6128_v54 = vshll.u32 %v11136_v49, 16  ;;  %v6340_v38 = vrot.slane %v7843_v34, 2  ;;  %v9472_v47 = vld [vmem:[%s11367_s25 + $0x58] sm:$0xff]   ;;  %v9473_v28 = vld [vmem:[%s11367_s25 + $0x10] sm:$0xff]  }
 0x8dc   : > { %v6228_v55 = vsel %vm1053_vm8, %v6226_v48, %v6227_v30  ;;  %v6119_v56 = vrot.slane %v6117_v51, 1  ;;  %v6341_v39 = vrot.slane %v11136_v49, 2  ;;  %v9474_v48 = vld [vmem:[%s11367_s25 + $0x50] sm:$0xff]   ;;  %v9475_v49 = vld [vmem:[%s11367_s25 + $0x8] sm:$0xff]   ;;  %v9478_v51 = vld [vmem:[%s11367_s25 + $0x40] sm:$0xff]  }
 0x8dd   : > { %v6122_v58 = vrot.slane %v6120_v52, 2  ;;  %9021 = vmatmul.mubr.bf16.vlgmr.msra.gmra.mxu0 %v6228_v55  ;;  %v6127_v59 = vrot.slane %v6125_v53, 1  ;;  %v6130_v60 = vrot.slane %v6128_v54, 2  ;;  %v9476_v30 = vld [vmem:[%s11367_s25 + $0x48] sm:$0xff]  }
 0x8de   : > { %9045 = vmatpush3.bf16.msra.mxu0 %v9443_v50  ;;  %9060 = vmatprep.mubr.msk.bf16.mxu0 %vm9500_vm3, %v9499_v1  ;;  %v6342_v40 = vsel %vm1185_vm10, %v6340_v38, %v6341_v39  ;;  %v9477_v50 = vld [vmem:[%s11367_s25] sm:$0xff]   ;;  %v6619_v38 = vld [vmem:[#allocation3] sm:$0xe] }
 0x8df   : > { %v6123_v61 = vor.u32 %v6122_v58, %v6119_v56  ;;  %9046 = vmatprep.subr.bf16.mxu0 %v9499_v1  ;;  %v6131_v63 = vor.u32 %v6130_v60, %v6127_v59 }
 0x8e1   : > { %v6132_v2 = vsel %vm1112_vm2, %v6123_v61, %v6131_v63 }
 0x8e2   : > { %9001 = vmatmul.mubr.bf16.vlgmr.msra.gmra.mxu1 %v6132_v2  ;;  %9047 = vmatpush3.bf16.msra.mxu0 %v9446_v62 }
 0x8e3   : > { %9025 = vmatpush3.bf16.msra.mxu1 %v9445_v0  ;;  %9048 = vmatprep.subr.bf16.mxu0 %v9499_v1 }
 0x8e4   : > { %9026 = vmatprep.subr.bf16.mxu1 %v9499_v1  ;;  %9040 = vmatprep.mubr.msk.bf16.mxu1 %vm9500_vm3, %v9499_v1 }
 0x8e6   : > { %9049 = vmatpush3.bf16.msra.mxu0 %v9448_v3  ;;  %v7852_v3 = vld [vmem:[%s11364_s22] ss:$0 sm:$0xff] }
 0x8e7   : > { %9027 = vmatpush3.bf16.msra.mxu1 %v9447_v57  ;;  %9050 = vmatprep.subr.bf16.mxu0 %v9499_v1 }
 0x8e8   : > { %9028 = vmatprep.subr.bf16.mxu1 %v9499_v1 }
 0x8ea   : > { %9051 = vmatpush3.bf16.msra.mxu0 %v9450_v7 }
 0x8eb   : > { %9029 = vmatpush3.bf16.msra.mxu1 %v9449_v9  ;;  %9052 = vmatprep.subr.bf16.mxu0 %v9499_v1  ;;  %v7853_v9 = vld [vmem:[%s11366_s24] ss:$0 sm:$0xff] }
 0x8ec   : > { %9030 = vmatprep.subr.bf16.mxu1 %v9499_v1 }
 0x8ee   : > { %9053 = vmatpush3.bf16.msra.mxu0 %v9452_v5 }
 0x8ef   : > { %9031 = vmatpush3.bf16.msra.mxu1 %v9451_v10  ;;  %9054 = vmatprep.subr.bf16.mxu0 %v9499_v1 }
 0x8f0   : > { %9032 = vmatprep.subr.bf16.mxu1 %v9499_v1 }
 0x8f2   : > { %9055 = vmatpush3.bf16.msra.mxu0 %v9454_v12 }
 0x8f3   : > { %9033 = vmatpush3.bf16.msra.mxu1 %v9453_v15  ;;  %9056 = vmatprep.subr.bf16.mxu0 %v9499_v1 }
 0x8f4   : > { %9034 = vmatprep.subr.bf16.mxu1 %v9499_v1 }
 0x8f6   : > { %9057 = vmatpush3.bf16.msra.mxu0 %v9456_v17 }
 0x8f7   : > { %9035 = vmatpush3.bf16.msra.mxu1 %v9455_v22  ;;  %9058 = vmatprep.subr.bf16.mxu0 %v9499_v1 }
 0x8f8   : > { %9036 = vmatprep.subr.bf16.mxu1 %v9499_v1 }
 0x8fa   : > { %9059 = vmatpush3.bf16.msra.mxu0 %v9458_v25 }
 0x8fb   : > { %9037 = vmatpush3.bf16.msra.mxu1 %v9457_v31  ;;  %9084 = vmatprep.subr.bf16.mxu0 %v9499_v1 }
 0x8fc   : > { %9038 = vmatprep.subr.bf16.mxu1 %v9499_v1 }
 0x8fd   : > { %9061 = vmatmul.mubr.bf16.vlgmr.msra.gmra.mxu0 %v6496_v37 }
 0x8fe   : > { %9100 = vmatprep.mubr.msk.bf16.mxu0 %vm9500_vm3, %v9499_v1  ;;  %9085 = vmatpush3.bf16.msra.mxu0 %v9463_v20 }
 0x8ff   : > { %9039 = vmatpush3.bf16.msra.mxu1 %v9461_v35  ;;  %9086 = vmatprep.subr.bf16.mxu0 %v9499_v1 }
 0x900   : > { %9064 = vmatprep.subr.bf16.mxu1 %v9499_v1 }
 0x902   : > { %9041 = vmatmul.mubr.bf16.vlgmr.msra.gmra.mxu1 %v6342_v40  ;;  %9087 = vmatpush3.bf16.msra.mxu0 %v9465_v42 }
 0x903   : > { %9080 = vmatprep.mubr.msk.bf16.mxu1 %vm9500_vm3, %v9499_v1  ;;  %9065 = vmatpush3.bf16.msra.mxu1 %v9464_v41 }
 0x904   : > { %9066 = vmatprep.subr.bf16.mxu1 %v9499_v1  ;;  %9088 = vmatprep.subr.bf16.mxu0 %v9499_v1 }
 0x906   : > { %9089 = vmatpush3.bf16.msra.mxu0 %v9467_v44 }
 0x907   : > { %9067 = vmatpush3.bf16.msra.mxu1 %v9466_v43  ;;  %9090 = vmatprep.subr.bf16.mxu0 %v9499_v1 }
 0x908   : > { %9068 = vmatprep.subr.bf16.mxu1 %v9499_v1 }
 0x90a   : > { %9091 = vmatpush3.bf16.msra.mxu0 %v9469_v29 }
 0x90b   : > { %9069 = vmatpush3.bf16.msra.mxu1 %v9468_v45  ;;  %9092 = vmatprep.subr.bf16.mxu0 %v9499_v1  ;;  %v6623_v45 = vld [vmem:[#allocation3 + $0x8] sm:$0x3] }
 0x90c   : > { %9070 = vmatprep.subr.bf16.mxu1 %v9499_v1 }
 0x90e   : > { %9093 = vmatpush3.bf16.msra.mxu0 %v9471_v4 }
 0x90f   : > { %9071 = vmatpush3.bf16.msra.mxu1 %v9470_v46  ;;  %9094 = vmatprep.subr.bf16.mxu0 %v9499_v1 }
 0x910   : > { %9072 = vmatprep.subr.bf16.mxu1 %v9499_v1 }
 0x912   : > { %9095 = vmatpush3.bf16.msra.mxu0 %v9473_v28 }
 0x913   : > { %9073 = vmatpush3.bf16.msra.mxu1 %v9472_v47  ;;  %9096 = vmatprep.subr.bf16.mxu0 %v9499_v1 }
 0x914   : > { %9074 = vmatprep.subr.bf16.mxu1 %v9499_v1 }
 0x916   : > { %9097 = vmatpush3.bf16.msra.mxu0 %v9475_v49 }
 0x917   : > { %9075 = vmatpush3.bf16.msra.mxu1 %v9474_v48  ;;  %9098 = vmatprep.subr.bf16.mxu0 %v9499_v1 }
 0x918   : > { %9076 = vmatprep.subr.bf16.mxu1 %v9499_v1 }
 0x91a   : > { %9099 = vmatpush3.bf16.msra.mxu0 %v9477_v50 }
 0x91b   : > { %9077 = vmatpush3.bf16.msra.mxu1 %v9476_v30 }
 0x91c   : > { %9078 = vmatprep.subr.bf16.mxu1 %v9499_v1 }
 0x91f   : > { %9079 = vmatpush3.bf16.msra.mxu1 %v9478_v51 }
 0x920   : > { %9104 = vmatprep.subr.bf16.mxu1 %v9499_v1 }
 0x99d   : > { %v6312_v52 = vpop.f32.mrf.mxu0 }
 0x99f   : > { %v9022_v53 = vpop.f32.mrf.mxu0 }
 0x9a1   : > { %v6315_v54 = vpop.f32.mrf.mxu0 }
 0x9a2   : > { %v6216_v55 = vpop.f32.mrf.mxu1 }
 0x9a3   : > { %v9023_v56 = vpop.f32.mrf.mxu0  ;;  %v6313_v63 = vadd.f32 %v6312_v52, %v6216_v55 }
 0x9a4   : > { %v9002_v58 = vpop.f32.mrf.mxu1 }
 0x9a6   : > { %v6219_v59 = vpop.f32.mrf.mxu1 }
 0x9a7   : > { %v6316_v10 = vadd.f32 %v6315_v54, %v6219_v59  ;;  %v9482_v59 = vld [vmem:[%s11367_s25 + $0xb8] sm:$0xff]  }
 0x9a8   : > { %v9003_v60 = vpop.f32.mrf.mxu1 }
 0x9bd   : > { %v6580_v61 = vpop.f32.mrf.mxu0 }
 0x9be   : > { %v6581_v13 = vadd.f32 %v7853_v9, %v6580_v61  ;;  %v9483_v61 = vld [vmem:[%s11367_s25 + $0xb0] sm:$0xff]  }
 0x9bf   : > { %v9062_v62 = vpop.f32.mrf.mxu0 }
 0x9c0   : > { %v9484_v62 = vld [vmem:[%s11367_s25 + $0xa8] sm:$0xff]  }
 0x9c1   : > { %v6583_v0 = vpop.f32.mrf.mxu0 }
 0x9c2   : > { %v6426_v2 = vpop.f32.mrf.mxu1  ;;  %v6584_v22 = vadd.f32 %v7853_v9, %v6583_v0  ;;  %v9486_v0 = vld [vmem:[%s11367_s25 + $0x98] sm:$0xff]   ;;  %v9489_v9 = vld [vmem:[%s11367_s25 + $0x80] sm:$0xff]  }
 0x9c3   : > { %v6433_v57 = vadd.f32 %v6426_v2, %v6313_v63  ;;  %v9063_v7 = vpop.f32.mrf.mxu0  ;;  %v9485_v63 = vld [vmem:[%s11367_s25 + $0xa0] sm:$0xff]   ;;  %v9487_v2 = vld [vmem:[%s11367_s25 + $0x90] sm:$0xff]  }
 0x9c4   : > { %v9042_v5 = vpop.f32.mrf.mxu1 }
 0x9c5   : > { %v6442_v11 = vadd.f32 %v7852_v3, %v6433_v57 }
 0x9c6   : > { %v6429_v12 = vpop.f32.mrf.mxu1 }
 0x9c7   : > { %v6444_v15 = vmax.f32 %v6442_v11, 0.0  ;;  %v6434_v14 = vadd.f32 %v6429_v12, %v6316_v10 }
 0x9c8   : > { %v9043_v16 = vpop.f32.mrf.mxu1 }
 0x9c9   : > { %v6587_v17 = vadd.f32 %v6581_v13, %v6444_v15  ;;  %v6443_v18 = vadd.f32 %v7852_v3, %v6434_v14  ;;  %v9488_v3 = vld [vmem:[%s11367_s25 + $0x88] sm:$0xff]  }
 0x9cb   : > { %v6589_v19 = vmax.f32 %v6587_v17, 0.0  ;;  %v6445_v23 = vmax.f32 %v6443_v18, 0.0 }
 0x9cd   : > { %v7949_v24 = vpack.c.bf16 %v6589_v19, %v6589_v19  ;;  %v6588_v25 = vadd.f32 %v6584_v22, %v6445_v23 }
 0x9cf   : > { %v6598_v26 = vshrl.u32 %v7949_v24, 16  ;;  %v6601_v27 = vshll.u32 %v7949_v24, 16  ;;  %v6590_v31 = vmax.f32 %v6588_v25, 0.0 }
 0x9d1   : > { %v6600_v32 = vrot.slane %v6598_v26, 6  ;;  %v6603_v33 = vrot.slane %v6601_v27, 7  ;;  %v7950_v34 = vpack.c.bf16 %v6590_v31, %v6590_v31 }
 0x9d3   : > { %v6604_v36 = vor.u32 %v6603_v33, %v6600_v32  ;;  %v6607_v35 = vshrl.u32 %v7950_v34, 16  ;;  %v6610_v37 = vshll.u32 %v7950_v34, 16 }
 0x9d5   : > { %v6620_v39 = vsel %vm9678_vm7, %v6604_v36, %v6619_v38  ;;  %v6609_v40 = vrot.slane %v6607_v35, 6  ;;  %v6612_v20 = vrot.slane %v6610_v37, 7  ;;  %v6605_v41 = vrot.slane %v6604_v36, 4 }
 0x9d6   : > { %6621 = vst [vmem:[#allocation3] sm:$0xe] %v6620_v39 }
 0x9d7   : > { %v6613_v42 = vor.u32 %v6612_v20, %v6609_v40 }
 0x9d9   : > { %v6614_v43 = vsel %vm9711_vm12, %v6605_v41, %v6613_v42  ;;  %v6615_v44 = vrot.slane %v6613_v42, 4 }
 0x9da   : > { %6622 = vst [vmem:[#allocation3 + $0x4] sm:$0xf] %v6614_v43 }
 0x9db   : > { %v6624_v29 = vsel %vm9669_vm5, %v6615_v44, %v6623_v45 }
 0x9dc   : > { %6625 = vst [vmem:[#allocation3 + $0x8] sm:$0x3] %v6624_v29 }
 0x9dd   : > { %v6626_v46 = vld [vmem:[#allocation3] sm:$0xe] }
 0x9de   : > { %v6874_v57 = vld [vmem:[#allocation3] sm:$0xc] }
 0x9e1   : > { %v6627_v4 = vld [vmem:[#allocation3 + $0x4] sm:$0xf] }
 0x9e2   : > { %v7882_v47 = vcombine.low %v6626_v46, %v6627_v4  ;;  %v7917_v7 = vcombine.low %v6874_v57, %v6627_v4 }
 0x9e3   : > { %v9480_v8 = vld [vmem:[#allocation3 + $0x8] ss:$0 sps:$4 sm:$0x11]  }
 0x9e4   : > { %v6781_v28 = vrot.slane %v7882_v47, 1  ;;  %v9481_v48 = vld [vmem:[#allocation3 + $0x8] ss:$0 sps:$4 sm:$0x33]   ;;  %v6782_v49 = vrot.slane %v9480_v8, 1  ;;  %v6672_v30 = vshrl.u32 %v7882_v47, 16 }
 0x9e5   : > { %v6675_v50 = vshll.u32 %v7882_v47, 16  ;;  %v6680_v51 = vshrl.u32 %v9481_v48, 16  ;;  %v6683_v52 = vshll.u32 %v9481_v48, 16  ;;  %v6895_v5 = vrot.slane %v7917_v7, 2 }
 0x9e6   : > { %v6783_v21 = vsel %vm1053_vm8, %v6781_v28, %v6782_v49  ;;  %v6674_v53 = vrot.slane %v6672_v30, 1  ;;  %v6896_v10 = vrot.slane %v9481_v48, 2 }
 0x9e7   : > { %v6677_v54 = vrot.slane %v6675_v50, 2  ;;  %9101 = vmatmul.mubr.bf16.vlgmr.msra.gmra.mxu0 %v6783_v21  ;;  %v6682_v55 = vrot.slane %v6680_v51, 1  ;;  %v6685_v6 = vrot.slane %v6683_v52, 2 }
 0x9e8   : > { %v6897_v11 = vsel %vm1185_vm10, %v6895_v5, %v6896_v10 }
 0x9e9   : > { %v6678_v56 = vor.u32 %v6677_v54, %v6674_v53  ;;  %v6686_v58 = vor.u32 %v6685_v6, %v6682_v55 }
 0x9eb   : > { %v6687_v60 = vsel %vm1112_vm2, %v6678_v56, %v6686_v58 }
 0x9ec   : > { %9081 = vmatmul.mubr.bf16.vlgmr.msra.gmra.mxu1 %v6687_v60 }
 0x9ed   : > { %9105 = vmatpush3.bf16.msra.mxu1 %v9482_v59  ;;  %9120 = vmatprep.mubr.msk.bf16.mxu1 %vm9500_vm3, %v9499_v1  ;;  %vm11424_vm3 = vmmov %vm11413_vm11 }
 0x9ee   : > { %9106 = vmatprep.subr.bf16.mxu1 %v9499_v1  ;;  %vm11425_vm5 = vmmov %vm11424_vm3 }
 0x9f1   : > { %9107 = vmatpush3.bf16.msra.mxu1 %v9483_v61 }
 0x9f2   : > { %9108 = vmatprep.subr.bf16.mxu1 %v9499_v1 }
 0x9f5   : > { %9109 = vmatpush3.bf16.msra.mxu1 %v9484_v62 }
 0x9f6   : > { %9110 = vmatprep.subr.bf16.mxu1 %v9499_v1 }
 0x9f9   : > { %9111 = vmatpush3.bf16.msra.mxu1 %v9485_v63 }
 0x9fa   : > { %9112 = vmatprep.subr.bf16.mxu1 %v9499_v1 }
 0x9fd   : > { %9113 = vmatpush3.bf16.msra.mxu1 %v9486_v0 }
 0x9fe   : > { %9114 = vmatprep.subr.bf16.mxu1 %v9499_v1 }
 0xa01   : > { %9115 = vmatpush3.bf16.msra.mxu1 %v9487_v2 }
 0xa02   : > { %9116 = vmatprep.subr.bf16.mxu1 %v9499_v1 }
 0xa05   : > { %9117 = vmatpush3.bf16.msra.mxu1 %v9488_v3 }
 0xa06   : > { %9118 = vmatprep.subr.bf16.mxu1 %v9499_v1  ;;  %v7926_v1 = vld [vmem:[%s11368_s26] ss:$0 sm:$0xff] }
 0xa09   : > { %9119 = vmatpush3.bf16.msra.mxu1 %v9489_v9 }
 0xa0c   : > { %9121 = vmatmul.mubr.bf16.vlgmr.msra.gmra.mxu1 %v6897_v11 }
 0xaa7   : > { %v6867_v12 = vpop.f32.mrf.mxu0 }
 0xaa9   : > { %v9102_v13 = vpop.f32.mrf.mxu0 }
 0xaab   : > { %v6870_v15 = vpop.f32.mrf.mxu0 }
 0xaac   : > { %v6771_v14 = vpop.f32.mrf.mxu1 }
 0xaad   : > { %v9103_v16 = vpop.f32.mrf.mxu0  ;;  %v6868_v22 = vadd.f32 %v6867_v12, %v6771_v14 }
 0xaae   : > { %v9082_v17 = vpop.f32.mrf.mxu1 }
 0xab0   : > { %v6774_v18 = vpop.f32.mrf.mxu1 }
 0xab1   : > { %v6871_v26 = vadd.f32 %v6870_v15, %v6774_v18 }
 0xab2   : > { %v9083_v19 = vpop.f32.mrf.mxu1 }
 0xacc   : > { %v6981_v23 = vpop.f32.mrf.mxu1 }
 0xacd   : > { %v6988_v24 = vadd.f32 %v6981_v23, %v6868_v22 }
 0xace   : > { %v9122_v25 = vpop.f32.mrf.mxu1 }
 0xacf   : > { %v6997_v27 = vadd.f32 %v7926_v1, %v6988_v24 }
 0xad0   : > { %v6984_v31 = vpop.f32.mrf.mxu1 }
 0xad1   : > { %6999 = vst.msk [vmem:[%s845_s6] sm:$0xff] %vm11424_vm3, %v6997_v27  ;;  %v6989_v32 = vadd.f32 %v6984_v31, %v6871_v26 }
 0xad2   : > { %v9123_v33 = vpop.f32.mrf.mxu1 }
 0xad3   : > { %v6998_v34 = vadd.f32 %v7926_v1, %v6989_v32 }
 0xad5   : > { %7000 = vst.msk [vmem:[%s845_s6 + $0x8] sm:$0xff] %vm11425_vm5, %v6998_v34 }
 0xad6 PF: > { %s38_s8 = sadd.s32 1, %s9497_s8  }
 0xad7   : > { %p35_p4 = scmp.ge.s32.totalorder %s38_s8, 4  }
 0xad9   :  { %37 = sbr.rel (!%p35_p4) target bundleno = 14 (0xe), region = 203 }

</bundles_post_ra>
